<compile_context>
chip_gen: v7x
topology: tpu7x:2x2x1
jax: 0.10.0
libtpu: 0.0.40
codegen_flags: <defaults>
</compile_context>

<pallas_src>
import functools
import math

import jax
import jax.numpy as jnp
from jax.experimental import pallas as pl
from jax.experimental.pallas import tpu as pltpu


# ---------------------------------------------------------------------------
# Pallas kernel: one batch element per grid step, everything fused.
# ---------------------------------------------------------------------------
def _aspp_kernel(x_ref, w1_ref, w3_ref, bb_ref, wf_ref, bias_ref, o_ref, xpad_ref,
                 *, branch_taps, branch_starts, pad_top, pad_left):
    """Refs (all VMEM):
      x_ref    : (1, H, W, C)   bf16 NHWC input tile
      w1_ref   : (C, P)         bf16 folded 1x1-branch weight
      w3_ref   : (T, C, P)      bf16 folded valid-tap weights (branches 2..4, pruned)
      bb_ref   : (4, 1, P)      f32 folded branch biases (branches 1..4)
      wf_ref   : (4*P, OUT)     bf16 final-1x1 weight for branches 1..4
      bias_ref : (1, 1, OUT)    f32 per-batch bias = bn1 bias + GAP-branch term
      o_ref    : (1, H, W, OUT) output tile
      xpad_ref : (Hp, Wp, C)    bf16 scratch: zero-halo padded input
    """
    H, W, C = x_ref.shape[1], x_ref.shape[2], x_ref.shape[3]
    OUT = o_ref.shape[3]
    HW = H * W
    Hp, Wp = xpad_ref.shape[0], xpad_ref.shape[1]
    ph, pw = pad_top, pad_left
    halo_b = Hp - ph - H
    halo_r = Wp - pw - W
    zdt = xpad_ref.dtype

    # --- zero ONLY the halo strips (not the whole scratch), then the center ---
    if ph > 0:
        xpad_ref[:ph, :, :] = jnp.zeros((ph, Wp, C), zdt)
    if halo_b > 0:
        xpad_ref[ph + H:, :, :] = jnp.zeros((halo_b, Wp, C), zdt)
    if pw > 0:
        xpad_ref[ph:ph + H, :pw, :] = jnp.zeros((H, pw, C), zdt)
    if halo_r > 0:
        xpad_ref[ph:ph + H, pw + W:, :] = jnp.zeros((H, halo_r, C), zdt)
    xpad_ref[ph:ph + H, pw:pw + W, :] = x_ref[0]

    # Center window (HW, C), reused by the 1x1 branch and every (0,0) tap.
    xc = x_ref[0].reshape(HW, C)

    # ---- Branch 1: 1x1 conv = one MXU matmul; bias + ReLU in f32 ------------
    acc = jnp.dot(xc, w1_ref[...], preferred_element_type=jnp.float32)
    branch_outs = [jnp.maximum(acc + bb_ref[0], 0.0).astype(wf_ref.dtype)]

    # ---- Branches 2..4: dilated 3x3 = ONE K-packed matmul per branch --------
    # im2col along the contraction dim: (HW, n*C) @ (n*C, P). Taps that read
    # pure padding were dropped at trace time (branch_taps is static).
    for bi, taps in enumerate(branch_taps):
        n = len(taps)
        cols = []
        for dy, dx in taps:
            if dy == 0 and dx == 0:
                cols.append(xc)
            else:
                xs = xpad_ref[ph + dy:ph + dy + H, pw + dx:pw + dx + W, :]
                cols.append(xs.reshape(HW, C))
        slab = cols[0] if n == 1 else jnp.concatenate(cols, axis=-1)
        wk = w3_ref[branch_starts[bi]:branch_starts[bi] + n].reshape(n * C, slab.shape[0] and w1_ref.shape[1])
        acc = jnp.dot(slab, wk, preferred_element_type=jnp.float32)
        branch_outs.append(jnp.maximum(acc + bb_ref[bi + 1], 0.0).astype(wf_ref.dtype))

    # ---- Fused final 1x1 over the (implicit) channel concat -----------------
    cat = jnp.concatenate(branch_outs, axis=-1)                 # (HW, 4P) bf16
    out = jnp.dot(cat, wf_ref[...], preferred_element_type=jnp.float32)
    out = jnp.maximum(out + bias_ref[0], 0.0)                   # GAP + bn1 bias, ReLU

    o_ref[...] = out.reshape(1, H, W, OUT).astype(o_ref.dtype)


# ---------------------------------------------------------------------------
# Wrapper: layout plumbing, BN folding, tap pruning, global-average-pool branch.
# ---------------------------------------------------------------------------
def aspp_pallas(x_nchw, params, dilations=(1, 6, 12, 18), eps=1e-5):
    B, C_in, H, W = x_nchw.shape
    dil3 = tuple(dilations[1:])                  # the three dilated 3x3 branches

    # Static tap pruning (trace-time: H, W, dilations are static): a tap whose
    # shifted window lies entirely outside the input reads only zero padding.
    def tap_alive(dy, dx):
        return (-H < dy < H) and (-W < dx < W)

    branch_taps = tuple(
        tuple((dy, dx) for dy in (-d, 0, d) for dx in (-d, 0, d) if tap_alive(dy, dx))
        for d in dil3)
    halo_h = max([abs(dy) for taps in branch_taps for dy, _ in taps], default=0)
    halo_w = max([abs(dx) for taps in branch_taps for _, dx in taps], default=0)
    pad_top = halo_h                              # H is the leading (untiled) dim
    pad_left = -(-halo_w // 8) * 8                # sublane-align the live center cols
    Hp = pad_top + H + halo_h
    Wp = pad_left + W + halo_w

    def fold(w_oihw, bn):
        """Fold eval-mode BN into a bias-free conv -> (kh,kw,I,O) weight + (O,) bias."""
        gamma, beta, mean, var = bn
        s = gamma / jnp.sqrt(var + eps)
        w = jnp.transpose(w_oihw, (2, 3, 1, 0)).astype(jnp.float32) * s
        b = (beta - mean * s).astype(jnp.float32)
        return w, b

    P = params["aspp1_w"].shape[0]
    out_ch = params["conv1_w"].shape[0]

    # Branch weights / biases (BN folded; matmul operands cast to bf16).
    w1m, b1 = fold(params["aspp1_w"], params["aspp1_bn"])
    w1m = w1m[0, 0].astype(jnp.bfloat16)                              # (C, P)

    w3_list, bb_list, branch_starts = [], [b1], []
    for name, taps, d in zip(("aspp2", "aspp3", "aspp4"), branch_taps, dil3):
        wk, bk = fold(params[name + "_w"], params[name + "_bn"])      # (3,3,C,P)
        branch_starts.append(len(w3_list))
        for dy, dx in taps:
            w3_list.append(wk[dy // d + 1, dx // d + 1])              # (C, P)
        bb_list.append(bk)
    branch_starts = tuple(branch_starts)
    w3 = jnp.stack(w3_list, axis=0).astype(jnp.bfloat16)              # (T, C, P)
    bb = jnp.stack(bb_list, axis=0)[:, None, :]                       # (4, 1, P) f32

    wgap, bgap = fold(params["gap_w"], params["gap_bn"])
    wgap = wgap[0, 0]                                                 # (C, P) f32

    wc1, bc1 = fold(params["conv1_w"], params["bn1"])                 # (1,1,5P,OUT), (OUT,)
    wc1 = wc1[0, 0]                                                   # (5P, OUT)
    wf = wc1[:4 * P].astype(jnp.bfloat16)                             # (4P, OUT) bf16
    wf5 = wc1[4 * P:]                                                 # (P, OUT) f32

    # Global-average-pool branch: constant over space after the 1x1 -> HxW
    # align_corners bilinear upsample -> folded into a per-batch output bias.
    hp_ = jax.lax.Precision.HIGHEST
    xm = jnp.mean(x_nchw.astype(jnp.float32), axis=(2, 3))            # (B, C)
    y5 = jax.nn.relu(jnp.matmul(xm, wgap, precision=hp_) + bgap)      # (B, P)
    bias_tot = (jnp.matmul(y5, wf5, precision=hp_) + bc1)[:, None, :]  # (B, 1, OUT) f32

    # NCHW -> NHWC bf16 (lane-dense channels, bf16 MXU operands).
    # TODO(synk): keep the surrounding decoder NHWC / fuse this relayout into the
    # producer+consumer to avoid the extra HBM passes around this small kernel.
    x = jnp.transpose(x_nchw, (0, 2, 3, 1)).astype(jnp.bfloat16)      # (B, H, W, C)

    kernel = functools.partial(_aspp_kernel, branch_taps=branch_taps,
                               branch_starts=branch_starts,
                               pad_top=pad_top, pad_left=pad_left)

    n_taps = 1 + sum(len(t) for t in branch_taps)
    flops = 2 * B * H * W * (C_in * P * n_taps + 4 * P * out_ch)
    bytes_accessed = (2 * x.size + 2 * (w1m.size + w3.size + wf.size)
                      + 4 * (bb.size + bias_tot.size)
                      + x_nchw.dtype.itemsize * B * H * W * out_ch)

    y_nhwc = pl.pallas_call(
        kernel,
        out_shape=jax.ShapeDtypeStruct((B, H, W, out_ch), x_nchw.dtype),
        grid_spec=pltpu.PrefetchScalarGridSpec(
            num_scalar_prefetch=0,
            grid=(B,),
            in_specs=[
                pl.BlockSpec((1, H, W, C_in), lambda b: (b, 0, 0, 0)),
                pl.BlockSpec((C_in, P), lambda b: (0, 0)),
                pl.BlockSpec((w3.shape[0], C_in, P), lambda b: (0, 0, 0)),
                pl.BlockSpec((4, 1, P), lambda b: (0, 0, 0)),
                pl.BlockSpec((4 * P, out_ch), lambda b: (0, 0)),
                pl.BlockSpec((1, 1, out_ch), lambda b: (b, 0, 0)),
            ],
            out_specs=pl.BlockSpec((1, H, W, out_ch), lambda b: (b, 0, 0, 0)),
            scratch_shapes=[pltpu.VMEM((Hp, Wp, C_in), jnp.bfloat16)],
        ),
        compiler_params=pltpu.CompilerParams(
            dimension_semantics=("parallel",),
            vmem_limit_bytes=32 * 1024 * 1024,
        ),
        cost_estimate=pl.CostEstimate(
            flops=int(flops), transcendentals=0, bytes_accessed=int(bytes_accessed)),
    )(x, w1m, w3, bb, wf, bias_tot)

    # NHWC -> NCHW (match the PyTorch module's output layout).
    return jnp.transpose(y_nhwc, (0, 3, 1, 2))


# ---------------------------------------------------------------------------
# Pure-JAX reference (eval-mode ASPP with lax convs) for correctness check.
# ---------------------------------------------------------------------------
def aspp_reference(x_nchw, params, dilations=(1, 6, 12, 18), eps=1e-5):
    hp = jax.lax.Precision.HIGHEST

    def conv(x, w, dil, pad):
        return jax.lax.conv_general_dilated(
            x, w, window_strides=(1, 1), padding=((pad, pad), (pad, pad)),
            rhs_dilation=(dil, dil),
            dimension_numbers=("NCHW", "OIHW", "NCHW"), precision=hp)

    def bn(x, p):
        gamma, beta, mean, var = p
        s = (gamma / jnp.sqrt(var + eps))[None, :, None, None]
        return (x - mean[None, :, None, None]) * s + beta[None, :, None, None]

    x = x_nchw.astype(jnp.float32)
    x1 = jax.nn.relu(bn(conv(x, params["aspp1_w"], dilations[0], 0), params["aspp1_bn"]))
    x2 = jax.nn.relu(bn(conv(x, params["aspp2_w"], dilations[1], dilations[1]), params["aspp2_bn"]))
    x3 = jax.nn.relu(bn(conv(x, params["aspp3_w"], dilations[2], dilations[2]), params["aspp3_bn"]))
    x4 = jax.nn.relu(bn(conv(x, params["aspp4_w"], dilations[3], dilations[3]), params["aspp4_bn"]))
    gap = jnp.mean(x, axis=(2, 3), keepdims=True)
    x5 = jax.nn.relu(bn(conv(gap, params["gap_w"], 1, 0), params["gap_bn"]))
    x5 = jnp.broadcast_to(x5, (x1.shape[0], x5.shape[1], x1.shape[2], x1.shape[3]))
    xc = jnp.concatenate([x1, x2, x3, x4, x5], axis=1)
    y = jax.nn.relu(bn(conv(xc, params["conv1_w"], 1, 0), params["bn1"]))
    return y  # dropout = identity in eval mode


# ---------------------------------------------------------------------------
# Deterministic parameter construction + self-test.
# ---------------------------------------------------------------------------
def init_params(key, in_channels, planes, out_channels):
    ks = list(jax.random.split(key, 12))

    def conv_w(k, o, i, kh, kw):
        return (jax.random.normal(k, (o, i, kh, kw), jnp.float32)
                / math.sqrt(i * kh * kw))

    def bn_p(k, c):
        k1, k2, k3, k4 = jax.random.split(k, 4)
        gamma = 1.0 + 0.2 * jax.random.normal(k1, (c,), jnp.float32)
        beta = 0.1 * jax.random.normal(k2, (c,), jnp.float32)
        mean = 0.1 * jax.random.normal(k3, (c,), jnp.float32)
        var = jax.random.uniform(k4, (c,), jnp.float32, minval=0.5, maxval=1.5)
        return (gamma, beta, mean, var)

    return {
        "aspp1_w": conv_w(ks[0], planes, in_channels, 1, 1), "aspp1_bn": bn_p(ks[1], planes),
        "aspp2_w": conv_w(ks[2], planes, in_channels, 3, 3), "aspp2_bn": bn_p(ks[3], planes),
        "aspp3_w": conv_w(ks[4], planes, in_channels, 3, 3), "aspp3_bn": bn_p(ks[5], planes),
        "aspp4_w": conv_w(ks[6], planes, in_channels, 3, 3), "aspp4_bn": bn_p(ks[7], planes),
        "gap_w": conv_w(ks[8], planes, in_channels, 1, 1), "gap_bn": bn_p(ks[9], planes),
        "conv1_w": conv_w(ks[10], out_channels, 5 * planes, 1, 1), "bn1": bn_p(ks[11], out_channels),
    }


if __name__ == "__main__":
    key = jax.random.PRNGKey(0)
    B, C_in, H, W = 2, 64, 16, 16      # module defaults: in_channels=64
    planes, out_ch = 256, 64           # in_channelster = 256 (hard-coded), out = in_channels

    kx, kp = jax.random.split(key)
    x = jax.random.normal(kx, (B, C_in, H, W), dtype=jnp.float32)
    params = init_params(kp, C_in, planes, out_ch)

    y = aspp_pallas(x, params)
    y = jax.block_until_ready(y)

    ref = aspp_reference(x, params)
    assert y.shape == (B, out_ch, H, W)
    err = float(jnp.max(jnp.abs(y - ref)))
    # bf16 MXU operands with f32 accumulation -> a few 1e-3 of error is expected.
    assert jnp.allclose(y, ref, atol=5e-2, rtol=5e-2), f"mismatch vs reference, max abs err {err}"

    print("KERNEL_OK")
</pallas_src>

<mosaic_0001>
module attributes {stable_mosaic.version = 11 : i64} {
  func.func @_aspp_kernel(%arg0: i32, %arg1: memref<1x16x16x64xbf16, #tpu.memory_space<vmem>>, %arg2: memref<64x256xbf16, #tpu.memory_space<vmem>>, %arg3: memref<19x64x256xbf16, #tpu.memory_space<vmem>>, %arg4: memref<4x1x256xf32, #tpu.memory_space<vmem>>, %arg5: memref<1024x64xbf16, #tpu.memory_space<vmem>>, %arg6: memref<1x1x64xf32, #tpu.memory_space<vmem>>, %arg7: memref<1x16x16x64xf32, #tpu.memory_space<vmem>>, %arg8: memref<40x44x64xbf16, #tpu.memory_space<vmem>>) attributes {dimension_semantics = [#tpu.dimension_semantics<parallel>], iteration_bounds = array<i64: 2>, scalar_prefetch = 0 : i64, scratch_operands = 1 : i64, tpu.core_type = #tpu.core_type<tc>, window_params = [{transform_indices = @transform_0, window_bounds = array<i64: 1, 16, 16, 64>}, {pipeline_mode = #tpu.pipeline_mode<synchronous>, transform_indices = @transform_1, window_bounds = array<i64: 64, 256>}, {pipeline_mode = #tpu.pipeline_mode<synchronous>, transform_indices = @transform_2, window_bounds = array<i64: 19, 64, 256>}, {pipeline_mode = #tpu.pipeline_mode<synchronous>, transform_indices = @transform_3, window_bounds = array<i64: 4, 1, 256>}, {pipeline_mode = #tpu.pipeline_mode<synchronous>, transform_indices = @transform_4, window_bounds = array<i64: 1024, 64>}, {transform_indices = @transform_5, window_bounds = array<i64: 1, 1, 64>}, {transform_indices = @transform_6, window_bounds = array<i64: 1, 16, 16, 64>}]} {
    %cst = arith.constant 0.000000e+00 : bf16
    %0 = vector.broadcast %cst : bf16 to vector<12x44x64xbf16>
    %c0 = arith.constant 0 : index
    %c0_0 = arith.constant 0 : index
    %c0_1 = arith.constant 0 : index
    %1 = vector.load %arg8[%c0, %c0_0, %c0_1] : memref<40x44x64xbf16, #tpu.memory_space<vmem>>, vector<12x44x64xbf16>
    tpu.vector_store %arg8[%c0, %c0_0, %c0_1], %0 {strides = array<i32>} : memref<40x44x64xbf16, #tpu.memory_space<vmem>>, vector<12x44x64xbf16>,
    %cst_2 = arith.constant 0.000000e+00 : bf16
    %2 = vector.broadcast %cst_2 : bf16 to vector<12x44x64xbf16>
    %c28 = arith.constant 28 : index
    %c0_3 = arith.constant 0 : index
    %c0_4 = arith.constant 0 : index
    %3 = vector.load %arg8[%c28, %c0_3, %c0_4] : memref<40x44x64xbf16, #tpu.memory_space<vmem>>, vector<12x44x64xbf16>
    tpu.vector_store %arg8[%c28, %c0_3, %c0_4], %2 {strides = array<i32>} : memref<40x44x64xbf16, #tpu.memory_space<vmem>>, vector<12x44x64xbf16>,
    %cst_5 = arith.constant 0.000000e+00 : bf16
    %4 = vector.broadcast %cst_5 : bf16 to vector<16x16x64xbf16>
    %c12 = arith.constant 12 : index
    %c0_6 = arith.constant 0 : index
    %c0_7 = arith.constant 0 : index
    %5 = vector.load %arg8[%c12, %c0_6, %c0_7] : memref<40x44x64xbf16, #tpu.memory_space<vmem>>, vector<16x16x64xbf16>
    tpu.vector_store %arg8[%c12, %c0_6, %c0_7], %4 {strides = array<i32>} : memref<40x44x64xbf16, #tpu.memory_space<vmem>>, vector<16x16x64xbf16>,
    %cst_8 = arith.constant 0.000000e+00 : bf16
    %6 = vector.broadcast %cst_8 : bf16 to vector<16x12x64xbf16>
    %c12_9 = arith.constant 12 : index
    %c32 = arith.constant 32 : index
    %c0_10 = arith.constant 0 : index
    %7 = vector.load %arg8[%c12_9, %c32, %c0_10] : memref<40x44x64xbf16, #tpu.memory_space<vmem>>, vector<16x12x64xbf16>
    tpu.vector_store %arg8[%c12_9, %c32, %c0_10], %6 {strides = array<i32>} : memref<40x44x64xbf16, #tpu.memory_space<vmem>>, vector<16x12x64xbf16>,
    %c0_11 = arith.constant 0 : index
    %c0_12 = arith.constant 0 : index
    %c0_13 = arith.constant 0 : index
    %c0_14 = arith.constant 0 : index
    %8 = vector.load %arg1[%c0_11, %c0_12, %c0_13, %c0_14] : memref<1x16x16x64xbf16, #tpu.memory_space<vmem>>, vector<1x16x16x64xbf16>
    %9 = vector.shape_cast %8 : vector<1x16x16x64xbf16> to vector<16x16x64xbf16>
    %c12_15 = arith.constant 12 : index
    %c16 = arith.constant 16 : index
    %c0_16 = arith.constant 0 : index
    %10 = vector.load %arg8[%c12_15, %c16, %c0_16] : memref<40x44x64xbf16, #tpu.memory_space<vmem>>, vector<16x16x64xbf16>
    tpu.vector_store %arg8[%c12_15, %c16, %c0_16], %9 {strides = array<i32>} : memref<40x44x64xbf16, #tpu.memory_space<vmem>>, vector<16x16x64xbf16>,
    %c0_17 = arith.constant 0 : index
    %c0_18 = arith.constant 0 : index
    %c0_19 = arith.constant 0 : index
    %c0_20 = arith.constant 0 : index
    %11 = vector.load %arg1[%c0_17, %c0_18, %c0_19, %c0_20] : memref<1x16x16x64xbf16, #tpu.memory_space<vmem>>, vector<1x16x16x64xbf16>
    %12 = vector.shape_cast %11 : vector<1x16x16x64xbf16> to vector<16x16x64xbf16>
    %13 = vector.shape_cast %12 : vector<16x16x64xbf16> to vector<256x64xbf16>
    %c0_21 = arith.constant 0 : index
    %c0_22 = arith.constant 0 : index
    %14 = vector.load %arg2[%c0_21, %c0_22] : memref<64x256xbf16, #tpu.memory_space<vmem>>, vector<64x256xbf16>
    %cst_23 = arith.constant dense<0.000000e+00> : vector<256x256xf32>
    %15 = tpu.matmul %13, %14, %cst_23 {dimension_numbers = #tpu.dot_dimension_numbers<[1], [0], [0], [1], [0, 0, 1, 1], [], []>} : vector<256x64xbf16>, vector<64x256xbf16>, vector<256x256xf32> -> vector<256x256xf32>
    %c0_24 = arith.constant 0 : index
    %c0_25 = arith.constant 0 : index
    %c0_26 = arith.constant 0 : index
    %16 = vector.load %arg4[%c0_24, %c0_25, %c0_26] : memref<4x1x256xf32, #tpu.memory_space<vmem>>, vector<1x1x256xf32>
    %17 = vector.shape_cast %16 : vector<1x1x256xf32> to vector<1x256xf32>
    %18 = vector.broadcast %17 : vector<1x256xf32> to vector<256x256xf32>
    %19 = arith.addf %15, %18 : vector<256x256xf32>
    %cst_27 = arith.constant 0.000000e+00 : f32
    %20 = vector.broadcast %cst_27 : f32 to vector<256x256xf32>
    %21 = arith.maximumf %19, %20 : vector<256x256xf32>
    %22 = arith.truncf %21 : vector<256x256xf32> to vector<256x256xbf16>
    %c6 = arith.constant 6 : index
    %c10 = arith.constant 10 : index
    %c0_28 = arith.constant 0 : index
    %23 = vector.load %arg8[%c6, %c10, %c0_28] : memref<40x44x64xbf16, #tpu.memory_space<vmem>>, vector<16x16x64xbf16>
    %24 = vector.shape_cast %23 : vector<16x16x64xbf16> to vector<256x64xbf16>
    %c6_29 = arith.constant 6 : index
    %c16_30 = arith.constant 16 : index
    %c0_31 = arith.constant 0 : index
    %25 = vector.load %arg8[%c6_29, %c16_30, %c0_31] : memref<40x44x64xbf16, #tpu.memory_space<vmem>>, vector<16x16x64xbf16>
    %26 = vector.shape_cast %25 : vector<16x16x64xbf16> to vector<256x64xbf16>
    %c6_32 = arith.constant 6 : index
    %c22 = arith.constant 22 : index
    %c0_33 = arith.constant 0 : index
    %27 = vector.load %arg8[%c6_32, %c22, %c0_33] : memref<40x44x64xbf16, #tpu.memory_space<vmem>>, vector<16x16x64xbf16>
    %28 = vector.shape_cast %27 : vector<16x16x64xbf16> to vector<256x64xbf16>
    %c12_34 = arith.constant 12 : index
    %c10_35 = arith.constant 10 : index
    %c0_36 = arith.constant 0 : index
    %29 = vector.load %arg8[%c12_34, %c10_35, %c0_36] : memref<40x44x64xbf16, #tpu.memory_space<vmem>>, vector<16x16x64xbf16>
    %30 = vector.shape_cast %29 : vector<16x16x64xbf16> to vector<256x64xbf16>
    %c12_37 = arith.constant 12 : index
    %c22_38 = arith.constant 22 : index
    %c0_39 = arith.constant 0 : index
    %31 = vector.load %arg8[%c12_37, %c22_38, %c0_39] : memref<40x44x64xbf16, #tpu.memory_space<vmem>>, vector<16x16x64xbf16>
    %32 = vector.shape_cast %31 : vector<16x16x64xbf16> to vector<256x64xbf16>
    %c18 = arith.constant 18 : index
    %c10_40 = arith.constant 10 : index
    %c0_41 = arith.constant 0 : index
    %33 = vector.load %arg8[%c18, %c10_40, %c0_41] : memref<40x44x64xbf16, #tpu.memory_space<vmem>>, vector<16x16x64xbf16>
    %34 = vector.shape_cast %33 : vector<16x16x64xbf16> to vector<256x64xbf16>
    %c18_42 = arith.constant 18 : index
    %c16_43 = arith.constant 16 : index
    %c0_44 = arith.constant 0 : index
    %35 = vector.load %arg8[%c18_42, %c16_43, %c0_44] : memref<40x44x64xbf16, #tpu.memory_space<vmem>>, vector<16x16x64xbf16>
    %36 = vector.shape_cast %35 : vector<16x16x64xbf16> to vector<256x64xbf16>
    %c18_45 = arith.constant 18 : index
    %c22_46 = arith.constant 22 : index
    %c0_47 = arith.constant 0 : index
    %37 = vector.load %arg8[%c18_45, %c22_46, %c0_47] : memref<40x44x64xbf16, #tpu.memory_space<vmem>>, vector<16x16x64xbf16>
    %38 = vector.shape_cast %37 : vector<16x16x64xbf16> to vector<256x64xbf16>
    %39 = tpu.concatenate %24, %26, %28, %30, %13, %32, %34, %36, %38 in 1 : vector<256x64xbf16>, vector<256x64xbf16>, vector<256x64xbf16>, vector<256x64xbf16>, vector<256x64xbf16>, vector<256x64xbf16>, vector<256x64xbf16>, vector<256x64xbf16>, vector<256x64xbf16> -> vector<256x576xbf16>
    %c0_48 = arith.constant 0 : index
    %c0_49 = arith.constant 0 : index
    %c0_50 = arith.constant 0 : index
    %40 = vector.load %arg3[%c0_48, %c0_49, %c0_50] : memref<19x64x256xbf16, #tpu.memory_space<vmem>>, vector<9x64x256xbf16>
    %41 = vector.shape_cast %40 : vector<9x64x256xbf16> to vector<576x256xbf16>
    %cst_51 = arith.constant dense<0.000000e+00> : vector<256x256xf32>
    %42 = tpu.matmul %39, %41, %cst_51 {dimension_numbers = #tpu.dot_dimension_numbers<[1], [0], [0], [1], [0, 0, 1, 1], [], []>} : vector<256x576xbf16>, vector<576x256xbf16>, vector<256x256xf32> -> vector<256x256xf32>
    %c1 = arith.constant 1 : index
    %c0_52 = arith.constant 0 : index
    %c0_53 = arith.constant 0 : index
    %43 = vector.load %arg4[%c1, %c0_52, %c0_53] : memref<4x1x256xf32, #tpu.memory_space<vmem>>, vector<1x1x256xf32>
    %44 = vector.shape_cast %43 : vector<1x1x256xf32> to vector<1x256xf32>
    %45 = vector.broadcast %44 : vector<1x256xf32> to vector<256x256xf32>
    %46 = arith.addf %42, %45 : vector<256x256xf32>
    %cst_54 = arith.constant 0.000000e+00 : f32
    %47 = vector.broadcast %cst_54 : f32 to vector<256x256xf32>
    %48 = arith.maximumf %46, %47 : vector<256x256xf32>
    %49 = arith.truncf %48 : vector<256x256xf32> to vector<256x256xbf16>
    %c0_55 = arith.constant 0 : index
    %c4 = arith.constant 4 : index
    %c0_56 = arith.constant 0 : index
    %50 = vector.load %arg8[%c0_55, %c4, %c0_56] : memref<40x44x64xbf16, #tpu.memory_space<vmem>>, vector<16x16x64xbf16>
    %51 = vector.shape_cast %50 : vector<16x16x64xbf16> to vector<256x64xbf16>
    %c0_57 = arith.constant 0 : index
    %c16_58 = arith.constant 16 : index
    %c0_59 = arith.constant 0 : index
    %52 = vector.load %arg8[%c0_57, %c16_58, %c0_59] : memref<40x44x64xbf16, #tpu.memory_space<vmem>>, vector<16x16x64xbf16>
    %53 = vector.shape_cast %52 : vector<16x16x64xbf16> to vector<256x64xbf16>
    %c0_60 = arith.constant 0 : index
    %c28_61 = arith.constant 28 : index
    %c0_62 = arith.constant 0 : index
    %54 = vector.load %arg8[%c0_60, %c28_61, %c0_62] : memref<40x44x64xbf16, #tpu.memory_space<vmem>>, vector<16x16x64xbf16>
    %55 = vector.shape_cast %54 : vector<16x16x64xbf16> to vector<256x64xbf16>
    %c12_63 = arith.constant 12 : index
    %c4_64 = arith.constant 4 : index
    %c0_65 = arith.constant 0 : index
    %56 = vector.load %arg8[%c12_63, %c4_64, %c0_65] : memref<40x44x64xbf16, #tpu.memory_space<vmem>>, vector<16x16x64xbf16>
    %57 = vector.shape_cast %56 : vector<16x16x64xbf16> to vector<256x64xbf16>
    %c12_66 = arith.constant 12 : index
    %c28_67 = arith.constant 28 : index
    %c0_68 = arith.constant 0 : index
    %58 = vector.load %arg8[%c12_66, %c28_67, %c0_68] : memref<40x44x64xbf16, #tpu.memory_space<vmem>>, vector<16x16x64xbf16>
    %59 = vector.shape_cast %58 : vector<16x16x64xbf16> to vector<256x64xbf16>
    %c24 = arith.constant 24 : index
    %c4_69 = arith.constant 4 : index
    %c0_70 = arith.constant 0 : index
    %60 = vector.load %arg8[%c24, %c4_69, %c0_70] : memref<40x44x64xbf16, #tpu.memory_space<vmem>>, vector<16x16x64xbf16>
    %61 = vector.shape_cast %60 : vector<16x16x64xbf16> to vector<256x64xbf16>
    %c24_71 = arith.constant 24 : index
    %c16_72 = arith.constant 16 : index
    %c0_73 = arith.constant 0 : index
    %62 = vector.load %arg8[%c24_71, %c16_72, %c0_73] : memref<40x44x64xbf16, #tpu.memory_space<vmem>>, vector<16x16x64xbf16>
    %63 = vector.shape_cast %62 : vector<16x16x64xbf16> to vector<256x64xbf16>
    %c24_74 = arith.constant 24 : index
    %c28_75 = arith.constant 28 : index
    %c0_76 = arith.constant 0 : index
    %64 = vector.load %arg8[%c24_74, %c28_75, %c0_76] : memref<40x44x64xbf16, #tpu.memory_space<vmem>>, vector<16x16x64xbf16>
    %65 = vector.shape_cast %64 : vector<16x16x64xbf16> to vector<256x64xbf16>
    %66 = tpu.concatenate %51, %53, %55, %57, %13, %59, %61, %63, %65 in 1 : vector<256x64xbf16>, vector<256x64xbf16>, vector<256x64xbf16>, vector<256x64xbf16>, vector<256x64xbf16>, vector<256x64xbf16>, vector<256x64xbf16>, vector<256x64xbf16>, vector<256x64xbf16> -> vector<256x576xbf16>
    %c9 = arith.constant 9 : index
    %c0_77 = arith.constant 0 : index
    %c0_78 = arith.constant 0 : index
    %67 = vector.load %arg3[%c9, %c0_77, %c0_78] : memref<19x64x256xbf16, #tpu.memory_space<vmem>>, vector<9x64x256xbf16>
    %68 = vector.shape_cast %67 : vector<9x64x256xbf16> to vector<576x256xbf16>
    %cst_79 = arith.constant dense<0.000000e+00> : vector<256x256xf32>
    %69 = tpu.matmul %66, %68, %cst_79 {dimension_numbers = #tpu.dot_dimension_numbers<[1], [0], [0], [1], [0, 0, 1, 1], [], []>} : vector<256x576xbf16>, vector<576x256xbf16>, vector<256x256xf32> -> vector<256x256xf32>
    %c2 = arith.constant 2 : index
    %c0_80 = arith.constant 0 : index
    %c0_81 = arith.constant 0 : index
    %70 = vector.load %arg4[%c2, %c0_80, %c0_81] : memref<4x1x256xf32, #tpu.memory_space<vmem>>, vector<1x1x256xf32>
    %71 = vector.shape_cast %70 : vector<1x1x256xf32> to vector<1x256xf32>
    %72 = vector.broadcast %71 : vector<1x256xf32> to vector<256x256xf32>
    %73 = arith.addf %69, %72 : vector<256x256xf32>
    %cst_82 = arith.constant 0.000000e+00 : f32
    %74 = vector.broadcast %cst_82 : f32 to vector<256x256xf32>
    %75 = arith.maximumf %73, %74 : vector<256x256xf32>
    %76 = arith.truncf %75 : vector<256x256xf32> to vector<256x256xbf16>
    %c18_83 = arith.constant 18 : index
    %c0_84 = arith.constant 0 : index
    %c0_85 = arith.constant 0 : index
    %77 = vector.load %arg3[%c18_83, %c0_84, %c0_85] : memref<19x64x256xbf16, #tpu.memory_space<vmem>>, vector<1x64x256xbf16>
    %78 = vector.shape_cast %77 : vector<1x64x256xbf16> to vector<64x256xbf16>
    %cst_86 = arith.constant dense<0.000000e+00> : vector<256x256xf32>
    %79 = tpu.matmul %13, %78, %cst_86 {dimension_numbers = #tpu.dot_dimension_numbers<[1], [0], [0], [1], [0, 0, 1, 1], [], []>} : vector<256x64xbf16>, vector<64x256xbf16>, vector<256x256xf32> -> vector<256x256xf32>
    %c3 = arith.constant 3 : index
    %c0_87 = arith.constant 0 : index
    %c0_88 = arith.constant 0 : index
    %80 = vector.load %arg4[%c3, %c0_87, %c0_88] : memref<4x1x256xf32, #tpu.memory_space<vmem>>, vector<1x1x256xf32>
    %81 = vector.shape_cast %80 : vector<1x1x256xf32> to vector<1x256xf32>
    %82 = vector.broadcast %81 : vector<1x256xf32> to vector<256x256xf32>
    %83 = arith.addf %79, %82 : vector<256x256xf32>
    %cst_89 = arith.constant 0.000000e+00 : f32
    %84 = vector.broadcast %cst_89 : f32 to vector<256x256xf32>
    %85 = arith.maximumf %83, %84 : vector<256x256xf32>
    %86 = arith.truncf %85 : vector<256x256xf32> to vector<256x256xbf16>
    %87 = tpu.concatenate %22, %49, %76, %86 in 1 : vector<256x256xbf16>, vector<256x256xbf16>, vector<256x256xbf16>, vector<256x256xbf16> -> vector<256x1024xbf16>
    %c0_90 = arith.constant 0 : index
    %c0_91 = arith.constant 0 : index
    %88 = vector.load %arg5[%c0_90, %c0_91] : memref<1024x64xbf16, #tpu.memory_space<vmem>>, vector<1024x64xbf16>
    %cst_92 = arith.constant dense<0.000000e+00> : vector<256x64xf32>
    %89 = tpu.matmul %87, %88, %cst_92 {dimension_numbers = #tpu.dot_dimension_numbers<[1], [0], [0], [1], [0, 0, 1, 1], [], []>} : vector<256x1024xbf16>, vector<1024x64xbf16>, vector<256x64xf32> -> vector<256x64xf32>
    %c0_93 = arith.constant 0 : index
    %c0_94 = arith.constant 0 : index
    %c0_95 = arith.constant 0 : index
    %90 = vector.load %arg6[%c0_93, %c0_94, %c0_95] : memref<1x1x64xf32, #tpu.memory_space<vmem>>, vector<1x1x64xf32>
    %91 = vector.shape_cast %90 : vector<1x1x64xf32> to vector<1x64xf32>
    %92 = vector.broadcast %91 : vector<1x64xf32> to vector<256x64xf32>
    %93 = arith.addf %89, %92 : vector<256x64xf32>
    %cst_96 = arith.constant 0.000000e+00 : f32
    %94 = vector.broadcast %cst_96 : f32 to vector<256x64xf32>
    %95 = arith.maximumf %93, %94 : vector<256x64xf32>
    %96 = vector.shape_cast %95 : vector<256x64xf32> to vector<1x16x16x64xf32>
    %c0_97 = arith.constant 0 : index
    %c0_98 = arith.constant 0 : index
    %c0_99 = arith.constant 0 : index
    %c0_100 = arith.constant 0 : index
    %97 = vector.load %arg7[%c0_97, %c0_98, %c0_99, %c0_100] : memref<1x16x16x64xf32, #tpu.memory_space<vmem>>, vector<1x16x16x64xf32>
    tpu.vector_store %arg7[%c0_97, %c0_98, %c0_99, %c0_100], %96 {strides = array<i32>} : memref<1x16x16x64xf32, #tpu.memory_space<vmem>>, vector<1x16x16x64xf32>,
    return
  }
  func.func @transform_0(%arg0: i32) -> (i32, i32, i32, i32) {
    %c0_i32 = arith.constant 0 : i32
    %c0_i32_0 = arith.constant 0 : i32
    %c0_i32_1 = arith.constant 0 : i32
    %c0_i32_2 = arith.constant 0 : i32
    return %arg0, %c0_i32, %c0_i32_0, %c0_i32_1 : i32, i32, i32, i32
  }
  func.func @transform_1(%arg0: i32) -> (i32, i32) {
    %c0_i32 = arith.constant 0 : i32
    %c0_i32_0 = arith.constant 0 : i32
    %c0_i32_1 = arith.constant 0 : i32
    return %c0_i32, %c0_i32_0 : i32, i32
  }
  func.func @transform_2(%arg0: i32) -> (i32, i32, i32) {
    %c0_i32 = arith.constant 0 : i32
    %c0_i32_0 = arith.constant 0 : i32
    %c0_i32_1 = arith.constant 0 : i32
    %c0_i32_2 = arith.constant 0 : i32
    return %c0_i32, %c0_i32_0, %c0_i32_1 : i32, i32, i32
  }
  func.func @transform_3(%arg0: i32) -> (i32, i32, i32) {
    %c0_i32 = arith.constant 0 : i32
    %c0_i32_0 = arith.constant 0 : i32
    %c0_i32_1 = arith.constant 0 : i32
    %c0_i32_2 = arith.constant 0 : i32
    return %c0_i32, %c0_i32_0, %c0_i32_1 : i32, i32, i32
  }
  func.func @transform_4(%arg0: i32) -> (i32, i32) {
    %c0_i32 = arith.constant 0 : i32
    %c0_i32_0 = arith.constant 0 : i32
    %c0_i32_1 = arith.constant 0 : i32
    return %c0_i32, %c0_i32_0 : i32, i32
  }
  func.func @transform_5(%arg0: i32) -> (i32, i32, i32) {
    %c0_i32 = arith.constant 0 : i32
    %c0_i32_0 = arith.constant 0 : i32
    %c0_i32_1 = arith.constant 0 : i32
    return %arg0, %c0_i32, %c0_i32_0 : i32, i32, i32
  }
  func.func @transform_6(%arg0: i32) -> (i32, i32, i32, i32) {
    %c0_i32 = arith.constant 0 : i32
    %c0_i32_0 = arith.constant 0 : i32
    %c0_i32_1 = arith.constant 0 : i32
    %c0_i32_2 = arith.constant 0 : i32
    return %arg0, %c0_i32, %c0_i32_0, %c0_i32_1 : i32, i32, i32, i32
  }
}

</mosaic_0001>

<bundles_post_ra>
// kernel: tpu_custom_call.1
= control target key start
LH: loop header
LB: loop body
LE: loop exit
PB: predicated region body
PF: predicated region fallthrough
CT: control target
= control target key end

     0   :  { %11 = vsyncpa [#allocation4], 0  ;;  %s15838_s0 = inlined_call_operand.vmem [shape: bf16[2,16,16,64], index: 0, kind: input, shape index: {}]   ;;  %s15839_s1 = inlined_call_operand.vmem [shape: bf16[64,256], index: 1, kind: input, shape index: {}]   ;;  %s15840_s2 = inlined_call_operand.hbm [shape: bf16[19,64,256], index: 2, kind: input, shape index: {}]   ;;  %s15841_s3 = inlined_call_operand.vmem [shape: f32[4,1,256], index: 3, kind: input, shape index: {}]   ;;  %s15842_s4 = inlined_call_operand.vmem [shape: bf16[1024,64], index: 4, kind: input, shape index: {}]   ;;  %s15843_s5 = inlined_call_operand.vmem [shape: f32[2,1,64], index: 5, kind: input, shape index: {}]   ;;  %s15844_s6 = inlined_call_operand.hbm [shape: f32[2,16,16,64], index: 6, kind: output, shape index: {}]  }
   0x1   :  { %12 = vsyncpa [#allocation5], 0 }
   0x2   :  { %14 = vsyncpa [#allocation5 + $0x1], 0  ;;  %s11495_s21 = smov 0   ;;  %s11497_s22 = smov 0  }
   0x3   :  { %s11499_s23 = smov 0   ;;  %s11501_s24 = smov 0  }
   0x4 LB: > { %s11516_s25 = sadd.s32 4294967295, %s11450_s24   ;;  %s9218_s26 = sadd.s32 4294967294, %s11450_s24   ;;  %s11450_s24 = sphi %s11501_s24, %s16177_s24   ;;  %s11446_s23 = sphi %s11499_s23, %s16176_s23   ;;  %s11442_s22 = sphi %s11497_s22, %s16175_s22   ;;  %s11438_s21 = sphi %s11495_s21, %s16174_s21  }
   0x5   : > { %s11520_s27 = sadd.s32 1, %s11450_s24   ;;  %s163_s28 = sadd.s32 1, %s11446_s23 }
   0x6   : > { %s160_s29 = ssub.s32 %s11450_s24, %s11520_s27  ;;  %p173_p0 = scmp.ne.s32.totalorder %s11446_s23, %s11442_s22 }
   0x7   : > { %p161_p1 = scmp.eq.s32.totalorder %s160_s29, 0  ;;  %p174_p2 = scmp.eq.s32.totalorder %s11516_s25, 1 }
   0x8   : > { %p179_p3 = scmp.ne.s32.totalorder %s11442_s22, %s11438_s21  ;;  %p180_p4 = scmp.eq.s32.totalorder %s9218_s26, 1 }
   0x9   : > { %s11531_s30 = scalar_select %p161_p1, %s11446_s23, %s163_s28  }
   0xa   : > { %p11533_p5 = por %p174_p2, %p173_p0  ;;  %p11537_p6 = por %p180_p4, %p179_p3 }
   0xb   : > { %p9219_p7 = scmp.ge.s32.totalorder %s11450_s24, 1  ;;  %p187_p8 = scmp.lt.s32.totalorder %s11450_s24, 3 }
   0xc   : > { %s15902_s7 = scalar_select %p11533_p5, 1, 0 }
   0xd   : > { %s15903_s8 = scalar_select %p11537_p6, 1, 0 }
   0xe   : > { %p15845_p9 = scmp.eq.s32.totalorder %s11516_s25, 0  ;;  %p11544_p10 = pnand %p9219_p7, %p187_p8 }
   0xf   : > { %s11452_s10 = smov [#allocation3]   ;;  %s11356_s15 = scalar_lea.hbm %s15840_s2, 19456 }
  0x10   : > { %s15904_s9 = scalar_select %p11544_p10, 1, 0 }
  0x11   : > { %s202_s11 = sshll.u32 %s11452_s10, 4  ;;  %p10844_p11 = pneg %p11544_p10  ;;  %s203_s11 = int_to_ptr.vmem [resolvable:$true] %s202_s11 }
  0x12   : > { %p11357_p13 = scmp.ne.s32.totalorder %s15840_s2, %s11356_s15  ;;  %p11363_p3 = scmp.lt.u32.totalorder %s11356_s15, %s15840_s2 }
  0x13   : > { %p11552_p12 = pnand %p15845_p9, %p10844_p11 }
  0x15   : > { %p11358_p0 = pneg %p11552_p12 }
  0x17   : > { %p11359_p1 = pnand %p11358_p0, %p11357_p13 }
  0x19   : > { %p11360_p2 = pneg %p11359_p1 }
  0x1b   : > { %p11365_p4 = pnand %p11363_p3, %p11360_p2 }
  0x1d   : > { %11368 = shalt.err (!%p11365_p4)
}
  0x1e   : > { %s11369_s20 = scalar_lea.vmem %s203_s11, 19456  ;;  %p11377_p9 = scmp.lt.s32.totalorder %s203_s11, %s203_s11 }
  0x1f   : > { %p11370_p7 = scmp.ne.s32.totalorder %s203_s11, %s11369_s20  ;;  %p11378_p6 = scmp.lt.s32.totalorder %s11369_s20, %s11369_s20 }
  0x21   : > { %p11372_p8 = pnand %p11370_p7, %p11358_p0  ;;  %p11379_p5 = por %p11378_p6, %p11377_p9 }
  0x23   : > { %p11373_p11 = pneg %p11372_p8 }
  0x25   : > { %p11380_p10 = pnand %p11379_p5, %p11373_p11 }
  0x27   : > { %11383 = shalt.err (!%p11380_p10)
}
  0x28   : > { %s11453_s26 = smov 128   ;;  %s11454_s28 = smov 8  }
  0x29   : > { %10847 = dma.hbm_to_vmem [thread:$0]  (!%p11552_p12), %s15840_s2, 19456, %s203_s11, [#allocation4], %s11453_s26, %s11453_s26, %s11454_s28  }
  0x2a   : > { %p15906_p13 = scmp.ne.s32.totalorder %s15904_s9, 0 }
  0x2c   : > { %238 = sbr.rel (%p15906_p13) target bundleno = 1314 (0x522), region = 44 }
  0x33   : > { %p15907_p1 = scmp.eq.s32.totalorder %s11516_s25, 0 }
  0x35   : > { %11429 = dma.done.wait (%p15907_p1), [#allocation4], 19456   ;;  %p15908_p0 = pmov %p15907_p1 }
  0x36   : > { %p271_p5 = scmp.lt.s32.totalorder %s11516_s25, 1  ;;  %vm280_vm0 = vcmask 519168   ;;  %v15866_v0 = vmov 0   ;;  %vm1163_vm1 = vcmask 1042432   ;;  %vm1164_vm2 = vcmask 1046532   ;;  %s11456_s19 = smov 64  }
  0x37   : > { %11431 = vsyncadd (%p15908_p0), [#allocation4], 4294947840  ;;  %431 = vst.msk [vmem:[#allocation2 + $0x13c] sm:$0xf] %vm280_vm0, %v15866_v0  ;;  %809 = vmatprep.mubr.bf16.mxu0 %v15866_v0  ;;  %v10898_v31 = vld [vmem:[%s15839_s1 + $0x4] ss:$8 sps:$4 sm:$0xff]  }
  0x38   : > { %281 = vst.msk [vmem:[#allocation2] sm:$0xf] %vm280_vm0, %v15866_v0  ;;  %282 = vst.msk [vmem:[#allocation2 + $0x4] sm:$0xf] %vm280_vm0, %v15866_v0  ;;  %s11919_s9 = scalar_select %p271_p5, %s11516_s25, 1  ;;  %777 = vmatprep.subr.bf16.mxu0 %v10898_v31  ;;  %vm728_vm4 = vcmask 523264  }
  0x39   : > { %283 = vst.msk [vmem:[#allocation2 + $0x8] sm:$0xf] %vm280_vm0, %v15866_v0  ;;  %284 = vst.msk [vmem:[#allocation2 + $0xc] sm:$0xf] %vm280_vm0, %v15866_v0  ;;  %v10901_v41 = vld [vmem:[%s15839_s1] ss:$8 sps:$4 sm:$0xff]  }
  0x3a   : > { %285 = vst.msk [vmem:[#allocation2 + $0x10] sm:$0xf] %vm280_vm0, %v15866_v0  ;;  %288 = vst.msk [vmem:[#allocation2 + $0x18] sm:$0xf] %vm280_vm0, %v15866_v0  ;;  %s9988_s11 = sshll.u32 %s11919_s9, 7  ;;  %778 = vmatpush1.bf16.msra.mxu0 %v10901_v41  ;;  %vm4338_vm5 = vcmask 1041408   ;;  %s278_s10 = scalar_lea.vmem %s15843_s5, %s11919_s9 }
  0x3b   : > { %289 = vst.msk [vmem:[#allocation2 + $0x1c] sm:$0xf] %vm280_vm0, %v15866_v0  ;;  %290 = vst.msk [vmem:[#allocation2 + $0x20] sm:$0xf] %vm280_vm0, %v15866_v0  ;;  %s11925_s14 = scalar_lea.vmem %s15838_s0, %s9988_s11  ;;  %v10902_v52 = vld [vmem:[%s15839_s1 + $0x14] ss:$8 sps:$4 sm:$0xff]  }
  0x3c   : > { %291 = vst.msk [vmem:[#allocation2 + $0x24] sm:$0xf] %vm280_vm0, %v15866_v0  ;;  %292 = vst.msk [vmem:[#allocation2 + $0x28] sm:$0xf] %vm280_vm0, %v15866_v0  ;;  %v494_v1 = vld [vmem:[%s11925_s14 + $0x8] sm:$0xf]  ;;  %779 = vmatprep.subr.bf16.mxu0 %v10902_v52 }
  0x3d   : > { %294 = vst.msk [vmem:[#allocation2 + $0x30] sm:$0xf] %vm280_vm0, %v15866_v0  ;;  %295 = vst.msk [vmem:[#allocation2 + $0x34] sm:$0xf] %vm280_vm0, %v15866_v0  ;;  %v495_v2 = vld [vmem:[%s11925_s14 + $0xc] sm:$0xf] }
  0x3e   : > { %296 = vst.msk [vmem:[#allocation2 + $0x38] sm:$0xf] %vm280_vm0, %v15866_v0  ;;  %297 = vst.msk [vmem:[#allocation2 + $0x3c] sm:$0xf] %vm280_vm0, %v15866_v0  ;;  %v492_v3 = vld [vmem:[%s11925_s14] sm:$0xf] }
  0x3f   : > { %298 = vst.msk [vmem:[#allocation2 + $0x40] sm:$0xf] %vm280_vm0, %v15866_v0  ;;  %300 = vst.msk [vmem:[#allocation2 + $0x48] sm:$0xf] %vm280_vm0, %v15866_v0  ;;  %v493_v4 = vld [vmem:[%s11925_s14 + $0x4] sm:$0xf] }
  0x40   : > { %301 = vst.msk [vmem:[#allocation2 + $0x4c] sm:$0xf] %vm280_vm0, %v15866_v0  ;;  %302 = vst.msk [vmem:[#allocation2 + $0x50] sm:$0xf] %vm280_vm0, %v15866_v0  ;;  %v1492_v5 = vld [vmem:[#allocation2 + $0x13c] sm:$0xe] }
  0x41   : > { %303 = vst.msk [vmem:[#allocation2 + $0x54] sm:$0xf] %vm280_vm0, %v15866_v0  ;;  %304 = vst.msk [vmem:[#allocation2 + $0x58] sm:$0xf] %vm280_vm0, %v15866_v0  ;;  %v496_v7 = vld [vmem:[%s11925_s14 + $0x10] sm:$0xf] }
  0x42   : > { %306 = vst.msk [vmem:[#allocation2 + $0x60] sm:$0xf] %vm280_vm0, %v15866_v0  ;;  %307 = vst.msk [vmem:[#allocation2 + $0x64] sm:$0xf] %vm280_vm0, %v15866_v0  ;;  %v497_v8 = vld [vmem:[%s11925_s14 + $0x14] sm:$0xf] }
  0x43   : > { %308 = vst.msk [vmem:[#allocation2 + $0x68] sm:$0xf] %vm280_vm0, %v15866_v0  ;;  %309 = vst.msk [vmem:[#allocation2 + $0x6c] sm:$0xf] %vm280_vm0, %v15866_v0  ;;  %v9300_v10 = vrot.slane %v1492_v5, 9  ;;  %vm4339_vm6 = vcmask 1045508  }
  0x44   : > { %310 = vst.msk [vmem:[#allocation2 + $0x70] sm:$0xf] %vm280_vm0, %v15866_v0  ;;  %312 = vst.msk [vmem:[#allocation2 + $0x78] sm:$0xf] %vm280_vm0, %v15866_v0  ;;  %v498_v21 = vld [vmem:[%s11925_s14 + $0x18] sm:$0xf] }
  0x45   : > { %313 = vst.msk [vmem:[#allocation2 + $0x7c] sm:$0xf] %vm280_vm0, %v15866_v0  ;;  %314 = vst.msk [vmem:[#allocation2 + $0x80] sm:$0xf] %vm280_vm0, %v15866_v0  ;;  %v499_v29 = vld [vmem:[%s11925_s14 + $0x1c] sm:$0xf] }
  0x46   : > { %315 = vst.msk [vmem:[#allocation2 + $0x84] sm:$0xf] %vm280_vm0, %v15866_v0  ;;  %316 = vst.msk [vmem:[#allocation2 + $0x88] sm:$0xf] %vm280_vm0, %v15866_v0  ;;  %v500_v43 = vld [vmem:[%s11925_s14 + $0x20] sm:$0xf] }
  0x47   : > { %318 = vst.msk [vmem:[#allocation2 + $0x90] sm:$0xf] %vm280_vm0, %v15866_v0  ;;  %319 = vst.msk [vmem:[#allocation2 + $0x94] sm:$0xf] %vm280_vm0, %v15866_v0  ;;  %v501_v48 = vld [vmem:[%s11925_s14 + $0x24] sm:$0xf] }
  0x48   : > { %320 = vst.msk [vmem:[#allocation2 + $0x98] sm:$0xf] %vm280_vm0, %v15866_v0  ;;  %321 = vst.msk [vmem:[#allocation2 + $0x9c] sm:$0xf] %vm280_vm0, %v15866_v0  ;;  %v10905_v62 = vld [vmem:[%s15839_s1 + $0x10] ss:$8 sps:$4 sm:$0xff]  }
  0x49   : > { %322 = vst.msk [vmem:[#allocation2 + $0xa0] sm:$0xf] %vm280_vm0, %v15866_v0  ;;  %324 = vst.msk [vmem:[#allocation2 + $0xa8] sm:$0xf] %vm280_vm0, %v15866_v0  ;;  %v502_v63 = vld [vmem:[%s11925_s14 + $0x28] sm:$0xf]  ;;  %780 = vmatpush1.bf16.msra.mxu0 %v10905_v62 }
  0x4a   : > { %325 = vst.msk [vmem:[#allocation2 + $0xac] sm:$0xf] %vm280_vm0, %v15866_v0  ;;  %326 = vst.msk [vmem:[#allocation2 + $0xb0] sm:$0xf] %vm280_vm0, %v15866_v0  ;;  %vm286_vm8 = vcmask 517120   ;;  %vm1374_vm9 = vcmask 1040384  }
  0x4b   : > { %327 = vst.msk [vmem:[#allocation2 + $0xb4] sm:$0xf] %vm280_vm0, %v15866_v0  ;;  %328 = vst.msk [vmem:[#allocation2 + $0xb8] sm:$0xf] %vm280_vm0, %v15866_v0  ;;  %vm1375_vm10 = vcmask 1044484   ;;  %s268_s9 = sand.u32 1, %s11442_s22  }
  0x4c   : > { %330 = vst.msk [vmem:[#allocation2 + $0xc0] sm:$0xf] %vm280_vm0, %v15866_v0  ;;  %331 = vst.msk [vmem:[#allocation2 + $0xc4] sm:$0xf] %vm280_vm0, %v15866_v0  ;;  %s9224_s11 = sshll.u32 %s268_s9, 8  ;;  %s9989_s13 = sshll.u32 %s11516_s25, 12 }
  0x4d   : > { %332 = vst.msk [vmem:[#allocation2 + $0xc8] sm:$0xf] %vm280_vm0, %v15866_v0  ;;  %333 = vst.msk [vmem:[#allocation2 + $0xcc] sm:$0xf] %vm280_vm0, %v15866_v0  ;;  %s15660_s12 = scalar_lea.vmem [#allocation6], %s9224_s11  ;;  %s15787_s18 = scalar_lea.hbm %s15844_s6, %s9989_s13 }
  0x4e   : > { %334 = vst.msk [vmem:[#allocation2 + $0xd0] sm:$0xf] %vm280_vm0, %v15866_v0  ;;  %336 = vst.msk [vmem:[#allocation2 + $0xd8] sm:$0xf] %vm280_vm0, %v15866_v0  ;;  %s9135_s15 = sshll.u32 %s15660_s12, 4  ;;  %s15797_s25 = scalar_lea.sflag [#allocation5], %s268_s9  ;;  %s15789_s15 = int_to_ptr.vmem [resolvable:$true] %s9135_s15 }
  0x4f   : > { %337 = vst.msk [vmem:[#allocation2 + $0xdc] sm:$0xf] %vm280_vm0, %v15866_v0  ;;  %338 = vst.msk [vmem:[#allocation2 + $0xe0] sm:$0xf] %vm280_vm0, %v15866_v0  ;;  %v11952_v28 = vld [vmem:[#allocation2 + $0x98] sm:$0xf] }
  0x50   : > { %339 = vst.msk [vmem:[#allocation2 + $0xe4] sm:$0xf] %vm280_vm0, %v15866_v0  ;;  %340 = vst.msk [vmem:[#allocation2 + $0xe8] sm:$0xf] %vm280_vm0, %v15866_v0  ;;  %v11956_v30 = vld [vmem:[#allocation2 + $0x9c] sm:$0xf] }
  0x51   : > { %342 = vst.msk [vmem:[#allocation2 + $0xf0] sm:$0xf] %vm280_vm0, %v15866_v0  ;;  %343 = vst.msk [vmem:[#allocation2 + $0xf4] sm:$0xf] %vm280_vm0, %v15866_v0  ;;  %v11948_v26 = vld [vmem:[#allocation2 + $0xb0] sm:$0xf]  ;;  %v9379_v45 = vcombine.low %v11952_v28, %v11956_v30 }
  0x52   : > { %344 = vst.msk [vmem:[#allocation2 + $0xf8] sm:$0xf] %vm280_vm0, %v15866_v0  ;;  %345 = vst.msk [vmem:[#allocation2 + $0xfc] sm:$0xf] %vm280_vm0, %v15866_v0  ;;  %v11950_v27 = vld [vmem:[#allocation2 + $0xb4] sm:$0xf] }
  0x53   : > { %346 = vst.msk [vmem:[#allocation2 + $0x100] sm:$0xf] %vm280_vm0, %v15866_v0  ;;  %348 = vst.msk [vmem:[#allocation2 + $0x108] sm:$0xf] %vm280_vm0, %v15866_v0  ;;  %v9380_v44 = vcombine.low %v11948_v26, %v11950_v27  ;;  %p16172_p9 = scmp.ne.s32.totalorder %s15902_s7, 0  ;;  %s11457_s20 = smov [#allocation6]  }
  0x54   : > { %349 = vst.msk [vmem:[#allocation2 + $0x10c] sm:$0xf] %vm280_vm0, %v15866_v0  ;;  %350 = vst.msk [vmem:[#allocation2 + $0x110] sm:$0xf] %vm280_vm0, %v15866_v0  ;;  %v11976_v46 = vld [vmem:[#allocation2 + $0xc8] sm:$0xf] }
  0x55   : > { %351 = vst.msk [vmem:[#allocation2 + $0x114] sm:$0xf] %vm280_vm0, %v15866_v0  ;;  %352 = vst.msk [vmem:[#allocation2 + $0x118] sm:$0xf] %vm280_vm0, %v15866_v0  ;;  %v11980_v49 = vld [vmem:[#allocation2 + $0xcc] sm:$0xf] }
  0x56   : > { %355 = vst.msk [vmem:[#allocation2 + $0x2a0] sm:$0xf] %vm280_vm0, %v15866_v0  ;;  %356 = vst.msk [vmem:[#allocation2 + $0x2a4] sm:$0xf] %vm280_vm0, %v15866_v0  ;;  %v1077_v55 = vld [vmem:[#allocation2 + $0xe0] sm:$0xf]  ;;  %v9381_v59 = vcombine.low %v11976_v46, %v11980_v49 }
  0x57   : > { %357 = vst.msk [vmem:[#allocation2 + $0x2a8] sm:$0xf] %vm280_vm0, %v15866_v0  ;;  %358 = vst.msk [vmem:[#allocation2 + $0x2ac] sm:$0xf] %vm280_vm0, %v15866_v0  ;;  %s11388_s26 = sshll.u32 %s11457_s20, 4  ;;  %s11389_s26 = int_to_ptr.vmem [resolvable:$false] %s11388_s26 }
  0x58   : > { %359 = vst.msk [vmem:[#allocation2 + $0x2b0] sm:$0xf] %vm280_vm0, %v15866_v0  ;;  %361 = vst.msk [vmem:[#allocation2 + $0x2b8] sm:$0xf] %vm280_vm0, %v15866_v0  ;;  %p11391_p2 = scmp.lt.s32.totalorder %s15789_s15, %s11389_s26 }
  0x59   : > { %362 = vst.msk [vmem:[#allocation2 + $0x2bc] sm:$0xf] %vm280_vm0, %v15866_v0  ;;  %363 = vst.msk [vmem:[#allocation2 + $0x2c0] sm:$0xf] %vm280_vm0, %v15866_v0 }
  0x5a   : > { %364 = vst.msk [vmem:[#allocation2 + $0x2c4] sm:$0xf] %vm280_vm0, %v15866_v0  ;;  %365 = vst.msk [vmem:[#allocation2 + $0x2c8] sm:$0xf] %vm280_vm0, %v15866_v0 }
  0x5b   : > { %367 = vst.msk [vmem:[#allocation2 + $0x2d0] sm:$0xf] %vm280_vm0, %v15866_v0  ;;  %368 = vst.msk [vmem:[#allocation2 + $0x2d4] sm:$0xf] %vm280_vm0, %v15866_v0 }
  0x5c   : > { %369 = vst.msk [vmem:[#allocation2 + $0x2d8] sm:$0xf] %vm280_vm0, %v15866_v0  ;;  %370 = vst.msk [vmem:[#allocation2 + $0x2dc] sm:$0xf] %vm280_vm0, %v15866_v0 }
  0x5d   : > { %371 = vst.msk [vmem:[#allocation2 + $0x2e0] sm:$0xf] %vm280_vm0, %v15866_v0  ;;  %373 = vst.msk [vmem:[#allocation2 + $0x2e8] sm:$0xf] %vm280_vm0, %v15866_v0 }
  0x5e   : > { %374 = vst.msk [vmem:[#allocation2 + $0x2ec] sm:$0xf] %vm280_vm0, %v15866_v0  ;;  %375 = vst.msk [vmem:[#allocation2 + $0x2f0] sm:$0xf] %vm280_vm0, %v15866_v0 }
  0x5f   : > { %376 = vst.msk [vmem:[#allocation2 + $0x2f4] sm:$0xf] %vm280_vm0, %v15866_v0  ;;  %377 = vst.msk [vmem:[#allocation2 + $0x2f8] sm:$0xf] %vm280_vm0, %v15866_v0 }
  0x60   : > { %379 = vst.msk [vmem:[#allocation2 + $0x300] sm:$0xf] %vm280_vm0, %v15866_v0  ;;  %380 = vst.msk [vmem:[#allocation2 + $0x304] sm:$0xf] %vm280_vm0, %v15866_v0 }
  0x61   : > { %381 = vst.msk [vmem:[#allocation2 + $0x308] sm:$0xf] %vm280_vm0, %v15866_v0  ;;  %382 = vst.msk [vmem:[#allocation2 + $0x30c] sm:$0xf] %vm280_vm0, %v15866_v0 }
  0x62   : > { %383 = vst.msk [vmem:[#allocation2 + $0x310] sm:$0xf] %vm280_vm0, %v15866_v0  ;;  %385 = vst.msk [vmem:[#allocation2 + $0x318] sm:$0xf] %vm280_vm0, %v15866_v0 }
  0x63   : > { %386 = vst.msk [vmem:[#allocation2 + $0x31c] sm:$0xf] %vm280_vm0, %v15866_v0  ;;  %387 = vst.msk [vmem:[#allocation2 + $0x320] sm:$0xf] %vm280_vm0, %v15866_v0 }
  0x64   : > { %388 = vst.msk [vmem:[#allocation2 + $0x324] sm:$0xf] %vm280_vm0, %v15866_v0  ;;  %389 = vst.msk [vmem:[#allocation2 + $0x328] sm:$0xf] %vm280_vm0, %v15866_v0 }
  0x65   : > { %391 = vst.msk [vmem:[#allocation2 + $0x330] sm:$0xf] %vm280_vm0, %v15866_v0  ;;  %392 = vst.msk [vmem:[#allocation2 + $0x334] sm:$0xf] %vm280_vm0, %v15866_v0 }
  0x66   : > { %393 = vst.msk [vmem:[#allocation2 + $0x338] sm:$0xf] %vm280_vm0, %v15866_v0  ;;  %394 = vst.msk [vmem:[#allocation2 + $0x33c] sm:$0xf] %vm280_vm0, %v15866_v0 }
  0x67   : > { %395 = vst.msk [vmem:[#allocation2 + $0x340] sm:$0xf] %vm280_vm0, %v15866_v0  ;;  %397 = vst.msk [vmem:[#allocation2 + $0x348] sm:$0xf] %vm280_vm0, %v15866_v0 }
  0x68   : > { %398 = vst.msk [vmem:[#allocation2 + $0x34c] sm:$0xf] %vm280_vm0, %v15866_v0  ;;  %399 = vst.msk [vmem:[#allocation2 + $0x350] sm:$0xf] %vm280_vm0, %v15866_v0 }
  0x69   : > { %400 = vst.msk [vmem:[#allocation2 + $0x354] sm:$0xf] %vm280_vm0, %v15866_v0  ;;  %401 = vst.msk [vmem:[#allocation2 + $0x358] sm:$0xf] %vm280_vm0, %v15866_v0 }
  0x6a   : > { %403 = vst.msk [vmem:[#allocation2 + $0x360] sm:$0xf] %vm280_vm0, %v15866_v0  ;;  %404 = vst.msk [vmem:[#allocation2 + $0x364] sm:$0xf] %vm280_vm0, %v15866_v0 }
  0x6b   : > { %405 = vst.msk [vmem:[#allocation2 + $0x368] sm:$0xf] %vm280_vm0, %v15866_v0  ;;  %406 = vst.msk [vmem:[#allocation2 + $0x36c] sm:$0xf] %vm280_vm0, %v15866_v0 }
  0x6c   : > { %407 = vst.msk [vmem:[#allocation2 + $0x370] sm:$0xf] %vm280_vm0, %v15866_v0  ;;  %409 = vst.msk [vmem:[#allocation2 + $0x378] sm:$0xf] %vm280_vm0, %v15866_v0 }
  0x6d   : > { %410 = vst.msk [vmem:[#allocation2 + $0x37c] sm:$0xf] %vm280_vm0, %v15866_v0  ;;  %411 = vst.msk [vmem:[#allocation2 + $0x380] sm:$0xf] %vm280_vm0, %v15866_v0 }
  0x6e   : > { %412 = vst.msk [vmem:[#allocation2 + $0x384] sm:$0xf] %vm280_vm0, %v15866_v0  ;;  %413 = vst.msk [vmem:[#allocation2 + $0x388] sm:$0xf] %vm280_vm0, %v15866_v0 }
  0x6f   : > { %415 = vst.msk [vmem:[#allocation2 + $0x390] sm:$0xf] %vm280_vm0, %v15866_v0  ;;  %416 = vst.msk [vmem:[#allocation2 + $0x394] sm:$0xf] %vm280_vm0, %v15866_v0 }
  0x70   : > { %417 = vst.msk [vmem:[#allocation2 + $0x398] sm:$0xf] %vm280_vm0, %v15866_v0  ;;  %418 = vst.msk [vmem:[#allocation2 + $0x39c] sm:$0xf] %vm280_vm0, %v15866_v0 }
  0x71   : > { %419 = vst.msk [vmem:[#allocation2 + $0x3a0] sm:$0xf] %vm280_vm0, %v15866_v0  ;;  %421 = vst.msk [vmem:[#allocation2 + $0x3a8] sm:$0xf] %vm280_vm0, %v15866_v0 }
  0x72   : > { %422 = vst.msk [vmem:[#allocation2 + $0x3ac] sm:$0xf] %vm280_vm0, %v15866_v0  ;;  %423 = vst.msk [vmem:[#allocation2 + $0x3b0] sm:$0xf] %vm280_vm0, %v15866_v0 }
  0x73   : > { %424 = vst.msk [vmem:[#allocation2 + $0x3b4] sm:$0xf] %vm280_vm0, %v15866_v0  ;;  %425 = vst.msk [vmem:[#allocation2 + $0x3b8] sm:$0xf] %vm280_vm0, %v15866_v0 }
  0x74   : > { %428 = vst.msk [vmem:[#allocation2 + $0x120] sm:$0xf] %vm280_vm0, %v15866_v0  ;;  %429 = vst.msk [vmem:[#allocation2 + $0x124] sm:$0xf] %vm280_vm0, %v15866_v0 }
  0x75   : > { %430 = vst.msk [vmem:[#allocation2 + $0x138] sm:$0xf] %vm280_vm0, %v15866_v0  ;;  %432 = vst.msk [vmem:[#allocation2 + $0x150] sm:$0xf] %vm280_vm0, %v15866_v0 }
  0x76   : > { %433 = vst.msk [vmem:[#allocation2 + $0x154] sm:$0xf] %vm280_vm0, %v15866_v0  ;;  %434 = vst.msk [vmem:[#allocation2 + $0x168] sm:$0xf] %vm280_vm0, %v15866_v0 }
  0x77   : > { %435 = vst.msk [vmem:[#allocation2 + $0x16c] sm:$0xf] %vm280_vm0, %v15866_v0  ;;  %436 = vst.msk [vmem:[#allocation2 + $0x180] sm:$0xf] %vm280_vm0, %v15866_v0 }
  0x78   : > { %437 = vst.msk [vmem:[#allocation2 + $0x184] sm:$0xf] %vm280_vm0, %v15866_v0  ;;  %438 = vst.msk [vmem:[#allocation2 + $0x198] sm:$0xf] %vm280_vm0, %v15866_v0 }
  0x79   : > { %439 = vst.msk [vmem:[#allocation2 + $0x19c] sm:$0xf] %vm280_vm0, %v15866_v0  ;;  %440 = vst.msk [vmem:[#allocation2 + $0x1b0] sm:$0xf] %vm280_vm0, %v15866_v0 }
  0x7a   : > { %441 = vst.msk [vmem:[#allocation2 + $0x1b4] sm:$0xf] %vm280_vm0, %v15866_v0  ;;  %442 = vst.msk [vmem:[#allocation2 + $0x1c8] sm:$0xf] %vm280_vm0, %v15866_v0 }
  0x7b   : > { %443 = vst.msk [vmem:[#allocation2 + $0x1cc] sm:$0xf] %vm280_vm0, %v15866_v0  ;;  %444 = vst.msk [vmem:[#allocation2 + $0x1e0] sm:$0xf] %vm280_vm0, %v15866_v0  ;;  %v1489_v6 = vld [vmem:[#allocation2 + $0x124] sm:$0xe] }
  0x7c   : > { %445 = vst.msk [vmem:[#allocation2 + $0x1e4] sm:$0xf] %vm280_vm0, %v15866_v0  ;;  %446 = vst.msk [vmem:[#allocation2 + $0x1f8] sm:$0xf] %vm280_vm0, %v15866_v0  ;;  %v9299_v11 = vrot.slane %v1489_v6, 9 }
  0x7d   : > { %447 = vst.msk [vmem:[#allocation2 + $0x1fc] sm:$0xf] %vm280_vm0, %v15866_v0  ;;  %448 = vst.msk [vmem:[#allocation2 + $0x210] sm:$0xf] %vm280_vm0, %v15866_v0  ;;  %v1495_v20 = vld [vmem:[#allocation2 + $0x154] sm:$0xe] }
  0x7e   : > { %449 = vst.msk [vmem:[#allocation2 + $0x214] sm:$0xf] %vm280_vm0, %v15866_v0  ;;  %450 = vst.msk [vmem:[#allocation2 + $0x228] sm:$0xf] %vm280_vm0, %v15866_v0  ;;  %v9301_v35 = vrot.slane %v1495_v20, 9 }
  0x7f   : > { %451 = vst.msk [vmem:[#allocation2 + $0x22c] sm:$0xf] %vm280_vm0, %v15866_v0  ;;  %452 = vst.msk [vmem:[#allocation2 + $0x240] sm:$0xf] %vm280_vm0, %v15866_v0  ;;  %v1498_v36 = vld [vmem:[#allocation2 + $0x16c] sm:$0xe] }
  0x80   : > { %453 = vst.msk [vmem:[#allocation2 + $0x244] sm:$0xf] %vm280_vm0, %v15866_v0  ;;  %454 = vst.msk [vmem:[#allocation2 + $0x258] sm:$0xf] %vm280_vm0, %v15866_v0  ;;  %v9302_v51 = vrot.slane %v1498_v36, 9 }
  0x81   : > { %455 = vst.msk [vmem:[#allocation2 + $0x25c] sm:$0xf] %vm280_vm0, %v15866_v0  ;;  %456 = vst.msk [vmem:[#allocation2 + $0x270] sm:$0xf] %vm280_vm0, %v15866_v0  ;;  %v1501_v58 = vld [vmem:[#allocation2 + $0x184] sm:$0xe] }
  0x82   : > { %457 = vst.msk [vmem:[#allocation2 + $0x274] sm:$0xf] %vm280_vm0, %v15866_v0  ;;  %458 = vst.msk [vmem:[#allocation2 + $0x288] sm:$0xf] %vm280_vm0, %v15866_v0  ;;  %v9303_v5 = vrot.slane %v1501_v58, 9 }
  0x83   : > { %459 = vst.msk [vmem:[#allocation2 + $0x28c] sm:$0xf] %vm280_vm0, %v15866_v0  ;;  %460 = vst.msk [vmem:[#allocation2 + $0x130] sm:$0xf] %vm280_vm0, %v15866_v0  ;;  %v10906_v6 = vld [vmem:[%s15839_s1 + $0x24] ss:$8 sps:$4 sm:$0xff]  }
  0x84   : > { %462 = vst.msk [vmem:[#allocation2 + $0x148] sm:$0xf] %vm280_vm0, %v15866_v0  ;;  %464 = vst.msk [vmem:[#allocation2 + $0x160] sm:$0xf] %vm280_vm0, %v15866_v0  ;;  %781 = vmatprep.subr.bf16.mxu0 %v10906_v6  ;;  %v505_v20 = vld [vmem:[%s11925_s14 + $0x34] sm:$0xf] }
  0x85   : > { %466 = vst.msk [vmem:[#allocation2 + $0x178] sm:$0xf] %vm280_vm0, %v15866_v0  ;;  %468 = vst.msk [vmem:[#allocation2 + $0x190] sm:$0xf] %vm280_vm0, %v15866_v0  ;;  %v508_v58 = vld [vmem:[%s11925_s14 + $0x40] sm:$0xf] }
  0x86   : > { %470 = vst.msk [vmem:[#allocation2 + $0x1a8] sm:$0xf] %vm280_vm0, %v15866_v0  ;;  %472 = vst.msk [vmem:[#allocation2 + $0x1c0] sm:$0xf] %vm280_vm0, %v15866_v0  ;;  %v10917_v6 = vld [vmem:[%s11925_s14 + $0x8] sm:$0xff]  }
  0x87   : > { %474 = vst.msk [vmem:[#allocation2 + $0x1d8] sm:$0xf] %vm280_vm0, %v15866_v0  ;;  %476 = vst.msk [vmem:[#allocation2 + $0x1f0] sm:$0xf] %vm280_vm0, %v15866_v0 }
  0x88   : > { %478 = vst.msk [vmem:[#allocation2 + $0x208] sm:$0xf] %vm280_vm0, %v15866_v0  ;;  %480 = vst.msk [vmem:[#allocation2 + $0x220] sm:$0xf] %vm280_vm0, %v15866_v0 }
  0x89   : > { %482 = vst.msk [vmem:[#allocation2 + $0x238] sm:$0xf] %vm280_vm0, %v15866_v0  ;;  %484 = vst.msk [vmem:[#allocation2 + $0x250] sm:$0xf] %vm280_vm0, %v15866_v0 }
  0x8a   : > { %486 = vst.msk [vmem:[#allocation2 + $0x268] sm:$0xf] %vm280_vm0, %v15866_v0  ;;  %488 = vst.msk [vmem:[#allocation2 + $0x280] sm:$0xf] %vm280_vm0, %v15866_v0 }
  0x8b   : > { %490 = vst.msk [vmem:[#allocation2 + $0x298] sm:$0xf] %vm280_vm0, %v15866_v0  ;;  %526 = vst.msk [vmem:[#allocation2 + $0x140] sm:$0xf] %vm280_vm0, %v494_v1  ;;  %v11998_v1 = vld [vmem:[#allocation2 + $0xe4] sm:$0xf] }
  0x8c   : > { %527 = vst.msk [vmem:[#allocation2 + $0x144] sm:$0xf] %vm280_vm0, %v495_v2  ;;  %524 = vst.msk [vmem:[#allocation2 + $0x128] sm:$0xf] %vm280_vm0, %v492_v3 }
  0x8d   : > { %525 = vst.msk [vmem:[#allocation2 + $0x12c] sm:$0xf] %vm280_vm0, %v493_v4  ;;  %528 = vst.msk [vmem:[#allocation2 + $0x158] sm:$0xf] %vm280_vm0, %v496_v7  ;;  %v503_v4 = vld [vmem:[%s11925_s14 + $0x2c] sm:$0xf] }
  0x8e   : > { %vm11938_vm3 = vmor %vm1163_vm1, %vm1164_vm2  ;;  %529 = vst.msk [vmem:[#allocation2 + $0x15c] sm:$0xf] %vm280_vm0, %v497_v8  ;;  %v12010_v8 = vld [vmem:[#allocation2 + $0xf8] sm:$0xf] }
  0x8f   : > { %530 = vst.msk [vmem:[#allocation2 + $0x170] sm:$0xf] %vm280_vm0, %v498_v21  ;;  %531 = vst.msk [vmem:[#allocation2 + $0x174] sm:$0xf] %vm280_vm0, %v499_v29 }
  0x90   : > { %532 = vst.msk [vmem:[#allocation2 + $0x188] sm:$0xf] %vm280_vm0, %v500_v43  ;;  %533 = vst.msk [vmem:[#allocation2 + $0x18c] sm:$0xf] %vm280_vm0, %v501_v48 }
  0x91   : > { %534 = vst.msk [vmem:[#allocation2 + $0x1a0] sm:$0xf] %vm280_vm0, %v502_v63  ;;  %535 = vst.msk [vmem:[#allocation2 + $0x1a4] sm:$0xf] %vm280_vm0, %v503_v4 }
  0x92   : > { %v1493_v12 = vld [vmem:[#allocation2 + $0x140] sm:$0xf]  ;;  %537 = vst.msk [vmem:[#allocation2 + $0x1bc] sm:$0xf] %vm280_vm0, %v505_v20  ;;  %540 = vst.msk [vmem:[#allocation2 + $0x1e8] sm:$0xf] %vm280_vm0, %v508_v58 }
  0x93   : > { %v1494_v13 = vld [vmem:[#allocation2 + $0x144] sm:$0x1]  ;;  %v1490_v14 = vld [vmem:[#allocation2 + $0x128] sm:$0xf]  ;;  %v1594_v15 = vrot.slane %v1493_v12, 5  ;;  %vm12082_vm7 = vmor %vm4338_vm5, %vm4339_vm6 }
  0x94   : > { %v1597_v16 = vrot.slane %v1494_v13, 5  ;;  %v1491_v17 = vld [vmem:[#allocation2 + $0x12c] sm:$0x1]  ;;  %v1587_v18 = vrot.slane %v1490_v14, 5  ;;  %v1496_v34 = vld [vmem:[#allocation2 + $0x158] sm:$0xf]  ;;  %v9382_v13 = vcombine.low %v1077_v55, %v11998_v1  ;;  %vm12347_vm11 = vmor %vm1374_vm9, %vm1375_vm10 }
  0x95   : > { %v1590_v19 = vrot.slane %v1491_v17, 5  ;;  %v1595_v22 = vsel %vm11938_vm3, %v9300_v10, %v1594_v15  ;;  %v1596_v23 = vrot.slane %v1594_v15, 4  ;;  %v1497_v39 = vld [vmem:[#allocation2 + $0x15c] sm:$0x1]  ;;  %v1601_v40 = vrot.slane %v1496_v34, 5 }
  0x96   : > { %v1588_v24 = vsel %vm11938_vm3, %v9299_v11, %v1587_v18  ;;  %v1589_v25 = vrot.slane %v1587_v18, 4  ;;  %v1604_v42 = vrot.slane %v1497_v39, 5  ;;  %v1499_v54 = vld [vmem:[#allocation2 + $0x170] sm:$0xf]  ;;  %v1500_v56 = vld [vmem:[#allocation2 + $0x174] sm:$0x1] }
  0x97   : > { %v1598_v32 = vsel %vm11938_vm3, %v1596_v23, %v1597_v16  ;;  %v1603_v47 = vrot.slane %v1601_v40, 4  ;;  %v1602_v50 = vsel %vm11938_vm3, %v9301_v35, %v1601_v40  ;;  %v1608_v57 = vrot.slane %v1499_v54, 5  ;;  %v1282_v10 = vld [vmem:[#allocation2 + $0xfc] sm:$0xf]  ;;  %v1502_v11 = vld [vmem:[#allocation2 + $0x188] sm:$0xf] }
  0x98   : > { %v1591_v33 = vsel %vm11938_vm3, %v1589_v25, %v1590_v19  ;;  %v9412_v37 = vcombine.low %v1595_v22, %v1598_v32  ;;  %v1611_v61 = vrot.slane %v1500_v56, 5  ;;  %v1504_v12 = vld [vmem:[#allocation2 + $0x19c] sm:$0xe]  ;;  %v1503_v15 = vld [vmem:[#allocation2 + $0x18c] sm:$0x1]  ;;  %v1615_v16 = vrot.slane %v1502_v11, 5 }
  0x99   : > { %v9411_v38 = vcombine.low %v1588_v24, %v1591_v33  ;;  %v1605_v53 = vsel %vm11938_vm3, %v1603_v47, %v1604_v42  ;;  %v1609_v2 = vsel %vm11938_vm3, %v9302_v51, %v1608_v57  ;;  %v1610_v3 = vrot.slane %v1608_v57, 4  ;;  %v10909_v17 = vld [vmem:[%s15839_s1 + $0x20] ss:$8 sps:$4 sm:$0xff]   ;;  %v504_v19 = vld [vmem:[%s11925_s14 + $0x30] sm:$0xf] }
  0x9a   : > { %2548 = vrot.lane.b32.xlu1 %v9412_v37, %s11456_s19  ;;  %v9413_v60 = vcombine.low %v1602_v50, %v1605_v53  ;;  %v1618_v18 = vrot.slane %v1503_v15, 5  ;;  %v1616_v21 = vsel %vm11938_vm3, %v9303_v5, %v1615_v16  ;;  %v1617_v22 = vrot.slane %v1615_v16, 4  ;;  %782 = vmatpush1.bf16.msra.mxu0 %v10909_v17  ;;  %536 = vst.msk [vmem:[#allocation2 + $0x1b8] sm:$0xf] %vm280_vm0, %v504_v19  ;;  %v10910_v23 = vld [vmem:[%s15839_s1 + $0x34] ss:$8 sps:$4 sm:$0xff]  }
  0x9b   : > { %2546 = vrot.lane.b32.xlu0 %v9411_v38, %s11456_s19  ;;  %v1612_v7 = vsel %vm11938_vm3, %v1610_v3, %v1611_v61  ;;  %v1083_v24 = vld [vmem:[#allocation2 + $0x110] sm:$0xf]  ;;  %v1283_v25 = vld [vmem:[#allocation2 + $0x114] sm:$0xf]  ;;  %v9304_v29 = vrot.slane %v1504_v12, 9  ;;  %v9383_v31 = vcombine.low %v12010_v8, %v1282_v10  ;;  %783 = vmatprep.subr.bf16.mxu0 %v10910_v23  ;;  %v10914_v40 = vld [vmem:[%s11925_s14] sm:$0xff]  }
  0x9c   : > { %v9414_v14 = vcombine.low %v1609_v2, %v1612_v7  ;;  %v1619_v32 = vsel %vm11938_vm3, %v1617_v22, %v1618_v18  ;;  %v1505_v33 = vld [vmem:[#allocation2 + $0x1a0] sm:$0xf]  ;;  %v1507_v34 = vld [vmem:[#allocation2 + $0x1b4] sm:$0xe]  ;;  %v10913_v35 = vld [vmem:[%s15839_s1 + $0x30] ss:$8 sps:$4 sm:$0xff]   ;;  %v9384_v48 = vcombine.low %v1083_v24, %v1283_v25 }
  0x9d   : > { %v9415_v36 = vcombine.low %v1616_v21, %v1619_v32  ;;  %v1506_v37 = vld [vmem:[#allocation2 + $0x1a4] sm:$0x1]  ;;  %v1622_v38 = vrot.slane %v1505_v33, 5  ;;  %v506_v39 = vld [vmem:[%s11925_s14 + $0x38] sm:$0xf]  ;;  %v9305_v50 = vrot.slane %v1507_v34, 9 }
  0x9e   : > { %2420 = vrot.lane.b32.xlu1 %v9380_v44, %s11456_s19  ;;  %v1625_v41 = vrot.slane %v1506_v37, 5  ;;  %784 = vmatpush1.bf16.msra.mxu0 %v10913_v35  ;;  %v507_v42 = vld [vmem:[%s11925_s14 + $0x3c] sm:$0xf]  ;;  %538 = vst.msk [vmem:[#allocation2 + $0x1d0] sm:$0xf] %vm280_vm0, %v506_v39 }
  0x9f   : > { %2418 = vrot.lane.b32.xlu0 %v9379_v45, %s11456_s19  ;;  %v1623_v43 = vsel %vm11938_vm3, %v9304_v29, %v1622_v38  ;;  %v1624_v44 = vrot.slane %v1622_v38, 4  ;;  %v1086_v45 = vld [vmem:[#allocation2 + $0x128] sm:$0xf]  ;;  %v1284_v47 = vld [vmem:[#allocation2 + $0x12c] sm:$0xf] }
  0xa0   : > { %539 = vst.msk [vmem:[#allocation2 + $0x1d4] sm:$0xf] %vm280_vm0, %v507_v42  ;;  %v1510_v51 = vld [vmem:[#allocation2 + $0x1cc] sm:$0xe]  ;;  %v1509_v54 = vld [vmem:[#allocation2 + $0x1bc] sm:$0x1] }
  0xa1   : > { %v1626_v52 = vsel %vm11938_vm3, %v1624_v44, %v1625_v41  ;;  %v1508_v53 = vld [vmem:[#allocation2 + $0x1b8] sm:$0xf]  ;;  %9251 = vmatmul.mubr.msk.bf16.vlgmr.msra.gmra.mrb[0].mxu0 %vm728_vm4, %v10914_v40  ;;  %v1632_v57 = vrot.slane %v1509_v54, 5  ;;  %v1089_v63 = vld [vmem:[#allocation2 + $0x140] sm:$0xf]  ;;  %v9306_v3 = vrot.slane %v1510_v51, 9 }
  0xa2   : > { %2422 = vrot.lane.b32.xlu1 %v9381_v59, %s11456_s19  ;;  %v9416_v55 = vcombine.low %v1623_v43, %v1626_v52  ;;  %v1629_v56 = vrot.slane %v1508_v53, 5  ;;  %819 = vmatprep.mubr.bf16.mxu0 %v15866_v0  ;;  %v509_v59 = vld [vmem:[%s11925_s14 + $0x44] sm:$0xf]  ;;  %v510_v12 = vld [vmem:[%s11925_s14 + $0x48] sm:$0xf] }
  0xa3   : > { %2550 = vrot.lane.b32.xlu0 %v9413_v60, %s11456_s19  ;;  %v9385_v60 = vcombine.low %v1086_v45, %v1284_v47  ;;  %v1285_v2 = vld [vmem:[#allocation2 + $0x144] sm:$0xf]  ;;  %541 = vst.msk [vmem:[#allocation2 + $0x1ec] sm:$0xf] %vm280_vm0, %v509_v59  ;;  %v1092_v15 = vld [vmem:[#allocation2 + $0x158] sm:$0xf] }
  0xa4   : > { %v1630_v61 = vsel %vm11938_vm3, %v9305_v50, %v1629_v56  ;;  %v1631_v62 = vrot.slane %v1629_v56, 4  ;;  %v1513_v5 = vld [vmem:[#allocation2 + $0x1e4] sm:$0xe]  ;;  %v1286_v16 = vld [vmem:[#allocation2 + $0x15c] sm:$0xf]  ;;  %v9386_v18 = vcombine.low %v1089_v63, %v1285_v2  ;;  %v10920_v50 = vld [vmem:[%s11925_s14 + $0x10] sm:$0xff]  }
  0xa5   : > { %v1511_v4 = vld [vmem:[#allocation2 + $0x1d0] sm:$0xf]  ;;  %v511_v17 = vld [vmem:[%s11925_s14 + $0x4c] sm:$0xf]  ;;  %542 = vst.msk [vmem:[#allocation2 + $0x200] sm:$0xf] %vm280_vm0, %v510_v12  ;;  %v9387_v39 = vcombine.low %v1092_v15, %v1286_v16 }
  0xa6   : > { %2424 = vrot.lane.b32.xlu1 %v9382_v13, %s11456_s19  ;;  %v1633_v7 = vsel %vm11938_vm3, %v1631_v62, %v1632_v57  ;;  %v1636_v11 = vrot.slane %v1511_v4, 5  ;;  %543 = vst.msk [vmem:[#allocation2 + $0x204] sm:$0xf] %vm280_vm0, %v511_v17  ;;  %v1516_v21 = vld [vmem:[#allocation2 + $0x1fc] sm:$0xe]  ;;  %v9307_v22 = vrot.slane %v1513_v5, 9 }
  0xa7   : > { %2552 = vrot.lane.b32.xlu0 %v9414_v14, %s11456_s19  ;;  %v1512_v10 = vld [vmem:[#allocation2 + $0x1d4] sm:$0x1]  ;;  %v9417_v13 = vcombine.low %v1630_v61, %v1633_v7  ;;  %v4693_v23 = vld [vmem:[#allocation2 + $0x120] sm:$0xc]  ;;  %v1514_v25 = vld [vmem:[#allocation2 + $0x1e8] sm:$0xf] }
  0xa8   : > { %v1639_v14 = vrot.slane %v1512_v10, 5  ;;  %v1637_v19 = vsel %vm11938_vm3, %v9306_v3, %v1636_v11  ;;  %v1638_v20 = vrot.slane %v1636_v11, 4  ;;  %v4694_v29 = vld [vmem:[#allocation2 + $0x124] sm:$0xf]  ;;  %v1643_v34 = vrot.slane %v1514_v25, 5  ;;  %v11241_v52 = vld [vmem:[%s15842_s4 + $0x148] sm:$0xff]  }
  0xa9   : > { %9252 = vmatmul.mubr.msk.bf16.gmra.mrb[4].mxu0 %vm728_vm4, %v10917_v6  ;;  %v1095_v35 = vld [vmem:[#allocation2 + $0x170] sm:$0xf]  ;;  %v9308_v37 = vrot.slane %v1516_v21, 9  ;;  %v4791_v38 = vrot.slane %v4694_v29, 6  ;;  %v9612_v41 = vrot.slane %v4693_v23, 10  ;;  %v10925_v21 = vld [vmem:[%s11925_s14 + $0x18] sm:$0xff]  }
  0xaa   : > { %2426 = vrot.lane.b32.xlu1 %v9383_v31, %s11456_s19  ;;  %v1640_v24 = vsel %vm11938_vm3, %v1638_v20, %v1639_v14  ;;  %v4695_v31 = vld [vmem:[#allocation2 + $0x128] sm:$0x3]  ;;  %829 = vmatprep.mubr.bf16.mxu0 %v15866_v0  ;;  %v1515_v33 = vld [vmem:[#allocation2 + $0x1ec] sm:$0x1]  ;;  %v512_v42 = vld [vmem:[%s11925_s14 + $0x50] sm:$0xf]  ;;  %v1644_v44 = vsel %vm11938_vm3, %v9307_v22, %v1643_v34 }
  0xab   : > { %2554 = vrot.lane.b32.xlu0 %v9415_v36, %s11456_s19  ;;  %v9418_v32 = vcombine.low %v1637_v19, %v1640_v24  ;;  %v1287_v36 = vld [vmem:[#allocation2 + $0x174] sm:$0xf]  ;;  %v1646_v40 = vrot.slane %v1515_v33, 5  ;;  %v1645_v45 = vrot.slane %v1643_v34, 4  ;;  %v4793_v47 = vrot.slane %v4791_v38, 4  ;;  %v10918_v22 = vld [vmem:[#allocation2 + $0x8] sm:$0xff]  }
  0xac   : > { %v513_v43 = vld [vmem:[%s11925_s14 + $0x54] sm:$0xf]  ;;  %544 = vst.msk [vmem:[#allocation2 + $0x218] sm:$0xf] %vm280_vm0, %v512_v42  ;;  %v1517_v51 = vld [vmem:[#allocation2 + $0x200] sm:$0xf]  ;;  %v9388_v57 = vcombine.low %v1095_v35, %v1287_v36  ;;  %v4792_v62 = vsel %vm12082_vm7, %v9612_v41, %v4791_v38 }
  0xad   : > { %545 = vst.msk [vmem:[#allocation2 + $0x21c] sm:$0xf] %vm280_vm0, %v513_v43  ;;  %v1647_v53 = vsel %vm11938_vm3, %v1645_v45, %v1646_v40  ;;  %v1518_v54 = vld [vmem:[#allocation2 + $0x204] sm:$0x1]  ;;  %v1519_v59 = vld [vmem:[#allocation2 + $0x214] sm:$0xe] }
  0xae   : > { %2428 = vrot.lane.b32.xlu1 %v9384_v48, %s11456_s19  ;;  %v4794_v48 = vrot.slane %v4695_v31, 6  ;;  %v9419_v56 = vcombine.low %v1644_v44, %v1647_v53  ;;  %v1653_v58 = vrot.slane %v1518_v54, 5  ;;  %v4696_v2 = vld [vmem:[#allocation2 + $0x138] sm:$0xc]  ;;  %v4697_v3 = vld [vmem:[#allocation2 + $0x13c] sm:$0xf] }
  0xaf   : > { %2556 = vrot.lane.b32.xlu0 %v9416_v55, %s11456_s19  ;;  %v1650_v55 = vrot.slane %v1517_v51, 5  ;;  %v4698_v4 = vld [vmem:[#allocation2 + $0x140] sm:$0x3]  ;;  %v9309_v6 = vrot.slane %v1519_v59, 9  ;;  %v9613_v7 = vrot.slane %v4696_v2, 10  ;;  %v4798_v10 = vrot.slane %v4697_v3, 6 }
  0xb0   : > { %v4795_v63 = vsel %vm12082_vm7, %v4793_v47, %v4794_v48  ;;  %v514_v11 = vld [vmem:[%s11925_s14 + $0x58] sm:$0xf]  ;;  %v515_v16 = vld [vmem:[%s11925_s14 + $0x5c] sm:$0xf]  ;;  %v4801_v20 = vrot.slane %v4698_v4, 6  ;;  %v3076_v33 = vld [vmem:[#allocation3 + $0x10] sm:$0xff] }
  0xb1   : > { %v1652_v61 = vrot.slane %v1650_v55, 4  ;;  %9253 = vmatmul.mubr.msk.bf16.gmra.mrb[8].mxu0 %vm728_vm4, %v10920_v50  ;;  %546 = vst.msk [vmem:[#allocation2 + $0x230] sm:$0xf] %vm280_vm0, %v514_v11  ;;  %v4800_v19 = vrot.slane %v4798_v10, 4  ;;  %547 = vst.msk [vmem:[#allocation2 + $0x234] sm:$0xf] %vm280_vm0, %v515_v16  ;;  %v4799_v35 = vsel %vm12082_vm7, %v9613_v7, %v4798_v10 }
  0xb2   : > { %2430 = vrot.lane.b32.xlu1 %v9385_v60, %s11456_s19  ;;  %v1651_v60 = vsel %vm11938_vm3, %v9308_v37, %v1650_v55  ;;  %839 = vmatprep.mubr.bf16.mxu0 %v15866_v0  ;;  %v1098_v23 = vld [vmem:[#allocation2 + $0x188] sm:$0xf]  ;;  %v1522_v29 = vld [vmem:[#allocation2 + $0x22c] sm:$0xe]  ;;  %v4699_v40 = vld [vmem:[#allocation2 + $0x150] sm:$0xc] }
  0xb3   : > { %2558 = vrot.lane.b32.xlu0 %v9417_v13, %s11456_s19  ;;  %v1654_v5 = vsel %vm11938_vm3, %v1652_v61, %v1653_v58  ;;  %v9724_v13 = vcombine.low %v4792_v62, %v4795_v63  ;;  %v1520_v14 = vld [vmem:[#allocation2 + $0x218] sm:$0xf]  ;;  %v10922_v31 = vld [vmem:[#allocation3 + $0x4] ss:$8 sps:$4 sm:$0xff]   ;;  %v4802_v36 = vsel %vm12082_vm7, %v4800_v19, %v4801_v20  ;;  %v10926_v37 = vld [vmem:[#allocation3] ss:$8 sps:$4 sm:$0xff]  }
  0xb4   : > { %v9420_v12 = vcombine.low %v1651_v60, %v1654_v5  ;;  %v1521_v15 = vld [vmem:[#allocation2 + $0x21c] sm:$0x1]  ;;  %v1657_v17 = vrot.slane %v1520_v14, 5  ;;  %3567 = vmatprep.subr.bf16.mxu1 %v10922_v31  ;;  %v4700_v41 = vld [vmem:[#allocation2 + $0x154] sm:$0xf]  ;;  %v9725_v47 = vcombine.low %v4799_v35, %v4802_v36  ;;  %v9614_v51 = vrot.slane %v4699_v40, 10 }
  0xb5   : > { %v3077_v42 = vld [vmem:[#allocation3 + $0x18] sm:$0xff]  ;;  %3568 = vmatpush1.bf16.msra.mxu1 %v10926_v37  ;;  %v4805_v53 = vrot.slane %v4700_v41, 6  ;;  %v10933_v54 = vld [vmem:[%s11925_s14 + $0x20] sm:$0xff]   ;;  %v3080_v7 = vld [vmem:[#allocation3 + $0x30] sm:$0xff]  ;;  %287 = vst.msk [vmem:[#allocation2 + $0x14] sm:$0x3] %vm286_vm8, %v15866_v0 }
  0xb6   : > { %2432 = vrot.lane.b32.xlu1 %v9386_v18, %s11456_s19  ;;  %v1660_v18 = vrot.slane %v1521_v15, 5  ;;  %v1658_v24 = vsel %vm11938_vm3, %v9309_v6, %v1657_v17  ;;  %v1659_v25 = vrot.slane %v1657_v17, 4  ;;  %v4701_v45 = vld [vmem:[#allocation2 + $0x158] sm:$0x3]  ;;  %v516_v58 = vld [vmem:[%s11925_s14 + $0x60] sm:$0xf]  ;;  %v9494_v59 = vcombine.low %v3076_v33, %v3077_v42 }
  0xb7   : > { %2560 = vrot.lane.b32.xlu0 %v9418_v32, %s11456_s19  ;;  %v1288_v32 = vld [vmem:[#allocation2 + $0x18c] sm:$0xf]  ;;  %v4807_v62 = vrot.slane %v4805_v53, 4  ;;  %v517_v63 = vld [vmem:[%s11925_s14 + $0x64] sm:$0xf]  ;;  %v3081_v10 = vld [vmem:[#allocation3 + $0x38] sm:$0xff] }
  0xb8   : > { %v1661_v34 = vsel %vm11938_vm3, %v1659_v25, %v1660_v18  ;;  %v9389_v43 = vcombine.low %v1098_v23, %v1288_v32  ;;  %v1523_v44 = vld [vmem:[#allocation2 + $0x230] sm:$0xf]  ;;  %v1524_v48 = vld [vmem:[#allocation2 + $0x234] sm:$0x1]  ;;  %548 = vst.msk [vmem:[#allocation2 + $0x248] sm:$0xf] %vm280_vm0, %v516_v58  ;;  %v9498_v35 = vcombine.low %v3080_v7, %v3081_v10 }
  0xb9   : > { %9254 = vmatmul.mubr.msk.bf16.gmra.mrb[12].mxu0 %vm728_vm4, %v10925_v21  ;;  %v9421_v38 = vcombine.low %v1658_v24, %v1661_v34  ;;  %v1664_v50 = vrot.slane %v1523_v44, 5  ;;  %v1667_v55 = vrot.slane %v1524_v48, 5  ;;  %v10921_v2 = vld [vmem:[#allocation2 + $0x20] sm:$0xff]   ;;  %549 = vst.msk [vmem:[#allocation2 + $0x24c] sm:$0xf] %vm280_vm0, %v517_v63  ;;  %v3084_v41 = vld [vmem:[#allocation3 + $0x50] sm:$0xff] }
  0xba   : > { %2434 = vrot.lane.b32.xlu1 %v9387_v39, %s11456_s19  ;;  %v9310_v39 = vrot.slane %v1522_v29, 9  ;;  %849 = vmatprep.mubr.bf16.mxu0 %v15866_v0  ;;  %v1101_v4 = vld [vmem:[#allocation2 + $0x1a0] sm:$0xf]  ;;  %v1525_v5 = vld [vmem:[#allocation2 + $0x244] sm:$0xe]  ;;  %v3085_v42 = vld [vmem:[#allocation3 + $0x58] sm:$0xff] }
  0xbb   : > { %2562 = vrot.lane.b32.xlu0 %v9419_v56, %s11456_s19  ;;  %v4808_v56 = vrot.slane %v4701_v45, 6  ;;  %v1666_v61 = vrot.slane %v1664_v50, 4  ;;  %v10930_v6 = vld [vmem:[#allocation3 + $0x24] ss:$8 sps:$4 sm:$0xff]   ;;  %v10934_v15 = vld [vmem:[#allocation3 + $0x20] ss:$8 sps:$4 sm:$0xff]  }
  0xbc   : > { %v1665_v60 = vsel %vm11938_vm3, %v9310_v39, %v1664_v50  ;;  %v4702_v16 = vld [vmem:[#allocation2 + $0x168] sm:$0xc]  ;;  %v4703_v17 = vld [vmem:[#allocation2 + $0x16c] sm:$0xf]  ;;  %v9311_v18 = vrot.slane %v1525_v5, 9 }
  0xbd   : > { %v1668_v3 = vsel %vm11938_vm3, %v1666_v61, %v1667_v55  ;;  %v4809_v14 = vsel %vm12082_vm7, %v4807_v62, %v4808_v56  ;;  %v4704_v19 = vld [vmem:[#allocation2 + $0x170] sm:$0x3]  ;;  %v9615_v20 = vrot.slane %v4702_v16, 10  ;;  %v4812_v21 = vrot.slane %v4703_v17, 6  ;;  %v10935_v29 = vld [vmem:[#allocation3 + $0x34] ss:$8 sps:$4 sm:$0xff]  }
  0xbe   : > { %2436 = vrot.lane.b32.xlu1 %v9388_v57, %s11456_s19  ;;  %v10927_v57 = vld [vmem:[#allocation3 + $0x14] ss:$8 sps:$4 sm:$0xff]   ;;  %v9422_v11 = vcombine.low %v1665_v60, %v1668_v3  ;;  %v4815_v25 = vrot.slane %v4704_v19, 6  ;;  %v518_v31 = vld [vmem:[%s11925_s14 + $0x68] sm:$0xf]  ;;  %v15859_v61 = vrot.slane %v11950_v27, 7 }
  0xbf   : > { %2564 = vrot.lane.b32.xlu0 %v9420_v12, %s11456_s19  ;;  %3569 = vmatprep.subr.bf16.mxu1 %v10927_v57  ;;  %v1289_v12 = vld [vmem:[#allocation2 + $0x1a4] sm:$0xf]  ;;  %v1526_v32 = vld [vmem:[#allocation2 + $0x248] sm:$0xf]  ;;  %v4814_v33 = vrot.slane %v4812_v21, 4  ;;  %v15858_v16 = vrot.slane %v11948_v26, 5 }
  0xc0   : > { %3570 = vmatpush1.bf16.msra.mxu1 %v9494_v59  ;;  %v9390_v23 = vcombine.low %v1101_v4, %v1289_v12  ;;  %v519_v34 = vld [vmem:[%s11925_s14 + $0x6c] sm:$0xf]  ;;  %550 = vst.msk [vmem:[#allocation2 + $0x260] sm:$0xf] %vm280_vm0, %v518_v31  ;;  %v1671_v37 = vrot.slane %v1526_v32, 5  ;;  %v9502_v4 = vcombine.low %v3084_v41, %v3085_v42  ;;  %v10937_v19 = vld [vmem:[#allocation2 + $0x50] sm:$0xff]  }
  0xc1   : > { %9255 = vmatmul.mubr.msk.bf16.gmra.mrb[16].mxu0 %vm728_vm4, %v10933_v54  ;;  %3571 = vmatprep.subr.bf16.mxu1 %v10930_v6  ;;  %v1527_v36 = vld [vmem:[#allocation2 + $0x24c] sm:$0x1]  ;;  %551 = vst.msk [vmem:[#allocation2 + $0x264] sm:$0xf] %vm280_vm0, %v519_v34  ;;  %v1528_v39 = vld [vmem:[#allocation2 + $0x25c] sm:$0xe] }
  0xc2   : > { %5814 = vrot.lane.b32.xlu1 %v9724_v13, %s11456_s19  ;;  %v4806_v13 = vsel %vm12082_vm7, %v9614_v51, %v4805_v53  ;;  %859 = vmatprep.mubr.bf16.mxu0 %v15866_v0  ;;  %v1674_v40 = vrot.slane %v1527_v36, 5  ;;  %v1673_v44 = vrot.slane %v1671_v37, 4  ;;  %v10938_v45 = vld [vmem:[#allocation3 + $0x44] ss:$8 sps:$4 sm:$0xff]   ;;  %v1104_v48 = vld [vmem:[#allocation2 + $0x1b8] sm:$0xf]  ;;  %v4813_v51 = vsel %vm12082_vm7, %v9615_v20, %v4812_v21 }
  0xc3   : > { %2566 = vrot.lane.b32.xlu0 %v9421_v38, %s11456_s19  ;;  %v9726_v24 = vcombine.low %v4806_v13, %v4809_v14  ;;  %v10929_v38 = vld [vmem:[#allocation2 + $0x38] sm:$0xff]   ;;  %v4816_v53 = vsel %vm12082_vm7, %v4814_v33, %v4815_v25  ;;  %v10942_v54 = vld [vmem:[#allocation3 + $0x244] ss:$8 sps:$4 sm:$0xff]   ;;  %v9312_v56 = vrot.slane %v1528_v39, 9  ;;  %v10945_v58 = vld [vmem:[#allocation3 + $0x40] ss:$8 sps:$4 sm:$0xff]  }
  0xc4   : > { %3572 = vmatpush1.bf16.msra.mxu1 %v10934_v15  ;;  %v1290_v50 = vld [vmem:[#allocation2 + $0x1bc] sm:$0xf]  ;;  %v1675_v55 = vsel %vm11938_vm3, %v1673_v44, %v1674_v40  ;;  %6868 = vmatprep.subr.bf16.mxu0 %v10942_v54  ;;  %v4705_v59 = vld [vmem:[#allocation2 + $0x180] sm:$0xc]  ;;  %v4706_v60 = vld [vmem:[#allocation2 + $0x184] sm:$0xf]  ;;  %v9727_v63 = vcombine.low %v4813_v51, %v4816_v53 }
  0xc5   : > { %3573 = vmatprep.subr.bf16.mxu1 %v10935_v29  ;;  %v9391_v62 = vcombine.low %v1104_v48, %v1290_v50  ;;  %v4707_v3 = vld [vmem:[#allocation2 + $0x188] sm:$0x3]  ;;  %v9616_v7 = vrot.slane %v4705_v59, 10  ;;  %v4819_v10 = vrot.slane %v4706_v60, 6  ;;  %v10946_v13 = vld [vmem:[#allocation3 + $0x54] ss:$8 sps:$4 sm:$0xff]  }
  0xc6   : > { %5686 = vrot.lane.b32.xlu1 %v10918_v22, %s11456_s19  ;;  %v10944_v22 = vld [vmem:[%s11925_s14 + $0x28] sm:$0xff]   ;;  %v520_v14 = vld [vmem:[%s11925_s14 + $0x70] sm:$0xf]  ;;  %v521_v21 = vld [vmem:[%s11925_s14 + $0x74] sm:$0xf]  ;;  %v1379_v36 = vrot.slane %v11956_v30, 7 }
  0xc7   : > { %2438 = vrot.lane.b32.xlu0 %v9389_v43, %s11456_s19  ;;  %v1672_v43 = vsel %vm11938_vm3, %v9311_v18, %v1671_v37  ;;  %v10955_v15 = vld [vmem:[%s11925_s14 + $0x30] sm:$0xff]   ;;  %v4821_v20 = vrot.slane %v4819_v10, 4  ;;  %552 = vst.msk [vmem:[#allocation2 + $0x278] sm:$0xf] %vm280_vm0, %v520_v14  ;;  %553 = vst.msk [vmem:[#allocation2 + $0x27c] sm:$0xf] %vm280_vm0, %v521_v21 }
  0xc8   : > { %3574 = vmatpush1.bf16.msra.mxu1 %v9498_v35  ;;  %v9423_v57 = vcombine.low %v1672_v43, %v1675_v55  ;;  %v1530_v5 = vld [vmem:[#allocation2 + $0x264] sm:$0x1]  ;;  %v10951_v31 = vld [vmem:[#allocation3 + $0x250] ss:$8 sps:$4 sm:$0xff]   ;;  %v10953_v32 = vld [vmem:[#allocation3 + $0x254] ss:$8 sps:$4 sm:$0xff]  }
  0xc9   : > { %9256 = vmatmul.mubr.msk.bf16.gmra.mrb[20].mxu0 %vm728_vm4, %v10944_v22  ;;  %3575 = vmatprep.subr.bf16.mxu1 %v10938_v45  ;;  %v1681_v12 = vrot.slane %v1530_v5, 5  ;;  %v1107_v22 = vld [vmem:[#allocation2 + $0x1d0] sm:$0xf]  ;;  %v10949_v29 = vld [vmem:[#allocation3 + $0x64] ss:$8 sps:$4 sm:$0xff]   ;;  %v3089_v48 = vld [vmem:[#allocation3 + $0x78] sm:$0xff] }
  0xca   : > { %5816 = vrot.lane.b32.xlu1 %v9725_v47, %s11456_s19  ;;  %v10940_v47 = vld [vmem:[#allocation3 + $0x240] ss:$8 sps:$4 sm:$0xff]   ;;  %869 = vmatprep.mubr.bf16.mxu0 %v15866_v0  ;;  %v1291_v34 = vld [vmem:[#allocation2 + $0x1d4] sm:$0xf]  ;;  %v4708_v40 = vld [vmem:[#allocation2 + $0x198] sm:$0xc] }
  0xcb   : > { %2568 = vrot.lane.b32.xlu0 %v9422_v11, %s11456_s19  ;;  %6869 = vmatpush1.bf16.msra.mxu0 %v10940_v47  ;;  %v4822_v11 = vrot.slane %v4707_v3, 6  ;;  %v1531_v35 = vld [vmem:[#allocation2 + $0x274] sm:$0xe]  ;;  %v10956_v37 = vld [vmem:[#allocation3 + $0x60] ss:$8 sps:$4 sm:$0xff]   ;;  %v9392_v43 = vcombine.low %v1107_v22, %v1291_v34  ;;  %v9617_v45 = vrot.slane %v4708_v40, 10 }
  0xcc   : > { %3576 = vmatpush1.bf16.msra.mxu1 %v10945_v58  ;;  %6870 = vmatprep.subr.bf16.mxu0 %v10953_v32  ;;  %v4709_v41 = vld [vmem:[#allocation2 + $0x19c] sm:$0xf]  ;;  %v4710_v42 = vld [vmem:[#allocation2 + $0x1a0] sm:$0x3]  ;;  %v9313_v44 = vrot.slane %v1531_v35, 9  ;;  %v1168_v59 = vrot.slane %v11952_v28, 5 }
  0xcd   : > { %3577 = vmatprep.subr.bf16.mxu1 %v10946_v13  ;;  %v4823_v25 = vsel %vm12082_vm7, %v4821_v20, %v4822_v11  ;;  %v4826_v47 = vrot.slane %v4709_v41, 6  ;;  %v4829_v51 = vrot.slane %v4710_v42, 6  ;;  %v10957_v53 = vld [vmem:[#allocation3 + $0x74] ss:$8 sps:$4 sm:$0xff]   ;;  %v522_v58 = vld [vmem:[%s11925_s14 + $0x78] sm:$0xf] }
  0xce   : > { %5688 = vrot.lane.b32.xlu1 %v10921_v2, %s11456_s19  ;;  %v1529_v2 = vld [vmem:[#allocation2 + $0x260] sm:$0xf]  ;;  %v1532_v50 = vld [vmem:[#allocation2 + $0x278] sm:$0xf]  ;;  %v1533_v55 = vld [vmem:[#allocation2 + $0x27c] sm:$0x1] }
  0xcf   : > { %2440 = vrot.lane.b32.xlu0 %v9390_v23, %s11456_s19  ;;  %v1678_v6 = vrot.slane %v1529_v2, 5  ;;  %6871 = vmatpush1.bf16.msra.mxu0 %v10951_v31  ;;  %v1688_v60 = vrot.slane %v1533_v55, 5  ;;  %554 = vst.msk [vmem:[#allocation2 + $0x290] sm:$0xf] %vm280_vm0, %v522_v58  ;;  %v12194_v5 = vld [vmem:[#allocation2 + $0x1ec] sm:$0xf] }
  0xd0   : > { %3578 = vmatpush1.bf16.msra.mxu1 %v9502_v4  ;;  %v12192_v4 = vld [vmem:[#allocation2 + $0x1e8] sm:$0xf]  ;;  %v10960_v11 = vld [vmem:[#allocation3 + $0x84] ss:$8 sps:$4 sm:$0xff]   ;;  %293 = vst.msk [vmem:[#allocation2 + $0x2c] sm:$0x3] %vm286_vm8, %v15866_v0 }
  0xd1   : > { %v1679_v17 = vsel %vm11938_vm3, %v9312_v56, %v1678_v6  ;;  %v1680_v18 = vrot.slane %v1678_v6, 4  ;;  %9257 = vmatmul.mubr.msk.bf16.gmra.mrb[24].mxu0 %vm728_vm4, %v10955_v15  ;;  %3579 = vmatprep.subr.bf16.mxu1 %v10949_v29  ;;  %v1685_v56 = vrot.slane %v1532_v50, 5  ;;  %v12198_v6 = vsel %vm12082_vm7, %v9617_v45, %v4826_v47  ;;  %v12211_v13 = vld [vmem:[#allocation2 + $0x28c] sm:$0xe]  ;;  %v10962_v14 = vld [vmem:[#allocation3 + $0x260] ss:$8 sps:$4 sm:$0xff]  }
  0xd2   : > { %5818 = vrot.lane.b32.xlu1 %v9726_v24, %s11456_s19  ;;  %v4820_v24 = vsel %vm12082_vm7, %v9616_v7, %v4819_v10  ;;  %879 = vmatprep.mubr.bf16.mxu0 %v15866_v0  ;;  %v12207_v10 = vrot.slane %v15859_v61, 4  ;;  %v10964_v15 = vld [vmem:[#allocation3 + $0x264] ss:$8 sps:$4 sm:$0xff]   ;;  %299 = vst.msk [vmem:[#allocation2 + $0x44] sm:$0x3] %vm286_vm8, %v15866_v0  ;;  %v10966_v21 = vld [vmem:[%s11925_s14 + $0x38] sm:$0xff]  }
  0xd3   : > { %2570 = vrot.lane.b32.xlu0 %v9423_v57, %s11456_s19  ;;  %v1682_v23 = vsel %vm11938_vm3, %v1680_v18, %v1681_v12  ;;  %v9728_v39 = vcombine.low %v4820_v24, %v4823_v25  ;;  %v4828_v57 = vrot.slane %v4826_v47, 4  ;;  %v12190_v2 = vsel %vm11938_vm3, %v9313_v44, %v1685_v56  ;;  %305 = vst.msk [vmem:[#allocation2 + $0x5c] sm:$0x3] %vm286_vm8, %v15866_v0  ;;  %v4711_v29 = vld [vmem:[#allocation2 + $0x1b0] sm:$0xc] }
  0xd4   : > { %v9424_v33 = vcombine.low %v1679_v17, %v1682_v23  ;;  %3580 = vmatpush1.bf16.msra.mxu1 %v10956_v37  ;;  %v1687_v3 = vrot.slane %v1685_v56, 4  ;;  %311 = vst.msk [vmem:[#allocation2 + $0x74] sm:$0x3] %vm286_vm8, %v15866_v0  ;;  %317 = vst.msk [vmem:[#allocation2 + $0x8c] sm:$0x3] %vm286_vm8, %v15866_v0  ;;  %v12295_v17 = vrot.slane %v15858_v16, 4  ;;  %6872 = vmatprep.subr.bf16.mxu0 %v10964_v15 }
  0xd5   : > { %3581 = vmatprep.subr.bf16.mxu1 %v10957_v53  ;;  %v12202_v7 = vsel %vm12082_vm7, %v4828_v57, %v4829_v51  ;;  %323 = vst.msk [vmem:[#allocation2 + $0xa4] sm:$0x3] %vm286_vm8, %v15866_v0  ;;  %329 = vst.msk [vmem:[#allocation2 + $0xbc] sm:$0x3] %vm286_vm8, %v15866_v0  ;;  %v15856_v18 = vrot.slane %v11976_v46, 5  ;;  %v15857_v22 = vrot.slane %v11980_v49, 7  ;;  %v9393_v24 = vcombine.low %v12192_v4, %v12194_v5 }
  0xd6   : > { %5690 = vrot.lane.b32.xlu1 %v10929_v38, %s11456_s19  ;;  %v3088_v38 = vld [vmem:[#allocation3 + $0x70] sm:$0xff]  ;;  %v1689_v12 = vsel %vm11938_vm3, %v1687_v3, %v1688_v60  ;;  %335 = vst.msk [vmem:[#allocation2 + $0xd4] sm:$0x3] %vm286_vm8, %v15866_v0  ;;  %341 = vst.msk [vmem:[#allocation2 + $0xec] sm:$0x3] %vm286_vm8, %v15866_v0  ;;  %v9729_v20 = vcombine.low %v12198_v6, %v12202_v7  ;;  %v9314_v25 = vrot.slane %v12211_v13, 9  ;;  %6873 = vmatpush1.bf16.msra.mxu0 %v10962_v14 }
  0xd7   : > { %2442 = vrot.lane.b32.xlu0 %v9391_v62, %s11456_s19  ;;  %v9506_v54 = vcombine.low %v3088_v38, %v3089_v48  ;;  %v12183_v62 = vld [vmem:[#allocation2 + $0x68] sm:$0xff]   ;;  %347 = vst.msk [vmem:[#allocation2 + $0x104] sm:$0x3] %vm286_vm8, %v15866_v0  ;;  %353 = vst.msk [vmem:[#allocation2 + $0x11c] sm:$0x3] %vm286_vm8, %v15866_v0  ;;  %v12312_v32 = vrot.slane %v1379_v36, 4 }
  0xd8   : > { %360 = vst.msk [vmem:[#allocation2 + $0x2b4] sm:$0x3] %vm286_vm8, %v15866_v0  ;;  %366 = vst.msk [vmem:[#allocation2 + $0x2cc] sm:$0x3] %vm286_vm8, %v15866_v0  ;;  %v10967_v23 = vld [vmem:[#allocation3 + $0x80] ss:$8 sps:$4 sm:$0xff]  }
  0xd9   : > { %3582 = vmatpush1.bf16.msra.mxu1 %v9506_v54  ;;  %372 = vst.msk [vmem:[#allocation2 + $0x2e4] sm:$0x3] %vm286_vm8, %v15866_v0  ;;  %378 = vst.msk [vmem:[#allocation2 + $0x2fc] sm:$0x3] %vm286_vm8, %v15866_v0  ;;  %9258 = vmatmul.mubr.msk.bf16.gmra.mrb[28].mxu0 %vm728_vm4, %v10966_v21  ;;  %v4712_v31 = vld [vmem:[#allocation2 + $0x1b4] sm:$0xf] }
  0xda   : > { %5820 = vrot.lane.b32.xlu1 %v9727_v63, %s11456_s19  ;;  %v523_v63 = vld [vmem:[%s11925_s14 + $0x7c] sm:$0xf]  ;;  %384 = vst.msk [vmem:[#allocation2 + $0x314] sm:$0x3] %vm286_vm8, %v15866_v0  ;;  %390 = vst.msk [vmem:[#allocation2 + $0x32c] sm:$0x3] %vm286_vm8, %v15866_v0  ;;  %3583 = vmatprep.subr.bf16.mxu1 %v10960_v11 }
  0xdb   : > { %2572 = vrot.lane.b32.xlu0 %v9424_v33, %s11456_s19  ;;  %555 = vst.msk [vmem:[#allocation2 + $0x294] sm:$0xf] %vm280_vm0, %v523_v63  ;;  %v1535_v33 = vld [vmem:[#allocation2 + $0x290] sm:$0xf]  ;;  %v4713_v34 = vld [vmem:[#allocation2 + $0x1b8] sm:$0x3]  ;;  %889 = vmatprep.mubr.bf16.mxu0 %v15866_v0 }
  0xdc   : > { %396 = vst.msk [vmem:[#allocation2 + $0x344] sm:$0x3] %vm286_vm8, %v15866_v0  ;;  %402 = vst.msk [vmem:[#allocation2 + $0x35c] sm:$0x3] %vm286_vm8, %v15866_v0  ;;  %v9618_v35 = vrot.slane %v4711_v29, 10  ;;  %v1692_v38 = vrot.slane %v1535_v33, 5 }
  0xdd   : > { %408 = vst.msk [vmem:[#allocation2 + $0x374] sm:$0x3] %vm286_vm8, %v15866_v0  ;;  %414 = vst.msk [vmem:[#allocation2 + $0x38c] sm:$0x3] %vm286_vm8, %v15866_v0  ;;  %3584 = vmatpush1.bf16.msra.mxu1 %v10967_v23  ;;  %v4833_v40 = vrot.slane %v4712_v31, 6  ;;  %v4836_v41 = vrot.slane %v4713_v34, 6 }
  0xde   : > { %5692 = vrot.lane.b32.xlu1 %v10937_v19, %s11456_s19  ;;  %420 = vst.msk [vmem:[#allocation2 + $0x3a4] sm:$0x3] %vm286_vm8, %v15866_v0  ;;  %426 = vst.msk [vmem:[#allocation2 + $0x3bc] sm:$0x3] %vm286_vm8, %v15866_v0  ;;  %v9425_v19 = vcombine.low %v12190_v2, %v1689_v12  ;;  %v12318_v42 = vrot.slane %v1168_v59, 4  ;;  %v1693_v47 = vsel %vm11938_vm3, %v9314_v25, %v1692_v38  ;;  %v1694_v48 = vrot.slane %v1692_v38, 4 }
  0xdf   : > { %2444 = vrot.lane.b32.xlu0 %v9392_v43, %s11456_s19  ;;  %461 = vst.msk [vmem:[#allocation2 + $0x134] sm:$0x3] %vm286_vm8, %v15866_v0  ;;  %463 = vst.msk [vmem:[#allocation2 + $0x14c] sm:$0x3] %vm286_vm8, %v15866_v0  ;;  %v12322_v43 = vrot.slane %v15856_v18, 4  ;;  %v4834_v50 = vsel %vm12082_vm7, %v9618_v35, %v4833_v40  ;;  %v4835_v51 = vrot.slane %v4833_v40, 4 }
  0xe0   : > { %465 = vst.msk [vmem:[#allocation2 + $0x164] sm:$0x3] %vm286_vm8, %v15866_v0  ;;  %467 = vst.msk [vmem:[#allocation2 + $0x17c] sm:$0x3] %vm286_vm8, %v15866_v0  ;;  %v10968_v45 = vld [vmem:[#allocation3 + $0x94] ss:$8 sps:$4 sm:$0xff]  }
  0xe1   : > { %469 = vst.msk [vmem:[#allocation2 + $0x194] sm:$0x3] %vm286_vm8, %v15866_v0  ;;  %471 = vst.msk [vmem:[#allocation2 + $0x1ac] sm:$0x3] %vm286_vm8, %v15866_v0  ;;  %v12329_v53 = vld [vmem:[#allocation2 + $0xe0] sm:$0xf]  ;;  %3585 = vmatprep.subr.bf16.mxu1 %v10968_v45  ;;  %v4837_v60 = vsel %vm12082_vm7, %v4835_v51, %v4836_v41 }
  0xe2   : > { %5822 = vrot.lane.b32.xlu1 %v9728_v39, %s11456_s19  ;;  %473 = vst.msk [vmem:[#allocation2 + $0x1c4] sm:$0x3] %vm286_vm8, %v15866_v0  ;;  %475 = vst.msk [vmem:[#allocation2 + $0x1dc] sm:$0x3] %vm286_vm8, %v15866_v0  ;;  %v1536_v37 = vld [vmem:[#allocation2 + $0x294] sm:$0x1]  ;;  %v9730_v3 = vcombine.low %v4834_v50, %v4837_v60 }
  0xe3   : > { %477 = vst.msk [vmem:[#allocation2 + $0x1f4] sm:$0x3] %vm286_vm8, %v15866_v0  ;;  %479 = vst.msk [vmem:[#allocation2 + $0x20c] sm:$0x3] %vm286_vm8, %v15866_v0  ;;  %2574 = vrot.lane.b32.xlu0 %v9425_v19, %s11456_s19  ;;  %v10959_v39 = vld [vmem:[#allocation2 + $0x80] sm:$0xff]   ;;  %v1695_v44 = vrot.slane %v1536_v37, 5 }
  0xe4   : > { %481 = vst.msk [vmem:[#allocation2 + $0x224] sm:$0x3] %vm286_vm8, %v15866_v0  ;;  %483 = vst.msk [vmem:[#allocation2 + $0x23c] sm:$0x3] %vm286_vm8, %v15866_v0  ;;  %v15854_v54 = vrot.slane %v12329_v53, 5  ;;  %v15855_v57 = vrot.slane %v11998_v1, 7 }
  0xe5   : > { %485 = vst.msk [vmem:[#allocation2 + $0x254] sm:$0x3] %vm286_vm8, %v15866_v0  ;;  %487 = vst.msk [vmem:[#allocation2 + $0x26c] sm:$0x3] %vm286_vm8, %v15866_v0  ;;  %v1113_v55 = vld [vmem:[#allocation2 + $0x200] sm:$0xf]  ;;  %v1696_v58 = vsel %vm11938_vm3, %v1694_v48, %v1695_v44 }
  0xe6   : > { %489 = vst.msk [vmem:[#allocation2 + $0x284] sm:$0x3] %vm286_vm8, %v15866_v0  ;;  %491 = vst.msk [vmem:[#allocation2 + $0x29c] sm:$0x3] %vm286_vm8, %v15866_v0  ;;  %5694 = vrot.lane.b32.xlu1 %v12183_v62, %s11456_s19  ;;  %v1293_v56 = vld [vmem:[#allocation2 + $0x204] sm:$0xf]  ;;  %v9426_v2 = vcombine.low %v1693_v47, %v1696_v58 }
  0xe7   : > { %2446 = vrot.lane.b32.xlu0 %v9393_v24, %s11456_s19  ;;  %v10971_v62 = vld [vmem:[#allocation3 + $0x90] ss:$8 sps:$4 sm:$0xff]   ;;  %v15852_v63 = vrot.slane %v12010_v8, 5  ;;  %v10973_v4 = vld [vmem:[#allocation3 + $0xa4] ss:$8 sps:$4 sm:$0xff]   ;;  %v9394_v19 = vcombine.low %v1113_v55, %v1293_v56  ;;  %v12355_v40 = vrot.slane %v15857_v22, 4 }
  0xe8   : > { %v12339_v5 = vld [vmem:[#allocation2 + $0xfc] sm:$0xf]  ;;  %v1907_v7 = vld [vmem:[#allocation2 + $0x1b8] sm:$0xf]  ;;  %3586 = vmatpush1.bf16.msra.mxu1 %v10971_v62  ;;  %v10978_v15 = vld [vmem:[%s11925_s14 + $0x40] sm:$0xff]   ;;  %v12360_v48 = vrot.slane %v15854_v54, 4 }
  0xe9   : > { %v15853_v6 = vrot.slane %v12339_v5, 7  ;;  %v2114_v11 = vld [vmem:[#allocation2 + $0x1bc] sm:$0xf]  ;;  %v10975_v13 = vld [vmem:[#allocation3 + $0x270] ss:$8 sps:$4 sm:$0xff]   ;;  %3587 = vmatprep.subr.bf16.mxu1 %v10973_v4  ;;  %9259 = vmatmul.mubr.msk.bf16.gmra.mrb[32].mxu0 %vm728_vm4, %v10978_v15  ;;  %v12364_v50 = vrot.slane %v15855_v57, 4 }
  0xea   : > { %5824 = vrot.lane.b32.xlu1 %v9729_v20, %s11456_s19  ;;  %v10972_v12 = vld [vmem:[#allocation2 + $0x98] sm:$0xff]   ;;  %v1697_v20 = vld [vmem:[#allocation2 + $0x128] sm:$0x8]  ;;  %v1698_v21 = vld [vmem:[#allocation2 + $0x12c] sm:$0xf]  ;;  %899 = vmatprep.mubr.bf16.mxu0 %v15866_v0  ;;  %v9459_v41 = vcombine.low %v1907_v7, %v2114_v11  ;;  %v12373_v58 = vrot.slane %v15852_v63, 4 }
  0xeb   : > { %v10977_v14 = vld [vmem:[#allocation3 + $0x274] ss:$8 sps:$4 sm:$0xff]   ;;  %2576 = vrot.lane.b32.xlu0 %v9426_v2, %s11456_s19  ;;  %v1699_v23 = vld [vmem:[#allocation2 + $0x130] sm:$0x7]  ;;  %v9315_v25 = vrot.slane %v1697_v20, 11  ;;  %v1795_v29 = vrot.slane %v1698_v21, 7 }
  0xec   : > { %6874 = vmatprep.subr.bf16.mxu0 %v10977_v14  ;;  %v1798_v31 = vrot.slane %v1699_v23, 7  ;;  %v10979_v33 = vld [vmem:[#allocation3 + $0xa0] ss:$8 sps:$4 sm:$0xff]   ;;  %v4715_v37 = vld [vmem:[#allocation2 + $0x1cc] sm:$0xf]  ;;  %v12379_v2 = vrot.slane %v15853_v6, 4 }
  0xed   : > { %v4714_v34 = vld [vmem:[#allocation2 + $0x1c8] sm:$0xc]  ;;  %v1797_v35 = vrot.slane %v1795_v29, 4  ;;  %6875 = vmatpush1.bf16.msra.mxu0 %v10975_v13  ;;  %v4716_v38 = vld [vmem:[#allocation2 + $0x1d0] sm:$0x3]  ;;  %3588 = vmatpush1.bf16.msra.mxu1 %v10979_v33  ;;  %v4840_v44 = vrot.slane %v4715_v37, 6  ;;  %v1796_v51 = vsel %vm12347_vm11, %v9315_v25, %v1795_v29 }
  0xee   : > { %5696 = vrot.lane.b32.xlu1 %v10959_v39, %s11456_s19  ;;  %v9619_v39 = vrot.slane %v4714_v34, 10  ;;  %v4843_v45 = vrot.slane %v4716_v38, 6  ;;  %v10980_v47 = vld [vmem:[#allocation3 + $0xb4] ss:$8 sps:$4 sm:$0xff]   ;;  %v10983_v56 = vld [vmem:[#allocation3 + $0xb0] ss:$8 sps:$4 sm:$0xff]  }
  0xef   : > { %2448 = vrot.lane.b32.xlu0 %v9394_v19, %s11456_s19  ;;  %v1799_v55 = vsel %vm12347_vm11, %v1797_v35, %v1798_v31  ;;  %v4842_v62 = vrot.slane %v4840_v44, 4  ;;  %3589 = vmatprep.subr.bf16.mxu1 %v10980_v47  ;;  %v1910_v7 = vld [vmem:[#allocation2 + $0x1d0] sm:$0xf]  ;;  %v2115_v11 = vld [vmem:[#allocation2 + $0x1d4] sm:$0xf]  ;;  %v10990_v37 = vld [vmem:[%s11925_s14 + $0x48] sm:$0xff]  }
  0xf0   : > { %v4841_v60 = vsel %vm12082_vm7, %v9619_v39, %v4840_v44  ;;  %v12384_v13 = vld [vmem:[#allocation2 + $0x114] sm:$0xf]  ;;  %v12387_v15 = vld [vmem:[#allocation2 + $0x128] sm:$0xf]  ;;  %v9427_v20 = vcombine.low %v1796_v51, %v1799_v55  ;;  %v12393_v25 = vld [vmem:[#allocation2 + $0x12c] sm:$0xf]  ;;  %v9460_v47 = vcombine.low %v1910_v7, %v2115_v11 }
  0xf1   : > { %v15851_v14 = vrot.slane %v12384_v13, 7  ;;  %v15848_v19 = vrot.slane %v12387_v15, 5  ;;  %v4844_v21 = vsel %vm12082_vm7, %v4842_v62, %v4843_v45  ;;  %3590 = vmatpush1.bf16.msra.mxu1 %v10983_v56  ;;  %v10987_v23 = vld [vmem:[#allocation3 + $0x280] ss:$8 sps:$4 sm:$0xff]   ;;  %v15849_v29 = vrot.slane %v12393_v25, 7  ;;  %v10984_v33 = vld [vmem:[#allocation2 + $0xb0] sm:$0xff]   ;;  %9260 = vmatmul.mubr.msk.bf16.gmra.mrb[36].mxu0 %vm728_vm4, %v10990_v37 }
  0xf2   : > { %5826 = vrot.lane.b32.xlu1 %v9730_v3, %s11456_s19  ;;  %v12381_v3 = vld [vmem:[#allocation2 + $0x110] sm:$0xf]  ;;  %v9731_v31 = vcombine.low %v4841_v60, %v4844_v21  ;;  %v10989_v34 = vld [vmem:[#allocation3 + $0x284] ss:$8 sps:$4 sm:$0xff]   ;;  %v1700_v35 = vld [vmem:[#allocation2 + $0x140] sm:$0x8]  ;;  %909 = vmatprep.mubr.bf16.mxu0 %v15866_v0 }
  0xf3   : > { %v15850_v4 = vrot.slane %v12381_v3, 5  ;;  %2754 = vrot.lane.b32.xlu0 %v9459_v41, %s11456_s19  ;;  %v1701_v38 = vld [vmem:[#allocation2 + $0x144] sm:$0xf]  ;;  %v1702_v39 = vld [vmem:[#allocation2 + $0x148] sm:$0x7]  ;;  %v9316_v44 = vrot.slane %v1700_v35, 11  ;;  %6876 = vmatprep.subr.bf16.mxu0 %v10989_v34 }
  0xf4   : > { %v1802_v41 = vrot.slane %v1701_v38, 7  ;;  %v1805_v45 = vrot.slane %v1702_v39, 7  ;;  %v10991_v51 = vld [vmem:[#allocation3 + $0xc0] ss:$8 sps:$4 sm:$0xff]   ;;  %v4718_v56 = vld [vmem:[#allocation2 + $0x1e4] sm:$0xf]  ;;  %6877 = vmatpush1.bf16.msra.mxu0 %v10987_v23 }
  0xf5   : > { %v4717_v55 = vld [vmem:[#allocation2 + $0x1e0] sm:$0xc]  ;;  %v4847_v35 = vrot.slane %v4718_v56, 6  ;;  %v12409_v7 = vrot.slane %v15851_v14, 4  ;;  %v12413_v11 = vrot.slane %v15848_v19, 4  ;;  %v12417_v34 = vrot.slane %v15849_v29, 4 }
  0xf6   : > { %5698 = vrot.lane.b32.xlu1 %v10972_v12, %s11456_s19  ;;  %v10985_v12 = vld [vmem:[#allocation3 + $0xc4] ss:$8 sps:$4 sm:$0xff]   ;;  %v1803_v60 = vsel %vm12347_vm11, %v9316_v44, %v1802_v41  ;;  %v1804_v62 = vrot.slane %v1802_v41, 4  ;;  %v9620_v21 = vrot.slane %v4717_v55, 10  ;;  %v10992_v23 = vld [vmem:[#allocation3 + $0xd4] ss:$8 sps:$4 sm:$0xff]  }
  0xf7   : > { %3591 = vmatprep.subr.bf16.mxu1 %v10985_v12  ;;  %2626 = vrot.lane.b32.xlu0 %v9427_v20, %s11456_s19  ;;  %v4719_v12 = vld [vmem:[#allocation2 + $0x1e8] sm:$0x3]  ;;  %v4849_v39 = vrot.slane %v4847_v35, 4  ;;  %v2116_v41 = vld [vmem:[#allocation2 + $0x1ec] sm:$0xf]  ;;  %v11002_v18 = vld [vmem:[%s11925_s14 + $0x50] sm:$0xff]  }
  0xf8   : > { %3592 = vmatpush1.bf16.msra.mxu1 %v10991_v51  ;;  %v4850_v20 = vrot.slane %v4719_v12, 6  ;;  %v1806_v37 = vsel %vm12347_vm11, %v1804_v62, %v1805_v45  ;;  %v4848_v38 = vsel %vm12082_vm7, %v9620_v21, %v4847_v35  ;;  %v1913_v44 = vld [vmem:[#allocation2 + $0x1e8] sm:$0xf]  ;;  %v10995_v55 = vld [vmem:[#allocation3 + $0xd0] ss:$8 sps:$4 sm:$0xff]  }
  0xf9   : > { %v12424_v56 = vld [vmem:[#allocation2 + $0x140] sm:$0xf]  ;;  %v9428_v12 = vcombine.low %v1803_v60, %v1806_v37  ;;  %3593 = vmatprep.subr.bf16.mxu1 %v10992_v23  ;;  %v12428_v19 = vld [vmem:[#allocation2 + $0x144] sm:$0xf]  ;;  %v12431_v45 = vld [vmem:[#allocation2 + $0x158] sm:$0xf]  ;;  %9261 = vmatmul.mubr.msk.bf16.gmra.mrb[40].mxu0 %vm728_vm4, %v11002_v18 }
  0xfa   : > { %5828 = vrot.lane.b32.xlu1 %v9731_v31, %s11456_s19  ;;  %v12405_v31 = vrot.slane %v15850_v4, 4  ;;  %v15862_v51 = vrot.slane %v12424_v56, 5  ;;  %15915 = vst [vmem:[#allocation9_spill] sm:$0xff] %v12431_v45  ;;  %v15860_v62 = vrot.slane %v12431_v45, 5  ;;  %v4851_v21 = vsel %vm12082_vm7, %v4849_v39, %v4850_v20  ;;  %v10997_v35 = vld [vmem:[#allocation3 + $0xe4] ss:$8 sps:$4 sm:$0xff]   ;;  %919 = vmatprep.mubr.bf16.mxu0 %v15866_v0 }
  0xfb   : > { %2756 = vrot.lane.b32.xlu0 %v9460_v47, %s11456_s19  ;;  %v12436_v29 = vld [vmem:[#allocation2 + $0x15c] sm:$0xf]  ;;  %v9732_v47 = vcombine.low %v4848_v38, %v4851_v21  ;;  %v10996_v60 = vld [vmem:[#allocation2 + $0xc8] sm:$0xff]   ;;  %v10999_v23 = vld [vmem:[#allocation3 + $0x290] ss:$8 sps:$4 sm:$0xff]   ;;  %v9461_v20 = vcombine.low %v1913_v44, %v2116_v41 }
  0xfc   : > { %v15861_v4 = vrot.slane %v12436_v29, 7  ;;  %3594 = vmatpush1.bf16.msra.mxu1 %v10995_v55  ;;  %v11001_v37 = vld [vmem:[#allocation3 + $0x294] ss:$8 sps:$4 sm:$0xff]   ;;  %v1703_v14 = vld [vmem:[#allocation2 + $0x158] sm:$0x8]  ;;  %v12451_v18 = vrot.slane %v15862_v51, 4 }
  0xfd   : > { %3595 = vmatprep.subr.bf16.mxu1 %v10997_v35  ;;  %v1704_v63 = vld [vmem:[#allocation2 + $0x15c] sm:$0xf]  ;;  %v1705_v6 = vld [vmem:[#allocation2 + $0x160] sm:$0x7]  ;;  %v9317_v39 = vrot.slane %v1703_v14, 11  ;;  %6878 = vmatprep.subr.bf16.mxu0 %v11001_v37 }
  0xfe   : > { %5700 = vrot.lane.b32.xlu1 %v10984_v33, %s11456_s19  ;;  %v15863_v33 = vrot.slane %v12428_v19, 7  ;;  %v1809_v54 = vrot.slane %v1704_v63, 7  ;;  %v1812_v57 = vrot.slane %v1705_v6, 7  ;;  %v11003_v22 = vld [vmem:[#allocation3 + $0xe0] ss:$8 sps:$4 sm:$0xff]   ;;  %6879 = vmatpush1.bf16.msra.mxu0 %v10999_v23 }
  0xff   : > { %2628 = vrot.lane.b32.xlu0 %v9428_v12, %s11456_s19  ;;  %v4720_v38 = vld [vmem:[#allocation2 + $0x1f8] sm:$0xc]  ;;  %v4721_v35 = vld [vmem:[#allocation2 + $0x1fc] sm:$0xf]  ;;  %v4722_v16 = vld [vmem:[#allocation2 + $0x200] sm:$0x3] }
 0x100   : > { %v1810_v55 = vsel %vm12347_vm11, %v9317_v39, %v1809_v54  ;;  %v1811_v21 = vrot.slane %v1809_v54, 4  ;;  %v9621_v61 = vrot.slane %v4720_v38, 10  ;;  %3596 = vmatpush1.bf16.msra.mxu1 %v11003_v22  ;;  %v4854_v12 = vrot.slane %v4721_v35, 6  ;;  %v11004_v14 = vld [vmem:[#allocation3 + $0xf4] ss:$8 sps:$4 sm:$0xff]  }
 0x101   : > { %v4857_v44 = vrot.slane %v4722_v16, 6  ;;  %v1916_v6 = vld [vmem:[#allocation2 + $0x200] sm:$0xf]  ;;  %v2117_v41 = vld [vmem:[#allocation2 + $0x204] sm:$0xf]  ;;  %3597 = vmatprep.subr.bf16.mxu1 %v11004_v14  ;;  %v12466_v38 = vrot.slane %v15861_v4, 4 }
 0x102   : > { %5830 = vrot.lane.b32.xlu1 %v9732_v47, %s11456_s19  ;;  %v1813_v63 = vsel %vm12347_vm11, %v1811_v21, %v1812_v57  ;;  %v11007_v54 = vld [vmem:[#allocation3 + $0xf0] ss:$8 sps:$4 sm:$0xff]   ;;  %v4855_v22 = vsel %vm12082_vm7, %v9621_v61, %v4854_v12  ;;  %v4856_v16 = vrot.slane %v4854_v12, 4  ;;  %v1295_v37 = vld [vmem:[#allocation2 + $0xa0] sm:$0x7]  ;;  %v12458_v57 = vrot.slane %v15863_v33, 4 }
 0x103   : > { %2758 = vrot.lane.b32.xlu0 %v9461_v20, %s11456_s19  ;;  %v9429_v47 = vcombine.low %v1810_v55, %v1813_v63  ;;  %v1294_v23 = vld [vmem:[#allocation2 + $0x98] sm:$0x8]  ;;  %v1382_v39 = vrot.slane %v1295_v37, 7  ;;  %v12468_v61 = vld [vmem:[#allocation2 + $0x170] sm:$0xf]  ;;  %v9462_v63 = vcombine.low %v1916_v6, %v2117_v41 }
 0x104   : > { %v9283_v20 = vrot.slane %v1294_v23, 11  ;;  %v15865_v55 = vrot.slane %v12468_v61, 5  ;;  %v4858_v21 = vsel %vm12082_vm7, %v4856_v16, %v4857_v44  ;;  %3598 = vmatpush1.bf16.msra.mxu1 %v11007_v54  ;;  %v11011_v4 = vld [vmem:[#allocation3 + $0x104] ss:$8 sps:$4 sm:$0xff]   ;;  %v12483_v44 = vld [vmem:[#allocation2 + $0x174] sm:$0xf] }
 0x105   : > { %v9733_v14 = vcombine.low %v4855_v22, %v4858_v21  ;;  %v1383_v37 = vsel %vm12347_vm11, %v12312_v32, %v1382_v39  ;;  %v11014_v22 = vld [vmem:[#allocation3 + $0x2a4] ss:$8 sps:$4 sm:$0xff]   ;;  %3760 = vmatprep.subr.bf16.mxu1 %v11011_v4  ;;  %v1706_v30 = vld [vmem:[#allocation2 + $0x170] sm:$0x8]  ;;  %v1707_v6 = vld [vmem:[#allocation2 + $0x174] sm:$0xf] }
 0x106   : > { %5702 = vrot.lane.b32.xlu1 %v10996_v60, %s11456_s19  ;;  %v12462_v60 = vrot.slane %v15860_v62, 4  ;;  %v1380_v23 = vsel %vm12347_vm11, %v9283_v20, %v1379_v36  ;;  %v11008_v62 = vld [vmem:[#allocation2 + $0xe0] sm:$0xff]   ;;  %v1708_v36 = vld [vmem:[#allocation2 + $0x178] sm:$0x7]  ;;  %6880 = vmatprep.subr.bf16.mxu0 %v11014_v22  ;;  %v9318_v39 = vrot.slane %v1706_v30, 11  ;;  %v1816_v21 = vrot.slane %v1707_v6, 7 }
 0x107   : > { %2630 = vrot.lane.b32.xlu0 %v9429_v47, %s11456_s19  ;;  %v9395_v54 = vcombine.low %v1380_v23, %v1383_v37  ;;  %v11012_v47 = vld [vmem:[#allocation3 + $0x2a0] ss:$8 sps:$4 sm:$0xff]   ;;  %v1819_v51 = vrot.slane %v1708_v36, 7  ;;  %v11015_v33 = vld [vmem:[%s11925_s14 + $0x58] sm:$0xff]   ;;  %v1067_v23 = vld [vmem:[#allocation2 + $0x94] sm:$0xe] }
 0x108   : > { %15916 = vst [vmem:[#allocation10_spill] sm:$0xff] %v12462_v60  ;;  %v1069_v37 = vld [vmem:[#allocation2 + $0x9c] sm:$0x1]  ;;  %v1817_v4 = vsel %vm12347_vm11, %v9318_v39, %v1816_v21  ;;  %9262 = vmatmul.mubr.msk.bf16.gmra.mrb[44].mxu0 %vm728_vm4, %v11015_v33  ;;  %v4723_v16 = vld [vmem:[#allocation2 + $0x210] sm:$0xc] }
 0x109   : > { %v11009_v22 = vld [vmem:[#allocation3 + $0x100] ss:$8 sps:$4 sm:$0xff]   ;;  %6881 = vmatpush1.bf16.msra.mxu0 %v11012_v47  ;;  %v4724_v30 = vld [vmem:[#allocation2 + $0x214] sm:$0xf]  ;;  %v4725_v6 = vld [vmem:[#allocation2 + $0x218] sm:$0x3]  ;;  %929 = vmatprep.mubr.bf16.mxu0 %v15866_v0 }
 0x10a   : > { %5832 = vrot.lane.b32.xlu1 %v9733_v14, %s11456_s19  ;;  %v1818_v14 = vrot.slane %v1816_v21, 4  ;;  %v9622_v36 = vrot.slane %v4723_v16, 10  ;;  %v4861_v39 = vrot.slane %v4724_v30, 6  ;;  %v2118_v47 = vld [vmem:[#allocation2 + $0x21c] sm:$0xf] }
 0x10b   : > { %2760 = vrot.lane.b32.xlu0 %v9462_v63, %s11456_s19  ;;  %v11017_v60 = vld [vmem:[#allocation3 + $0x2b0] ss:$8 sps:$4 sm:$0xff]   ;;  %v11019_v45 = vld [vmem:[#allocation3 + $0x2b4] ss:$8 sps:$4 sm:$0xff]  }
 0x10c   : > { %v12473_v35 = vpop.permute.xlu1 %2548  ;;  %v1820_v63 = vsel %vm12347_vm11, %v1818_v14, %v1819_v51  ;;  %v12512_v51 = vrot.slane %v15865_v55, 4  ;;  %v1297_v14 = vld [vmem:[#allocation2 + $0xb8] sm:$0x7]  ;;  %v4863_v30 = vrot.slane %v4861_v39, 4  ;;  %6882 = vmatprep.subr.bf16.mxu0 %v11019_v45  ;;  %v1711_v45 = vld [vmem:[#allocation2 + $0x190] sm:$0x7] }
 0x10d   : > { %v2547_v12 = vpop.permute.xlu0 %2546  ;;  %v9430_v28 = vcombine.low %v1817_v4, %v1820_v63  ;;  %v1389_v63 = vrot.slane %v1297_v14, 7  ;;  %6883 = vmatpush1.bf16.msra.mxu0 %v11017_v60 }
 0x10e   : > { %v2900_v41 = vsel %vm728_vm4, %v9395_v54, %v2547_v12  ;;  %v9267_v12 = vrot.slane %v1067_v23, 9  ;;  %v1171_v54 = vrot.slane %v1069_v37, 5  ;;  %5704 = vrot.lane.b32.xlu1 %v11008_v62, %s11456_s19  ;;  %v1919_v62 = vld [vmem:[#allocation2 + $0x218] sm:$0xf]  ;;  %15917 = vst [vmem:[#allocation11_spill] sm:$0xff] %v12512_v51 }
 0x10f   : > { %3599 = vmatprep.mubr.bf16.mxu1 %v2900_v41  ;;  %v1296_v37 = vld [vmem:[#allocation2 + $0xb0] sm:$0x8]  ;;  %2632 = vrot.lane.b32.xlu0 %v9430_v28, %s11456_s19  ;;  %v9463_v0 = vcombine.low %v1919_v62, %v2118_v47  ;;  %v15920_v62 = vrot.slane %v11950_v27, 7  ;;  %v11020_v28 = vld [vmem:[#allocation2 + $0xf8] sm:$0xff]   ;;  %v1070_v27 = vld [vmem:[#allocation2 + $0xac] sm:$0xe] }
 0x110   : > { %v12488_v20 = vpop.permute.xlu1 %2420  ;;  %v1169_v41 = vsel %vm11938_vm3, %v9267_v12, %v1168_v59  ;;  %v1172_v33 = vsel %vm11938_vm3, %v12318_v42, %v1171_v54  ;;  %v4864_v59 = vrot.slane %v4725_v6, 6  ;;  %v12514_v12 = vld [vmem:[#allocation2 + $0x188] sm:$0xf]  ;;  %v4862_v54 = vsel %vm12082_vm7, %v9622_v36, %v4861_v39  ;;  %v12521_v6 = vld [vmem:[#allocation2 + $0x18c] sm:$0xf] }
 0x111   : > { %v2419_v32 = vpop.permute.xlu0 %2418  ;;  %v9363_v16 = vcombine.low %v1169_v41, %v1172_v33  ;;  %15918 = vst [vmem:[#allocation12_spill] sm:$0xff] %v12514_v12  ;;  %v9284_v4 = vrot.slane %v1296_v37, 11  ;;  %15919 = vst [vmem:[#allocation13_spill] sm:$0xff] %v12521_v6  ;;  %v1709_v39 = vld [vmem:[#allocation2 + $0x188] sm:$0x8]  ;;  %v11024_v37 = vld [vmem:[%s11925_s14 + $0x60] sm:$0xff]  }
 0x112   : > { %v4865_v33 = vsel %vm12082_vm7, %v4863_v30, %v4864_v59  ;;  %v9319_v59 = vrot.slane %v1709_v39, 11  ;;  %v1826_v41 = vrot.slane %v1711_v45, 7  ;;  %9263 = vmatmul.mubr.msk.bf16.gmra.mrb[48].mxu0 %vm728_vm4, %v11024_v37  ;;  %v4726_v45 = vld [vmem:[#allocation2 + $0x228] sm:$0xc]  ;;  %v4728_v37 = vld [vmem:[#allocation2 + $0x230] sm:$0x3] }
 0x113   : > { %v2836_v55 = vsel %vm728_vm4, %v9363_v16, %v2419_v32  ;;  %v9734_v32 = vcombine.low %v4862_v54, %v4865_v33  ;;  %v1387_v47 = vsel %vm12347_vm11, %v9284_v4, %v15920_v62  ;;  %v1710_v16 = vld [vmem:[#allocation2 + $0x18c] sm:$0xf]  ;;  %v11023_v54 = vld [vmem:[#allocation3 + $0x114] ss:$8 sps:$4 sm:$0xff]   ;;  %2762 = vrot.lane.b32.xlu0 %v9463_v0, %s11456_s19  ;;  %v9268_v33 = vrot.slane %v1070_v27, 9 }
 0x114   : > { %v12505_v21 = vpop.permute.xlu1 %2422  ;;  %3600 = vmatmul.mubr.bf16.vlgmr.msra.gmra.mrb[0].mxu1 %v2836_v55  ;;  %v1390_v55 = vsel %vm12347_vm11, %v12207_v10, %v1389_v63  ;;  %v1823_v30 = vrot.slane %v1710_v16, 7  ;;  %v1072_v63 = vld [vmem:[#allocation2 + $0xb4] sm:$0x1]  ;;  %v11025_v0 = vld [vmem:[#allocation3 + $0x2c0] ss:$8 sps:$4 sm:$0xff]  }
 0x115   : > { %v12507_v23 = vpop.permute.xlu0 %2550  ;;  %3761 = vmatpush1.bf16.msra.mxu1 %v11009_v22  ;;  %v9396_v14 = vcombine.low %v1387_v47, %v1390_v55  ;;  %v11021_v22 = vld [vmem:[#allocation3 + $0x110] ss:$8 sps:$4 sm:$0xff]   ;;  %5834 = vrot.lane.b32.xlu1 %v9734_v32, %s11456_s19  ;;  %v1178_v32 = vrot.slane %v1072_v63, 5  ;;  %v11027_v47 = vld [vmem:[#allocation3 + $0x2c4] ss:$8 sps:$4 sm:$0xff]   ;;  %v15921_v55 = vrot.slane %v11948_v26, 5 }
 0x116   : > { %v1824_v10 = vsel %vm12347_vm11, %v9319_v59, %v1823_v30  ;;  %v1825_v60 = vrot.slane %v1823_v30, 4  ;;  %3762 = vmatprep.subr.bf16.mxu1 %v11023_v54  ;;  %v4727_v59 = vld [vmem:[#allocation2 + $0x22c] sm:$0xf]  ;;  %6884 = vmatprep.subr.bf16.mxu0 %v11027_v47  ;;  %v9623_v54 = vrot.slane %v4726_v45, 10  ;;  %v1922_v27 = vld [vmem:[#allocation2 + $0x230] sm:$0xf] }
 0x117   : > { %v2904_v4 = vsel %vm728_vm4, %v9396_v14, %v12473_v35  ;;  %v1176_v16 = vsel %vm11938_vm3, %v9268_v33, %v15921_v55  ;;  %v15922_v14 = vmov 0   ;;  %v2119_v26 = vld [vmem:[#allocation2 + $0x234] sm:$0xf]  ;;  %v15924_v63 = vrot.slane %v12514_v12, 5  ;;  %6885 = vmatpush1.bf16.msra.mxu0 %v11025_v0 }
 0x118   : > { %v12526_v36 = vpop.permute.xlu1 %2424  ;;  %3609 = vmatprep.mubr.bf16.mxu1 %v2904_v4  ;;  %v1827_v35 = vsel %vm12347_vm11, %v1825_v60, %v1826_v41  ;;  %939 = vmatprep.mubr.bf16.mxu0 %v15922_v14  ;;  %v4868_v41 = vrot.slane %v4727_v59, 6  ;;  %v15923_v4 = vrot.slane %v12483_v44, 7  ;;  %v11032_v12 = vld [vmem:[#allocation2 + $0x110] sm:$0xff]  }
 0x119   : > { %v12528_v42 = vpop.permute.xlu0 %2552  ;;  %3763 = vmatpush1.bf16.msra.mxu1 %v11021_v22  ;;  %5706 = vrot.lane.b32.xlu1 %v11020_v28, %s11456_s19  ;;  %v9431_v30 = vcombine.low %v1824_v10, %v1827_v35  ;;  %v1179_v22 = vsel %vm11938_vm3, %v12295_v17, %v1178_v32  ;;  %v12566_v33 = vrot.slane %v15924_v63, 4  ;;  %v4871_v28 = vrot.slane %v4728_v37, 6  ;;  %v11029_v10 = vld [vmem:[#allocation3 + $0x2d0] ss:$8 sps:$4 sm:$0xff]   ;;  %v11031_v63 = vld [vmem:[#allocation3 + $0x2d4] ss:$8 sps:$4 sm:$0xff]  }
 0x11a   : > { %v12562_v60 = vrot.slane %v15923_v4, 4  ;;  %v9364_v55 = vcombine.low %v1176_v16, %v1179_v22  ;;  %v15926_v32 = vrot.slane %v12521_v6, 7  ;;  %v4869_v45 = vsel %vm12082_vm7, %v9623_v54, %v4868_v41  ;;  %v12579_v16 = vld [vmem:[#allocation2 + $0x1a0] sm:$0xf]  ;;  %v12582_v37 = vld [vmem:[#allocation2 + $0x1a4] sm:$0xf]  ;;  %6886 = vmatprep.subr.bf16.mxu0 %v11031_v63 }
 0x11b   : > { %15925 = vst [vmem:[#allocation14_spill] sm:$0xff] %v12566_v33  ;;  %2634 = vrot.lane.b32.xlu0 %v9431_v30, %s11456_s19  ;;  %v4870_v59 = vrot.slane %v4868_v41, 4  ;;  %v9464_v4 = vcombine.low %v1922_v27, %v2119_v26  ;;  %15928 = vst [vmem:[#allocation16_spill] sm:$0xff] %v12579_v16  ;;  %v1712_v33 = vld [vmem:[#allocation2 + $0x1a0] sm:$0x8]  ;;  %6887 = vmatpush1.bf16.msra.mxu0 %v11029_v10  ;;  %v15930_v63 = vrot.slane %v11980_v49, 7 }
 0x11c   : > { %v12545_v39 = vpop.permute.xlu1 %2426  ;;  %v12574_v47 = vrot.slane %v15926_v32, 4  ;;  %15929 = vst [vmem:[#allocation17_spill] sm:$0xff] %v12582_v37  ;;  %v2840_v32 = vsel %vm728_vm4, %v9364_v55, %v12488_v20  ;;  %v1713_v54 = vld [vmem:[#allocation2 + $0x1a4] sm:$0xf]  ;;  %v1714_v41 = vld [vmem:[#allocation2 + $0x1a8] sm:$0x7] }
 0x11d   : > { %v12547_v62 = vpop.permute.xlu0 %2554  ;;  %3610 = vmatmul.mubr.bf16.gmra.mrb[4].mxu1 %v2840_v32  ;;  %v4872_v30 = vsel %vm12082_vm7, %v4870_v59, %v4871_v28  ;;  %v9320_v27 = vrot.slane %v1712_v33, 11  ;;  %v1830_v0 = vrot.slane %v1713_v54, 7  ;;  %v1298_v6 = vld [vmem:[#allocation2 + $0xc8] sm:$0x8]  ;;  %v1299_v22 = vld [vmem:[#allocation2 + $0xd0] sm:$0x7] }
 0x11e   : > { %15927 = vst [vmem:[#allocation15_spill] sm:$0xff] %v12574_v47  ;;  %v9735_v26 = vcombine.low %v4869_v45, %v4872_v30  ;;  %v1833_v47 = vrot.slane %v1714_v41, 7  ;;  %v9285_v20 = vrot.slane %v1298_v6, 11  ;;  %v1396_v55 = vrot.slane %v1299_v22, 7  ;;  %v11033_v32 = vld [vmem:[#allocation3 + $0x120] ss:$8 sps:$4 sm:$0xff]  }
 0x11f   : > { %2764 = vrot.lane.b32.xlu0 %v9464_v4, %s11456_s19  ;;  %v11036_v28 = vld [vmem:[%s11925_s14 + $0x68] sm:$0xff]   ;;  %v1831_v33 = vsel %vm12347_vm11, %v9320_v27, %v1830_v0  ;;  %v1832_v10 = vrot.slane %v1830_v0, 4  ;;  %v1073_v4 = vld [vmem:[#allocation2 + $0xc4] sm:$0xe] }
 0x120   : > { %v12568_v35 = vpop.permute.xlu1 %2428  ;;  %5836 = vrot.lane.b32.xlu1 %v9735_v26, %s11456_s19  ;;  %v11035_v45 = vld [vmem:[#allocation3 + $0x124] ss:$8 sps:$4 sm:$0xff]   ;;  %v1394_v30 = vsel %vm12347_vm11, %v9285_v20, %v15930_v63  ;;  %v1397_v6 = vsel %vm12347_vm11, %v12355_v40, %v1396_v55  ;;  %9264 = vmatmul.mubr.msk.bf16.gmra.mrb[52].mxu0 %vm728_vm4, %v11036_v28  ;;  %v9269_v0 = vrot.slane %v1073_v4, 9  ;;  %v11037_v26 = vld [vmem:[#allocation3 + $0x2e0] ss:$8 sps:$4 sm:$0xff]   ;;  %v15932_v4 = vrot.slane %v12579_v16, 5 }
 0x121   : > { %v12570_v17 = vpop.permute.xlu0 %2556  ;;  %v1075_v22 = vld [vmem:[#allocation2 + $0xcc] sm:$0x1]  ;;  %v1834_v54 = vsel %vm12347_vm11, %v1832_v10, %v1833_v47  ;;  %v9397_v41 = vcombine.low %v1394_v30, %v1397_v6  ;;  %3764 = vmatprep.subr.bf16.mxu1 %v11035_v45  ;;  %949 = vmatprep.mubr.bf16.mxu0 %v15922_v14  ;;  %v4729_v40 = vld [vmem:[#allocation2 + $0x240] sm:$0xc]  ;;  %v4730_v55 = vld [vmem:[#allocation2 + $0x244] sm:$0xf] }
 0x122   : > { %v1185_v27 = vrot.slane %v1075_v22, 5  ;;  %v9432_v20 = vcombine.low %v1831_v33, %v1834_v54  ;;  %3765 = vmatpush1.bf16.msra.mxu1 %v11033_v32  ;;  %v11039_v63 = vld [vmem:[#allocation3 + $0x2e4] ss:$8 sps:$4 sm:$0xff]   ;;  %v15931_v10 = vrot.slane %v11976_v46, 5  ;;  %v4731_v32 = vld [vmem:[#allocation2 + $0x248] sm:$0x3] }
 0x123   : > { %v2908_v47 = vsel %vm728_vm4, %v9397_v41, %v12507_v23  ;;  %v9624_v30 = vrot.slane %v4729_v40, 10  ;;  %v1925_v6 = vld [vmem:[#allocation2 + $0x248] sm:$0xf]  ;;  %v12625_v22 = vrot.slane %v15932_v4, 4  ;;  %v4878_v46 = vrot.slane %v4731_v32, 6  ;;  %6888 = vmatprep.subr.bf16.mxu0 %v11039_v63 }
 0x124   : > { %v12589_v51 = vpop.permute.xlu1 %2430  ;;  %5708 = vrot.lane.b32.xlu1 %v11032_v12, %s11456_s19  ;;  %v1183_v45 = vsel %vm11938_vm3, %v9269_v0, %v15931_v10  ;;  %v1186_v33 = vsel %vm11938_vm3, %v12322_v43, %v1185_v27  ;;  %2636 = vrot.lane.b32.xlu0 %v9432_v20, %s11456_s19  ;;  %v4875_v12 = vrot.slane %v4730_v55, 6  ;;  %v2120_v54 = vld [vmem:[#allocation2 + $0x24c] sm:$0xf]  ;;  %v15934_v41 = vrot.slane %v12582_v37, 7  ;;  %v11041_v27 = vld [vmem:[#allocation3 + $0x2f0] ss:$8 sps:$4 sm:$0xff]  }
 0x125   : > { %v12593_v59 = vpop.permute.xlu0 %2558  ;;  %15933 = vst [vmem:[#allocation18_spill] sm:$0xff] %v12625_v22  ;;  %3619 = vmatprep.mubr.bf16.mxu1 %v2908_v47  ;;  %v9365_v23 = vcombine.low %v1183_v45, %v1186_v33  ;;  %v9465_v43 = vcombine.low %v1925_v6, %v2120_v54  ;;  %v11043_v40 = vld [vmem:[#allocation3 + $0x2f4] ss:$8 sps:$4 sm:$0xff]   ;;  %v12634_v16 = vld [vmem:[#allocation2 + $0x1b8] sm:$0xf]  ;;  %6889 = vmatpush1.bf16.msra.mxu0 %v11037_v26 }
 0x126   : > { %v12630_v0 = vrot.slane %v15934_v41, 4  ;;  %15936 = vst [vmem:[#allocation20_spill] sm:$0xff] %v12634_v16  ;;  %v4876_v55 = vsel %vm12082_vm7, %v9624_v30, %v4875_v12  ;;  %v4877_v47 = vrot.slane %v4875_v12, 4  ;;  %v12641_v45 = vld [vmem:[#allocation2 + $0x1bc] sm:$0xf]  ;;  %6890 = vmatprep.subr.bf16.mxu0 %v11043_v40  ;;  %v11044_v41 = vld [vmem:[#allocation2 + $0x128] sm:$0xff]  }
 0x127   : > { %v2844_v20 = vsel %vm728_vm4, %v9365_v23, %v12505_v21  ;;  %15937 = vst [vmem:[#allocation21_spill] sm:$0xff] %v12641_v45  ;;  %v1715_v33 = vld [vmem:[#allocation2 + $0x1b8] sm:$0x8]  ;;  %v1716_v32 = vld [vmem:[#allocation2 + $0x1bc] sm:$0xf] }
 0x128   : > { %v12608_v49 = vpop.permute.xlu1 %2432  ;;  %15935 = vst [vmem:[#allocation19_spill] sm:$0xff] %v12630_v0  ;;  %3620 = vmatmul.mubr.bf16.gmra.mrb[8].mxu1 %v2844_v20  ;;  %v4879_v54 = vsel %vm12082_vm7, %v4877_v47, %v4878_v46  ;;  %2766 = vrot.lane.b32.xlu0 %v9465_v43, %s11456_s19  ;;  %v1717_v21 = vld [vmem:[#allocation2 + $0x1c0] sm:$0x7]  ;;  %v9321_v23 = vrot.slane %v1715_v33, 11  ;;  %v1837_v30 = vrot.slane %v1716_v32, 7  ;;  %v15939_v33 = vrot.slane %v12634_v16, 5 }
 0x129   : > { %v12611_v28 = vpop.permute.xlu0 %2560  ;;  %v1300_v12 = vld [vmem:[#allocation2 + $0xe0] sm:$0x8]  ;;  %v9736_v26 = vcombine.low %v4876_v55, %v4879_v54  ;;  %v1840_v4 = vrot.slane %v1717_v21, 7  ;;  %v1301_v63 = vld [vmem:[#allocation2 + $0xe8] sm:$0x7]  ;;  %6891 = vmatpush1.bf16.msra.mxu0 %v11041_v27  ;;  %v15941_v55 = vrot.slane %v11998_v1, 7 }
 0x12a   : > { %v9286_v20 = vrot.slane %v1300_v12, 11  ;;  %v11045_v40 = vld [vmem:[#allocation3 + $0x130] ss:$8 sps:$4 sm:$0xff]   ;;  %v1838_v0 = vsel %vm12347_vm11, %v9321_v23, %v1837_v30  ;;  %v1839_v46 = vrot.slane %v1837_v30, 4  ;;  %v1403_v47 = vrot.slane %v1301_v63, 7 }
 0x12b   : > { %v11047_v43 = vld [vmem:[#allocation3 + $0x134] ss:$8 sps:$4 sm:$0xff]   ;;  %v12655_v32 = vrot.slane %v15939_v33, 4  ;;  %5838 = vrot.lane.b32.xlu1 %v9736_v26, %s11456_s19  ;;  %v12665_v37 = vld [vmem:[#allocation2 + $0x1d0] sm:$0xf]  ;;  %v15943_v63 = vrot.slane %v12329_v53, 5 }
 0x12c   : > { %v12632_v10 = vpop.permute.xlu1 %2434  ;;  %v1401_v54 = vsel %vm12347_vm11, %v9286_v20, %v15941_v55  ;;  %v11048_v21 = vld [vmem:[%s11925_s14 + $0x70] sm:$0xff]   ;;  %v1076_v12 = vld [vmem:[#allocation2 + $0xdc] sm:$0xe]  ;;  %15942 = vst [vmem:[#allocation24_spill] sm:$0xff] %v12665_v37  ;;  %v1841_v23 = vsel %vm12347_vm11, %v1839_v46, %v1840_v4  ;;  %v1404_v30 = vsel %vm12347_vm11, %v12364_v50, %v1403_v47  ;;  %3766 = vmatprep.subr.bf16.mxu1 %v11047_v43  ;;  %v1078_v1 = vld [vmem:[#allocation2 + $0xe4] sm:$0x1] }
 0x12d   : > { %v12644_v6 = vpop.permute.xlu0 %2562  ;;  %15940 = vst [vmem:[#allocation23_spill] sm:$0xff] %v12655_v32  ;;  %v9270_v26 = vrot.slane %v1076_v12, 9  ;;  %v9433_v33 = vcombine.low %v1838_v0, %v1841_v23  ;;  %v9398_v20 = vcombine.low %v1401_v54, %v1404_v30  ;;  %9265 = vmatmul.mubr.msk.bf16.gmra.mrb[56].mxu0 %vm728_vm4, %v11048_v21  ;;  %v1192_v55 = vrot.slane %v1078_v1, 5  ;;  %3767 = vmatpush1.bf16.msra.mxu1 %v11045_v40  ;;  %v11049_v32 = vld [vmem:[#allocation3 + $0x300] ss:$8 sps:$4 sm:$0xff]  }
 0x12e   : > { %v11051_v16 = vld [vmem:[#allocation3 + $0x304] ss:$8 sps:$4 sm:$0xff]   ;;  %v4732_v46 = vld [vmem:[#allocation2 + $0x258] sm:$0xc]  ;;  %v4733_v50 = vld [vmem:[#allocation2 + $0x25c] sm:$0xf]  ;;  %959 = vmatprep.mubr.bf16.mxu0 %v15922_v14 }
 0x12f   : > { %v1190_v4 = vsel %vm11938_vm3, %v9270_v26, %v15943_v63  ;;  %v4734_v47 = vld [vmem:[#allocation2 + $0x260] sm:$0x3]  ;;  %5710 = vrot.lane.b32.xlu1 %v11044_v41, %s11456_s19  ;;  %2638 = vrot.lane.b32.xlu0 %v9433_v33, %s11456_s19  ;;  %v2912_v0 = vsel %vm728_vm4, %v9398_v20, %v12528_v42  ;;  %v1193_v40 = vsel %vm11938_vm3, %v12360_v48, %v1192_v55  ;;  %v9625_v53 = vrot.slane %v4732_v46, 10  ;;  %v2121_v21 = vld [vmem:[#allocation2 + $0x264] sm:$0xf] }
 0x130   : > { %v12649_v22 = vpop.permute.xlu1 %2436  ;;  %v4882_v43 = vrot.slane %v4733_v50, 6  ;;  %v12688_v54 = vld [vmem:[#allocation2 + $0x260] sm:$0xf]  ;;  %v15945_v12 = vrot.slane %v12641_v45, 7  ;;  %v12694_v23 = vld [vmem:[#allocation2 + $0x1d4] sm:$0xf]  ;;  %3629 = vmatprep.mubr.bf16.mxu1 %v2912_v0  ;;  %v9366_v30 = vcombine.low %v1190_v4, %v1193_v40  ;;  %6892 = vmatprep.subr.bf16.mxu0 %v11051_v16 }
 0x131   : > { %15938 = vst [vmem:[#allocation22_spill] sm:$0xff] %v12649_v22  ;;  %v12663_v27 = vpop.permute.xlu0 %2564  ;;  %15944 = vst [vmem:[#allocation25_spill] sm:$0xff] %v12688_v54  ;;  %v4885_v42 = vrot.slane %v4734_v47, 6  ;;  %v11053_v1 = vld [vmem:[#allocation3 + $0x310] ss:$8 sps:$4 sm:$0xff]   ;;  %v15948_v48 = vrot.slane %v12665_v37, 5  ;;  %6893 = vmatpush1.bf16.msra.mxu0 %v11049_v32  ;;  %v9466_v55 = vcombine.low %v12688_v54, %v2121_v21 }
 0x132   : > { %v12692_v63 = vrot.slane %v15945_v12, 4  ;;  %15947 = vst [vmem:[#allocation27_spill] sm:$0xff] %v12694_v23  ;;  %v4883_v33 = vsel %vm12082_vm7, %v9625_v53, %v4882_v43  ;;  %v4884_v20 = vrot.slane %v4882_v43, 4  ;;  %v11055_v46 = vld [vmem:[#allocation3 + $0x314] ss:$8 sps:$4 sm:$0xff]   ;;  %v2848_v40 = vsel %vm728_vm4, %v9366_v30, %v12526_v36  ;;  %v11056_v16 = vld [vmem:[#allocation2 + $0x140] sm:$0xff]  }
 0x133   : > { %v12699_v26 = vrot.slane %v15948_v48, 4  ;;  %v12708_v4 = vld [vmem:[#allocation2 + $0x1e8] sm:$0xf]  ;;  %v12711_v47 = vld [vmem:[#allocation2 + $0x1ec] sm:$0xf]  ;;  %3630 = vmatmul.mubr.bf16.gmra.mrb[12].mxu1 %v2848_v40  ;;  %2768 = vrot.lane.b32.xlu0 %v9466_v55, %s11456_s19 }
 0x134   : > { %v12674_v22 = vpop.permute.xlu1 %5814  ;;  %15946 = vst [vmem:[#allocation26_spill] sm:$0xff] %v12692_v63  ;;  %15950 = vst [vmem:[#allocation29_spill] sm:$0xff] %v12708_v4  ;;  %v1718_v53 = vld [vmem:[#allocation2 + $0x1d0] sm:$0x8]  ;;  %v4886_v32 = vsel %vm12082_vm7, %v4884_v20, %v4885_v42  ;;  %v1719_v43 = vld [vmem:[#allocation2 + $0x1d4] sm:$0xf]  ;;  %6894 = vmatprep.subr.bf16.mxu0 %v11055_v46 }
 0x135   : > { %15949 = vst [vmem:[#allocation28_spill] sm:$0xff] %v12699_v26  ;;  %v12704_v50 = vpop.permute.xlu0 %2566  ;;  %15951 = vst [vmem:[#allocation30_spill] sm:$0xff] %v12711_v47  ;;  %v1720_v21 = vld [vmem:[#allocation2 + $0x1d8] sm:$0x7]  ;;  %v9322_v48 = vrot.slane %v1718_v53, 11  ;;  %v9737_v41 = vcombine.low %v4883_v33, %v4886_v32  ;;  %v1844_v14 = vrot.slane %v1719_v43, 7  ;;  %6895 = vmatpush1.bf16.msra.mxu0 %v11053_v1 }
 0x136   : > { %v1847_v26 = vrot.slane %v1720_v21, 7  ;;  %v1302_v0 = vld [vmem:[#allocation2 + $0xf8] sm:$0x8]  ;;  %v1303_v37 = vld [vmem:[#allocation2 + $0x100] sm:$0x7]  ;;  %v15953_v46 = vrot.slane %v12339_v5, 7 }
 0x137   : > { %v9287_v36 = vrot.slane %v1302_v0, 11  ;;  %v1410_v30 = vrot.slane %v1303_v37, 7  ;;  %v11057_v40 = vld [vmem:[#allocation3 + $0x140] ss:$8 sps:$4 sm:$0xff]   ;;  %v11060_v63 = vld [vmem:[%s11925_s14 + $0x78] sm:$0xff]   ;;  %5840 = vrot.lane.b32.xlu1 %v9737_v41, %s11456_s19  ;;  %v1845_v33 = vsel %vm12347_vm11, %v9322_v48, %v1844_v14  ;;  %v1846_v20 = vrot.slane %v1844_v14, 4 }
 0x138   : > { %v12706_v12 = vpop.permute.xlu1 %5686  ;;  %v11059_v55 = vld [vmem:[#allocation3 + $0x144] ss:$8 sps:$4 sm:$0xff]   ;;  %9266 = vmatmul.mubr.msk.bf16.gmra.mrb[60].mxu0 %vm728_vm4, %v11060_v63  ;;  %v1079_v0 = vld [vmem:[#allocation2 + $0xf4] sm:$0xe]  ;;  %v1081_v53 = vld [vmem:[#allocation2 + $0xfc] sm:$0x1] }
 0x139   : > { %v12720_v45 = vpop.permute.xlu0 %2438  ;;  %v1408_v1 = vsel %vm12347_vm11, %v9287_v36, %v15953_v46  ;;  %v1411_v37 = vsel %vm12347_vm11, %v12379_v2, %v1410_v30  ;;  %v1848_v41 = vsel %vm12347_vm11, %v1846_v20, %v1847_v26  ;;  %3768 = vmatprep.subr.bf16.mxu1 %v11059_v55  ;;  %v9271_v14 = vrot.slane %v1079_v0, 9  ;;  %v11061_v21 = vld [vmem:[#allocation3 + $0x320] ss:$8 sps:$4 sm:$0xff]   ;;  %v11063_v48 = vld [vmem:[#allocation3 + $0x324] ss:$8 sps:$4 sm:$0xff]  }
 0x13a   : > { %15952 = vst [vmem:[#allocation31_spill] sm:$0xff] %v12720_v45  ;;  %v9399_v32 = vcombine.low %v1408_v1, %v1411_v37  ;;  %v1199_v43 = vrot.slane %v1081_v53, 5  ;;  %v9434_v5 = vcombine.low %v1845_v33, %v1848_v41  ;;  %3769 = vmatpush1.bf16.msra.mxu1 %v11057_v40  ;;  %v4735_v36 = vld [vmem:[#allocation2 + $0x270] sm:$0xc]  ;;  %v4736_v46 = vld [vmem:[#allocation2 + $0x274] sm:$0xf]  ;;  %6896 = vmatprep.subr.bf16.mxu0 %v11063_v48 }
 0x13b   : > { %5712 = vrot.lane.b32.xlu1 %v11056_v16, %s11456_s19  ;;  %v15954_v26 = vrot.slane %v12010_v8, 5  ;;  %v4737_v33 = vld [vmem:[#allocation2 + $0x278] sm:$0x3]  ;;  %v9626_v20 = vrot.slane %v4735_v36, 10  ;;  %v15956_v1 = vrot.slane %v12694_v23, 7  ;;  %v4889_v8 = vrot.slane %v4736_v46, 6  ;;  %6897 = vmatpush1.bf16.msra.mxu0 %v11061_v21 }
 0x13c   : > { %v12722_v42 = vpop.permute.xlu1 %5816  ;;  %v2916_v63 = vsel %vm728_vm4, %v9399_v32, %v12547_v62  ;;  %v1200_v40 = vsel %vm11938_vm3, %v12373_v58, %v1199_v43  ;;  %v12751_v55 = vld [vmem:[#allocation2 + $0x278] sm:$0xf]  ;;  %2640 = vrot.lane.b32.xlu0 %v9434_v5, %s11456_s19  ;;  %v4892_v16 = vrot.slane %v4737_v33, 6  ;;  %v2122_v0 = vld [vmem:[#allocation2 + $0x27c] sm:$0xf]  ;;  %v15958_v53 = vrot.slane %v12708_v4, 5 }
 0x13d   : > { %v12737_v45 = vpop.permute.xlu0 %2568  ;;  %v1197_v30 = vsel %vm11938_vm3, %v9271_v14, %v15954_v26  ;;  %15955 = vst [vmem:[#allocation32_spill] sm:$0xff] %v12751_v55  ;;  %v12755_v37 = vrot.slane %v15956_v1, 4  ;;  %3639 = vmatprep.mubr.bf16.mxu1 %v2916_v63  ;;  %v9467_v58 = vcombine.low %v12751_v55, %v2122_v0  ;;  %v11065_v32 = vld [vmem:[#allocation3 + $0x330] ss:$8 sps:$4 sm:$0xff]   ;;  %v11067_v14 = vld [vmem:[#allocation3 + $0x334] ss:$8 sps:$4 sm:$0xff]   ;;  %v4890_v46 = vsel %vm12082_vm7, %v9626_v20, %v4889_v8 }
 0x13e   : > { %v9367_v62 = vcombine.low %v1197_v30, %v1200_v40  ;;  %v12760_v41 = vrot.slane %v15958_v53, 4  ;;  %v15960_v43 = vrot.slane %v12711_v47, 7  ;;  %v4891_v63 = vrot.slane %v4889_v8, 4  ;;  %v12775_v48 = vld [vmem:[#allocation2 + $0x200] sm:$0xf]  ;;  %6898 = vmatprep.subr.bf16.mxu0 %v11067_v14 }
 0x13f   : > { %15957 = vst [vmem:[#allocation33_spill] sm:$0xff] %v12755_v37  ;;  %15963 = vst [vmem:[#allocation37_spill] sm:$0xff] %v12775_v48  ;;  %v4242_v33 = vld [vmem:[#allocation2] sm:$0xc]  ;;  %v4243_v1 = vld [vmem:[#allocation2 + $0x4] sm:$0xf]  ;;  %6899 = vmatpush1.bf16.msra.mxu0 %v11065_v32 }
 0x140   : > { %v12739_v2 = vpop.permute.xlu1 %5688  ;;  %15959 = vst [vmem:[#allocation34_spill] sm:$0xff] %v12760_v41  ;;  %v12765_v36 = vrot.slane %v15960_v43, 4  ;;  %v2852_v5 = vsel %vm728_vm4, %v9367_v62, %v12545_v39  ;;  %v4893_v39 = vsel %vm12082_vm7, %v4891_v63, %v4892_v16  ;;  %2770 = vrot.lane.b32.xlu0 %v9467_v58, %s11456_s19  ;;  %v4244_v20 = vld [vmem:[#allocation2 + $0x8] sm:$0x3]  ;;  %v9580_v62 = vrot.slane %v4242_v33, 10 }
 0x141   : > { %v12771_v26 = vpop.permute.xlu0 %2440  ;;  %3640 = vmatmul.mubr.bf16.gmra.mrb[16].mxu1 %v2852_v5  ;;  %v4343_v21 = vrot.slane %v4243_v1, 6  ;;  %v1721_v8 = vld [vmem:[#allocation2 + $0x1e8] sm:$0x8]  ;;  %v9738_v0 = vcombine.low %v4890_v46, %v4893_v39  ;;  %v4346_v53 = vrot.slane %v4244_v20, 6  ;;  %v1722_v43 = vld [vmem:[#allocation2 + $0x1ec] sm:$0xf] }
 0x142   : > { %15961 = vst [vmem:[#allocation35_spill] sm:$0xff] %v12765_v36  ;;  %15962 = vst [vmem:[#allocation36_spill] sm:$0xff] %v12771_v26  ;;  %v1723_v41 = vld [vmem:[#allocation2 + $0x1f0] sm:$0x7]  ;;  %v9323_v4 = vrot.slane %v1721_v8, 11  ;;  %v11068_v36 = vld [vmem:[#allocation2 + $0x158] sm:$0xff]  }
 0x143   : > { %v4345_v5 = vrot.slane %v4343_v21, 4  ;;  %v1851_v14 = vrot.slane %v1722_v43, 7  ;;  %v1854_v40 = vrot.slane %v1723_v41, 7  ;;  %v1304_v47 = vld [vmem:[#allocation2 + $0x110] sm:$0x8]  ;;  %5842 = vrot.lane.b32.xlu1 %v9738_v0, %s11456_s19  ;;  %v4344_v16 = vsel %vm12082_vm7, %v9580_v62, %v4343_v21 }
 0x144   : > { %v12773_v30 = vpop.permute.xlu1 %5818  ;;  %v1305_v58 = vld [vmem:[#allocation2 + $0x118] sm:$0x7]  ;;  %v9288_v63 = vrot.slane %v1304_v47, 11  ;;  %v11071_v20 = vld [vmem:[#allocation3 + $0x154] ss:$8 sps:$4 sm:$0xff]   ;;  %v15965_v0 = vrot.slane %v12384_v13, 7 }
 0x145   : > { %v11069_v46 = vld [vmem:[#allocation3 + $0x150] ss:$8 sps:$4 sm:$0xff]   ;;  %v12786_v33 = vpop.permute.xlu0 %2570  ;;  %v4347_v1 = vsel %vm12082_vm7, %v4345_v5, %v4346_v53  ;;  %v1852_v32 = vsel %vm12347_vm11, %v9323_v4, %v1851_v14  ;;  %v1853_v41 = vrot.slane %v1851_v14, 4  ;;  %v1417_v39 = vrot.slane %v1305_v58, 7  ;;  %v4485_v8 = vld [vmem:[#allocation2 + $0xc] sm:$0xc]  ;;  %3770 = vmatprep.subr.bf16.mxu1 %v11071_v20 }
 0x146   : > { %15964 = vst [vmem:[#allocation38_spill] sm:$0xff] %v12786_v33  ;;  %v1415_v62 = vsel %vm12347_vm11, %v9288_v63, %v15965_v0  ;;  %v4486_v21 = vld [vmem:[#allocation2 + $0x10] sm:$0xf]  ;;  %v4487_v47 = vld [vmem:[#allocation2 + $0x14] sm:$0x3]  ;;  %v9596_v43 = vrot.slane %v4485_v8, 10  ;;  %v9676_v13 = vcombine.low %v4344_v16, %v4347_v1  ;;  %3771 = vmatpush1.bf16.msra.mxu1 %v11069_v46 }
 0x147   : > { %v1855_v23 = vsel %vm12347_vm11, %v1853_v41, %v1854_v40  ;;  %v1418_v53 = vsel %vm12347_vm11, %v12409_v7, %v1417_v39  ;;  %v4583_v4 = vrot.slane %v4486_v21, 6  ;;  %v4586_v5 = vrot.slane %v4487_v47, 6  ;;  %v1082_v14 = vld [vmem:[#allocation2 + $0x10c] sm:$0xe]  ;;  %v1084_v58 = vld [vmem:[#allocation2 + $0x114] sm:$0x1]  ;;  %5714 = vrot.lane.b32.xlu1 %v11068_v36, %s11456_s19 }
 0x148   : > { %v12781_v37 = vpop.permute.xlu1 %5690  ;;  %v9435_v63 = vcombine.low %v1852_v32, %v1855_v23  ;;  %v9400_v0 = vcombine.low %v1415_v62, %v1418_v53  ;;  %v9272_v8 = vrot.slane %v1082_v14, 9  ;;  %v4738_v26 = vld [vmem:[#allocation2 + $0x288] sm:$0xc]  ;;  %v4739_v40 = vld [vmem:[#allocation2 + $0x28c] sm:$0xf]  ;;  %v1206_v20 = vrot.slane %v1084_v58, 5 }
 0x149   : > { %v12804_v41 = vpop.permute.xlu0 %2442  ;;  %v4584_v7 = vsel %vm12082_vm7, %v9596_v43, %v4583_v4  ;;  %v4585_v39 = vrot.slane %v4583_v4, 4  ;;  %v4740_v21 = vld [vmem:[#allocation2 + $0x290] sm:$0x3]  ;;  %v9627_v47 = vrot.slane %v4738_v26, 10  ;;  %v15966_v23 = vrot.slane %v12381_v3, 5 }
 0x14a   : > { %2642 = vrot.lane.b32.xlu0 %v9435_v63, %s11456_s19  ;;  %v2920_v36 = vsel %vm728_vm4, %v9400_v0, %v12570_v17  ;;  %v4896_v46 = vrot.slane %v4739_v40, 6  ;;  %v4899_v1 = vrot.slane %v4740_v21, 6  ;;  %v12815_v32 = vld [vmem:[#allocation2 + $0x290] sm:$0xf]  ;;  %v2123_v62 = vld [vmem:[#allocation2 + $0x294] sm:$0xf]  ;;  %v1207_v17 = vsel %vm11938_vm3, %v12405_v31, %v1206_v20 }
 0x14b   : > { %v1204_v16 = vsel %vm11938_vm3, %v9272_v8, %v15966_v23  ;;  %v15967_v43 = vrot.slane %v12775_v48, 5  ;;  %v12821_v26 = vld [vmem:[#allocation2 + $0x204] sm:$0xf]  ;;  %3649 = vmatprep.mubr.bf16.mxu1 %v2920_v36  ;;  %v4587_v3 = vsel %vm12082_vm7, %v4585_v39, %v4586_v5  ;;  %v1724_v40 = vld [vmem:[#allocation2 + $0x200] sm:$0x8]  ;;  %v6136_v39 = vsel %vm728_vm4, %v9676_v13, %v12706_v12 }
 0x14c   : > { %v12801_v33 = vpop.permute.xlu1 %5820  ;;  %v9708_v58 = vcombine.low %v4584_v7, %v4587_v3  ;;  %v9368_v63 = vcombine.low %v1204_v16, %v1207_v17  ;;  %v4897_v0 = vsel %vm12082_vm7, %v9627_v47, %v4896_v46  ;;  %v4898_v8 = vrot.slane %v4896_v46, 4  ;;  %v1725_v21 = vld [vmem:[#allocation2 + $0x204] sm:$0xf]  ;;  %v12835_v36 = vld [vmem:[#allocation2 + $0x1b8] sm:$0xf] }
 0x14d   : > { %v12819_v53 = vrot.slane %v15967_v43, 4  ;;  %v12833_v23 = vpop.permute.xlu0 %2572  ;;  %15969 = vst [vmem:[#allocation40_spill] sm:$0xff] %v12835_v36  ;;  %v9468_v31 = vcombine.low %v12815_v32, %v2123_v62  ;;  %v1726_v20 = vld [vmem:[#allocation2 + $0x208] sm:$0x7]  ;;  %v9324_v7 = vrot.slane %v1724_v40, 11  ;;  %v1858_v43 = vrot.slane %v1725_v21, 7 }
 0x14e   : > { %v6200_v16 = vsel %vm728_vm4, %v9708_v58, %v12674_v22  ;;  %v2856_v47 = vsel %vm728_vm4, %v9368_v63, %v12568_v35  ;;  %v4900_v46 = vsel %vm12082_vm7, %v4898_v8, %v4899_v1  ;;  %v1306_v3 = vld [vmem:[#allocation2 + $0x128] sm:$0x8]  ;;  %v1307_v17 = vld [vmem:[#allocation2 + $0x130] sm:$0x7]  ;;  %v1861_v12 = vrot.slane %v1726_v20, 7 }
 0x14f   : > { %15968 = vst [vmem:[#allocation39_spill] sm:$0xff] %v12819_v53  ;;  %6900 = vmatprep.mubr.bf16.mxu0 %v6200_v16  ;;  %3650 = vmatmul.mubr.bf16.gmra.mrb[20].mxu1 %v2856_v47  ;;  %v9739_v5 = vcombine.low %v4897_v0, %v4900_v46  ;;  %v9289_v13 = vrot.slane %v1306_v3, 11  ;;  %v1424_v62 = vrot.slane %v1307_v17, 7  ;;  %v11074_v4 = vld [vmem:[#allocation3 + $0x160] ss:$8 sps:$4 sm:$0xff]   ;;  %v11073_v22 = vld [vmem:[#allocation2 + $0x170] sm:$0xff]   ;;  %v1859_v35 = vsel %vm12347_vm11, %v9324_v7, %v1858_v43 }
 0x150   : > { %v12829_v14 = vpop.permute.xlu1 %5692  ;;  %6901 = vmatmul.mubr.bf16.vlgmr.msra.gmra.mrb[64].mxu0 %v6136_v39  ;;  %2772 = vrot.lane.b32.xlu0 %v9468_v31, %s11456_s19  ;;  %v1860_v1 = vrot.slane %v1858_v43, 4  ;;  %v11076_v58 = vld [vmem:[#allocation3 + $0x164] ss:$8 sps:$4 sm:$0xff]   ;;  %v15970_v0 = vrot.slane %v12393_v25, 7  ;;  %v4489_v31 = vld [vmem:[#allocation2 + $0x28] sm:$0xf] }
 0x151   : > { %v4488_v63 = vld [vmem:[#allocation2 + $0x24] sm:$0xc]  ;;  %v12852_v8 = vpop.permute.xlu0 %2444  ;;  %5844 = vrot.lane.b32.xlu1 %v9739_v5, %s11456_s19  ;;  %v1425_v39 = vsel %vm12347_vm11, %v12417_v34, %v1424_v62  ;;  %v4490_v20 = vld [vmem:[#allocation2 + $0x2c] sm:$0x3]  ;;  %3772 = vmatprep.subr.bf16.mxu1 %v11076_v58  ;;  %v4590_v46 = vrot.slane %v4489_v31, 6 }
 0x152   : > { %v1422_v21 = vsel %vm12347_vm11, %v9289_v13, %v15970_v0  ;;  %v9597_v16 = vrot.slane %v4488_v63, 10  ;;  %v1862_v7 = vsel %vm12347_vm11, %v1860_v1, %v1861_v12  ;;  %v4593_v43 = vrot.slane %v4490_v20, 6  ;;  %v1085_v5 = vld [vmem:[#allocation2 + $0x124] sm:$0xe]  ;;  %v1087_v3 = vld [vmem:[#allocation2 + $0x12c] sm:$0x1]  ;;  %3773 = vmatpush1.bf16.msra.mxu1 %v11074_v4 }
 0x153   : > { %v9401_v47 = vcombine.low %v1422_v21, %v1425_v39  ;;  %v9436_v25 = vcombine.low %v1859_v35, %v1862_v7  ;;  %v9273_v17 = vrot.slane %v1085_v5, 9  ;;  %v1213_v53 = vrot.slane %v1087_v3, 5  ;;  %v11077_v13 = vld [vmem:[#allocation2 + $0x248] sm:$0xff]   ;;  %v4245_v1 = vld [vmem:[#allocation2 + $0x18] sm:$0xc] }
 0x154   : > { %v12847_v40 = vpop.permute.xlu1 %5822  ;;  %v4591_v62 = vsel %vm12082_vm7, %v9597_v16, %v4590_v46  ;;  %v4592_v12 = vrot.slane %v4590_v46, 4  ;;  %v4246_v58 = vld [vmem:[#allocation2 + $0x1c] sm:$0xf]  ;;  %v15971_v35 = vrot.slane %v12387_v15, 5  ;;  %v9581_v21 = vrot.slane %v4245_v1, 10 }
 0x155   : > { %v2924_v34 = vsel %vm728_vm4, %v9401_v47, %v12593_v59  ;;  %5716 = vrot.lane.b32.xlu1 %v11073_v22, %s11456_s19  ;;  %2644 = vrot.lane.b32.xlu0 %v9436_v25, %s11456_s19  ;;  %v1214_v63 = vsel %vm11938_vm3, %v12413_v11, %v1213_v53  ;;  %v4247_v59 = vld [vmem:[#allocation2 + $0x20] sm:$0x3]  ;;  %v4350_v39 = vrot.slane %v4246_v58, 6  ;;  %v12879_v31 = vld [vmem:[#allocation2 + $0x2a8] sm:$0xf]  ;;  %v12881_v20 = vpop.permute.xlu0 %2574  ;;  %v15973_v22 = vrot.slane %v12821_v26, 7 }
 0x156   : > { %v1211_v4 = vsel %vm11938_vm3, %v9273_v17, %v15971_v35  ;;  %15972 = vst [vmem:[#allocation41_spill] sm:$0xff] %v12879_v31  ;;  %3659 = vmatprep.mubr.bf16.mxu1 %v2924_v34  ;;  %v4594_v15 = vsel %vm12082_vm7, %v4592_v12, %v4593_v43  ;;  %v4353_v47 = vrot.slane %v4247_v59, 6  ;;  %v2124_v46 = vld [vmem:[#allocation2 + $0x2ac] sm:$0xf]  ;;  %v15974_v11 = vrot.slane %v12835_v36, 5 }
 0x157   : > { %v12885_v16 = vrot.slane %v15973_v22, 4  ;;  %v9369_v7 = vcombine.low %v1211_v4, %v1214_v63  ;;  %v4901_v5 = vld [vmem:[#allocation2 + $0x12c] sm:$0xc]  ;;  %v9709_v3 = vcombine.low %v4591_v62, %v4594_v15  ;;  %v4351_v25 = vsel %vm12082_vm7, %v9581_v21, %v4350_v39  ;;  %v4902_v1 = vld [vmem:[#allocation2 + $0x130] sm:$0xf] }
 0x158   : > { %v12864_v0 = vpop.permute.xlu1 %5694  ;;  %v12891_v53 = vrot.slane %v15974_v11, 4  ;;  %v4352_v17 = vrot.slane %v4350_v39, 4  ;;  %v4903_v58 = vld [vmem:[#allocation2 + $0x134] sm:$0x3]  ;;  %v12897_v34 = vld [vmem:[#allocation2 + $0x1d0] sm:$0xf]  ;;  %v9469_v4 = vcombine.low %v12879_v31, %v2124_v46 }
 0x159   : > { %v2860_v12 = vsel %vm728_vm4, %v9369_v7, %v12589_v51  ;;  %v9628_v63 = vrot.slane %v4901_v5, 10  ;;  %v1727_v59 = vld [vmem:[#allocation2 + $0x218] sm:$0x8]  ;;  %v1728_v62 = vld [vmem:[#allocation2 + $0x21c] sm:$0xf]  ;;  %v6204_v39 = vsel %vm728_vm4, %v9709_v3, %v12722_v42  ;;  %6054 = vrot.lane.b32.xlu1 %v11077_v13, %s11456_s19  ;;  %v4999_v11 = vrot.slane %v4902_v1, 6  ;;  %v12911_v46 = vpop.permute.xlu0 %2446 }
 0x15a   : > { %15975 = vst [vmem:[#allocation42_spill] sm:$0xff] %v12891_v53  ;;  %v12903_v22 = vld [vmem:[#allocation2 + $0x1e8] sm:$0xf]  ;;  %3660 = vmatmul.mubr.bf16.gmra.mrb[24].mxu1 %v2860_v12  ;;  %v4354_v15 = vsel %vm12082_vm7, %v4352_v17, %v4353_v47  ;;  %v1729_v51 = vld [vmem:[#allocation2 + $0x220] sm:$0x7]  ;;  %6910 = vmatprep.mubr.bf16.mxu0 %v6204_v39  ;;  %v5002_v43 = vrot.slane %v4903_v58, 6 }
 0x15b   : > { %15976 = vst [vmem:[#allocation43_spill] sm:$0xff] %v12903_v22  ;;  %v1308_v7 = vld [vmem:[#allocation2 + $0x140] sm:$0x8]  ;;  %v9677_v5 = vcombine.low %v4351_v25, %v4354_v15  ;;  %2774 = vrot.lane.b32.xlu0 %v9469_v4, %s11456_s19  ;;  %v9325_v21 = vrot.slane %v1727_v59, 11  ;;  %v1865_v53 = vrot.slane %v1728_v62, 7  ;;  %v5000_v42 = vsel %vm12082_vm7, %v9628_v63, %v4999_v11 }
 0x15c   : > { %v12895_v35 = vpop.permute.xlu1 %5824  ;;  %v1309_v36 = vld [vmem:[#allocation2 + $0x148] sm:$0x7]  ;;  %v5001_v13 = vrot.slane %v4999_v11, 4  ;;  %v1868_v3 = vrot.slane %v1729_v51, 7  ;;  %v9290_v12 = vrot.slane %v1308_v7, 11  ;;  %v15977_v39 = vrot.slane %v12428_v19, 7 }
 0x15d   : > { %v11079_v47 = vld [vmem:[#allocation3 + $0x170] ss:$8 sps:$4 sm:$0xff]   ;;  %v6140_v1 = vsel %vm728_vm4, %v9677_v5, %v12739_v2  ;;  %v1866_v25 = vsel %vm12347_vm11, %v9325_v21, %v1865_v53  ;;  %v1867_v4 = vrot.slane %v1865_v53, 4  ;;  %v1431_v58 = vrot.slane %v1309_v36, 7  ;;  %v11081_v59 = vld [vmem:[#allocation3 + $0x174] ss:$8 sps:$4 sm:$0xff]   ;;  %v12933_v19 = vpop.permute.xlu0 %2576 }
 0x15e   : > { %v4491_v62 = vld [vmem:[#allocation2 + $0x3c] sm:$0xc]  ;;  %6911 = vmatmul.mubr.bf16.gmra.mrb[68].mxu0 %v6140_v1  ;;  %v5003_v63 = vsel %vm12082_vm7, %v5001_v13, %v5002_v43  ;;  %v1429_v15 = vsel %vm12347_vm11, %v9290_v12, %v15977_v39  ;;  %v4492_v11 = vld [vmem:[#allocation2 + $0x40] sm:$0xf]  ;;  %v4493_v51 = vld [vmem:[#allocation2 + $0x44] sm:$0x3]  ;;  %3774 = vmatprep.subr.bf16.mxu1 %v11081_v59 }
 0x15f   : > { %v9598_v7 = vrot.slane %v4491_v62, 10  ;;  %v9740_v2 = vcombine.low %v5000_v42, %v5003_v63  ;;  %v1869_v21 = vsel %vm12347_vm11, %v1867_v4, %v1868_v3  ;;  %v1432_v36 = vsel %vm12347_vm11, %v12458_v57, %v1431_v58  ;;  %v1088_v5 = vld [vmem:[#allocation2 + $0x13c] sm:$0xe]  ;;  %v1090_v43 = vld [vmem:[#allocation2 + $0x144] sm:$0x1]  ;;  %3775 = vmatpush1.bf16.msra.mxu1 %v11079_v47 }
 0x160   : > { %v12916_v17 = vpop.permute.xlu1 %5696  ;;  %v4597_v53 = vrot.slane %v4492_v11, 6  ;;  %v11082_v13 = vld [vmem:[#allocation2 + $0x260] sm:$0xff]   ;;  %v9437_v1 = vcombine.low %v1866_v25, %v1869_v21  ;;  %v9402_v12 = vcombine.low %v1429_v15, %v1432_v36  ;;  %v4600_v39 = vrot.slane %v4493_v51, 6  ;;  %v4248_v57 = vld [vmem:[#allocation2 + $0x30] sm:$0xc] }
 0x161   : > { %v9274_v48 = vrot.slane %v1088_v5, 9  ;;  %5894 = vrot.lane.b32.xlu1 %v9740_v2, %s11456_s19  ;;  %v1220_v4 = vrot.slane %v1090_v43, 5  ;;  %v4249_v58 = vld [vmem:[#allocation2 + $0x34] sm:$0xf]  ;;  %v15978_v25 = vrot.slane %v12424_v56, 5  ;;  %v9582_v63 = vrot.slane %v4248_v57, 10 }
 0x162   : > { %v4598_v42 = vsel %vm12082_vm7, %v9598_v7, %v4597_v53  ;;  %v4599_v3 = vrot.slane %v4597_v53, 4  ;;  %2646 = vrot.lane.b32.xlu0 %v9437_v1, %s11456_s19  ;;  %v2928_v59 = vsel %vm728_vm4, %v9402_v12, %v12611_v28  ;;  %v4250_v47 = vld [vmem:[#allocation2 + $0x38] sm:$0x3]  ;;  %v4357_v15 = vrot.slane %v4249_v58, 6  ;;  %v12945_v11 = vld [vmem:[#allocation2 + $0x2c0] sm:$0xf]  ;;  %v12958_v53 = vpop.permute.xlu0 %2448 }
 0x163   : > { %v1218_v62 = vsel %vm11938_vm3, %v9274_v48, %v15978_v25  ;;  %15979 = vst [vmem:[#allocation44_spill] sm:$0xff] %v12945_v11  ;;  %v15980_v7 = vrot.slane %v12897_v34, 5  ;;  %3669 = vmatprep.mubr.bf16.mxu1 %v2928_v59  ;;  %v1221_v56 = vsel %vm11938_vm3, %v12451_v18, %v1220_v4  ;;  %v4360_v48 = vrot.slane %v4250_v47, 6  ;;  %v2125_v21 = vld [vmem:[#allocation2 + $0x2c4] sm:$0xf] }
 0x164   : > { %v12947_v51 = vpop.permute.xlu1 %5826  ;;  %v4601_v28 = vsel %vm12082_vm7, %v4599_v3, %v4600_v39  ;;  %v4904_v36 = vld [vmem:[#allocation2 + $0x144] sm:$0xc]  ;;  %v9370_v43 = vcombine.low %v1218_v62, %v1221_v56  ;;  %v4358_v1 = vsel %vm12082_vm7, %v9582_v63, %v4357_v15  ;;  %v4359_v12 = vrot.slane %v4357_v15, 4  ;;  %v4905_v57 = vld [vmem:[#allocation2 + $0x148] sm:$0xf] }
 0x165   : > { %v12951_v2 = vrot.slane %v15980_v7, 4  ;;  %v9710_v5 = vcombine.low %v4598_v42, %v4601_v28  ;;  %v4906_v58 = vld [vmem:[#allocation2 + $0x14c] sm:$0x3]  ;;  %v15981_v59 = vrot.slane %v12903_v22, 5  ;;  %v12966_v3 = vld [vmem:[#allocation2 + $0x200] sm:$0xf]  ;;  %6056 = vrot.lane.b32.xlu1 %v11082_v13, %s11456_s19  ;;  %v9470_v4 = vcombine.low %v12945_v11, %v2125_v21 }
 0x166   : > { %15983 = vst [vmem:[#allocation46_spill] sm:$0xff] %v12966_v3  ;;  %v9629_v42 = vrot.slane %v4904_v36, 10  ;;  %v1730_v25 = vld [vmem:[#allocation2 + $0x230] sm:$0x8]  ;;  %v2864_v47 = vsel %vm728_vm4, %v9370_v43, %v12608_v49  ;;  %v4361_v63 = vsel %vm12082_vm7, %v4359_v12, %v4360_v48  ;;  %v5006_v15 = vrot.slane %v4905_v57, 6 }
 0x167   : > { %v12964_v39 = vrot.slane %v15981_v59, 4  ;;  %v6208_v62 = vsel %vm728_vm4, %v9710_v5, %v12773_v30  ;;  %v1731_v7 = vld [vmem:[#allocation2 + $0x234] sm:$0xf]  ;;  %v1732_v28 = vld [vmem:[#allocation2 + $0x238] sm:$0x7]  ;;  %3670 = vmatmul.mubr.bf16.gmra.mrb[28].mxu1 %v2864_v47  ;;  %v9678_v21 = vcombine.low %v4358_v1, %v4361_v63  ;;  %v5009_v36 = vrot.slane %v4906_v58, 6  ;;  %v12980_v30 = vpop.permute.xlu0 %2754  ;;  %2776 = vrot.lane.b32.xlu0 %v9470_v4, %s11456_s19 }
 0x168   : > { %v12977_v56 = vld [vmem:[#allocation2 + $0x218] sm:$0xf]  ;;  %6920 = vmatprep.mubr.bf16.mxu0 %v6208_v62  ;;  %v9326_v59 = vrot.slane %v1730_v25, 11  ;;  %v5007_v49 = vsel %vm12082_vm7, %v9629_v42, %v5006_v15  ;;  %v5008_v48 = vrot.slane %v5006_v15, 4  ;;  %v1872_v5 = vrot.slane %v1731_v7, 7  ;;  %v12985_v57 = vpop.permute.xlu1 %5698 }
 0x169   : > { %15982 = vst [vmem:[#allocation45_spill] sm:$0xff] %v12964_v39  ;;  %15984 = vst [vmem:[#allocation47_spill] sm:$0xff] %v12977_v56  ;;  %v1310_v18 = vld [vmem:[#allocation2 + $0x158] sm:$0x8]  ;;  %v1875_v43 = vrot.slane %v1732_v28, 7  ;;  %v6144_v62 = vsel %vm728_vm4, %v9678_v21, %v12781_v37  ;;  %v15985_v13 = vrot.slane %v12436_v29, 7 }
 0x16a   : > { %v1311_v12 = vld [vmem:[#allocation2 + $0x160] sm:$0x7]  ;;  %v9291_v1 = vrot.slane %v1310_v18, 11  ;;  %v11086_v47 = vld [vmem:[#allocation3 + $0x184] ss:$8 sps:$4 sm:$0xff]   ;;  %6921 = vmatmul.mubr.bf16.gmra.mrb[72].mxu0 %v6144_v62  ;;  %v5010_v4 = vsel %vm12082_vm7, %v5008_v48, %v5009_v36  ;;  %v1873_v42 = vsel %vm12347_vm11, %v9326_v59, %v1872_v5  ;;  %v1874_v63 = vrot.slane %v1872_v5, 4 }
 0x16b   : > { %v1438_v58 = vrot.slane %v1311_v12, 7  ;;  %v11084_v25 = vld [vmem:[#allocation3 + $0x180] ss:$8 sps:$4 sm:$0xff]   ;;  %v4494_v15 = vld [vmem:[#allocation2 + $0x54] sm:$0xc]  ;;  %v9741_v28 = vcombine.low %v5007_v49, %v5010_v4  ;;  %3776 = vmatprep.subr.bf16.mxu1 %v11086_v47  ;;  %v11087_v48 = vld [vmem:[#allocation2 + $0x278] sm:$0xff]   ;;  %v13000_v62 = vpop.permute.xlu0 %2626 }
 0x16c   : > { %v4495_v7 = vld [vmem:[#allocation2 + $0x58] sm:$0xf]  ;;  %v1436_v37 = vsel %vm12347_vm11, %v9291_v1, %v15985_v13  ;;  %v4496_v21 = vld [vmem:[#allocation2 + $0x5c] sm:$0x3]  ;;  %v9599_v12 = vrot.slane %v4494_v15, 10  ;;  %v1876_v59 = vsel %vm12347_vm11, %v1874_v63, %v1875_v43  ;;  %3777 = vmatpush1.bf16.msra.mxu1 %v11084_v25  ;;  %v15986_v25 = vld [vmem:[#allocation9_spill] sm:$0xff] }
 0x16d   : > { %v1439_v18 = vsel %vm12347_vm11, %v12466_v38, %v1438_v58  ;;  %v1091_v36 = vld [vmem:[#allocation2 + $0x154] sm:$0xe]  ;;  %v4604_v5 = vrot.slane %v4495_v7, 6  ;;  %v4607_v29 = vrot.slane %v4496_v21, 6  ;;  %v1093_v4 = vld [vmem:[#allocation2 + $0x15c] sm:$0x1]  ;;  %5896 = vrot.lane.b32.xlu1 %v9741_v28, %s11456_s19  ;;  %v9438_v13 = vcombine.low %v1873_v42, %v1876_v59  ;;  %v13009_v7 = vpop.permute.xlu1 %5828 }
 0x16e   : > { %v9403_v49 = vcombine.low %v1436_v37, %v1439_v18  ;;  %v9275_v1 = vrot.slane %v1091_v36, 9  ;;  %v1227_v38 = vrot.slane %v1093_v4, 5  ;;  %v4251_v58 = vld [vmem:[#allocation2 + $0x48] sm:$0xc]  ;;  %v4252_v22 = vld [vmem:[#allocation2 + $0x4c] sm:$0xf] }
 0x16f   : > { %v4605_v15 = vsel %vm12082_vm7, %v9599_v12, %v4604_v5  ;;  %v4606_v39 = vrot.slane %v4604_v5, 4  ;;  %v4253_v43 = vld [vmem:[#allocation2 + $0x50] sm:$0x3]  ;;  %v9583_v63 = vrot.slane %v4251_v58, 10  ;;  %2648 = vrot.lane.b32.xlu0 %v9438_v13, %s11456_s19  ;;  %v15987_v42 = vrot.slane %v15986_v25, 5  ;;  %v15988_v37 = vld [vmem:[#allocation10_spill] sm:$0xff]  ;;  %v13021_v59 = vpop.permute.xlu0 %2756 }
 0x170   : > { %v2932_v47 = vsel %vm728_vm4, %v9403_v49, %v12644_v6  ;;  %v1228_v6 = vsel %vm11938_vm3, %v15988_v37, %v1227_v38  ;;  %v4364_v18 = vrot.slane %v4252_v22, 6  ;;  %v4367_v21 = vrot.slane %v4253_v43, 6  ;;  %v13019_v12 = vld [vmem:[#allocation2 + $0x2d8] sm:$0xf]  ;;  %v2126_v36 = vld [vmem:[#allocation2 + $0x2dc] sm:$0xf] }
 0x171   : > { %3679 = vmatprep.mubr.bf16.mxu1 %v2932_v47  ;;  %v1225_v28 = vsel %vm11938_vm3, %v9275_v1, %v15987_v42  ;;  %15989 = vst [vmem:[#allocation9_spill] sm:$0xff] %v13019_v12  ;;  %15990 = vst [vmem:[#allocation10_spill] sm:$0xff] %v13021_v59  ;;  %v15991_v49 = vrot.slane %v12966_v3, 5  ;;  %v15993_v4 = vrot.slane %v12977_v56, 5  ;;  %v4608_v1 = vsel %vm12082_vm7, %v4606_v39, %v4607_v29  ;;  %v4907_v38 = vld [vmem:[#allocation2 + $0x15c] sm:$0xc]  ;;  %v13052_v3 = vpop.permute.xlu1 %5700 }
 0x172   : > { %v9371_v58 = vcombine.low %v1225_v28, %v1228_v6  ;;  %v4908_v22 = vld [vmem:[#allocation2 + $0x160] sm:$0xf]  ;;  %v9711_v47 = vcombine.low %v4605_v15, %v4608_v1  ;;  %6058 = vrot.lane.b32.xlu1 %v11087_v48, %s11456_s19  ;;  %v4365_v43 = vsel %vm12082_vm7, %v9583_v63, %v4364_v18  ;;  %v4366_v25 = vrot.slane %v4364_v18, 4  ;;  %v4909_v37 = vld [vmem:[#allocation2 + $0x164] sm:$0x3] }
 0x173   : > { %v13025_v5 = vrot.slane %v15991_v49, 4  ;;  %v13029_v13 = vrot.slane %v15993_v4, 4  ;;  %v9471_v42 = vcombine.low %v13019_v12, %v2126_v36  ;;  %v1733_v49 = vld [vmem:[#allocation2 + $0x248] sm:$0x8]  ;;  %v13037_v56 = vld [vmem:[#allocation2 + $0x230] sm:$0xf]  ;;  %v13050_v4 = vpop.permute.xlu0 %2628 }
 0x174   : > { %v2868_v29 = vsel %vm728_vm4, %v9371_v58, %v12632_v10  ;;  %v9630_v48 = vrot.slane %v4907_v38, 10  ;;  %v1734_v15 = vld [vmem:[#allocation2 + $0x24c] sm:$0xf]  ;;  %v6212_v63 = vsel %vm728_vm4, %v9711_v47, %v12801_v33  ;;  %v4368_v28 = vsel %vm12082_vm7, %v4366_v25, %v4367_v21  ;;  %v1735_v36 = vld [vmem:[#allocation2 + $0x250] sm:$0x7] }
 0x175   : > { %15992 = vst [vmem:[#allocation48_spill] sm:$0xff] %v13025_v5  ;;  %15994 = vst [vmem:[#allocation49_spill] sm:$0xff] %v13029_v13  ;;  %v13040_v13 = vld [vmem:[#allocation2 + $0x248] sm:$0xf]  ;;  %3680 = vmatmul.mubr.bf16.gmra.mrb[32].mxu1 %v2868_v29  ;;  %2778 = vrot.lane.b32.xlu0 %v9471_v42, %s11456_s19  ;;  %v5013_v6 = vrot.slane %v4908_v22, 6  ;;  %v5016_v18 = vrot.slane %v4909_v37, 6  ;;  %v9679_v39 = vcombine.low %v4365_v43, %v4368_v28 }
 0x176   : > { %v1312_v1 = vld [vmem:[#allocation2 + $0x170] sm:$0x8]  ;;  %6930 = vmatprep.mubr.bf16.mxu0 %v6212_v63  ;;  %v9327_v10 = vrot.slane %v1733_v49, 11  ;;  %v1879_v58 = vrot.slane %v1734_v15, 7  ;;  %v1882_v38 = vrot.slane %v1735_v36, 7 }
 0x177   : > { %v1313_v5 = vld [vmem:[#allocation2 + $0x178] sm:$0x7]  ;;  %v5014_v33 = vsel %vm12082_vm7, %v9630_v48, %v5013_v6  ;;  %v5015_v21 = vrot.slane %v5013_v6, 4  ;;  %v9292_v47 = vrot.slane %v1312_v1, 11  ;;  %v6148_v37 = vsel %vm728_vm4, %v9679_v39, %v12829_v14  ;;  %v11091_v29 = vld [vmem:[#allocation3 + $0x194] ss:$8 sps:$4 sm:$0xff]   ;;  %v13070_v36 = vpop.permute.xlu0 %2758 }
 0x178   : > { %v1445_v25 = vrot.slane %v1313_v5, 7  ;;  %v11089_v22 = vld [vmem:[#allocation3 + $0x190] ss:$8 sps:$4 sm:$0xff]   ;;  %v1880_v43 = vsel %vm12347_vm11, %v9327_v10, %v1879_v58  ;;  %v1881_v49 = vrot.slane %v1879_v58, 4  ;;  %v4497_v15 = vld [vmem:[#allocation2 + $0x6c] sm:$0xc]  ;;  %6931 = vmatmul.mubr.bf16.gmra.mrb[76].mxu0 %v6148_v37  ;;  %3778 = vmatprep.subr.bf16.mxu1 %v11091_v29 }
 0x179   : > { %v5017_v63 = vsel %vm12082_vm7, %v5015_v21, %v5016_v18  ;;  %v15995_v48 = vrot.slane %v12483_v44, 7  ;;  %v4498_v14 = vld [vmem:[#allocation2 + $0x70] sm:$0xf]  ;;  %v4499_v39 = vld [vmem:[#allocation2 + $0x74] sm:$0x3]  ;;  %v9600_v6 = vrot.slane %v4497_v15, 10  ;;  %3779 = vmatpush1.bf16.msra.mxu1 %v11089_v22 }
 0x17a   : > { %v1446_v28 = vsel %vm12347_vm11, %v12562_v60, %v1445_v25  ;;  %v9742_v1 = vcombine.low %v5014_v33, %v5017_v63  ;;  %v1883_v10 = vsel %vm12347_vm11, %v1881_v49, %v1882_v38  ;;  %v4611_v18 = vrot.slane %v4498_v14, 6  ;;  %v1094_v44 = vld [vmem:[#allocation2 + $0x16c] sm:$0xe]  ;;  %v1096_v21 = vld [vmem:[#allocation2 + $0x174] sm:$0x1]  ;;  %v13079_v49 = vpop.permute.xlu1 %5830 }
 0x17b   : > { %v1443_v5 = vsel %vm12347_vm11, %v9292_v47, %v15995_v48  ;;  %v11092_v37 = vld [vmem:[#allocation2 + $0x290] sm:$0xff]   ;;  %v9439_v47 = vcombine.low %v1880_v43, %v1883_v10  ;;  %v4614_v48 = vrot.slane %v4499_v39, 6  ;;  %v9276_v42 = vrot.slane %v1094_v44, 9  ;;  %v4254_v25 = vld [vmem:[#allocation2 + $0x60] sm:$0xc]  ;;  %v13090_v14 = vpop.permute.xlu0 %2630 }
 0x17c   : > { %v9404_v58 = vcombine.low %v1443_v5, %v1446_v28  ;;  %v1234_v59 = vrot.slane %v1096_v21, 5  ;;  %5898 = vrot.lane.b32.xlu1 %v9742_v1, %s11456_s19  ;;  %v4612_v33 = vsel %vm12082_vm7, %v9600_v6, %v4611_v18  ;;  %v4613_v38 = vrot.slane %v4611_v18, 4  ;;  %v15997_v15 = vld [vmem:[#allocation11_spill] sm:$0xff]  ;;  %v4255_v63 = vld [vmem:[#allocation2 + $0x64] sm:$0xf] }
 0x17d   : > { %v15884_v29 = vrot.slane %v12751_v55, 5  ;;  %2650 = vrot.lane.b32.xlu0 %v9439_v47, %s11456_s19  ;;  %v15996_v43 = vrot.slane %v12468_v61, 5  ;;  %v4256_v5 = vld [vmem:[#allocation2 + $0x68] sm:$0x3]  ;;  %v9584_v28 = vrot.slane %v4254_v25, 10  ;;  %v4371_v1 = vrot.slane %v4255_v63, 6 }
 0x17e   : > { %v2936_v60 = vsel %vm728_vm4, %v9404_v58, %v12663_v27  ;;  %v1235_v27 = vsel %vm11938_vm3, %v15997_v15, %v1234_v59  ;;  %v4615_v39 = vsel %vm12082_vm7, %v4613_v38, %v4614_v48  ;;  %v4374_v10 = vrot.slane %v4256_v5, 6  ;;  %v1946_v58 = vld [vmem:[#allocation2 + $0x2f0] sm:$0xf]  ;;  %v2127_v61 = vld [vmem:[#allocation2 + $0x2f4] sm:$0xf] }
 0x17f   : > { %3689 = vmatprep.mubr.bf16.mxu1 %v2936_v60  ;;  %v1232_v22 = vsel %vm11938_vm3, %v9276_v42, %v15996_v43  ;;  %v15998_v18 = vrot.slane %v13037_v56, 5  ;;  %v15999_v44 = vrot.slane %v13040_v13, 5  ;;  %v9712_v21 = vcombine.low %v4612_v33, %v4615_v39  ;;  %v1314_v60 = vld [vmem:[#allocation2 + $0x188] sm:$0x8]  ;;  %v1315_v25 = vld [vmem:[#allocation2 + $0x190] sm:$0x7] }
 0x180   : > { %v9372_v6 = vcombine.low %v1232_v22, %v1235_v27  ;;  %v9472_v47 = vcombine.low %v1946_v58, %v2127_v61  ;;  %v16001_v43 = vld [vmem:[#allocation22_spill] sm:$0xff]  ;;  %6060 = vrot.lane.b32.xlu1 %v11092_v37, %s11456_s19  ;;  %v4372_v38 = vsel %vm12082_vm7, %v9584_v28, %v4371_v1  ;;  %v4373_v22 = vrot.slane %v4371_v1, 4  ;;  %v4910_v27 = vld [vmem:[#allocation2 + $0x174] sm:$0xc]  ;;  %v4911_v63 = vld [vmem:[#allocation2 + $0x178] sm:$0xf] }
 0x181   : > { %v13096_v42 = vrot.slane %v15998_v18, 4  ;;  %v13100_v59 = vrot.slane %v15999_v44, 4  ;;  %v9293_v15 = vrot.slane %v1314_v60, 11  ;;  %v16002_v5 = vrot.slane %v12688_v54, 5  ;;  %v4912_v28 = vld [vmem:[#allocation2 + $0x17c] sm:$0x3] }
 0x182   : > { %v2872_v48 = vsel %vm728_vm4, %v9372_v6, %v16001_v43  ;;  %v13113_v33 = vrot.slane %v15884_v29, 4  ;;  %v6216_v39 = vsel %vm728_vm4, %v9712_v21, %v12847_v40  ;;  %2780 = vrot.lane.b32.xlu0 %v9472_v47, %s11456_s19  ;;  %v1452_v37 = vrot.slane %v1315_v25, 7  ;;  %v16005_v1 = vld [vmem:[#allocation13_spill] sm:$0xff]  ;;  %v13124_v29 = vpop.permute.xlu1 %5702  ;;  %v16007_v21 = vld [vmem:[#allocation15_spill] sm:$0xff] }
 0x183   : > { %16000 = vst [vmem:[#allocation11_spill] sm:$0xff] %v13100_v59  ;;  %v13109_v18 = vrot.slane %v16002_v5, 4  ;;  %3690 = vmatmul.mubr.bf16.gmra.mrb[36].mxu1 %v2872_v48  ;;  %6940 = vmatprep.mubr.bf16.mxu0 %v6216_v39  ;;  %v4375_v6 = vsel %vm12082_vm7, %v4373_v22, %v4374_v10  ;;  %v16006_v58 = vrot.slane %v16005_v1, 7  ;;  %v9631_v44 = vrot.slane %v4910_v27, 10  ;;  %v11094_v43 = vld [vmem:[#allocation3 + $0x340] ss:$8 sps:$4 sm:$0xff]   ;;  %v13129_v10 = vpop.permute.xlu0 %2760 }
 0x184   : > { %16004 = vst [vmem:[#allocation50_spill] sm:$0xff] %v13113_v33  ;;  %v5020_v60 = vrot.slane %v4911_v63, 6  ;;  %v11096_v5 = vld [vmem:[#allocation3 + $0x344] ss:$8 sps:$4 sm:$0xff]   ;;  %v9680_v40 = vcombine.low %v4372_v38, %v4375_v6  ;;  %v1453_v47 = vsel %vm12347_vm11, %v16007_v21, %v1452_v37  ;;  %v5023_v25 = vrot.slane %v4912_v28, 6 }
 0x185   : > { %16003 = vst [vmem:[#allocation22_spill] sm:$0xff] %v13109_v18  ;;  %v1450_v61 = vsel %vm12347_vm11, %v9293_v15, %v16006_v58  ;;  %v1736_v48 = vld [vmem:[#allocation2 + $0x260] sm:$0x8]  ;;  %v1737_v39 = vld [vmem:[#allocation2 + $0x264] sm:$0xf]  ;;  %7061 = vmatprep.subr.bf16.mxu0 %v11096_v5  ;;  %v16011_v18 = vld [vmem:[#allocation31_spill] sm:$0xff] }
 0x186   : > { %v9405_v22 = vcombine.low %v1450_v61, %v1453_v47  ;;  %v5021_v15 = vsel %vm12082_vm7, %v9631_v44, %v5020_v60  ;;  %v5022_v27 = vrot.slane %v5020_v60, 4  ;;  %v1738_v63 = vld [vmem:[#allocation2 + $0x268] sm:$0x7]  ;;  %v9328_v1 = vrot.slane %v1736_v48, 11  ;;  %v11099_v37 = vld [vmem:[#allocation3 + $0x1a4] ss:$8 sps:$4 sm:$0xff]   ;;  %7062 = vmatpush1.bf16.msra.mxu0 %v11094_v43 }
 0x187   : > { %v11097_v58 = vld [vmem:[#allocation3 + $0x1a0] ss:$8 sps:$4 sm:$0xff]   ;;  %v6152_v38 = vsel %vm728_vm4, %v9680_v40, %v12864_v0  ;;  %v1886_v6 = vrot.slane %v1737_v39, 7  ;;  %v1889_v33 = vrot.slane %v1738_v63, 7  ;;  %v4500_v28 = vld [vmem:[#allocation2 + $0x84] sm:$0xc]  ;;  %3780 = vmatprep.subr.bf16.mxu1 %v11099_v37 }
 0x188   : > { %6941 = vmatmul.mubr.bf16.gmra.mrb[80].mxu0 %v6152_v38  ;;  %v2940_v61 = vsel %vm728_vm4, %v9405_v22, %v12704_v50  ;;  %v5024_v44 = vsel %vm12082_vm7, %v5022_v27, %v5023_v25  ;;  %v4501_v60 = vld [vmem:[#allocation2 + $0x88] sm:$0xf]  ;;  %v4502_v5 = vld [vmem:[#allocation2 + $0x8c] sm:$0x3]  ;;  %v9601_v21 = vrot.slane %v4500_v28, 10  ;;  %3781 = vmatpush1.bf16.msra.mxu1 %v11097_v58  ;;  %v13141_v50 = vpop.permute.xlu1 %5832  ;;  %v16008_v28 = vld [vmem:[#allocation12_spill] sm:$0xff] }
 0x189   : > { %3699 = vmatprep.mubr.bf16.mxu1 %v2940_v61  ;;  %v9743_v47 = vcombine.low %v5021_v15, %v5024_v44  ;;  %v1887_v0 = vsel %vm12347_vm11, %v9328_v1, %v1886_v6  ;;  %v1888_v40 = vrot.slane %v1886_v6, 4  ;;  %v4618_v48 = vrot.slane %v4501_v60, 6  ;;  %v1097_v39 = vld [vmem:[#allocation2 + $0x184] sm:$0xe]  ;;  %v1099_v43 = vld [vmem:[#allocation2 + $0x18c] sm:$0x1]  ;;  %v13148_v6 = vpop.permute.xlu0 %2632 }
 0x18a   : > { %v4621_v63 = vrot.slane %v4502_v5, 6  ;;  %v9277_v38 = vrot.slane %v1097_v39, 9  ;;  %v1241_v55 = vrot.slane %v1099_v43, 5  ;;  %v11100_v27 = vld [vmem:[#allocation2 + $0x2a8] sm:$0xff]   ;;  %v4257_v1 = vld [vmem:[#allocation2 + $0x78] sm:$0xc] }
 0x18b   : > { %5900 = vrot.lane.b32.xlu1 %v9743_v47, %s11456_s19  ;;  %v1890_v25 = vsel %vm12347_vm11, %v1888_v40, %v1889_v33  ;;  %v4619_v22 = vsel %vm12082_vm7, %v9601_v21, %v4618_v48  ;;  %v4620_v15 = vrot.slane %v4618_v48, 4  ;;  %v16009_v61 = vrot.slane %v16008_v28, 5  ;;  %v16010_v44 = vld [vmem:[#allocation14_spill] sm:$0xff]  ;;  %v4258_v5 = vld [vmem:[#allocation2 + $0x7c] sm:$0xf] }
 0x18c   : > { %v9440_v37 = vcombine.low %v1887_v0, %v1890_v25  ;;  %v1242_v60 = vsel %vm11938_vm3, %v16010_v44, %v1241_v55  ;;  %v4259_v33 = vld [vmem:[#allocation2 + $0x80] sm:$0x3]  ;;  %v9585_v47 = vrot.slane %v4257_v1, 10  ;;  %v4378_v48 = vrot.slane %v4258_v5, 6  ;;  %v1949_v43 = vld [vmem:[#allocation2 + $0x308] sm:$0xf] }
 0x18d   : > { %v1239_v58 = vsel %vm11938_vm3, %v9277_v38, %v16009_v61  ;;  %v4622_v21 = vsel %vm12082_vm7, %v4620_v15, %v4621_v63  ;;  %v4381_v39 = vrot.slane %v4259_v33, 6  ;;  %v2128_v0 = vld [vmem:[#allocation2 + $0x30c] sm:$0xf]  ;;  %v1316_v55 = vld [vmem:[#allocation2 + $0x1a0] sm:$0x8]  ;;  %v13179_v28 = vpop.permute.xlu0 %2762 }
 0x18e   : > { %v9373_v40 = vcombine.low %v1239_v58, %v1242_v60  ;;  %2652 = vrot.lane.b32.xlu0 %v9440_v37, %s11456_s19  ;;  %v9713_v38 = vcombine.low %v4619_v22, %v4622_v21  ;;  %v9473_v61 = vcombine.low %v1949_v43, %v2128_v0  ;;  %v1317_v44 = vld [vmem:[#allocation2 + $0x1a8] sm:$0x7]  ;;  %v4379_v63 = vsel %vm12082_vm7, %v9585_v47, %v4378_v48  ;;  %v4913_v60 = vld [vmem:[#allocation2 + $0x18c] sm:$0xc]  ;;  %v4914_v5 = vld [vmem:[#allocation2 + $0x190] sm:$0xf] }
 0x18f   : > { %6062 = vrot.lane.b32.xlu1 %v11100_v27, %s11456_s19  ;;  %v4380_v15 = vrot.slane %v4378_v48, 4  ;;  %v9294_v58 = vrot.slane %v1316_v55, 11  ;;  %v1459_v21 = vrot.slane %v1317_v44, 7  ;;  %v4915_v43 = vld [vmem:[#allocation2 + $0x194] sm:$0x3]  ;;  %v16012_v47 = vld [vmem:[#allocation17_spill] sm:$0xff] }
 0x190   : > { %v2876_v1 = vsel %vm728_vm4, %v9373_v40, %v16011_v18  ;;  %v6220_v22 = vsel %vm728_vm4, %v9713_v38, %v12895_v35  ;;  %v13171_v18 = vpop.permute.xlu1 %5704  ;;  %v16013_v40 = vrot.slane %v16012_v47, 7  ;;  %v9632_v0 = vrot.slane %v4913_v60, 10  ;;  %v1739_v37 = vld [vmem:[#allocation2 + $0x278] sm:$0x8]  ;;  %v1740_v33 = vld [vmem:[#allocation2 + $0x27c] sm:$0xf] }
 0x191   : > { %3700 = vmatmul.mubr.bf16.gmra.mrb[40].mxu1 %v2876_v1  ;;  %6950 = vmatprep.mubr.bf16.mxu0 %v6220_v22  ;;  %v4382_v27 = vsel %vm12082_vm7, %v4380_v15, %v4381_v39  ;;  %v5027_v55 = vrot.slane %v4914_v5, 6  ;;  %v16014_v38 = vld [vmem:[#allocation19_spill] sm:$0xff]  ;;  %v5030_v1 = vrot.slane %v4915_v43, 6  ;;  %v1741_v39 = vld [vmem:[#allocation2 + $0x280] sm:$0x7]  ;;  %v9329_v15 = vrot.slane %v1739_v37, 11 }
 0x192   : > { %v1457_v48 = vsel %vm12347_vm11, %v9294_v58, %v16013_v40  ;;  %v9681_v35 = vcombine.low %v4379_v63, %v4382_v27  ;;  %2782 = vrot.lane.b32.xlu0 %v9473_v61, %s11456_s19  ;;  %v1460_v44 = vsel %vm12347_vm11, %v16014_v38, %v1459_v21  ;;  %v11102_v22 = vld [vmem:[#allocation3 + $0x1b0] ss:$8 sps:$4 sm:$0xff]   ;;  %v1893_v5 = vrot.slane %v1740_v33, 7  ;;  %v11104_v40 = vld [vmem:[#allocation3 + $0x1b4] ss:$8 sps:$4 sm:$0xff]  }
 0x193   : > { %v9406_v47 = vcombine.low %v1457_v48, %v1460_v44  ;;  %v5028_v58 = vsel %vm12082_vm7, %v9632_v0, %v5027_v55  ;;  %v5029_v60 = vrot.slane %v5027_v55, 4  ;;  %v4503_v25 = vld [vmem:[#allocation2 + $0x9c] sm:$0xc]  ;;  %v1896_v61 = vrot.slane %v1741_v39, 7  ;;  %v4504_v27 = vld [vmem:[#allocation2 + $0xa0] sm:$0xf]  ;;  %3782 = vmatprep.subr.bf16.mxu1 %v11104_v40 }
 0x194   : > { %v6156_v63 = vsel %vm728_vm4, %v9681_v35, %v12916_v17  ;;  %v4505_v54 = vld [vmem:[#allocation2 + $0xa4] sm:$0x3]  ;;  %v9602_v59 = vrot.slane %v4503_v25, 10  ;;  %v1894_v43 = vsel %vm12347_vm11, %v9329_v15, %v1893_v5  ;;  %v1895_v33 = vrot.slane %v1893_v5, 4  ;;  %v11105_v48 = vld [vmem:[#allocation3 + $0x350] ss:$8 sps:$4 sm:$0xff]   ;;  %3783 = vmatpush1.bf16.msra.mxu1 %v11102_v22  ;;  %v13195_v39 = vpop.permute.xlu1 %5834 }
 0x195   : > { %6951 = vmatmul.mubr.bf16.gmra.mrb[84].mxu0 %v6156_v63  ;;  %v2944_v37 = vsel %vm728_vm4, %v9406_v47, %v12737_v45  ;;  %v5031_v21 = vsel %vm12082_vm7, %v5029_v60, %v5030_v1  ;;  %v11107_v0 = vld [vmem:[#allocation3 + $0x354] ss:$8 sps:$4 sm:$0xff]   ;;  %v4625_v55 = vrot.slane %v4504_v27, 6  ;;  %v4628_v35 = vrot.slane %v4505_v54, 6  ;;  %v1102_v25 = vld [vmem:[#allocation2 + $0x1a4] sm:$0x1]  ;;  %v13199_v47 = vpop.permute.xlu0 %2634 }
 0x196   : > { %3709 = vmatprep.mubr.bf16.mxu1 %v2944_v37  ;;  %v9744_v17 = vcombine.low %v5028_v58, %v5031_v21  ;;  %v1100_v38 = vld [vmem:[#allocation2 + $0x19c] sm:$0xe]  ;;  %v11108_v44 = vld [vmem:[#allocation2 + $0x2c0] sm:$0xff]   ;;  %v1897_v45 = vsel %vm12347_vm11, %v1895_v33, %v1896_v61  ;;  %7063 = vmatprep.subr.bf16.mxu0 %v11107_v0  ;;  %v1248_v15 = vrot.slane %v1102_v25, 5  ;;  %v4260_v5 = vld [vmem:[#allocation2 + $0x90] sm:$0xc] }
 0x197   : > { %v9278_v1 = vrot.slane %v1100_v38, 9  ;;  %v9441_v60 = vcombine.low %v1894_v43, %v1897_v45  ;;  %v4626_v54 = vsel %vm12082_vm7, %v9602_v59, %v4625_v55  ;;  %v4627_v58 = vrot.slane %v4625_v55, 4  ;;  %v4261_v22 = vld [vmem:[#allocation2 + $0x94] sm:$0xf]  ;;  %7064 = vmatpush1.bf16.msra.mxu0 %v11105_v48  ;;  %v16015_v40 = vld [vmem:[#allocation16_spill] sm:$0xff]  ;;  %v16017_v27 = vld [vmem:[#allocation18_spill] sm:$0xff] }
 0x198   : > { %5902 = vrot.lane.b32.xlu1 %v9744_v17, %s11456_s19  ;;  %v16016_v63 = vrot.slane %v16015_v40, 5  ;;  %v1249_v37 = vsel %vm11938_vm3, %v16017_v27, %v1248_v15  ;;  %v4262_v21 = vld [vmem:[#allocation2 + $0x98] sm:$0x3]  ;;  %v9586_v33 = vrot.slane %v4260_v5, 10  ;;  %v4385_v0 = vrot.slane %v4261_v22, 6 }
 0x199   : > { %v1952_v43 = vld [vmem:[#allocation2 + $0x320] sm:$0xf]  ;;  %v16018_v17 = vrot.slane %v12815_v32, 5  ;;  %2654 = vrot.lane.b32.xlu0 %v9441_v60, %s11456_s19  ;;  %v4629_v48 = vsel %vm12082_vm7, %v4627_v58, %v4628_v35  ;;  %v4388_v38 = vrot.slane %v4262_v21, 6  ;;  %v2129_v25 = vld [vmem:[#allocation2 + $0x324] sm:$0xf] }
 0x19a   : > { %v1246_v61 = vsel %vm11938_vm3, %v9278_v1, %v16016_v63  ;;  %v1318_v45 = vld [vmem:[#allocation2 + $0x1b8] sm:$0x8]  ;;  %v16020_v1 = vrot.slane %v12879_v31, 5  ;;  %v9714_v5 = vcombine.low %v4626_v54, %v4629_v48  ;;  %v4386_v22 = vsel %vm12082_vm7, %v9586_v33, %v4385_v0  ;;  %v1319_v63 = vld [vmem:[#allocation2 + $0x1c0] sm:$0x7]  ;;  %v13231_v54 = vpop.permute.xlu1 %5706  ;;  %v11123_v31 = vld [vmem:[#allocation2 + $0x2f0] sm:$0xff]  }
 0x19b   : > { %v13213_v59 = vrot.slane %v16018_v17, 4  ;;  %v9374_v55 = vcombine.low %v1246_v61, %v1249_v37  ;;  %v4387_v40 = vrot.slane %v4385_v0, 4  ;;  %v4916_v27 = vld [vmem:[#allocation2 + $0x1a4] sm:$0xc]  ;;  %v16022_v60 = vrot.slane %v12945_v11, 5  ;;  %v16024_v35 = vld [vmem:[#allocation36_spill] sm:$0xff] }
 0x19c   : > { %v13220_v15 = vrot.slane %v16020_v1, 4  ;;  %6064 = vrot.lane.b32.xlu1 %v11108_v44, %s11456_s19  ;;  %v9474_v61 = vcombine.low %v1952_v43, %v2129_v25  ;;  %v9295_v37 = vrot.slane %v1318_v45, 11  ;;  %v4917_v21 = vld [vmem:[#allocation2 + $0x1a8] sm:$0xf]  ;;  %v4918_v1 = vld [vmem:[#allocation2 + $0x1ac] sm:$0x3]  ;;  %v6224_v48 = vsel %vm728_vm4, %v9714_v5, %v12947_v51  ;;  %v13241_v43 = vpop.permute.xlu0 %2764 }
 0x19d   : > { %16019 = vst [vmem:[#allocation13_spill] sm:$0xff] %v13213_v59  ;;  %v13226_v17 = vrot.slane %v16022_v60, 4  ;;  %v2880_v58 = vsel %vm728_vm4, %v9374_v55, %v16024_v35  ;;  %v16025_v33 = vrot.slane %v13019_v12, 5  ;;  %v4389_v60 = vsel %vm12082_vm7, %v4387_v40, %v4388_v38  ;;  %v1742_v35 = vld [vmem:[#allocation2 + $0x290] sm:$0x8]  ;;  %6960 = vmatprep.mubr.bf16.mxu0 %v6224_v48  ;;  %v16027_v45 = vld [vmem:[#allocation21_spill] sm:$0xff] }
 0x19e   : > { %16021 = vst [vmem:[#allocation15_spill] sm:$0xff] %v13220_v15  ;;  %3710 = vmatmul.mubr.bf16.gmra.mrb[44].mxu1 %v2880_v58  ;;  %v1466_v55 = vrot.slane %v1319_v63, 7  ;;  %v1743_v44 = vld [vmem:[#allocation2 + $0x294] sm:$0xf]  ;;  %v9682_v25 = vcombine.low %v4386_v22, %v4389_v60  ;;  %2784 = vrot.lane.b32.xlu0 %v9474_v61, %s11456_s19  ;;  %v16028_v12 = vrot.slane %v16027_v45, 7  ;;  %v5034_v51 = vrot.slane %v4917_v21, 6 }
 0x19f   : > { %16023 = vst [vmem:[#allocation12_spill] sm:$0xff] %v13226_v17  ;;  %v13235_v0 = vrot.slane %v16025_v33, 4  ;;  %v1744_v5 = vld [vmem:[#allocation2 + $0x298] sm:$0x7]  ;;  %v11110_v58 = vld [vmem:[#allocation3 + $0x1c0] ss:$8 sps:$4 sm:$0xff]  }
 0x1a0   : > { %v1464_v33 = vsel %vm12347_vm11, %v9295_v37, %v16028_v12  ;;  %v16029_v17 = vld [vmem:[#allocation26_spill] sm:$0xff]  ;;  %v5037_v40 = vrot.slane %v4918_v1, 6  ;;  %v9330_v63 = vrot.slane %v1742_v35, 11  ;;  %v1900_v11 = vrot.slane %v1743_v44, 7  ;;  %v4507_v37 = vld [vmem:[#allocation2 + $0xb8] sm:$0xf] }
 0x1a1   : > { %16026 = vst [vmem:[#allocation14_spill] sm:$0xff] %v13235_v0  ;;  %v9633_v0 = vrot.slane %v4916_v27, 10  ;;  %v1467_v38 = vsel %vm12347_vm11, %v16029_v17, %v1466_v55  ;;  %v11112_v48 = vld [vmem:[#allocation3 + $0x1c4] ss:$8 sps:$4 sm:$0xff]   ;;  %v6160_v22 = vsel %vm728_vm4, %v9682_v25, %v12985_v57  ;;  %v5036_v12 = vrot.slane %v5034_v51, 4  ;;  %v16033_v15 = vld [vmem:[#allocation23_spill] sm:$0xff] }
 0x1a2   : > { %v9407_v61 = vcombine.low %v1464_v33, %v1467_v38  ;;  %v4506_v27 = vld [vmem:[#allocation2 + $0xb4] sm:$0xc]  ;;  %6961 = vmatmul.mubr.bf16.gmra.mrb[88].mxu0 %v6160_v22  ;;  %v1901_v21 = vsel %vm12347_vm11, %v9330_v63, %v1900_v11  ;;  %v1902_v45 = vrot.slane %v1900_v11, 4  ;;  %v1903_v17 = vrot.slane %v1744_v5, 7  ;;  %3784 = vmatprep.subr.bf16.mxu1 %v11112_v48  ;;  %v4508_v1 = vld [vmem:[#allocation2 + $0xbc] sm:$0x3]  ;;  %v13261_v38 = vpop.permute.xlu1 %5836 }
 0x1a3   : > { %v5035_v60 = vsel %vm12082_vm7, %v9633_v0, %v5034_v51  ;;  %v9603_v55 = vrot.slane %v4506_v27, 10  ;;  %v16030_v35 = vld [vmem:[#allocation38_spill] sm:$0xff]  ;;  %v5038_v57 = vsel %vm12082_vm7, %v5036_v12, %v5037_v40  ;;  %v4632_v25 = vrot.slane %v4507_v37, 6  ;;  %3785 = vmatpush1.bf16.msra.mxu1 %v11110_v58  ;;  %v1103_v5 = vld [vmem:[#allocation2 + $0x1b4] sm:$0xe]  ;;  %v13265_v27 = vpop.permute.xlu0 %2636 }
 0x1a4   : > { %v2948_v44 = vsel %vm728_vm4, %v9407_v61, %v16030_v35  ;;  %v4635_v0 = vrot.slane %v4508_v1, 6  ;;  %v11113_v33 = vld [vmem:[#allocation3 + $0x360] ss:$8 sps:$4 sm:$0xff]   ;;  %v11115_v51 = vld [vmem:[#allocation3 + $0x364] ss:$8 sps:$4 sm:$0xff]   ;;  %v9745_v63 = vcombine.low %v5035_v60, %v5038_v57  ;;  %v1904_v11 = vsel %vm12347_vm11, %v1902_v45, %v1903_v17  ;;  %v11116_v35 = vld [vmem:[#allocation2 + $0x2d8] sm:$0xff]  }
 0x1a5   : > { %3719 = vmatprep.mubr.bf16.mxu1 %v2948_v44  ;;  %v1105_v48 = vld [vmem:[#allocation2 + $0x1bc] sm:$0x1]  ;;  %v4263_v22 = vld [vmem:[#allocation2 + $0xa8] sm:$0xc]  ;;  %v9442_v61 = vcombine.low %v1901_v21, %v1904_v11  ;;  %v4633_v40 = vsel %vm12082_vm7, %v9603_v55, %v4632_v25  ;;  %v4634_v12 = vrot.slane %v4632_v25, 4  ;;  %7065 = vmatprep.subr.bf16.mxu0 %v11115_v51  ;;  %v9279_v37 = vrot.slane %v1103_v5, 9 }
 0x1a6   : > { %v4264_v58 = vld [vmem:[#allocation2 + $0xac] sm:$0xf]  ;;  %v4265_v1 = vld [vmem:[#allocation2 + $0xb0] sm:$0x3]  ;;  %5904 = vrot.lane.b32.xlu1 %v9745_v63, %s11456_s19  ;;  %v1255_v60 = vrot.slane %v1105_v48, 5  ;;  %v9587_v44 = vrot.slane %v4263_v22, 10  ;;  %7066 = vmatpush1.bf16.msra.mxu0 %v11113_v33 }
 0x1a7   : > { %v4392_v45 = vrot.slane %v4264_v58, 6  ;;  %v4395_v17 = vrot.slane %v4265_v1, 6  ;;  %2656 = vrot.lane.b32.xlu0 %v9442_v61, %s11456_s19  ;;  %v4636_v21 = vsel %vm12082_vm7, %v4634_v12, %v4635_v0  ;;  %v16031_v57 = vld [vmem:[#allocation20_spill] sm:$0xff]  ;;  %v1320_v51 = vld [vmem:[#allocation2 + $0x1d0] sm:$0x8] }
 0x1a8   : > { %v16032_v55 = vrot.slane %v16031_v57, 5  ;;  %v1321_v11 = vld [vmem:[#allocation2 + $0x1d8] sm:$0x7]  ;;  %v9715_v5 = vcombine.low %v4633_v40, %v4636_v21  ;;  %v1256_v63 = vsel %vm11938_vm3, %v16033_v15, %v1255_v60  ;;  %v4919_v22 = vld [vmem:[#allocation2 + $0x1bc] sm:$0xc]  ;;  %v9296_v0 = vrot.slane %v1320_v51, 11 }
 0x1a9   : > { %v4393_v33 = vsel %vm12082_vm7, %v9587_v44, %v4392_v45  ;;  %v4394_v48 = vrot.slane %v4392_v45, 4  ;;  %v4920_v61 = vld [vmem:[#allocation2 + $0x1c0] sm:$0xf]  ;;  %v1473_v12 = vrot.slane %v1321_v11, 7  ;;  %v4921_v1 = vld [vmem:[#allocation2 + $0x1c4] sm:$0x3] }
 0x1aa   : > { %v1253_v25 = vsel %vm11938_vm3, %v9279_v37, %v16032_v55  ;;  %v9634_v57 = vrot.slane %v4919_v22, 10  ;;  %v13282_v37 = vpop.permute.xlu1 %5708  ;;  %v6228_v40 = vsel %vm728_vm4, %v9715_v5, %v13009_v7  ;;  %v5041_v60 = vrot.slane %v4920_v61, 6  ;;  %v11117_v44 = vld [vmem:[#allocation3 + $0x1d0] ss:$8 sps:$4 sm:$0xff]   ;;  %v11119_v45 = vld [vmem:[#allocation3 + $0x1d4] ss:$8 sps:$4 sm:$0xff]   ;;  %v13288_v55 = vpop.permute.xlu0 %2766 }
 0x1ab   : > { %v9375_v58 = vcombine.low %v1253_v25, %v1256_v63  ;;  %v4396_v15 = vsel %vm12082_vm7, %v4394_v48, %v4395_v17  ;;  %v5044_v21 = vrot.slane %v4921_v1, 6  ;;  %6970 = vmatprep.mubr.bf16.mxu0 %v6228_v40  ;;  %6066 = vrot.lane.b32.xlu0 %v11116_v35, %s11456_s19  ;;  %v16034_v11 = vld [vmem:[#allocation27_spill] sm:$0xff]  ;;  %v4509_v5 = vld [vmem:[#allocation2 + $0xcc] sm:$0xc]  ;;  %v16036_v22 = vld [vmem:[#allocation33_spill] sm:$0xff] }
 0x1ac   : > { %v9683_v51 = vcombine.low %v4393_v33, %v4396_v15  ;;  %v16035_v63 = vrot.slane %v16034_v11, 7  ;;  %v4510_v17 = vld [vmem:[#allocation2 + $0xd0] sm:$0xf]  ;;  %v4511_v48 = vld [vmem:[#allocation2 + $0xd4] sm:$0x3]  ;;  %v1474_v61 = vsel %vm12347_vm11, %v16036_v22, %v1473_v12  ;;  %v5042_v1 = vsel %vm12082_vm7, %v9634_v57, %v5041_v60  ;;  %3786 = vmatprep.subr.bf16.mxu1 %v11119_v45 }
 0x1ad   : > { %v2884_v25 = vsel %vm728_vm4, %v9375_v58, %v12804_v41  ;;  %v5043_v41 = vrot.slane %v5041_v60, 4  ;;  %v9604_v33 = vrot.slane %v4509_v5, 10  ;;  %v11120_v35 = vld [vmem:[#allocation3 + $0x370] ss:$8 sps:$4 sm:$0xff]   ;;  %v11122_v58 = vld [vmem:[#allocation3 + $0x374] ss:$8 sps:$4 sm:$0xff]   ;;  %3787 = vmatpush1.bf16.msra.mxu1 %v11117_v44 }
 0x1ae   : > { %v1471_v7 = vsel %vm12347_vm11, %v9296_v0, %v16035_v63  ;;  %3720 = vmatmul.mubr.bf16.gmra.mrb[48].mxu1 %v2884_v25  ;;  %v6164_v40 = vsel %vm728_vm4, %v9683_v51, %v13052_v3  ;;  %v4639_v15 = vrot.slane %v4510_v17, 6  ;;  %v4642_v11 = vrot.slane %v4511_v48, 6  ;;  %v1106_v63 = vld [vmem:[#allocation2 + $0x1cc] sm:$0xe]  ;;  %v1108_v25 = vld [vmem:[#allocation2 + $0x1d4] sm:$0x1]  ;;  %7067 = vmatprep.subr.bf16.mxu0 %v11122_v58  ;;  %v13311_v17 = vpop.permute.xlu1 %5838 }
 0x1af   : > { %v9408_v0 = vcombine.low %v1471_v7, %v1474_v61  ;;  %6971 = vmatmul.mubr.bf16.gmra.mrb[92].mxu0 %v6164_v40  ;;  %v5045_v12 = vsel %vm12082_vm7, %v5043_v41, %v5044_v21  ;;  %v9280_v57 = vrot.slane %v1106_v63, 9  ;;  %v1262_v60 = vrot.slane %v1108_v25, 5  ;;  %v4266_v45 = vld [vmem:[#allocation2 + $0xc0] sm:$0xc]  ;;  %v4267_v5 = vld [vmem:[#allocation2 + $0xc4] sm:$0xf]  ;;  %6068 = vrot.lane.b32.xlu0 %v11123_v31, %s11456_s19  ;;  %v13320_v40 = vpop.permute.xlu0 %2638 }
 0x1b0   : > { %v9746_v59 = vcombine.low %v5042_v1, %v5045_v12  ;;  %v4640_v3 = vsel %vm12082_vm7, %v9604_v33, %v4639_v15  ;;  %v4641_v51 = vrot.slane %v4639_v15, 4  ;;  %v4268_v7 = vld [vmem:[#allocation2 + $0xc8] sm:$0x3]  ;;  %7068 = vmatpush1.bf16.msra.mxu0 %v11120_v35  ;;  %v16037_v21 = vld [vmem:[#allocation24_spill] sm:$0xff]  ;;  %v9588_v1 = vrot.slane %v4266_v45, 10  ;;  %v11137_v12 = vld [vmem:[#allocation2 + $0x320] sm:$0xff]  }
 0x1b1   : > { %v2952_v22 = vsel %vm728_vm4, %v9408_v0, %v12833_v23  ;;  %v11130_v44 = vld [vmem:[#allocation2 + $0x308] sm:$0xff]   ;;  %v16038_v48 = vrot.slane %v16037_v21, 5  ;;  %v16039_v41 = vld [vmem:[#allocation28_spill] sm:$0xff]  ;;  %v4399_v33 = vrot.slane %v4267_v5, 6  ;;  %v4402_v0 = vrot.slane %v4268_v7, 6 }
 0x1b2   : > { %3729 = vmatprep.mubr.bf16.mxu1 %v2952_v22  ;;  %v1263_v23 = vsel %vm11938_vm3, %v16039_v41, %v1262_v60  ;;  %v1322_v58 = vld [vmem:[#allocation2 + $0x1e8] sm:$0x8]  ;;  %5906 = vrot.lane.b32.xlu1 %v9746_v59, %s11456_s19  ;;  %v4643_v31 = vsel %vm12082_vm7, %v4641_v51, %v4642_v11  ;;  %v1323_v15 = vld [vmem:[#allocation2 + $0x1f0] sm:$0x7]  ;;  %v4922_v25 = vld [vmem:[#allocation2 + $0x1d4] sm:$0xc] }
 0x1b3   : > { %v1260_v61 = vsel %vm11938_vm3, %v9280_v57, %v16038_v48  ;;  %v9297_v63 = vrot.slane %v1322_v58, 11  ;;  %v9716_v57 = vcombine.low %v4640_v3, %v4643_v31  ;;  %v4400_v60 = vsel %vm12082_vm7, %v9588_v1, %v4399_v33  ;;  %v4923_v22 = vld [vmem:[#allocation2 + $0x1d8] sm:$0xf]  ;;  %v4924_v21 = vld [vmem:[#allocation2 + $0x1dc] sm:$0x3]  ;;  %v16040_v48 = vld [vmem:[#allocation30_spill] sm:$0xff]  ;;  %6070 = vrot.lane.b32.xlu0 %v11130_v44, %s11456_s19 }
 0x1b4   : > { %v9376_v35 = vcombine.low %v1260_v61, %v1263_v23  ;;  %v4401_v45 = vrot.slane %v4399_v33, 4  ;;  %v1480_v5 = vrot.slane %v1323_v15, 7  ;;  %v16041_v41 = vrot.slane %v16040_v48, 7  ;;  %v11124_v61 = vld [vmem:[#allocation3 + $0x1e0] ss:$8 sps:$4 sm:$0xff]   ;;  %v16042_v33 = vld [vmem:[#allocation35_spill] sm:$0xff] }
 0x1b5   : > { %v9635_v51 = vrot.slane %v4922_v25, 10  ;;  %v5048_v7 = vrot.slane %v4923_v22, 6  ;;  %v11126_v23 = vld [vmem:[#allocation3 + $0x1e4] ss:$8 sps:$4 sm:$0xff]   ;;  %v6232_v3 = vsel %vm728_vm4, %v9716_v57, %v13079_v49  ;;  %v5051_v58 = vrot.slane %v4924_v21, 6  ;;  %v11144_v22 = vld [vmem:[#allocation2 + $0x338] sm:$0xff]   ;;  %v13345_v21 = vpop.permute.xlu0 %2768 }
 0x1b6   : > { %v2888_v59 = vsel %vm728_vm4, %v9376_v35, %v12852_v8  ;;  %v1478_v11 = vsel %vm12347_vm11, %v9297_v63, %v16041_v41  ;;  %v4403_v1 = vsel %vm12082_vm7, %v4401_v45, %v4402_v0  ;;  %v1481_v8 = vsel %vm12347_vm11, %v16042_v33, %v1480_v5  ;;  %v4512_v31 = vld [vmem:[#allocation2 + $0xe4] sm:$0xc]  ;;  %v4513_v35 = vld [vmem:[#allocation2 + $0xe8] sm:$0xf]  ;;  %6980 = vmatprep.mubr.bf16.mxu0 %v6232_v3  ;;  %v4514_v49 = vld [vmem:[#allocation2 + $0xec] sm:$0x3] }
 0x1b7   : > { %3730 = vmatmul.mubr.bf16.gmra.mrb[52].mxu1 %v2888_v59  ;;  %v9684_v15 = vcombine.low %v4400_v60, %v4403_v1  ;;  %v9409_v63 = vcombine.low %v1478_v11, %v1481_v8  ;;  %v5049_v44 = vsel %vm12082_vm7, %v9635_v51, %v5048_v7  ;;  %v5050_v25 = vrot.slane %v5048_v7, 4  ;;  %3788 = vmatprep.subr.bf16.mxu1 %v11126_v23  ;;  %v11127_v57 = vld [vmem:[#allocation3 + $0x380] ss:$8 sps:$4 sm:$0xff]   ;;  %v13343_v59 = vpop.permute.xlu1 %5710  ;;  %v11129_v5 = vld [vmem:[#allocation3 + $0x384] ss:$8 sps:$4 sm:$0xff]  }
 0x1b8   : > { %v9605_v0 = vrot.slane %v4512_v31, 10  ;;  %v4646_v45 = vrot.slane %v4513_v35, 6  ;;  %v4649_v48 = vrot.slane %v4514_v49, 6  ;;  %3789 = vmatpush1.bf16.msra.mxu1 %v11124_v61  ;;  %v1109_v51 = vld [vmem:[#allocation2 + $0x1e4] sm:$0xe]  ;;  %6072 = vrot.lane.b32.xlu0 %v11137_v12, %s11456_s19 }
 0x1b9   : > { %v6168_v60 = vsel %vm728_vm4, %v9684_v15, %v13124_v29  ;;  %v2956_v41 = vsel %vm728_vm4, %v9409_v63, %v12881_v20  ;;  %v5052_v11 = vsel %vm12082_vm7, %v5050_v25, %v5051_v58  ;;  %v1111_v7 = vld [vmem:[#allocation2 + $0x1ec] sm:$0x1]  ;;  %v4269_v23 = vld [vmem:[#allocation2 + $0xd8] sm:$0xc]  ;;  %v9281_v33 = vrot.slane %v1109_v51, 9  ;;  %7069 = vmatprep.subr.bf16.mxu0 %v11129_v5  ;;  %v16043_v15 = vld [vmem:[#allocation29_spill] sm:$0xff] }
 0x1ba   : > { %6981 = vmatmul.mubr.bf16.gmra.mrb[96].mxu0 %v6168_v60  ;;  %3739 = vmatprep.mubr.bf16.mxu1 %v2956_v41  ;;  %v9747_v3 = vcombine.low %v5049_v44, %v5052_v11  ;;  %v4647_v61 = vsel %vm12082_vm7, %v9605_v0, %v4646_v45  ;;  %v4648_v1 = vrot.slane %v4646_v45, 4  ;;  %v4270_v29 = vld [vmem:[#allocation2 + $0xdc] sm:$0xf]  ;;  %v4271_v8 = vld [vmem:[#allocation2 + $0xe0] sm:$0x3]  ;;  %v1269_v20 = vrot.slane %v1111_v7, 5 }
 0x1bb   : > { %v9589_v31 = vrot.slane %v4269_v23, 10  ;;  %v4406_v35 = vrot.slane %v4270_v29, 6  ;;  %v4409_v58 = vrot.slane %v4271_v8, 6  ;;  %v16044_v63 = vrot.slane %v16043_v15, 5  ;;  %7070 = vmatpush1.bf16.msra.mxu0 %v11127_v57  ;;  %v1324_v25 = vld [vmem:[#allocation2 + $0x200] sm:$0x8] }
 0x1bc   : > { %5908 = vrot.lane.b32.xlu1 %v9747_v3, %s11456_s19  ;;  %v4650_v12 = vsel %vm12082_vm7, %v4648_v1, %v4649_v48  ;;  %v1325_v49 = vld [vmem:[#allocation2 + $0x208] sm:$0x7]  ;;  %v4925_v11 = vld [vmem:[#allocation2 + $0x1ec] sm:$0xc]  ;;  %v4926_v51 = vld [vmem:[#allocation2 + $0x1f0] sm:$0xf]  ;;  %6074 = vrot.lane.b32.xlu0 %v11144_v22, %s11456_s19  ;;  %v13369_v48 = vpop.permute.xlu1 %5840 }
 0x1bd   : > { %v1267_v44 = vsel %vm11938_vm3, %v9281_v33, %v16044_v63  ;;  %v9717_v0 = vcombine.low %v4647_v61, %v4650_v12  ;;  %v16045_v45 = vld [vmem:[#allocation34_spill] sm:$0xff]  ;;  %v4407_v60 = vsel %vm12082_vm7, %v9589_v31, %v4406_v35  ;;  %v4408_v41 = vrot.slane %v4406_v35, 4  ;;  %v4927_v3 = vld [vmem:[#allocation2 + $0x1f4] sm:$0x3]  ;;  %v13371_v33 = vpop.permute.xlu0 %2640  ;;  %v11131_v35 = vld [vmem:[#allocation3 + $0x1f0] ss:$8 sps:$4 sm:$0xff]  }
 0x1be   : > { %v1270_v5 = vsel %vm11938_vm3, %v16045_v45, %v1269_v20  ;;  %v9298_v23 = vrot.slane %v1324_v25, 11  ;;  %v1487_v57 = vrot.slane %v1325_v49, 7  ;;  %v9636_v1 = vrot.slane %v4925_v11, 10  ;;  %v11151_v61 = vld [vmem:[#allocation2 + $0x350] sm:$0xff]   ;;  %v4515_v25 = vld [vmem:[#allocation2 + $0xfc] sm:$0xc] }
 0x1bf   : > { %v9377_v7 = vcombine.low %v1267_v44, %v1270_v5  ;;  %v6236_v29 = vsel %vm728_vm4, %v9717_v0, %v13141_v50  ;;  %v4410_v8 = vsel %vm12082_vm7, %v4408_v41, %v4409_v58  ;;  %v5055_v20 = vrot.slane %v4926_v51, 6  ;;  %v11133_v22 = vld [vmem:[#allocation3 + $0x1f4] ss:$8 sps:$4 sm:$0xff]   ;;  %v4516_v58 = vld [vmem:[#allocation2 + $0x100] sm:$0xf] }
 0x1c0   : > { %v5058_v31 = vrot.slane %v4927_v3, 6  ;;  %6990 = vmatprep.mubr.bf16.mxu0 %v6236_v29  ;;  %v9685_v15 = vcombine.low %v4407_v60, %v4410_v8  ;;  %v16046_v63 = vrot.slane %v12821_v26, 7  ;;  %v1488_v50 = vsel %vm12347_vm11, %v12885_v16, %v1487_v57  ;;  %v4517_v49 = vld [vmem:[#allocation2 + $0x104] sm:$0x3]  ;;  %3790 = vmatprep.subr.bf16.mxu1 %v11133_v22  ;;  %v11134_v60 = vld [vmem:[#allocation3 + $0x390] ss:$8 sps:$4 sm:$0xff]  }
 0x1c1   : > { %v2892_v12 = vsel %vm728_vm4, %v9377_v7, %v12911_v46  ;;  %v5056_v45 = vsel %vm12082_vm7, %v9636_v1, %v5055_v20  ;;  %v5057_v5 = vrot.slane %v5055_v20, 4  ;;  %v9606_v46 = vrot.slane %v4515_v25, 10  ;;  %v11136_v26 = vld [vmem:[#allocation3 + $0x394] ss:$8 sps:$4 sm:$0xff]   ;;  %v1114_v16 = vld [vmem:[#allocation2 + $0x204] sm:$0x1]  ;;  %3791 = vmatpush1.bf16.msra.mxu1 %v11131_v35  ;;  %6076 = vrot.lane.b32.xlu0 %v11151_v61, %s11456_s19 }
 0x1c2   : > { %v1485_v44 = vsel %vm12347_vm11, %v9298_v23, %v16046_v63  ;;  %3740 = vmatmul.mubr.bf16.gmra.mrb[56].mxu1 %v2892_v12  ;;  %v6172_v41 = vsel %vm728_vm4, %v9685_v15, %v13171_v18  ;;  %v4653_v11 = vrot.slane %v4516_v58, 6  ;;  %v4656_v51 = vrot.slane %v4517_v49, 6  ;;  %v1112_v7 = vld [vmem:[#allocation2 + $0x1fc] sm:$0xe]  ;;  %7071 = vmatprep.subr.bf16.mxu0 %v11136_v26  ;;  %v4272_v29 = vld [vmem:[#allocation2 + $0xf0] sm:$0xc]  ;;  %v13395_v18 = vpop.permute.xlu1 %5712 }
 0x1c3   : > { %v9410_v0 = vcombine.low %v1485_v44, %v1488_v50  ;;  %6991 = vmatmul.mubr.bf16.gmra.mrb[100].mxu0 %v6172_v41  ;;  %v5059_v57 = vsel %vm12082_vm7, %v5057_v5, %v5058_v31  ;;  %v9282_v3 = vrot.slane %v1112_v7, 9  ;;  %v1276_v1 = vrot.slane %v1114_v16, 5  ;;  %v4273_v8 = vld [vmem:[#allocation2 + $0xf4] sm:$0xf]  ;;  %v4274_v22 = vld [vmem:[#allocation2 + $0xf8] sm:$0x3] }
 0x1c4   : > { %v9748_v20 = vcombine.low %v5056_v45, %v5059_v57  ;;  %v4654_v35 = vsel %vm12082_vm7, %v9606_v46, %v4653_v11  ;;  %v4655_v61 = vrot.slane %v4653_v11, 4  ;;  %v9590_v12 = vrot.slane %v4272_v29, 10  ;;  %7072 = vmatpush1.bf16.msra.mxu0 %v11134_v60  ;;  %v16047_v15 = vld [vmem:[#allocation37_spill] sm:$0xff]  ;;  %v16049_v44 = vld [vmem:[#allocation39_spill] sm:$0xff]  ;;  %v1908_v5 = vld [vmem:[#allocation2 + $0x1bc] sm:$0x1] }
 0x1c5   : > { %v2960_v23 = vsel %vm728_vm4, %v9410_v0, %v12933_v19  ;;  %v13399_v19 = vpop.permute.xlu0 %2770  ;;  %v16048_v31 = vrot.slane %v16047_v15, 5  ;;  %v1277_v50 = vsel %vm11938_vm3, %v16049_v44, %v1276_v1  ;;  %v4413_v25 = vrot.slane %v4273_v8, 6  ;;  %v1906_v49 = vld [vmem:[#allocation2 + $0x1b4] sm:$0xe]  ;;  %v4928_v60 = vld [vmem:[#allocation2 + $0x204] sm:$0xc] }
 0x1c6   : > { %3749 = vmatprep.mubr.bf16.mxu1 %v2960_v23  ;;  %v4416_v58 = vrot.slane %v4274_v22, 6  ;;  %5910 = vrot.lane.b32.xlu1 %v9748_v20, %s11456_s19  ;;  %v4657_v0 = vsel %vm12082_vm7, %v4655_v61, %v4656_v51  ;;  %v9331_v46 = vrot.slane %v1906_v49, 9  ;;  %v2007_v7 = vrot.slane %v1908_v5, 5  ;;  %v4929_v16 = vld [vmem:[#allocation2 + $0x208] sm:$0xf] }
 0x1c7   : > { %v1274_v63 = vsel %vm11938_vm3, %v9282_v3, %v16048_v31  ;;  %v9718_v26 = vcombine.low %v4654_v35, %v4657_v0  ;;  %v4414_v41 = vsel %vm12082_vm7, %v9590_v12, %v4413_v25  ;;  %v4415_v11 = vrot.slane %v4413_v25, 4  ;;  %v4930_v23 = vld [vmem:[#allocation2 + $0x20c] sm:$0x3]  ;;  %v16050_v3 = vld [vmem:[#allocation40_spill] sm:$0xff]  ;;  %v4518_v15 = vld [vmem:[#allocation2 + $0x114] sm:$0xc] }
 0x1c8   : > { %v9378_v45 = vcombine.low %v1274_v63, %v1277_v50  ;;  %v16051_v1 = vrot.slane %v16050_v3, 5  ;;  %v9637_v29 = vrot.slane %v4928_v60, 10  ;;  %v5062_v8 = vrot.slane %v4929_v16, 6  ;;  %v11140_v20 = vld [vmem:[#allocation3 + $0x204] ss:$8 sps:$4 sm:$0xff]   ;;  %v13426_v63 = vpop.permute.xlu1 %5842 }
 0x1c9   : > { %v6240_v35 = vsel %vm728_vm4, %v9718_v26, %v13195_v39  ;;  %v4417_v61 = vsel %vm12082_vm7, %v4415_v11, %v4416_v58  ;;  %v16052_v22 = vld [vmem:[#allocation42_spill] sm:$0xff]  ;;  %v4519_v31 = vld [vmem:[#allocation2 + $0x118] sm:$0xf]  ;;  %3953 = vmatprep.subr.bf16.mxu1 %v11140_v20  ;;  %v4520_v49 = vld [vmem:[#allocation2 + $0x11c] sm:$0x3]  ;;  %v13430_v58 = vpop.permute.xlu0 %2642 }
 0x1ca   : > { %v2896_v57 = vsel %vm728_vm4, %v9378_v45, %v12958_v53  ;;  %v2005_v51 = vsel %vm11938_vm3, %v9331_v46, %v16051_v1  ;;  %v2008_v12 = vsel %vm11938_vm3, %v16052_v22, %v2007_v7  ;;  %v5065_v53 = vrot.slane %v4930_v23, 6  ;;  %7000 = vmatprep.mubr.bf16.mxu0 %v6240_v35  ;;  %v11141_v0 = vld [vmem:[#allocation3 + $0x3a0] ss:$8 sps:$4 sm:$0xff]   ;;  %v11143_v60 = vld [vmem:[#allocation3 + $0x3a4] ss:$8 sps:$4 sm:$0xff]  }
 0x1cb   : > { %3750 = vmatmul.mubr.bf16.gmra.mrb[60].mxu1 %v2896_v57  ;;  %v9686_v44 = vcombine.low %v4414_v41, %v4417_v61  ;;  %v9443_v50 = vcombine.low %v2005_v51, %v2008_v12  ;;  %v5063_v25 = vsel %vm12082_vm7, %v9637_v29, %v5062_v8  ;;  %v5064_v39 = vrot.slane %v5062_v8, 4  ;;  %v11138_v7 = vld [vmem:[#allocation3 + $0x200] ss:$8 sps:$4 sm:$0xff]   ;;  %v4276_v23 = vld [vmem:[#allocation2 + $0x10c] sm:$0xf]  ;;  %7073 = vmatprep.subr.bf16.mxu0 %v11143_v60 }
 0x1cc   : > { %v9607_v45 = vrot.slane %v4518_v15, 10  ;;  %v4660_v5 = vrot.slane %v4519_v31, 6  ;;  %v4663_v46 = vrot.slane %v4520_v49, 6  ;;  %v4275_v16 = vld [vmem:[#allocation2 + $0x108] sm:$0xc]  ;;  %v4420_v8 = vrot.slane %v4276_v23, 6  ;;  %7074 = vmatpush1.bf16.msra.mxu0 %v11141_v0 }
 0x1cd   : > { %v6176_v26 = vsel %vm728_vm4, %v9686_v44, %v13231_v54  ;;  %v3012_v41 = vsel %vm728_vm4, %v9443_v50, %v12980_v30  ;;  %v5066_v11 = vsel %vm12082_vm7, %v5064_v39, %v5065_v53  ;;  %v4277_v57 = vld [vmem:[#allocation2 + $0x110] sm:$0x3]  ;;  %v9591_v29 = vrot.slane %v4275_v16, 10  ;;  %v13441_v54 = vld [vmem:[%s11925_s14] sm:$0xff]   ;;  %v1909_v35 = vld [vmem:[#allocation2 + $0x1cc] sm:$0xe]  ;;  %v13457_v50 = vpop.permute.xlu1 %5714 }
 0x1ce   : > { %7001 = vmatmul.mubr.bf16.gmra.mrb[104].mxu0 %v6176_v26  ;;  %3792 = vmatprep.mubr.bf16.mxu1 %v3012_v41  ;;  %v9749_v3 = vcombine.low %v5063_v25, %v5066_v11  ;;  %v4661_v1 = vsel %vm12082_vm7, %v9607_v45, %v4660_v5  ;;  %v4662_v51 = vrot.slane %v4660_v5, 4  ;;  %v2963_v30 = vsel %vm728_vm4, %v13441_v54, %v13000_v62  ;;  %v1911_v61 = vld [vmem:[#allocation2 + $0x1d4] sm:$0x1]  ;;  %v4931_v15 = vld [vmem:[#allocation2 + $0x21c] sm:$0xc]  ;;  %v13450_v44 = vld [vmem:[%s11925_s14 + $0x8] sm:$0xff]  }
 0x1cf   : > { %v4423_v20 = vrot.slane %v4277_v57, 6  ;;  %v9332_v12 = vrot.slane %v1909_v35, 9  ;;  %v2014_v53 = vrot.slane %v1911_v61, 5  ;;  %v4932_v31 = vld [vmem:[#allocation2 + $0x220] sm:$0xf]  ;;  %v13455_v62 = vsel %vm728_vm4, %v13450_v44, %v13050_v4 }
 0x1d0   : > { %5912 = vrot.lane.b32.xlu1 %v9749_v3, %s11456_s19  ;;  %v4664_v22 = vsel %vm12082_vm7, %v4662_v51, %v4663_v46  ;;  %v4421_v39 = vsel %vm12082_vm7, %v9591_v29, %v4420_v8  ;;  %v4422_v49 = vrot.slane %v4420_v8, 4  ;;  %v4933_v45 = vld [vmem:[#allocation2 + $0x224] sm:$0x3]  ;;  %v9638_v0 = vrot.slane %v4931_v15, 10  ;;  %v11145_v5 = vld [vmem:[#allocation3 + $0x3b0] ss:$8 sps:$4 sm:$0xff]   ;;  %v13461_v46 = vpop.permute.xlu0 %2772 }
 0x1d1   : > { %v9719_v25 = vcombine.low %v4661_v1, %v4664_v22  ;;  %v16053_v60 = vrot.slane %v12897_v34, 5  ;;  %v2015_v4 = vsel %vm11938_vm3, %v12951_v2, %v2014_v53  ;;  %v5069_v41 = vrot.slane %v4932_v31, 6  ;;  %v11147_v16 = vld [vmem:[#allocation3 + $0x3b4] ss:$8 sps:$4 sm:$0xff]   ;;  %v4521_v23 = vld [vmem:[#allocation2 + $0x12c] sm:$0xc] }
 0x1d2   : > { %v5072_v11 = vrot.slane %v4933_v45, 6  ;;  %v4424_v3 = vsel %vm12082_vm7, %v4422_v49, %v4423_v20  ;;  %v4522_v34 = vld [vmem:[#allocation2 + $0x130] sm:$0xf]  ;;  %v4523_v51 = vld [vmem:[#allocation2 + $0x134] sm:$0x3]  ;;  %v9608_v29 = vrot.slane %v4521_v23, 10  ;;  %7075 = vmatprep.subr.bf16.mxu0 %v11147_v16 }
 0x1d3   : > { %3793 = vmatmul.mubr.bf16.vlgmr.msra.gmra.mrb[0].mxu1 %v2963_v30  ;;  %v2012_v26 = vsel %vm11938_vm3, %v9332_v12, %v16053_v60  ;;  %v6244_v57 = vsel %vm728_vm4, %v9719_v25, %v13261_v38  ;;  %v11158_v30 = vld [vmem:[#allocation2 + $0x368] sm:$0xff]   ;;  %v9687_v8 = vcombine.low %v4421_v39, %v4424_v3  ;;  %v5070_v2 = vsel %vm12082_vm7, %v9638_v0, %v5069_v41  ;;  %v4278_v22 = vld [vmem:[#allocation2 + $0x120] sm:$0xc]  ;;  %v4279_v12 = vld [vmem:[#allocation2 + $0x124] sm:$0xf] }
 0x1d4   : > { %3954 = vmatpush1.bf16.msra.mxu1 %v11138_v7  ;;  %v9444_v1 = vcombine.low %v2012_v26, %v2015_v4  ;;  %7010 = vmatprep.mubr.bf16.mxu0 %v6244_v57  ;;  %v5071_v35 = vrot.slane %v5069_v41, 4  ;;  %v4667_v61 = vrot.slane %v4522_v34, 6  ;;  %v16054_v38 = vld [vmem:[#allocation10_spill] sm:$0xff]  ;;  %v4670_v20 = vrot.slane %v4523_v51, 6  ;;  %v1912_v23 = vld [vmem:[#allocation2 + $0x1e4] sm:$0xe] }
 0x1d5   : > { %7076 = vmatpush1.bf16.msra.mxu0 %v11145_v5  ;;  %v4280_v53 = vld [vmem:[#allocation2 + $0x128] sm:$0x3]  ;;  %v9592_v15 = vrot.slane %v4278_v22, 10  ;;  %v4427_v31 = vrot.slane %v4279_v12, 6  ;;  %6078 = vrot.lane.b32.xlu0 %v11158_v30, %s11456_s19  ;;  %v6180_v25 = vsel %vm728_vm4, %v9687_v8, %v13282_v37  ;;  %v11150_v60 = vld [vmem:[#allocation3 + $0x3c4] ss:$8 sps:$4 sm:$0xff]   ;;  %v13485_v5 = vpop.permute.xlu1 %5844  ;;  %v13489_v37 = vpop.permute.xlu0 %2644 }
 0x1d6   : > { %v3016_v7 = vsel %vm728_vm4, %v9444_v1, %v16054_v38  ;;  %v5073_v39 = vsel %vm12082_vm7, %v5071_v35, %v5072_v11  ;;  %v4668_v49 = vsel %vm12082_vm7, %v9608_v29, %v4667_v61  ;;  %v4669_v45 = vrot.slane %v4667_v61, 4  ;;  %v11148_v0 = vld [vmem:[#allocation3 + $0x3c0] ss:$8 sps:$4 sm:$0xff]   ;;  %7011 = vmatmul.mubr.bf16.gmra.mrb[108].mxu0 %v6180_v25  ;;  %7077 = vmatprep.subr.bf16.mxu0 %v11150_v60  ;;  %v1914_v57 = vld [vmem:[#allocation2 + $0x1ec] sm:$0x1] }
 0x1d7   : > { %3802 = vmatprep.mubr.bf16.mxu1 %v3016_v7  ;;  %v9750_v26 = vcombine.low %v5070_v2, %v5073_v39  ;;  %v4428_v4 = vsel %vm12082_vm7, %v9592_v15, %v4427_v31  ;;  %v4429_v41 = vrot.slane %v4427_v31, 4  ;;  %v4430_v16 = vrot.slane %v4280_v53, 6  ;;  %v4934_v3 = vld [vmem:[#allocation2 + $0x234] sm:$0xc]  ;;  %v4935_v30 = vld [vmem:[#allocation2 + $0x238] sm:$0xf] }
 0x1d8   : > { %v4671_v11 = vsel %vm12082_vm7, %v4669_v45, %v4670_v20  ;;  %v9333_v51 = vrot.slane %v1912_v23, 9  ;;  %v2021_v29 = vrot.slane %v1914_v57, 5  ;;  %v4936_v8 = vld [vmem:[#allocation2 + $0x23c] sm:$0x3]  ;;  %v9639_v35 = vrot.slane %v4934_v3, 10  ;;  %v16055_v7 = vld [vmem:[#allocation43_spill] sm:$0xff] }
 0x1d9   : > { %5914 = vrot.lane.b32.xlu1 %v9750_v26, %s11456_s19  ;;  %v9720_v1 = vcombine.low %v4668_v49, %v4671_v11  ;;  %v4431_v34 = vsel %vm12082_vm7, %v4429_v41, %v4430_v16  ;;  %7078 = vmatpush1.bf16.msra.mxu0 %v11148_v0  ;;  %v5076_v61 = vrot.slane %v4935_v30, 6  ;;  %v5079_v22 = vrot.slane %v4936_v8, 6  ;;  %v11152_v12 = vld [vmem:[#allocation3 + $0x3d0] ss:$8 sps:$4 sm:$0xff]   ;;  %v16057_v15 = vld [vmem:[#allocation45_spill] sm:$0xff]  ;;  %v13512_v3 = vpop.permute.xlu0 %2774 }
 0x1da   : > { %v9688_v2 = vcombine.low %v4428_v4, %v4431_v34  ;;  %v16056_v20 = vrot.slane %v16055_v7, 5  ;;  %v2022_v31 = vsel %vm11938_vm3, %v16057_v15, %v2021_v29  ;;  %v11154_v25 = vld [vmem:[#allocation3 + $0x3d4] ss:$8 sps:$4 sm:$0xff]   ;;  %v4524_v39 = vld [vmem:[#allocation2 + $0x144] sm:$0xc]  ;;  %v13510_v4 = vpop.permute.xlu1 %5716 }
 0x1db   : > { %3803 = vmatmul.mubr.bf16.gmra.mrb[4].mxu1 %v13455_v62  ;;  %v6248_v38 = vsel %vm728_vm4, %v9720_v1, %v13311_v17  ;;  %v4525_v62 = vld [vmem:[#allocation2 + $0x148] sm:$0xf]  ;;  %v5077_v17 = vsel %vm12082_vm7, %v9639_v35, %v5076_v61  ;;  %v5078_v0 = vrot.slane %v5076_v61, 4  ;;  %v4526_v60 = vld [vmem:[#allocation2 + $0x14c] sm:$0x3]  ;;  %7079 = vmatprep.subr.bf16.mxu0 %v11154_v25  ;;  %v9609_v41 = vrot.slane %v4524_v39, 10 }
 0x1dc   : > { %v2019_v53 = vsel %vm11938_vm3, %v9333_v51, %v16056_v20  ;;  %7020 = vmatprep.mubr.bf16.mxu0 %v6248_v38  ;;  %v6184_v49 = vsel %vm728_vm4, %v9688_v2, %v13343_v59  ;;  %v4281_v26 = vld [vmem:[#allocation2 + $0x138] sm:$0xc]  ;;  %v4674_v16 = vrot.slane %v4525_v62, 6  ;;  %v4677_v11 = vrot.slane %v4526_v60, 6  ;;  %v4282_v23 = vld [vmem:[#allocation2 + $0x13c] sm:$0xf] }
 0x1dd   : > { %v9445_v45 = vcombine.low %v2019_v53, %v2022_v31  ;;  %v9593_v57 = vrot.slane %v4281_v26, 10  ;;  %v5080_v1 = vsel %vm12082_vm7, %v5078_v0, %v5079_v22  ;;  %7080 = vmatpush1.bf16.msra.mxu0 %v11152_v12  ;;  %v13519_v34 = vld [vmem:[%s11925_s14 + $0x10] sm:$0xff]   ;;  %v4283_v29 = vld [vmem:[#allocation2 + $0x140] sm:$0x3]  ;;  %v4434_v30 = vrot.slane %v4282_v23, 6  ;;  %v16058_v26 = vld [vmem:[#allocation46_spill] sm:$0xff] }
 0x1de   : > { %v2969_v51 = vsel %vm728_vm4, %v13519_v34, %v13090_v14  ;;  %v11155_v8 = vld [vmem:[#allocation3 + $0x3e0] ss:$8 sps:$4 sm:$0xff]   ;;  %7021 = vmatmul.mubr.bf16.gmra.mrb[112].mxu0 %v6184_v49  ;;  %v9751_v35 = vcombine.low %v5077_v17, %v5080_v1  ;;  %v4676_v61 = vrot.slane %v4674_v16, 4  ;;  %v4437_v38 = vrot.slane %v4283_v29, 6  ;;  %v11157_v22 = vld [vmem:[#allocation3 + $0x3e4] ss:$8 sps:$4 sm:$0xff]   ;;  %v13534_v0 = vpop.permute.xlu1 %6054  ;;  %v13540_v1 = vpop.permute.xlu0 %2646 }
 0x1df   : > { %v3020_v59 = vsel %vm728_vm4, %v9445_v45, %v13070_v36  ;;  %v11165_v2 = vld [vmem:[#allocation2 + $0x380] sm:$0xff]   ;;  %v4675_v36 = vsel %vm12082_vm7, %v9609_v41, %v4674_v16  ;;  %v4435_v12 = vsel %vm12082_vm7, %v9593_v57, %v4434_v30  ;;  %v4436_v7 = vrot.slane %v4434_v30, 4  ;;  %v1915_v20 = vld [vmem:[#allocation2 + $0x1fc] sm:$0xe]  ;;  %7081 = vmatprep.subr.bf16.mxu0 %v11157_v22  ;;  %v4937_v31 = vld [vmem:[#allocation2 + $0x24c] sm:$0xc] }
 0x1e0   : > { %3812 = vmatprep.mubr.bf16.mxu1 %v3020_v59  ;;  %6080 = vrot.lane.b32.xlu0 %v11165_v2, %s11456_s19  ;;  %v4678_v14 = vsel %vm12082_vm7, %v4676_v61, %v4677_v11  ;;  %v1917_v53 = vld [vmem:[#allocation2 + $0x204] sm:$0x1]  ;;  %v9334_v15 = vrot.slane %v1915_v20, 9  ;;  %v4938_v49 = vld [vmem:[#allocation2 + $0x250] sm:$0xf]  ;;  %v9640_v17 = vrot.slane %v4937_v31, 10 }
 0x1e1   : > { %5916 = vrot.lane.b32.xlu1 %v9751_v35, %s11456_s19  ;;  %v9721_v25 = vcombine.low %v4675_v36, %v4678_v14  ;;  %v4438_v39 = vsel %vm12082_vm7, %v4436_v7, %v4437_v38  ;;  %7082 = vmatpush1.bf16.msra.mxu0 %v11155_v8  ;;  %v2028_v62 = vrot.slane %v1917_v53, 5  ;;  %v4939_v45 = vld [vmem:[#allocation2 + $0x254] sm:$0x3]  ;;  %v16059_v41 = vrot.slane %v16058_v26, 5  ;;  %v11159_v57 = vld [vmem:[#allocation3 + $0x3f0] ss:$8 sps:$4 sm:$0xff]  }
 0x1e2   : > { %v9689_v60 = vcombine.low %v4435_v12, %v4438_v39  ;;  %v5083_v11 = vrot.slane %v4938_v49, 6  ;;  %v5086_v23 = vrot.slane %v4939_v45, 6  ;;  %v11161_v59 = vld [vmem:[#allocation3 + $0x3f4] ss:$8 sps:$4 sm:$0xff]   ;;  %v4528_v2 = vld [vmem:[#allocation2 + $0x160] sm:$0xf]  ;;  %v598_v38 = vlaneseq }
 0x1e3   : > { %3813 = vmatmul.mubr.bf16.gmra.mrb[8].mxu1 %v2969_v51  ;;  %v2026_v16 = vsel %vm11938_vm3, %v9334_v15, %v16059_v41  ;;  %v6252_v51 = vsel %vm728_vm4, %v9721_v25, %v13369_v48  ;;  %v16060_v29 = vld [vmem:[#allocation48_spill] sm:$0xff]  ;;  %v4529_v35 = vld [vmem:[#allocation2 + $0x164] sm:$0x3]  ;;  %7083 = vmatprep.subr.bf16.mxu0 %v11161_v59  ;;  %v4284_v20 = vld [vmem:[#allocation2 + $0x150] sm:$0xc]  ;;  %v4681_v15 = vrot.slane %v4528_v2, 6 }
 0x1e4   : > { %v2029_v30 = vsel %vm11938_vm3, %v16060_v29, %v2028_v62  ;;  %v4527_v8 = vld [vmem:[#allocation2 + $0x15c] sm:$0xc]  ;;  %7030 = vmatprep.mubr.bf16.mxu0 %v6252_v51  ;;  %v6188_v22 = vsel %vm728_vm4, %v9689_v60, %v13395_v18  ;;  %v5084_v48 = vsel %vm12082_vm7, %v9640_v17, %v5083_v11  ;;  %v5085_v7 = vrot.slane %v5083_v11, 4  ;;  %v4285_v14 = vld [vmem:[#allocation2 + $0x154] sm:$0xf]  ;;  %v13569_v51 = vpop.permute.xlu0 %2776 }
 0x1e5   : > { %v13548_v36 = vld [vmem:[%s11925_s14 + $0x18] sm:$0xff]   ;;  %v9446_v12 = vcombine.low %v2026_v16, %v2029_v30  ;;  %7084 = vmatpush1.bf16.msra.mxu0 %v11159_v57  ;;  %v9610_v53 = vrot.slane %v4527_v8, 10  ;;  %v4684_v31 = vrot.slane %v4529_v35, 6  ;;  %v9594_v39 = vrot.slane %v4284_v20, 10  ;;  %v11162_v45 = vld [vmem:[#allocation3 + $0x400] ss:$8 sps:$4 sm:$0xff]   ;;  %v13563_v16 = vpop.permute.xlu1 %5894 }
 0x1e6   : > { %v2972_v61 = vsel %vm728_vm4, %v13548_v36, %v13148_v6  ;;  %v4286_v25 = vld [vmem:[#allocation2 + $0x158] sm:$0x3]  ;;  %7031 = vmatmul.mubr.bf16.gmra.mrb[116].mxu0 %v6188_v22  ;;  %v5087_v18 = vsel %vm12082_vm7, %v5085_v7, %v5086_v23  ;;  %v4441_v62 = vrot.slane %v4285_v14, 6  ;;  %v11164_v17 = vld [vmem:[#allocation3 + $0x404] ss:$8 sps:$4 sm:$0xff]   ;;  %v4683_v41 = vrot.slane %v4681_v15, 4 }
 0x1e7   : > { %v3024_v6 = vsel %vm728_vm4, %v9446_v12, %v13129_v10  ;;  %v4444_v49 = vrot.slane %v4286_v25, 6  ;;  %v9752_v60 = vcombine.low %v5084_v48, %v5087_v18  ;;  %v4682_v26 = vsel %vm12082_vm7, %v9610_v53, %v4681_v15  ;;  %7085 = vmatprep.subr.bf16.mxu0 %v11164_v17  ;;  %v1918_v10 = vld [vmem:[#allocation2 + $0x214] sm:$0xe]  ;;  %v1920_v59 = vld [vmem:[#allocation2 + $0x21c] sm:$0x1] }
 0x1e8   : > { %3822 = vmatprep.mubr.bf16.mxu1 %v3024_v6  ;;  %v4442_v11 = vsel %vm12082_vm7, %v9594_v39, %v4441_v62  ;;  %v4443_v57 = vrot.slane %v4441_v62, 4  ;;  %v13567_v23 = vshrl.u32 %v598_v38, 7  ;;  %v4685_v29 = vsel %vm12082_vm7, %v4683_v41, %v4684_v31  ;;  %v4940_v2 = vld [vmem:[#allocation2 + $0x264] sm:$0xc]  ;;  %v4941_v35 = vld [vmem:[#allocation2 + $0x268] sm:$0xf] }
 0x1e9   : > { %5918 = vrot.lane.b32.xlu1 %v9752_v60, %s11456_s19  ;;  %v9335_v30 = vrot.slane %v1918_v10, 9  ;;  %v2035_v8 = vrot.slane %v1920_v59, 5  ;;  %v9722_v22 = vcombine.low %v4682_v26, %v4685_v29  ;;  %7086 = vmatpush1.bf16.msra.mxu0 %v11162_v45  ;;  %v4942_v48 = vld [vmem:[#allocation2 + $0x26c] sm:$0x3]  ;;  %v9641_v38 = vrot.slane %v4940_v2, 10  ;;  %v16061_v53 = vld [vmem:[#allocation47_spill] sm:$0xff] }
 0x1ea   : > { %v4445_v12 = vsel %vm12082_vm7, %v4443_v57, %v4444_v49  ;;  %v5090_v7 = vrot.slane %v4941_v35, 6  ;;  %v11166_v20 = vld [vmem:[#allocation3 + $0x410] ss:$8 sps:$4 sm:$0xff]   ;;  %v16062_v15 = vrot.slane %v16061_v53, 5  ;;  %v5093_v39 = vrot.slane %v4942_v48, 6  ;;  %v811_v62 = vpop.f32.mrb[0].mxu0 }
 0x1eb   : > { %3823 = vmatmul.mubr.bf16.gmra.mrb[12].mxu1 %v2972_v61  ;;  %v9690_v14 = vcombine.low %v4442_v11, %v4445_v12  ;;  %v16063_v61 = vld [vmem:[#allocation49_spill] sm:$0xff]  ;;  %v11168_v6 = vld [vmem:[#allocation3 + $0x414] ss:$8 sps:$4 sm:$0xff]   ;;  %v11169_v18 = vld [vmem:[#allocation3 + $0x210] ss:$8 sps:$4 sm:$0xff]   ;;  %v6256_v49 = vsel %vm728_vm4, %v9722_v22, %v13426_v63  ;;  %v13590_v29 = vsub.s32 0, %v13567_v23 }
 0x1ec   : > { %v2033_v31 = vsel %vm11938_vm3, %v9335_v30, %v16062_v15  ;;  %v2036_v25 = vsel %vm11938_vm3, %v16063_v61, %v2035_v8  ;;  %v5091_v17 = vsel %vm12082_vm7, %v9641_v38, %v5090_v7  ;;  %v5092_v60 = vrot.slane %v5090_v7, 4  ;;  %v11171_v26 = vld [vmem:[#allocation3 + $0x214] ss:$8 sps:$4 sm:$0xff]   ;;  %7040 = vmatprep.mubr.bf16.mxu0 %v6256_v49  ;;  %7087 = vmatprep.subr.bf16.mxu0 %v11168_v6  ;;  %v4531_v57 = vld [vmem:[#allocation2 + $0x178] sm:$0xf]  ;;  %v13593_v30 = vld [vmem:[%s11925_s14 + $0x20] sm:$0xff]   ;;  %v13598_v8 = vpop.permute.xlu1 %6056  ;;  %v13609_v38 = vpop.permute.xlu0 %2648 }
 0x1ed   : > { %v9447_v45 = vcombine.low %v2033_v31, %v2036_v25  ;;  %v4530_v41 = vld [vmem:[#allocation2 + $0x174] sm:$0xc]  ;;  %v6192_v11 = vsel %vm728_vm4, %v9690_v14, %v13457_v50  ;;  %v4532_v10 = vld [vmem:[#allocation2 + $0x17c] sm:$0x3]  ;;  %16064 = vst [vmem:[#allocation31_spill] sm:$0xff] %v13590_v29  ;;  %v2975_v63 = vsel %vm728_vm4, %v13593_v30, %v13199_v47  ;;  %3955 = vmatprep.subr.bf16.mxu1 %v11171_v26  ;;  %v4688_v35 = vrot.slane %v4531_v57, 6 }
 0x1ee   : > { %v9611_v59 = vrot.slane %v4530_v41, 10  ;;  %7041 = vmatmul.mubr.bf16.gmra.mrb[120].mxu0 %v6192_v11  ;;  %v5094_v50 = vsel %vm12082_vm7, %v5092_v60, %v5093_v39  ;;  %v4691_v22 = vrot.slane %v4532_v10, 6  ;;  %v13607_v12 = vld [vmem:[%s15841_s3] sm:$0x3]  ;;  %v4287_v48 = vld [vmem:[#allocation2 + $0x168] sm:$0xc]  ;;  %3956 = vmatpush1.bf16.msra.mxu1 %v11169_v18 }
 0x1ef   : > { %v3028_v2 = vsel %vm728_vm4, %v9447_v45, %v13179_v28  ;;  %v9753_v47 = vcombine.low %v5091_v17, %v5094_v50  ;;  %7088 = vmatpush1.bf16.msra.mxu0 %v11166_v20  ;;  %v13613_v28 = vrot.slane %v13607_v12, %v13590_v29  ;;  %v4288_v7 = vld [vmem:[#allocation2 + $0x16c] sm:$0xf]  ;;  %v4289_v14 = vld [vmem:[#allocation2 + $0x170] sm:$0x3]  ;;  %v9595_v53 = vrot.slane %v4287_v48, 10  ;;  %v13617_v6 = vpop.f32.mrb[1].mxu0 }
 0x1f0   : > { %3832 = vmatprep.mubr.bf16.mxu1 %v3028_v2  ;;  %v4689_v15 = vsel %vm12082_vm7, %v9611_v59, %v4688_v35  ;;  %v4690_v31 = vrot.slane %v4688_v35, 4  ;;  %v4448_v61 = vrot.slane %v4288_v7, 6  ;;  %v4451_v25 = vrot.slane %v4289_v14, 6  ;;  %v11172_v39 = vld [vmem:[#allocation3 + $0x420] ss:$8 sps:$4 sm:$0xff]   ;;  %16065 = vst [vmem:[#allocation17_spill] sm:$0xff] %v13617_v6 }
 0x1f1   : > { %v13619_v49 = vld [vmem:[#allocation2 + $0x2f0] sm:$0xf]  ;;  %5920 = vrot.lane.b32.xlu1 %v9753_v47, %s11456_s19  ;;  %v812_v45 = vadd.f32 %v811_v62, %v13613_v28  ;;  %v11174_v17 = vld [vmem:[#allocation3 + $0x424] ss:$8 sps:$4 sm:$0xff]   ;;  %v815_v60 = vpop.f32.mrb[2].mxu0  ;;  %v11175_v10 = vld [vmem:[#allocation2 + $0x398] sm:$0xff]  }
 0x1f2   : > { %v15890_v20 = vrot.slane %v13619_v49, 5  ;;  %v4692_v26 = vsel %vm12082_vm7, %v4690_v31, %v4691_v22  ;;  %v4449_v18 = vsel %vm12082_vm7, %v9595_v53, %v4448_v61  ;;  %v4450_v41 = vrot.slane %v4448_v61, 4  ;;  %v13629_v57 = vpop.f32.mrb[3].mxu0  ;;  %7089 = vmatprep.subr.bf16.mxu0 %v11174_v17  ;;  %v1921_v50 = vld [vmem:[#allocation2 + $0x22c] sm:$0xe]  ;;  %6082 = vrot.lane.b32.xlu0 %v11175_v10, %s11456_s19  ;;  %v13638_v53 = vpop.permute.xlu0 %2778 }
 0x1f3   : > { %3833 = vmatmul.mubr.bf16.gmra.mrb[16].mxu1 %v2975_v63  ;;  %v816_v11 = vadd.f32 %v815_v60, %v13613_v28  ;;  %16066 = vst [vmem:[#allocation19_spill] sm:$0xff] %v13629_v57  ;;  %v9723_v59 = vcombine.low %v4689_v15, %v4692_v26  ;;  %v970_v2 = vmax.f32 %v812_v45, 0.0  ;;  %v1923_v62 = vld [vmem:[#allocation2 + $0x234] sm:$0x1]  ;;  %v13631_v63 = vpop.permute.xlu1 %5896  ;;  %7090 = vmatpush1.bf16.msra.mxu0 %v11172_v39  ;;  %v9336_v48 = vrot.slane %v1921_v50, 9  ;;  %v13636_v14 = vpop.f32.mrb[4].mxu0 }
 0x1f4   : > { %v4452_v35 = vsel %vm12082_vm7, %v4450_v41, %v4451_v25  ;;  %v2042_v47 = vrot.slane %v1923_v62, 5  ;;  %v4943_v7 = vld [vmem:[#allocation2 + $0x27c] sm:$0xc]  ;;  %16067 = vst [vmem:[#allocation16_spill] sm:$0xff] %v13636_v14  ;;  %v4944_v61 = vld [vmem:[#allocation2 + $0x280] sm:$0xf] }
 0x1f5   : > { %v972_v22 = vmax.f32 %v816_v11, 0.0  ;;  %v6260_v15 = vsel %vm728_vm4, %v9723_v59, %v13485_v5  ;;  %v9691_v31 = vcombine.low %v4449_v18, %v4452_v35  ;;  %v4945_v45 = vld [vmem:[#allocation2 + $0x284] sm:$0x3]  ;;  %v11176_v17 = vld [vmem:[#allocation3 + $0x430] ss:$8 sps:$4 sm:$0xff]   ;;  %v16069_v39 = vrot.slane %v13037_v56, 5 }
 0x1f6   : > { %7050 = vmatprep.mubr.bf16.mxu0 %v6260_v15  ;;  %v2043_v26 = vsel %vm11938_vm3, %v13096_v42, %v2042_v47  ;;  %v9642_v41 = vrot.slane %v4943_v7, 10  ;;  %v11178_v11 = vld [vmem:[#allocation3 + $0x434] ss:$8 sps:$4 sm:$0xff]   ;;  %v5110_v5 = vld [vmem:[#allocation2 + $0x240] sm:$0xc]  ;;  %v13651_v18 = vpop.f32.mrb[5].mxu0 }
 0x1f7   : > { %v13642_v25 = vpack.c.bf16 %v972_v22, %v970_v2  ;;  %v2040_v60 = vsel %vm11938_vm3, %v9336_v48, %v16069_v39  ;;  %16070 = vst [vmem:[#allocation36_spill] sm:$0xff] %v13651_v18  ;;  %v13653_v10 = vld [vmem:[#allocation2 + $0x308] sm:$0xf]  ;;  %v6196_v2 = vsel %vm728_vm4, %v9691_v31, %v13510_v4  ;;  %v5111_v50 = vld [vmem:[#allocation2 + $0x244] sm:$0xf]  ;;  %v5097_v22 = vrot.slane %v4944_v61, 6  ;;  %7091 = vmatprep.subr.bf16.mxu0 %v11178_v11 }
 0x1f8   : > { %v15891_v59 = vrot.slane %v13653_v10, 5  ;;  %v9448_v56 = vcombine.low %v2040_v60, %v2043_v26  ;;  %v5112_v62 = vld [vmem:[#allocation2 + $0x248] sm:$0x3]  ;;  %7051 = vmatmul.mubr.bf16.gmra.mrb[124].mxu0 %v6196_v2  ;;  %v5100_v48 = vrot.slane %v4945_v45, 6  ;;  %v9644_v47 = vrot.slane %v5110_v5, 10  ;;  %v13664_v15 = vpop.f32.mrb[6].mxu0  ;;  %v13670_v26 = vpop.permute.xlu1 %6058 }
 0x1f9   : > { %16068 = vst [vmem:[#allocation18_spill] sm:$0xff] %v13642_v25  ;;  %v13659_v35 = vld [vmem:[%s11925_s14 + $0x28] sm:$0xff]   ;;  %v5208_v7 = vrot.slane %v5111_v50, 6  ;;  %16071 = vst [vmem:[#allocation21_spill] sm:$0xff] %v13664_v15  ;;  %v11179_v39 = vld [vmem:[#allocation2 + $0x3b0] sm:$0xff]   ;;  %7092 = vmatpush1.bf16.msra.mxu0 %v11176_v17  ;;  %v5211_v31 = vrot.slane %v5112_v62, 6  ;;  %v13677_v17 = vpop.permute.xlu0 %2650  ;;  %v6263_v25 = vsel %vm728_vm4, %v13441_v54, %v13563_v16 }
 0x1fa   : > { %v2978_v42 = vsel %vm728_vm4, %v13659_v35, %v13265_v27  ;;  %v3032_v4 = vsel %vm728_vm4, %v9448_v56, %v13241_v43  ;;  %v13668_v60 = vpop.f32.mrb[7].mxu0  ;;  %v5098_v27 = vsel %vm12082_vm7, %v9642_v41, %v5097_v22  ;;  %v5099_v61 = vrot.slane %v5097_v22, 4  ;;  %6084 = vrot.lane.b32.xlu0 %v11179_v39, %s11456_s19  ;;  %v1924_v5 = vld [vmem:[#allocation2 + $0x244] sm:$0xe]  ;;  %v1926_v43 = vld [vmem:[#allocation2 + $0x24c] sm:$0x1] }
 0x1fb   : > { %16072 = vst [vmem:[#allocation26_spill] sm:$0xff] %v13668_v60  ;;  %3842 = vmatprep.mubr.bf16.mxu1 %v3032_v4  ;;  %v5209_v45 = vsel %vm12082_vm7, %v9644_v47, %v5208_v7  ;;  %v5210_v11 = vrot.slane %v5208_v7, 4  ;;  %v13681_v2 = vrot.slane %v15890_v20, 4  ;;  %v13685_v56 = vrot.slane %v15891_v59, 4  ;;  %v4946_v41 = vld [vmem:[#allocation2 + $0x294] sm:$0xc] }
 0x1fc   : > { %3843 = vmatmul.mubr.bf16.gmra.mrb[20].mxu1 %v2978_v42  ;;  %v4947_v50 = vld [vmem:[#allocation2 + $0x298] sm:$0xf]  ;;  %v13688_v62 = vld [vmem:[%s11925_s14 + $0x30] sm:$0xff]   ;;  %v5101_v47 = vsel %vm12082_vm7, %v5099_v61, %v5100_v48  ;;  %v9337_v39 = vrot.slane %v1924_v5, 9  ;;  %v2049_v4 = vrot.slane %v1926_v43, 5  ;;  %v13698_v42 = vsub.s32 1, %v13567_v23 }
 0x1fd   : > { %v2981_v22 = vsel %vm728_vm4, %v13688_v62, %v13320_v40  ;;  %v5212_v7 = vsel %vm12082_vm7, %v5210_v11, %v5211_v31  ;;  %v4948_v20 = vld [vmem:[#allocation2 + $0x29c] sm:$0x3]  ;;  %v5113_v59 = vld [vmem:[#allocation2 + $0x258] sm:$0xc]  ;;  %v9754_v29 = vcombine.low %v5098_v27, %v5101_v47  ;;  %v5115_v15 = vld [vmem:[#allocation2 + $0x260] sm:$0x3]  ;;  %v13717_v47 = vpop.permute.xlu1 %5898 }
 0x1fe   : > { %16073 = vst [vmem:[#allocation38_spill] sm:$0xff] %v13698_v42  ;;  %v9756_v60 = vcombine.low %v5209_v45, %v5212_v7  ;;  %v5114_v40 = vld [vmem:[#allocation2 + $0x25c] sm:$0xf]  ;;  %v16074_v48 = vrot.slane %v13040_v13, 5  ;;  %v16075_v61 = vld [vmem:[#allocation11_spill] sm:$0xff]  ;;  %v9643_v5 = vrot.slane %v4946_v41, 10 }
 0x1ff   : > { %v2050_v11 = vsel %vm11938_vm3, %v16075_v61, %v2049_v4  ;;  %v5104_v23 = vrot.slane %v4947_v50, 6  ;;  %v13710_v43 = vpop.f32.mrb[8].mxu0  ;;  %5922 = vrot.lane.b32.xlu1 %v9754_v29, %s11456_s19  ;;  %v5107_v27 = vrot.slane %v4948_v20, 6  ;;  %v9645_v45 = vrot.slane %v5113_v59, 10  ;;  %v1927_v29 = vld [vmem:[#allocation2 + $0x25c] sm:$0xe] }
 0x200   : > { %v2047_v31 = vsel %vm11938_vm3, %v9337_v39, %v16074_v48  ;;  %16076 = vst [vmem:[#allocation20_spill] sm:$0xff] %v13710_v43  ;;  %v6312_v54 = vsel %vm728_vm4, %v9756_v60, %v13534_v0  ;;  %v13715_v13 = vpop.f32.mrb[9].mxu0  ;;  %v5215_v50 = vrot.slane %v5114_v40, 6  ;;  %v5218_v39 = vrot.slane %v5115_v15, 6  ;;  %v13723_v48 = vpop.permute.xlu0 %2780  ;;  %v1929_v59 = vld [vmem:[#allocation2 + $0x264] sm:$0x1] }
 0x201   : > { %v9449_v16 = vcombine.low %v2047_v31, %v2050_v11  ;;  %16077 = vst [vmem:[#allocation23_spill] sm:$0xff] %v13715_v13  ;;  %7093 = vmatprep.mubr.bf16.mxu0 %v6312_v54  ;;  %v5105_v7 = vsel %vm12082_vm7, %v9643_v5, %v5104_v23  ;;  %v5106_v41 = vrot.slane %v5104_v23, 4  ;;  %v13721_v4 = vpop.f32.mrb[10].mxu0  ;;  %v5116_v60 = vld [vmem:[#allocation2 + $0x270] sm:$0xc]  ;;  %v13734_v5 = vld [vmem:[%s11925_s14 + $0x38] sm:$0xff]   ;;  %v13769_v14 = vpop.permute.xlu1 %6060 }
 0x202   : > { %16078 = vst [vmem:[#allocation27_spill] sm:$0xff] %v13721_v4  ;;  %7094 = vmatmul.mubr.bf16.vlgmr.msra.gmra.mrb[64].mxu0 %v6263_v25  ;;  %v13727_v20 = vpop.f32.mrb[11].mxu0  ;;  %v5216_v40 = vsel %vm12082_vm7, %v9645_v45, %v5215_v50  ;;  %v5217_v31 = vrot.slane %v5215_v50, 4  ;;  %v5117_v61 = vld [vmem:[#allocation2 + $0x274] sm:$0xf]  ;;  %v13748_v45 = vld [vmem:[%s11925_s14 + $0x48] sm:$0xff]  }
 0x203   : > { %v3036_v0 = vsel %vm728_vm4, %v9449_v16, %v13288_v55  ;;  %16079 = vst [vmem:[#allocation33_spill] sm:$0xff] %v13727_v20  ;;  %v5108_v15 = vsel %vm12082_vm7, %v5106_v41, %v5107_v27  ;;  %v5118_v25 = vld [vmem:[#allocation2 + $0x278] sm:$0x3]  ;;  %v841_v11 = vpop.f32.mrb[12].mxu0  ;;  %v2984_v55 = vsel %vm728_vm4, %v13734_v5, %v13371_v33  ;;  %v11180_v16 = vld [vmem:[#allocation3 + $0x220] ss:$8 sps:$4 sm:$0xff]   ;;  %v13753_v41 = vsel %vm728_vm4, %v13748_v45, %v13489_v37 }
 0x204   : > { %3852 = vmatprep.mubr.bf16.mxu1 %v3036_v0  ;;  %v9755_v23 = vcombine.low %v5105_v7, %v5108_v15  ;;  %v843_v54 = vpop.f32.mrb[13].mxu0  ;;  %v13740_v0 = vld [vmem:[%s11925_s14 + $0x40] sm:$0xff]   ;;  %v13756_v50 = vld [vmem:[%s11925_s14 + $0x50] sm:$0xff]   ;;  %v9338_v7 = vrot.slane %v1927_v29, 9  ;;  %v2056_v15 = vrot.slane %v1929_v59, 5  ;;  %v9646_v13 = vrot.slane %v5116_v60, 10 }
 0x205   : > { %3853 = vmatmul.mubr.bf16.gmra.mrb[24].mxu1 %v2981_v22  ;;  %v13745_v27 = vsel %vm728_vm4, %v13740_v0, %v13430_v58  ;;  %16080 = vst [vmem:[#allocation24_spill] sm:$0xff] %v13756_v50  ;;  %v13761_v33 = vsel %vm728_vm4, %v13756_v50, %v13540_v1  ;;  %v5219_v22 = vsel %vm12082_vm7, %v5217_v31, %v5218_v39  ;;  %v845_v20 = vpop.f32.mrb[14].mxu0  ;;  %v11182_v4 = vld [vmem:[#allocation3 + $0x224] ss:$8 sps:$4 sm:$0xff]   ;;  %v5222_v43 = vrot.slane %v5117_v61, 6 }
 0x206   : > { %v6266_v58 = vsel %vm728_vm4, %v13450_v44, %v13631_v63  ;;  %5924 = vrot.lane.b32.xlu1 %v9755_v23, %s11456_s19  ;;  %v9757_v37 = vcombine.low %v5216_v40, %v5219_v22  ;;  %v5225_v18 = vrot.slane %v5118_v25, 6  ;;  %v847_v1 = vpop.f32.mrb[15].mxu0  ;;  %v13773_v39 = vrot.slane %v13607_v12, %v13698_v42  ;;  %v16081_v31 = vld [vmem:[#allocation25_spill] sm:$0xff]  ;;  %v16083_v63 = vld [vmem:[#allocation22_spill] sm:$0xff]  ;;  %v1930_v60 = vld [vmem:[#allocation2 + $0x274] sm:$0xe]  ;;  %3957 = vmatprep.subr.bf16.mxu1 %v11182_v4  ;;  %v13783_v25 = vpop.permute.xlu0 %2652 }
 0x207   : > { %v16082_v57 = vrot.slane %v16081_v31, 5  ;;  %v2057_v29 = vsel %vm11938_vm3, %v16083_v63, %v2056_v15  ;;  %v842_v59 = vadd.f32 %v841_v11, %v13613_v28  ;;  %v1932_v40 = vld [vmem:[#allocation2 + $0x27c] sm:$0x1]  ;;  %v851_v61 = vpop.f32.mrb[16].mxu0  ;;  %v5223_v22 = vsel %vm12082_vm7, %v9646_v13, %v5222_v43  ;;  %3958 = vmatpush1.bf16.msra.mxu1 %v11180_v16  ;;  %v5119_v63 = vld [vmem:[#allocation2 + $0x288] sm:$0xc] }
 0x208   : > { %v6316_v12 = vsel %vm728_vm4, %v9757_v37, %v13598_v8  ;;  %v844_v11 = vadd.f32 %v843_v54, %v13773_v39  ;;  %v846_v31 = vadd.f32 %v845_v20, %v13613_v28  ;;  %v848_v4 = vadd.f32 %v847_v1, %v13773_v39  ;;  %v5120_v42 = vld [vmem:[#allocation2 + $0x28c] sm:$0xf]  ;;  %v5123_v50 = vld [vmem:[#allocation2 + $0x2a4] sm:$0xf]  ;;  %s11390_s19 = scalar_lea.vmem %s11389_s26, 8192 }
 0x209   : > { %v2054_v44 = vsel %vm11938_vm3, %v9338_v7, %v16082_v57  ;;  %v5224_v57 = vrot.slane %v5222_v43, 4  ;;  %v853_v7 = vpop.f32.mrb[17].mxu0  ;;  %7103 = vmatprep.mubr.bf16.mxu0 %v6316_v12  ;;  %v982_v15 = vmax.f32 %v842_v59, 0.0  ;;  %v9339_v13 = vrot.slane %v1930_v60, 9  ;;  %v5121_v59 = vld [vmem:[#allocation2 + $0x290] sm:$0x3]  ;;  %v13805_v60 = vpop.permute.xlu1 %5900 }
 0x20a   : > { %v9450_v23 = vcombine.low %v2054_v44, %v2057_v29  ;;  %v855_v6 = vpop.f32.mrb[18].mxu0  ;;  %7104 = vmatmul.mubr.bf16.gmra.mrb[68].mxu0 %v6266_v58  ;;  %v2063_v16 = vrot.slane %v1932_v40, 5  ;;  %v983_v54 = vmax.f32 %v844_v11, 0.0  ;;  %v984_v29 = vmax.f32 %v846_v31, 0.0  ;;  %v16084_v12 = vld [vmem:[#allocation32_spill] sm:$0xff] }
 0x20b   : > { %v5226_v43 = vsel %vm12082_vm7, %v5224_v57, %v5225_v18  ;;  %v857_v37 = vpop.f32.mrb[19].mxu0  ;;  %v985_v20 = vmax.f32 %v848_v4, 0.0  ;;  %v16085_v58 = vrot.slane %v16084_v12, 5  ;;  %v9647_v40 = vrot.slane %v5119_v63, 10  ;;  %v1933_v57 = vld [vmem:[#allocation2 + $0x28c] sm:$0xe] }
 0x20c   : > { %v3040_v8 = vsel %vm728_vm4, %v9450_v23, %v13345_v21  ;;  %v9758_v44 = vcombine.low %v5223_v22, %v5226_v43  ;;  %v13796_v1 = vpop.f32.mrb[20].mxu0  ;;  %v16086_v23 = vld [vmem:[#allocation50_spill] sm:$0xff]  ;;  %v5229_v22 = vrot.slane %v5120_v42, 6  ;;  %v13809_v4 = vpack.c.bf16 %v984_v29, %v982_v15  ;;  %v1935_v43 = vld [vmem:[#allocation2 + $0x294] sm:$0x1] }
 0x20d   : > { %3862 = vmatprep.mubr.bf16.mxu1 %v3040_v8  ;;  %v2061_v21 = vsel %vm11938_vm3, %v9339_v13, %v16085_v58  ;;  %v2064_v18 = vsel %vm11938_vm3, %v16086_v23, %v2063_v16  ;;  %v863_v11 = vpop.f32.mrb[21].mxu0  ;;  %v13813_v13 = vpop.permute.xlu0 %2782  ;;  %v5122_v12 = vld [vmem:[#allocation2 + $0x2a0] sm:$0xc]  ;;  %v5232_v16 = vrot.slane %v5121_v59, 6  ;;  %v852_v23 = vadd.f32 %v851_v61, %v13613_v28 }
 0x20e   : > { %3863 = vmatmul.mubr.bf16.gmra.mrb[28].mxu1 %v2984_v55  ;;  %v6320_v31 = vsel %vm728_vm4, %v9758_v44, %v13670_v26  ;;  %16087 = vst [vmem:[#allocation28_spill] sm:$0xff] %v13809_v4  ;;  %v13811_v55 = vpack.c.bf16 %v985_v20, %v983_v54  ;;  %v9451_v8 = vcombine.low %v2061_v21, %v2064_v18  ;;  %v865_v58 = vpop.f32.mrb[22].mxu0  ;;  %v5231_v42 = vrot.slane %v5229_v22, 4  ;;  %v11183_v20 = vld [vmem:[#allocation3 + $0x440] ss:$8 sps:$4 sm:$0xff]   ;;  %v6063_v4 = vpop.permute.xlu1 %6062 }
 0x20f   : > { %7113 = vmatprep.mubr.bf16.mxu0 %v6320_v31  ;;  %v5230_v63 = vsel %vm12082_vm7, %v9647_v40, %v5229_v22  ;;  %v867_v26 = vpop.f32.mrb[23].mxu0  ;;  %v6269_v15 = vsel %vm728_vm4, %v13519_v34, %v13717_v47  ;;  %v854_v54 = vadd.f32 %v853_v7, %v13773_v39  ;;  %v856_v29 = vadd.f32 %v855_v6, %v13613_v28  ;;  %v11185_v21 = vld [vmem:[#allocation3 + $0x444] ss:$8 sps:$4 sm:$0xff]   ;;  %v5124_v34 = vld [vmem:[#allocation2 + $0x2a8] sm:$0x3] }
 0x210   : > { %16088 = vst [vmem:[#allocation30_spill] sm:$0xff] %v13811_v55  ;;  %v3044_v44 = vsel %vm728_vm4, %v9451_v8, %v13399_v19  ;;  %v13825_v18 = vpop.f32.mrb[24].mxu0  ;;  %v5233_v61 = vsel %vm12082_vm7, %v5231_v42, %v5232_v16  ;;  %v986_v59 = vmax.f32 %v852_v23, 0.0  ;;  %v858_v40 = vadd.f32 %v857_v37, %v13773_v39  ;;  %7254 = vmatprep.subr.bf16.mxu0 %v11185_v21 }
 0x211   : > { %3872 = vmatprep.mubr.bf16.mxu1 %v3044_v44  ;;  %v9340_v22 = vrot.slane %v1933_v57, 9  ;;  %v13830_v47 = vpop.f32.mrb[25].mxu0  ;;  %v9759_v19 = vcombine.low %v5230_v63, %v5233_v61  ;;  %v987_v31 = vmax.f32 %v854_v54, 0.0  ;;  %v988_v7 = vmax.f32 %v856_v29, 0.0  ;;  %v13847_v29 = vpop.permute.xlu0 %2654  ;;  %7255 = vmatpush1.bf16.msra.mxu0 %v11183_v20  ;;  %v1938_v61 = vld [vmem:[#allocation2 + $0x2ac] sm:$0x1] }
 0x212   : > { %v2070_v8 = vrot.slane %v1935_v43, 5  ;;  %v13832_v6 = vpop.f32.mrb[26].mxu0  ;;  %7114 = vmatmul.mubr.bf16.gmra.mrb[72].mxu0 %v6269_v15  ;;  %v989_v44 = vmax.f32 %v858_v40, 0.0  ;;  %v16089_v55 = vrot.slane %v12815_v32, 5  ;;  %v9648_v37 = vrot.slane %v5122_v12, 10  ;;  %v16091_v43 = vld [vmem:[#allocation13_spill] sm:$0xff] }
 0x213   : > { %v5236_v57 = vrot.slane %v5123_v50, 6  ;;  %v13838_v16 = vpop.f32.mrb[27].mxu0  ;;  %v6324_v63 = vsel %vm728_vm4, %v9759_v19, %v13769_v14  ;;  %v13842_v23 = vpack.c.bf16 %v988_v7, %v986_v59  ;;  %v5239_v54 = vrot.slane %v5124_v34, 6  ;;  %v1936_v32 = vld [vmem:[#allocation2 + $0x2a4] sm:$0xe] }
 0x214   : > { %v2068_v42 = vsel %vm11938_vm3, %v9340_v22, %v16089_v55  ;;  %v2071_v15 = vsel %vm11938_vm3, %v16091_v43, %v2070_v8  ;;  %v13849_v21 = vpop.f32.mrb[28].mxu0  ;;  %7123 = vmatprep.mubr.bf16.mxu0 %v6324_v63  ;;  %v13852_v50 = vpack.c.bf16 %v989_v44, %v987_v31  ;;  %v5125_v59 = vld [vmem:[#allocation2 + $0x2b8] sm:$0xc]  ;;  %v6272_v20 = vsel %vm728_vm4, %v13548_v36, %v13805_v60  ;;  %v11188_v7 = vld [vmem:[#allocation3 + $0x234] ss:$8 sps:$4 sm:$0xff]  }
 0x215   : > { %16090 = vst [vmem:[#allocation35_spill] sm:$0xff] %v13842_v23  ;;  %v9452_v55 = vcombine.low %v2068_v42, %v2071_v15  ;;  %v5237_v14 = vsel %vm12082_vm7, %v9648_v37, %v5236_v57  ;;  %v5238_v12 = vrot.slane %v5236_v57, 4  ;;  %v13856_v40 = vpop.f32.mrb[29].mxu0  ;;  %v862_v22 = vadd.f32 %v13796_v1, %v13613_v28  ;;  %v11186_v31 = vld [vmem:[#allocation3 + $0x230] ss:$8 sps:$4 sm:$0xff]   ;;  %3959 = vmatprep.subr.bf16.mxu1 %v11188_v7  ;;  %v5903_v15 = vpop.permute.xlu1 %5902 }
 0x216   : > { %3873 = vmatmul.mubr.bf16.gmra.mrb[32].mxu1 %v13745_v27  ;;  %16092 = vst [vmem:[#allocation29_spill] sm:$0xff] %v13852_v50  ;;  %v864_v27 = vadd.f32 %v863_v11, %v13773_v39  ;;  %v866_v34 = vadd.f32 %v865_v58, %v13613_v28  ;;  %v13865_v19 = vpop.f32.mrb[30].mxu0  ;;  %v868_v42 = vadd.f32 %v867_v26, %v13773_v39  ;;  %v9341_v36 = vrot.slane %v1936_v32, 9  ;;  %v5126_v60 = vld [vmem:[#allocation2 + $0x2bc] sm:$0xf] }
 0x217   : > { %v3048_v8 = vsel %vm728_vm4, %v9452_v55, %v13461_v46  ;;  %v5240_v44 = vsel %vm12082_vm7, %v5238_v12, %v5239_v54  ;;  %v5127_v37 = vld [vmem:[#allocation2 + $0x2c0] sm:$0x3]  ;;  %v13872_v1 = vpop.f32.mrb[31].mxu0  ;;  %v990_v58 = vmax.f32 %v862_v22, 0.0  ;;  %v2077_v54 = vrot.slane %v1938_v61, 5  ;;  %3960 = vmatpush1.bf16.msra.mxu1 %v11186_v31 }
 0x218   : > { %3882 = vmatprep.mubr.bf16.mxu1 %v3048_v8  ;;  %v9760_v11 = vcombine.low %v5237_v14, %v5240_v44  ;;  %v991_v57 = vmax.f32 %v864_v27, 0.0  ;;  %v992_v63 = vmax.f32 %v866_v34, 0.0  ;;  %v13874_v43 = vpop.f32.mrb[32].mxu0  ;;  %v993_v46 = vmax.f32 %v868_v42, 0.0  ;;  %v16093_v55 = vld [vmem:[#allocation41_spill] sm:$0xff]  ;;  %v13885_v27 = vpop.permute.xlu0 %2784  ;;  %v16097_v42 = vld [vmem:[#allocation15_spill] sm:$0xff] }
 0x219   : > { %v16094_v23 = vrot.slane %v16093_v55, 5  ;;  %v9649_v32 = vrot.slane %v5125_v59, 10  ;;  %v13880_v12 = vpop.f32.mrb[33].mxu0  ;;  %v5243_v34 = vrot.slane %v5126_v60, 6  ;;  %v5246_v7 = vrot.slane %v5127_v37, 6 }
 0x21a   : > { %v6328_v14 = vsel %vm728_vm4, %v9760_v11, %v6063_v4  ;;  %v13883_v22 = vpack.c.bf16 %v992_v63, %v990_v58  ;;  %v13887_v8 = vpop.f32.mrb[34].mxu0  ;;  %7124 = vmatmul.mubr.bf16.gmra.mrb[76].mxu0 %v6272_v20  ;;  %v13889_v44 = vpack.c.bf16 %v993_v46, %v991_v57  ;;  %v872_v61 = vadd.f32 %v13825_v18, %v13613_v28  ;;  %v1939_v59 = vld [vmem:[#allocation2 + $0x2bc] sm:$0xe]  ;;  %v1941_v31 = vld [vmem:[#allocation2 + $0x2c4] sm:$0x1] }
 0x21b   : > { %v2075_v26 = vsel %vm11938_vm3, %v9341_v36, %v16094_v23  ;;  %v2078_v23 = vsel %vm11938_vm3, %v16097_v42, %v2077_v54  ;;  %v874_v4 = vadd.f32 %v13830_v47, %v13773_v39  ;;  %v13898_v36 = vpop.f32.mrb[35].mxu0  ;;  %7133 = vmatprep.mubr.bf16.mxu0 %v6328_v14  ;;  %v5244_v20 = vsel %vm12082_vm7, %v9649_v32, %v5243_v34  ;;  %v5128_v58 = vld [vmem:[#allocation2 + $0x2d0] sm:$0xc]  ;;  %v5129_v57 = vld [vmem:[#allocation2 + $0x2d4] sm:$0xf]  ;;  %v6065_v42 = vpop.permute.xlu1 %6064 }
 0x21c   : > { %16095 = vst [vmem:[#allocation34_spill] sm:$0xff] %v13883_v22  ;;  %16096 = vst [vmem:[#allocation37_spill] sm:$0xff] %v13889_v44  ;;  %v9453_v60 = vcombine.low %v2075_v26, %v2078_v23  ;;  %v5245_v37 = vrot.slane %v5243_v34, 4  ;;  %v876_v11 = vadd.f32 %v13832_v6, %v13613_v28  ;;  %v13904_v63 = vpop.f32.mrb[36].mxu0  ;;  %v6275_v18 = vsel %vm728_vm4, %v13593_v30, %v5903_v15  ;;  %v5130_v26 = vld [vmem:[#allocation2 + $0x2d8] sm:$0x3] }
 0x21d   : > { %v994_v47 = vmax.f32 %v872_v61, 0.0  ;;  %v995_v46 = vmax.f32 %v874_v4, 0.0  ;;  %v878_v55 = vadd.f32 %v13838_v16, %v13773_v39  ;;  %v13911_v54 = vpop.f32.mrb[37].mxu0  ;;  %v9342_v34 = vrot.slane %v1939_v59, 9  ;;  %v13921_v4 = vpop.permute.xlu0 %2656  ;;  %v11189_v44 = vld [vmem:[#allocation3 + $0x450] ss:$8 sps:$4 sm:$0xff]  }
 0x21e   : > { %3883 = vmatmul.mubr.bf16.gmra.mrb[36].mxu1 %v13753_v41  ;;  %v3052_v6 = vsel %vm728_vm4, %v9453_v60, %v13512_v3  ;;  %v5247_v32 = vsel %vm12082_vm7, %v5245_v37, %v5246_v7  ;;  %v996_v14 = vmax.f32 %v876_v11, 0.0  ;;  %v13917_v41 = vpop.f32.mrb[38].mxu0  ;;  %v2084_v23 = vrot.slane %v1941_v31, 5  ;;  %v16099_v3 = vld [vmem:[#allocation44_spill] sm:$0xff]  ;;  %v1942_v11 = vld [vmem:[#allocation2 + $0x2d4] sm:$0xe] }
 0x21f   : > { %3892 = vmatprep.mubr.bf16.mxu1 %v3052_v6  ;;  %v9761_v30 = vcombine.low %v5244_v20, %v5247_v32  ;;  %v997_v15 = vmax.f32 %v878_v55, 0.0  ;;  %v9650_v61 = vrot.slane %v5128_v58, 10  ;;  %v13919_v16 = vpop.f32.mrb[39].mxu0  ;;  %v16100_v60 = vrot.slane %v16099_v3, 5  ;;  %v16102_v31 = vld [vmem:[#allocation12_spill] sm:$0xff] }
 0x220   : > { %v13923_v22 = vpack.c.bf16 %v996_v14, %v994_v47  ;;  %v5250_v59 = vrot.slane %v5129_v57, 6  ;;  %v5253_v37 = vrot.slane %v5130_v26, 6  ;;  %v2085_v58 = vsel %vm11938_vm3, %v16102_v31, %v2084_v23  ;;  %v1944_v6 = vld [vmem:[#allocation2 + $0x2dc] sm:$0x1]  ;;  %v13937_v14 = vpop.f32.mrb[40].mxu0 }
 0x221   : > { %v2082_v7 = vsel %vm11938_vm3, %v9342_v34, %v16100_v60  ;;  %v6332_v20 = vsel %vm728_vm4, %v9761_v30, %v6065_v42  ;;  %v13930_v55 = vpack.c.bf16 %v997_v15, %v995_v46  ;;  %v882_v47 = vadd.f32 %v13849_v21, %v13613_v28  ;;  %v11191_v32 = vld [vmem:[#allocation3 + $0x454] ss:$8 sps:$4 sm:$0xff]   ;;  %v5131_v42 = vld [vmem:[#allocation2 + $0x2e8] sm:$0xc]  ;;  %v5132_v30 = vld [vmem:[#allocation2 + $0x2ec] sm:$0xf] }
 0x222   : > { %16098 = vst [vmem:[#allocation39_spill] sm:$0xff] %v13923_v22  ;;  %v9454_v34 = vcombine.low %v2082_v7, %v2085_v58  ;;  %v5251_v57 = vsel %vm12082_vm7, %v9650_v61, %v5250_v59  ;;  %v5252_v26 = vrot.slane %v5250_v59, 4  ;;  %v884_v46 = vadd.f32 %v13856_v40, %v13773_v39  ;;  %v13943_v15 = vpop.f32.mrb[41].mxu0  ;;  %7134 = vmatmul.mubr.bf16.gmra.mrb[80].mxu0 %v6275_v18  ;;  %v5133_v7 = vld [vmem:[#allocation2 + $0x2f0] sm:$0x3] }
 0x223   : > { %16101 = vst [vmem:[#allocation40_spill] sm:$0xff] %v13930_v55  ;;  %v998_v23 = vmax.f32 %v882_v47, 0.0  ;;  %v886_v21 = vadd.f32 %v13865_v19, %v13613_v28  ;;  %v888_v3 = vadd.f32 %v13872_v1, %v13773_v39  ;;  %v9343_v60 = vrot.slane %v1942_v11, 9  ;;  %7256 = vmatprep.subr.bf16.mxu0 %v11191_v32  ;;  %v13949_v61 = vpop.f32.mrb[42].mxu0  ;;  %7143 = vmatprep.mubr.bf16.mxu0 %v6332_v20  ;;  %v5905_v19 = vpop.permute.xlu1 %5904  ;;  %v16103_v32 = vld [vmem:[#allocation9_spill] sm:$0xff] }
 0x224   : > { %v3056_v40 = vsel %vm728_vm4, %v9454_v34, %v13569_v51  ;;  %v5254_v59 = vsel %vm12082_vm7, %v5252_v26, %v5253_v37  ;;  %v999_v18 = vmax.f32 %v884_v46, 0.0  ;;  %v2091_v31 = vrot.slane %v1944_v6, 5  ;;  %7257 = vmatpush1.bf16.msra.mxu0 %v11189_v44  ;;  %v13955_v58 = vpop.f32.mrb[43].mxu0  ;;  %v6067_v37 = vpop.permute.xlu0 %6066  ;;  %v16105_v6 = vld [vmem:[#allocation14_spill] sm:$0xff]  ;;  %v13969_v46 = vld [vmem:[#allocation2 + $0x320] sm:$0xf] }
 0x225   : > { %v9762_v1 = vcombine.low %v5251_v57, %v5254_v59  ;;  %v1000_v11 = vmax.f32 %v886_v21, 0.0  ;;  %v1001_v47 = vmax.f32 %v888_v3, 0.0  ;;  %v16104_v22 = vrot.slane %v16103_v32, 5  ;;  %v13962_v51 = vpop.f32.mrb[44].mxu0 }
 0x226   : > { %3893 = vmatmul.mubr.bf16.gmra.mrb[40].mxu1 %v13761_v33  ;;  %v2092_v44 = vsel %vm11938_vm3, %v16105_v6, %v2091_v31  ;;  %v9651_v34 = vrot.slane %v5131_v42, 10  ;;  %v5257_v26 = vrot.slane %v5132_v30, 6  ;;  %v5260_v33 = vrot.slane %v5133_v7, 6  ;;  %v13967_v57 = vpop.f32.mrb[45].mxu0  ;;  %v13981_v42 = vld [vmem:[%s11925_s14 + $0x58] sm:$0xff]  }
 0x227   : > { %v2089_v20 = vsel %vm11938_vm3, %v9343_v60, %v16104_v22  ;;  %3902 = vmatprep.mubr.bf16.mxu1 %v3056_v40  ;;  %v13972_v3 = vpack.c.bf16 %v1000_v11, %v998_v23  ;;  %v13974_v22 = vpack.c.bf16 %v1001_v47, %v999_v18  ;;  %v1945_v40 = vld [vmem:[#allocation2 + $0x2ec] sm:$0xe]  ;;  %v13976_v59 = vpop.f32.mrb[46].mxu0  ;;  %v6278_v31 = vsel %vm728_vm4, %v13659_v35, %v5905_v19  ;;  %v1947_v11 = vld [vmem:[#allocation2 + $0x2f4] sm:$0x1] }
 0x228   : > { %v9455_v60 = vcombine.low %v2089_v20, %v2092_v44  ;;  %16108 = vst [vmem:[#allocation43_spill] sm:$0xff] %v13981_v42  ;;  %v2996_v30 = vsel %vm728_vm4, %v13981_v42, %v13609_v38  ;;  %v5259_v7 = vrot.slane %v5257_v26, 4  ;;  %v892_v23 = vadd.f32 %v13874_v43, %v13613_v28  ;;  %v13988_v18 = vpop.f32.mrb[47].mxu0  ;;  %v11194_v47 = vld [vmem:[#allocation3 + $0x484] ss:$8 sps:$4 sm:$0xff]  }
 0x229   : > { %16106 = vst [vmem:[#allocation42_spill] sm:$0xff] %v13972_v3  ;;  %16107 = vst [vmem:[#allocation10_spill] sm:$0xff] %v13974_v22  ;;  %v6336_v32 = vsel %vm728_vm4, %v9762_v1, %v6067_v37  ;;  %v5258_v20 = vsel %vm12082_vm7, %v9651_v34, %v5257_v26  ;;  %v894_v35 = vadd.f32 %v13880_v12, %v13773_v39  ;;  %v5134_v38 = vld [vmem:[#allocation2 + $0x300] sm:$0xc]  ;;  %v5135_v6 = vld [vmem:[#allocation2 + $0x304] sm:$0xf]  ;;  %7605 = vmatprep.subr.bf16.mxu1 %v11194_v47  ;;  %v5907_v12 = vpop.permute.xlu1 %5906 }
 0x22a   : > { %v896_v19 = vadd.f32 %v13887_v8, %v13613_v28  ;;  %v13997_v44 = vpop.f32.mrb[48].mxu0  ;;  %v5261_v43 = vsel %vm12082_vm7, %v5259_v7, %v5260_v33  ;;  %v1002_v21 = vmax.f32 %v892_v23, 0.0  ;;  %v898_v1 = vadd.f32 %v13898_v36, %v13773_v39  ;;  %v5136_v3 = vld [vmem:[#allocation2 + $0x308] sm:$0x3]  ;;  %7144 = vmatmul.mubr.bf16.gmra.mrb[84].mxu0 %v6278_v31  ;;  %v6069_v31 = vpop.permute.xlu0 %6068 }
 0x22b   : > { %v9344_v37 = vrot.slane %v1945_v40, 9  ;;  %v14003_v34 = vpop.f32.mrb[49].mxu0  ;;  %v3060_v8 = vsel %vm728_vm4, %v9455_v60, %v13638_v53  ;;  %v1003_v26 = vmax.f32 %v894_v35, 0.0  ;;  %v2098_v55 = vrot.slane %v1947_v11, 5  ;;  %7153 = vmatprep.mubr.bf16.mxu0 %v6336_v32  ;;  %v1948_v32 = vld [vmem:[#allocation2 + $0x304] sm:$0xe] }
 0x22c   : > { %v1004_v22 = vmax.f32 %v896_v19, 0.0  ;;  %v14007_v50 = vpop.f32.mrb[50].mxu0  ;;  %v9763_v33 = vcombine.low %v5258_v20, %v5261_v43  ;;  %v1005_v7 = vmax.f32 %v898_v1, 0.0  ;;  %v16109_v36 = vrot.slane %v13619_v49, 5 }
 0x22d   : > { %v5264_v23 = vrot.slane %v5135_v6, 6  ;;  %v14013_v47 = vpop.f32.mrb[51].mxu0  ;;  %v2099_v53 = vsel %vm11938_vm3, %v13681_v2, %v2098_v55  ;;  %v9652_v60 = vrot.slane %v5134_v38, 10  ;;  %v5267_v11 = vrot.slane %v5136_v3, 6  ;;  %v1950_v38 = vld [vmem:[#allocation2 + $0x30c] sm:$0x1] }
 0x22e   : > { %v2096_v40 = vsel %vm11938_vm3, %v9344_v37, %v16109_v36  ;;  %3903 = vmatmul.mubr.bf16.gmra.mrb[44].mxu1 %v2996_v30  ;;  %v14015_v42 = vpack.c.bf16 %v1004_v22, %v1002_v21  ;;  %v14020_v20 = vpop.f32.mrb[52].mxu0  ;;  %v6281_v49 = vsel %vm728_vm4, %v13688_v62, %v5907_v12  ;;  %v14024_v35 = vpack.c.bf16 %v1005_v7, %v1003_v26  ;;  %v11195_v21 = vld [vmem:[#allocation3 + $0x460] ss:$8 sps:$4 sm:$0xff]   ;;  %v11197_v22 = vld [vmem:[#allocation3 + $0x464] ss:$8 sps:$4 sm:$0xff]  }
 0x22f   : > { %3912 = vmatprep.mubr.bf16.mxu1 %v3060_v8  ;;  %v5266_v30 = vrot.slane %v5264_v23, 4  ;;  %v14026_v19 = vpop.f32.mrb[53].mxu0  ;;  %v9456_v6 = vcombine.low %v2096_v40, %v2099_v53  ;;  %v902_v2 = vadd.f32 %v13904_v63, %v13613_v28  ;;  %v904_v55 = vadd.f32 %v13911_v54, %v13773_v39  ;;  %v5137_v62 = vld [vmem:[#allocation2 + $0x318] sm:$0xc]  ;;  %v14038_v37 = vld [vmem:[%s11925_s14 + $0x60] sm:$0xff]   ;;  %7258 = vmatprep.subr.bf16.mxu0 %v11197_v22 }
 0x230   : > { %16110 = vst [vmem:[#allocation45_spill] sm:$0xff] %v14015_v42  ;;  %v906_v3 = vadd.f32 %v13917_v41, %v13613_v28  ;;  %v14034_v43 = vpop.f32.mrb[54].mxu0  ;;  %v6340_v1 = vsel %vm728_vm4, %v9763_v33, %v6069_v31  ;;  %v2999_v12 = vsel %vm728_vm4, %v14038_v37, %v13677_v17  ;;  %v908_v63 = vadd.f32 %v13919_v16, %v13773_v39  ;;  %v5138_v54 = vld [vmem:[#allocation2 + $0x31c] sm:$0xf]  ;;  %v5139_v26 = vld [vmem:[#allocation2 + $0x320] sm:$0x3] }
 0x231   : > { %v9345_v8 = vrot.slane %v1948_v32, 9  ;;  %v14045_v7 = vpop.f32.mrb[55].mxu0  ;;  %v5265_v41 = vsel %vm12082_vm7, %v9652_v60, %v5264_v23  ;;  %v5268_v33 = vsel %vm12082_vm7, %v5266_v30, %v5267_v11  ;;  %v1006_v36 = vmax.f32 %v902_v2, 0.0  ;;  %7259 = vmatpush1.bf16.msra.mxu0 %v11195_v21 }
 0x232   : > { %v1007_v40 = vmax.f32 %v904_v55, 0.0  ;;  %v14051_v31 = vpop.f32.mrb[56].mxu0  ;;  %v1008_v17 = vmax.f32 %v906_v3, 0.0  ;;  %v1009_v53 = vmax.f32 %v908_v63, 0.0  ;;  %v16111_v16 = vrot.slane %v13653_v10, 5  ;;  %7154 = vmatmul.mubr.bf16.gmra.mrb[88].mxu0 %v6281_v49  ;;  %v5909_v63 = vpop.permute.xlu1 %5908 }
 0x233   : > { %v2105_v42 = vrot.slane %v1950_v38, 5  ;;  %v14057_v22 = vpop.f32.mrb[57].mxu0  ;;  %v3064_v23 = vsel %vm728_vm4, %v9456_v6, %v13723_v48  ;;  %v9653_v60 = vrot.slane %v5137_v62, 10  ;;  %v5271_v11 = vrot.slane %v5138_v54, 6  ;;  %7163 = vmatprep.mubr.bf16.mxu0 %v6340_v1  ;;  %v1951_v3 = vld [vmem:[#allocation2 + $0x31c] sm:$0xe] }
 0x234   : > { %v2103_v32 = vsel %vm11938_vm3, %v9345_v8, %v16111_v16  ;;  %v5274_v30 = vrot.slane %v5139_v26, 6  ;;  %v14061_v2 = vpop.f32.mrb[58].mxu0  ;;  %v14063_v21 = vpack.c.bf16 %v1008_v17, %v1006_v36  ;;  %v14065_v55 = vpack.c.bf16 %v1009_v53, %v1007_v40  ;;  %v1953_v38 = vld [vmem:[#allocation2 + $0x324] sm:$0x1]  ;;  %v6071_v36 = vpop.permute.xlu0 %6070  ;;  %v5141_v17 = vld [vmem:[#allocation2 + $0x334] sm:$0xf] }
 0x235   : > { %v2106_v10 = vsel %vm11938_vm3, %v13685_v56, %v2105_v42  ;;  %v912_v49 = vadd.f32 %v13937_v14, %v13613_v28  ;;  %v14072_v48 = vpop.f32.mrb[59].mxu0  ;;  %v16114_v6 = vrot.slane %v13969_v46, 5  ;;  %v9764_v1 = vcombine.low %v5265_v41, %v5268_v33 }
 0x236   : > { %16112 = vst [vmem:[#allocation46_spill] sm:$0xff] %v14063_v21  ;;  %16113 = vst [vmem:[#allocation48_spill] sm:$0xff] %v14065_v55  ;;  %3913 = vmatmul.mubr.bf16.gmra.mrb[48].mxu1 %v2999_v12  ;;  %v9457_v8 = vcombine.low %v2103_v32, %v2106_v10  ;;  %v5273_v54 = vrot.slane %v5271_v11, 4  ;;  %v14076_v26 = vpop.f32.mrb[60].mxu0  ;;  %v914_v14 = vadd.f32 %v13943_v15, %v13773_v39  ;;  %v9346_v33 = vrot.slane %v1951_v3, 9 }
 0x237   : > { %v2111_v62 = vrot.slane %v16114_v6, 4  ;;  %3922 = vmatprep.mubr.bf16.mxu1 %v3064_v23  ;;  %v1010_v56 = vmax.f32 %v912_v49, 0.0  ;;  %v916_v42 = vadd.f32 %v13949_v61, %v13613_v28  ;;  %v918_v40 = vadd.f32 %v13955_v58, %v13773_v39  ;;  %v14084_v53 = vpop.f32.mrb[61].mxu0  ;;  %v5140_v32 = vld [vmem:[#allocation2 + $0x330] sm:$0xc] }
 0x238   : > { %v5272_v12 = vsel %vm12082_vm7, %v9653_v60, %v5271_v11  ;;  %v5275_v41 = vsel %vm12082_vm7, %v5273_v54, %v5274_v30  ;;  %v2112_v16 = vrot.slane %v1953_v38, 5  ;;  %v14090_v15 = vpop.f32.mrb[62].mxu0  ;;  %v6284_v61 = vsel %vm728_vm4, %v13734_v5, %v5909_v63  ;;  %v5142_v49 = vld [vmem:[#allocation2 + $0x338] sm:$0x3]  ;;  %v11203_v55 = vld [vmem:[#allocation3 + $0x474] ss:$8 sps:$4 sm:$0xff]  }
 0x239   : > { %v1011_v23 = vmax.f32 %v914_v14, 0.0  ;;  %v1012_v58 = vmax.f32 %v916_v42, 0.0  ;;  %v1013_v10 = vmax.f32 %v918_v40, 0.0  ;;  %v14094_v6 = vpop.f32.mrb[63].mxu0  ;;  %v6344_v60 = vsel %vm728_vm4, %v9764_v1, %v6071_v36  ;;  %v11201_v21 = vld [vmem:[#allocation3 + $0x470] ss:$8 sps:$4 sm:$0xff]   ;;  %v6073_v36 = vpop.permute.xlu0 %6072  ;;  %7260 = vmatprep.subr.bf16.mxu0 %v11203_v55 }
 0x23a   : > { %v5278_v11 = vrot.slane %v5141_v17, 6  ;;  %v14098_v30 = vld [vmem:[%s11925_s14 + $0x68] sm:$0xff]   ;;  %v9765_v38 = vcombine.low %v5272_v12, %v5275_v41  ;;  %v11207_v63 = vld [vmem:[%s15842_s4 + $0x40] sm:$0xff]   ;;  %7164 = vmatmul.mubr.bf16.gmra.mrb[92].mxu0 %v6284_v61  ;;  %v3068_v1 = vsel %vm728_vm4, %v9457_v8, %v13813_v13  ;;  %v16115_v14 = vrot.slane %v13969_v46, 5  ;;  %v5911_v40 = vpop.permute.xlu1 %5910 }
 0x23b   : > { %v3002_v3 = vsel %vm728_vm4, %v14098_v30, %v13783_v25  ;;  %v14103_v54 = vpack.c.bf16 %v1012_v58, %v1010_v56  ;;  %v14105_v5 = vpack.c.bf16 %v1013_v10, %v1011_v23  ;;  %v2113_v25 = vsel %vm11938_vm3, %v2111_v62, %v2112_v16  ;;  %7173 = vmatprep.mubr.bf16.mxu0 %v6344_v60  ;;  %v5144_v62 = vld [vmem:[#allocation2 + $0x34c] sm:$0xf]  ;;  %v5143_v61 = vld [vmem:[#allocation2 + $0x348] sm:$0xc] }
 0x23c   : > { %v2110_v42 = vsel %vm11938_vm3, %v9346_v33, %v16115_v14  ;;  %v9654_v56 = vrot.slane %v5140_v32, 10  ;;  %v5280_v17 = vrot.slane %v5278_v11, 4  ;;  %v5281_v12 = vrot.slane %v5142_v49, 6  ;;  %7261 = vmatpush1.bf16.msra.mxu0 %v11201_v21  ;;  %v5145_v49 = vld [vmem:[#allocation2 + $0x350] sm:$0x3] }
 0x23d   : > { %v922_v41 = vadd.f32 %v13962_v51, %v13613_v28  ;;  %v924_v13 = vadd.f32 %v13967_v57, %v13773_v39  ;;  %v926_v46 = vadd.f32 %v13976_v59, %v13613_v28  ;;  %v928_v9 = vadd.f32 %v13988_v18, %v13773_v39  ;;  %9990 = vmatprep.subr.bf16.mxu0 %v11207_v63  ;;  %v2131_v14 = vld [vmem:[#allocation2 + $0x1c0] sm:$0x7] }
 0x23e   : > { %3923 = vmatmul.mubr.bf16.gmra.mrb[52].mxu1 %v3002_v3  ;;  %v6348_v55 = vsel %vm728_vm4, %v9765_v38, %v6073_v36  ;;  %v9458_v8 = vcombine.low %v2110_v42, %v2113_v25  ;;  %v6287_v51 = vsel %vm728_vm4, %v13740_v0, %v5911_v40  ;;  %v932_v59 = vadd.f32 %v13997_v44, %v13613_v28  ;;  %v11322_v3 = vld [vmem:[#allocation2 + $0x1bc] sm:$0xf]  ;;  %v2130_v36 = vld [vmem:[#allocation2 + $0x1b8] sm:$0x8] }
 0x23f   : > { %3932 = vmatprep.mubr.bf16.mxu1 %v3068_v1  ;;  %v1014_v33 = vmax.f32 %v922_v41, 0.0  ;;  %v1015_v16 = vmax.f32 %v924_v13, 0.0  ;;  %v1016_v57 = vmax.f32 %v926_v46, 0.0  ;;  %v1017_v32 = vmax.f32 %v928_v9, 0.0  ;;  %v6075_v13 = vpop.permute.xlu0 %6074 }
 0x240   : > { %v5279_v18 = vsel %vm12082_vm7, %v9654_v56, %v5278_v11  ;;  %v5282_v21 = vsel %vm12082_vm7, %v5280_v17, %v5281_v12  ;;  %v5285_v23 = vrot.slane %v5144_v62, 6  ;;  %v934_v58 = vadd.f32 %v14003_v34, %v13773_v39  ;;  %v14144_v11 = vld [vmem:[%s11925_s14 + $0x70] sm:$0xff]  }
 0x241   : > { %v14137_v10 = vpack.c.bf16 %v1016_v57, %v1014_v33  ;;  %v14139_v0 = vpack.c.bf16 %v1017_v32, %v1015_v16  ;;  %v1018_v60 = vmax.f32 %v932_v59, 0.0  ;;  %v936_v44 = vadd.f32 %v14007_v50, %v13613_v28 }
 0x242   : > { %v2212_v38 = vrot.slane %v11322_v3, 7  ;;  %v3005_v63 = vsel %vm728_vm4, %v14144_v11, %v13847_v29  ;;  %v1019_v1 = vmax.f32 %v934_v58, 0.0  ;;  %v938_v34 = vadd.f32 %v14013_v47, %v13773_v39  ;;  %7174 = vmatmul.mubr.bf16.gmra.mrb[96].mxu0 %v6287_v51  ;;  %v5913_v41 = vpop.permute.xlu1 %5912  ;;  %v11324_v58 = vld [vmem:[#allocation2 + $0x1d4] sm:$0xf] }
 0x243   : > { %v3072_v42 = vsel %vm728_vm4, %v9458_v8, %v13885_v27  ;;  %v9766_v25 = vcombine.low %v5279_v18, %v5282_v21  ;;  %v9655_v50 = vrot.slane %v5143_v61, 10  ;;  %v1020_v56 = vmax.f32 %v936_v44, 0.0  ;;  %7183 = vmatprep.mubr.bf16.mxu0 %v6348_v55  ;;  %v5147_v8 = vld [vmem:[#allocation2 + $0x364] sm:$0xf] }
 0x244   : > { %v5287_v40 = vrot.slane %v5285_v23, 4  ;;  %v5288_v17 = vrot.slane %v5145_v49, 6  ;;  %v1021_v12 = vmax.f32 %v938_v34, 0.0  ;;  %v942_v29 = vadd.f32 %v14020_v20, %v13613_v28  ;;  %v14173_v49 = vld [vmem:[%s11925_s14 + $0x78] sm:$0xff]  }
 0x245   : > { %v14155_v47 = vpack.c.bf16 %v1020_v56, %v1018_v60  ;;  %v9347_v46 = vrot.slane %v2130_v36, 11  ;;  %v2214_v9 = vrot.slane %v2212_v38, 4  ;;  %v2215_v62 = vrot.slane %v2131_v14, 7  ;;  %v5148_v60 = vld [vmem:[#allocation2 + $0x368] sm:$0x3]  ;;  %v6077_v36 = vpop.permute.xlu0 %6076 }
 0x246   : > { %3933 = vmatmul.mubr.bf16.gmra.mrb[56].mxu1 %v3005_v63  ;;  %v14157_v27 = vpack.c.bf16 %v1021_v12, %v1019_v1  ;;  %v1022_v55 = vmax.f32 %v942_v29, 0.0  ;;  %v944_v33 = vadd.f32 %v14026_v19, %v13773_v39  ;;  %v946_v20 = vadd.f32 %v14034_v43, %v13613_v28 }
 0x247   : > { %3942 = vmatprep.mubr.bf16.mxu1 %v3072_v42  ;;  %v948_v16 = vadd.f32 %v14045_v7, %v13773_v39  ;;  %v6290_v51 = vsel %vm728_vm4, %v13748_v45, %v5913_v41  ;;  %v6352_v57 = vsel %vm728_vm4, %v9766_v25, %v6075_v13  ;;  %v5286_v32 = vsel %vm12082_vm7, %v9655_v50, %v5285_v23  ;;  %v5146_v7 = vld [vmem:[#allocation2 + $0x360] sm:$0xc] }
 0x248   : > { %v5289_v59 = vsel %vm12082_vm7, %v5287_v40, %v5288_v17  ;;  %v5292_v18 = vrot.slane %v5147_v8, 6  ;;  %v1023_v21 = vmax.f32 %v944_v33, 0.0  ;;  %v1024_v19 = vmax.f32 %v946_v20, 0.0 }
 0x249   : > { %v1025_v61 = vmax.f32 %v948_v16, 0.0  ;;  %v2219_v43 = vrot.slane %v11324_v58, 7  ;;  %v3008_v45 = vsel %vm728_vm4, %v14173_v49, %v13921_v4  ;;  %v9767_v44 = vcombine.low %v5286_v32, %v5289_v59  ;;  %v2132_v4 = vld [vmem:[#allocation2 + $0x1d0] sm:$0x8]  ;;  %v11192_v16 = vld [vmem:[#allocation3 + $0x480] ss:$8 sps:$4 sm:$0xff]  }
 0x24a   : > { %7184 = vmatmul.mubr.bf16.gmra.mrb[100].mxu0 %v6290_v51  ;;  %v14178_v23 = vpack.c.bf16 %v1024_v19, %v1022_v55  ;;  %v952_v63 = vadd.f32 %v14051_v31, %v13613_v28  ;;  %v2213_v1 = vsel %vm12347_vm11, %v9347_v46, %v2212_v38  ;;  %v2216_v34 = vsel %vm12347_vm11, %v2214_v9, %v2215_v62  ;;  %v2133_v38 = vld [vmem:[#allocation2 + $0x1d8] sm:$0x7] }
 0x24b   : > { %v14180_v3 = vpack.c.bf16 %v1025_v61, %v1023_v21  ;;  %7193 = vmatprep.mubr.bf16.mxu0 %v6352_v57  ;;  %v954_v14 = vadd.f32 %v14057_v22, %v13773_v39  ;;  %v956_v42 = vadd.f32 %v14061_v2, %v13613_v28  ;;  %v5915_v25 = vpop.permute.xlu1 %5914  ;;  %v9656_v50 = vrot.slane %v5146_v7, 10  ;;  %v5150_v2 = vld [vmem:[#allocation2 + $0x37c] sm:$0xf]  ;;  %v5149_v59 = vld [vmem:[#allocation2 + $0x378] sm:$0xc] }
 0x24c   : > { %16116 = vst [vmem:[#allocation47_spill] sm:$0xff] %v14178_v23  ;;  %v5294_v56 = vrot.slane %v5292_v18, 4  ;;  %v5295_v31 = vrot.slane %v5148_v60, 6  ;;  %v1026_v40 = vmax.f32 %v952_v63, 0.0  ;;  %v16117_v17 = vmov 0   ;;  %v16118_v62 = vld [vmem:[#allocation24_spill] sm:$0xff] }
 0x24d   : > { %v1027_v12 = vmax.f32 %v954_v14, 0.0  ;;  %v1028_v29 = vmax.f32 %v956_v42, 0.0  ;;  %v958_v41 = vadd.f32 %v14072_v48, %v13773_v39  ;;  %v9475_v13 = vcombine.low %v2213_v1, %v2216_v34  ;;  %v5151_v21 = vld [vmem:[#allocation2 + $0x380] sm:$0x3]  ;;  %v11200_v7 = vld [vmem:[#allocation3 + $0x494] ss:$8 sps:$4 sm:$0xff]   ;;  %v6079_v14 = vpop.permute.xlu0 %6078 }
 0x24e   : > { %3943 = vmatmul.mubr.bf16.gmra.mrb[60].mxu1 %v3008_v45  ;;  %v2221_v46 = vrot.slane %v2219_v43, 4  ;;  %v6356_v22 = vsel %vm728_vm4, %v9767_v44, %v6077_v36  ;;  %v9348_v9 = vrot.slane %v2132_v4, 11  ;;  %v6293_v8 = vsel %vm728_vm4, %v16118_v62, %v5915_v25  ;;  %v11326_v60 = vld [vmem:[#allocation2 + $0x1ec] sm:$0xf]  ;;  %v2134_v36 = vld [vmem:[#allocation2 + $0x1e8] sm:$0x8] }
 0x24f   : > { %3985 = vmatprep.mubr.bf16.mxu1 %v16117_v17  ;;  %v14198_v55 = vpack.c.bf16 %v1028_v29, %v1026_v40  ;;  %v1029_v33 = vmax.f32 %v958_v41, 0.0  ;;  %v962_v20 = vadd.f32 %v14076_v26, %v13613_v28  ;;  %v5293_v51 = vsel %vm12082_vm7, %v9656_v50, %v5292_v18  ;;  %v5153_v40 = vld [vmem:[#allocation2 + $0x394] sm:$0xf] }
 0x250   : > { %v5296_v48 = vsel %vm12082_vm7, %v5294_v56, %v5295_v31  ;;  %v2222_v57 = vrot.slane %v2133_v38, 7  ;;  %v964_v32 = vadd.f32 %v14084_v53, %v13773_v39  ;;  %v5299_v19 = vrot.slane %v5150_v2, 6  ;;  %v11198_v56 = vld [vmem:[#allocation3 + $0x490] ss:$8 sps:$4 sm:$0xff]  }
 0x251   : > { %16119 = vst [vmem:[#allocation49_spill] sm:$0xff] %v14198_v55  ;;  %v14208_v61 = vpack.c.bf16 %v1029_v33, %v1027_v12  ;;  %v1030_v58 = vmax.f32 %v962_v20, 0.0  ;;  %v966_v26 = vadd.f32 %v14090_v15, %v13613_v28  ;;  %v968_v18 = vadd.f32 %v14094_v6, %v13773_v39  ;;  %v2135_v31 = vld [vmem:[#allocation2 + $0x1f0] sm:$0x7]  ;;  %v5154_v20 = vld [vmem:[#allocation2 + $0x398] sm:$0x3] }
 0x252   : > { %7194 = vmatmul.mubr.bf16.gmra.mrb[104].mxu0 %v6293_v8  ;;  %v1031_v45 = vmax.f32 %v964_v32, 0.0  ;;  %v2226_v44 = vrot.slane %v11326_v60, 7  ;;  %v9768_v1 = vcombine.low %v5293_v51, %v5296_v48  ;;  %v2220_v34 = vsel %vm12347_vm11, %v9348_v9, %v2219_v43  ;;  %v11206_v43 = vld [vmem:[#allocation3 + $0x4a4] ss:$8 sps:$4 sm:$0xff]   ;;  %v16123_v12 = vld [vmem:[#allocation43_spill] sm:$0xff] }
 0x253   : > { %16120 = vst [vmem:[#allocation11_spill] sm:$0xff] %v14208_v61  ;;  %7203 = vmatprep.mubr.bf16.mxu0 %v6356_v22  ;;  %v1032_v63 = vmax.f32 %v966_v26, 0.0  ;;  %v5917_v53 = vpop.permute.xlu1 %5916  ;;  %v2223_v15 = vsel %vm12347_vm11, %v2221_v46, %v2222_v57  ;;  %v1033_v4 = vmax.f32 %v968_v18, 0.0  ;;  %v9657_v6 = vrot.slane %v5149_v59, 10  ;;  %v5152_v8 = vld [vmem:[#allocation2 + $0x390] sm:$0xc] }
 0x254   : > { %v5301_v42 = vrot.slane %v5299_v19, 4  ;;  %v5302_v25 = vrot.slane %v5151_v21, 6  ;;  %v6296_v29 = vsel %vm728_vm4, %v16123_v12, %v5917_v53  ;;  %v2228_v41 = vrot.slane %v2226_v44, 4  ;;  %v11211_v51 = vld [vmem:[#allocation3 + $0x4b4] ss:$8 sps:$4 sm:$0xff]  }
 0x255   : > { %v14220_v50 = vpack.c.bf16 %v1032_v63, %v1030_v58  ;;  %v14222_v38 = vpack.c.bf16 %v1033_v4, %v1031_v45  ;;  %v9476_v46 = vcombine.low %v2220_v34, %v2223_v15  ;;  %v9349_v22 = vrot.slane %v2134_v36, 11  ;;  %v11327_v48 = vld [vmem:[#allocation2 + $0x204] sm:$0xf]  ;;  %v14231_v32 = vld [vmem:[#allocation2 + $0x21c] sm:$0xf]  ;;  %v6081_v45 = vpop.permute.xlu0 %6080 }
 0x256   : > { %9564 = vmatmul.mubr.msk.bf16.vlgmr.msra.gmra.mrb[0].mxu1 %vm728_vm4, %v9475_v13  ;;  %v6360_v13 = vsel %vm728_vm4, %v9768_v1, %v6079_v14  ;;  %v5300_v9 = vsel %vm12082_vm7, %v9657_v6, %v5299_v19  ;;  %v5303_v2 = vsel %vm12082_vm7, %v5301_v42, %v5302_v25  ;;  %v2229_v62 = vrot.slane %v2135_v31, 7  ;;  %v2136_v26 = vld [vmem:[#allocation2 + $0x200] sm:$0x8]  ;;  %v2137_v53 = vld [vmem:[#allocation2 + $0x208] sm:$0x7] }
 0x257   : > { %7606 = vmatpush1.bf16.msra.mxu1 %v11192_v16  ;;  %3995 = vmatprep.mubr.bf16.mxu1 %v16117_v17  ;;  %16121 = vst [vmem:[#allocation25_spill] sm:$0xff] %v14220_v50  ;;  %16122 = vst [vmem:[#allocation22_spill] sm:$0xff] %v14222_v38  ;;  %v5306_v33 = vrot.slane %v5153_v40, 6  ;;  %v11204_v16 = vld [vmem:[#allocation3 + $0x4a0] ss:$8 sps:$4 sm:$0xff]   ;;  %v2233_v57 = vrot.slane %v11327_v48, 7  ;;  %v9769_v19 = vcombine.low %v5300_v9, %v5303_v2 }
 0x258   : > { %7607 = vmatprep.subr.bf16.mxu1 %v11200_v7  ;;  %v2240_v59 = vrot.slane %v14231_v32, 7  ;;  %v2227_v58 = vsel %vm12347_vm11, %v9349_v22, %v2226_v44  ;;  %v2230_v18 = vsel %vm12347_vm11, %v2228_v41, %v2229_v62  ;;  %v9658_v7 = vrot.slane %v5152_v8, 10  ;;  %v11209_v1 = vld [vmem:[#allocation3 + $0x4b0] ss:$8 sps:$4 sm:$0xff]   ;;  %v14240_v34 = vld [vmem:[#allocation2 + $0x234] sm:$0xf] }
 0x259   : > { %v5308_v60 = vrot.slane %v5306_v33, 4  ;;  %v5309_v63 = vrot.slane %v5154_v20, 6  ;;  %v2247_v15 = vrot.slane %v14240_v34, 7  ;;  %v11217_v36 = vld [vmem:[%s15842_s4 + $0xc0] sm:$0xff]   ;;  %v2235_v4 = vrot.slane %v2233_v57, 4  ;;  %v16129_v32 = vld [vmem:[#allocation26_spill] sm:$0xff] }
 0x25a   : > { %7204 = vmatmul.mubr.bf16.gmra.mrb[108].mxu0 %v6296_v29  ;;  %v6364_v14 = vsel %vm728_vm4, %v9769_v19, %v6081_v45  ;;  %v9477_v6 = vcombine.low %v2227_v58, %v2230_v18  ;;  %v5156_v42 = vld [vmem:[#allocation2 + $0x3ac] sm:$0xf]  ;;  %v5307_v25 = vsel %vm12082_vm7, %v9658_v7, %v5306_v33  ;;  %v9350_v31 = vrot.slane %v2136_v26, 11  ;;  %v14263_v2 = vld [vmem:[#allocation2 + $0x264] sm:$0xf] }
 0x25b   : > { %7608 = vmatpush1.bf16.msra.mxu1 %v11198_v56  ;;  %7213 = vmatprep.mubr.bf16.mxu0 %v6360_v13  ;;  %v5919_v21 = vpop.permute.xlu1 %5918  ;;  %v5310_v56 = vsel %vm12082_vm7, %v5308_v60, %v5309_v63  ;;  %v2236_v40 = vrot.slane %v2137_v53, 7  ;;  %v5313_v12 = vrot.slane %v5156_v42, 6  ;;  %v5155_v13 = vld [vmem:[#allocation2 + $0x3a8] sm:$0xc]  ;;  %v14260_v22 = vld [vmem:[#allocation2 + $0x24c] sm:$0xf] }
 0x25c   : > { %7609 = vmatprep.subr.bf16.mxu1 %v11206_v43  ;;  %v6299_v44 = vsel %vm728_vm4, %v14038_v37, %v5919_v21  ;;  %v2242_v37 = vrot.slane %v2240_v59, 4  ;;  %v14257_v43 = vrot.slane %v2247_v15, 4  ;;  %v9770_v41 = vcombine.low %v5307_v25, %v5310_v56  ;;  %v2138_v20 = vld [vmem:[#allocation2 + $0x218] sm:$0x8]  ;;  %v14273_v26 = vld [vmem:[#allocation2 + $0x27c] sm:$0xf] }
 0x25d   : > { %v2254_v9 = vrot.slane %v14260_v22, 7  ;;  %v15901_v62 = vrot.slane %v14263_v2, 7  ;;  %v2234_v8 = vsel %vm12347_vm11, %v9350_v31, %v2233_v57  ;;  %v2237_v33 = vsel %vm12347_vm11, %v2235_v4, %v2236_v40  ;;  %v14276_v18 = vld [vmem:[#allocation2 + $0x294] sm:$0xf]  ;;  %v14280_v63 = vld [vmem:[#allocation2 + $0x2ac] sm:$0xf] }
 0x25e   : > { %9565 = vmatmul.mubr.msk.bf16.gmra.mrb[4].mxu1 %vm728_vm4, %v9476_v46  ;;  %v5157_v46 = vld [vmem:[#allocation2 + $0x3b0] sm:$0x3]  ;;  %v9659_v21 = vrot.slane %v5155_v13, 10  ;;  %v5315_v19 = vrot.slane %v5313_v12, 4  ;;  %v15900_v45 = vrot.slane %v14273_v26, 7  ;;  %v15899_v57 = vrot.slane %v14276_v18, 7 }
 0x25f   : > { %4005 = vmatprep.mubr.bf16.mxu1 %v16117_v17  ;;  %7610 = vmatpush1.bf16.msra.mxu1 %v11204_v16  ;;  %v2139_v16 = vld [vmem:[#allocation2 + $0x220] sm:$0x7]  ;;  %v5316_v58 = vrot.slane %v5157_v46, 6  ;;  %v9478_v60 = vcombine.low %v2234_v8, %v2237_v33  ;;  %v15898_v53 = vrot.slane %v14280_v63, 7  ;;  %v14289_v4 = vrot.slane %v2254_v9, 4  ;;  %v16126_v25 = vld [vmem:[#allocation16_spill] sm:$0xff] }
 0x260   : > { %7611 = vmatprep.subr.bf16.mxu1 %v11211_v51  ;;  %v14301_v56 = vadd.f32 %v16126_v25, %v13613_v28  ;;  %v5314_v31 = vsel %vm12082_vm7, %v9659_v21, %v5313_v12  ;;  %v16127_v13 = vld [vmem:[#allocation36_spill] sm:$0xff]  ;;  %v16128_v8 = vld [vmem:[#allocation21_spill] sm:$0xff]  ;;  %v14342_v25 = vadd.f32 %v16129_v32, %v13773_v39  ;;  %v14433_v50 = vld [vmem:[#allocation2 + $0x2ac] sm:$0xc] }
 0x261   : > { %v5317_v40 = vsel %vm12082_vm7, %v5315_v19, %v5316_v58  ;;  %v14317_v46 = vadd.f32 %v16127_v13, %v13773_v39  ;;  %v14321_v33 = vadd.f32 %v16128_v8, %v13613_v28  ;;  %v14326_v12 = vrot.slane %v15898_v53, 4  ;;  %v2141_v19 = vld [vmem:[#allocation2 + $0x238] sm:$0x7]  ;;  %v5351_v8 = vld [vmem:[#allocation2 + $0x250] sm:$0xf] }
 0x262   : > { %7214 = vmatmul.mubr.bf16.gmra.mrb[112].mxu0 %v6299_v44  ;;  %v9351_v44 = vrot.slane %v2138_v20, 11  ;;  %v9771_v21 = vcombine.low %v5314_v31, %v5317_v40  ;;  %v2250_v13 = vrot.slane %v2141_v19, 7  ;;  %v16132_v53 = vld [vmem:[#allocation27_spill] sm:$0xff]  ;;  %v5448_v19 = vrot.slane %v5351_v8, 6  ;;  %v14376_v8 = vld [vmem:[#allocation2 + $0x264] sm:$0xc] }
 0x263   : > { %7612 = vmatpush1.bf16.msra.mxu1 %v11209_v1  ;;  %7223 = vmatprep.mubr.bf16.mxu0 %v6364_v14  ;;  %v5921_v29 = vpop.permute.xlu1 %5920  ;;  %v14293_v14 = vrot.slane %v15901_v62, 4  ;;  %v5350_v62 = vld [vmem:[#allocation2 + $0x24c] sm:$0xc]  ;;  %v14382_v34 = vld [vmem:[#allocation2 + $0x280] sm:$0xf]  ;;  %v16140_v38 = vmax.f32 %v14321_v33, 0.0 }
 0x264   : > { %10102 = vmatprep.subr.bf16.mxu1 %v11217_v36  ;;  %v6302_v51 = vsel %vm728_vm4, %v14098_v30, %v5921_v29  ;;  %v6083_v48 = vpop.permute.xlu0 %6082  ;;  %v16124_v30 = vld [vmem:[#allocation17_spill] sm:$0xff]  ;;  %v2243_v36 = vrot.slane %v2139_v16, 7  ;;  %v14309_v29 = vrot.slane %v15900_v45, 4  ;;  %v2241_v16 = vsel %vm12347_vm11, %v9351_v44, %v2240_v59  ;;  %v16130_v44 = vld [vmem:[#allocation20_spill] sm:$0xff]  ;;  %v11213_v33 = vld [vmem:[%s15842_s4 + $0x8] sm:$0xff]  }
 0x265   : > { %v6368_v7 = vsel %vm728_vm4, %v9770_v41, %v6083_v48  ;;  %v14285_v1 = vadd.f32 %v16124_v30, %v13773_v39  ;;  %v14313_v41 = vrot.slane %v15899_v57, 4  ;;  %v2140_v48 = vld [vmem:[#allocation2 + $0x230] sm:$0x8]  ;;  %v14354_v57 = vadd.f32 %v16132_v53, %v13613_v28  ;;  %v14394_v30 = vld [vmem:[#allocation2 + $0x278] sm:$0x8] }
 0x266   : > { %9566 = vmatmul.mubr.msk.bf16.gmra.mrb[8].mxu1 %vm728_vm4, %v9477_v6  ;;  %v16125_v6 = vld [vmem:[#allocation19_spill] sm:$0xff]  ;;  %v9352_v40 = vrot.slane %v2140_v48, 11  ;;  %v14396_v58 = vld [vmem:[#allocation2 + $0x280] sm:$0x7]  ;;  %v5462_v22 = vrot.slane %v14382_v34, 6 }
 0x267   : > { %4015 = vmatprep.mubr.bf16.mxu1 %v16117_v17  ;;  %v14297_v42 = vadd.f32 %v16125_v6, %v13773_v39  ;;  %v5352_v48 = vld [vmem:[#allocation2 + $0x254] sm:$0x3]  ;;  %v5450_v6 = vrot.slane %v5448_v19, 4  ;;  %v14425_v34 = vld [vmem:[#allocation2 + $0x290] sm:$0x8] }
 0x26a   : > { %7224 = vmatmul.mubr.bf16.gmra.mrb[116].mxu0 %v6302_v51  ;;  %v2244_v51 = vsel %vm12347_vm11, %v2242_v37, %v2243_v36  ;;  %v14346_v37 = vadd.f32 %v16130_v44, %v13613_v28  ;;  %v16131_v36 = vld [vmem:[#allocation23_spill] sm:$0xff]  ;;  %v16133_v44 = vld [vmem:[#allocation33_spill] sm:$0xff]  ;;  %v2142_v28 = vld [vmem:[#allocation2 + $0x248] sm:$0x8] }
 0x26b   : > { %7233 = vmatprep.mubr.bf16.mxu0 %v6368_v7  ;;  %v9479_v59 = vcombine.low %v2241_v16, %v2244_v51  ;;  %v14350_v31 = vadd.f32 %v16131_v36, %v13773_v39  ;;  %v14362_v36 = vadd.f32 %v16133_v44, %v13773_v39  ;;  %v2251_v39 = vsel %vm12347_vm11, %v14257_v43, %v2250_v13  ;;  %v2144_v13 = vld [vmem:[#allocation2 + $0x260] sm:$0x8]  ;;  %v2145_v7 = vld [vmem:[#allocation2 + $0x268] sm:$0x7] }
 0x26c   : > { %v5451_v44 = vrot.slane %v5352_v48, 6  ;;  %v9353_v53 = vrot.slane %v2142_v28, 11  ;;  %v14392_v28 = vld [vmem:[#allocation2 + $0x284] sm:$0x3] }
 0x26d   : > { %v16141_v61 = vmax.f32 %v14350_v31, 0.0 }
 0x26e   : > { %9567 = vmatmul.mubr.msk.bf16.gmra.mrb[12].mxu1 %vm728_vm4, %v9478_v60  ;;  %v6085_v60 = vpop.permute.xlu0 %6084 }
 0x26f   : > { %4025 = vmatprep.mubr.bf16.mxu1 %v16117_v17  ;;  %v6372_v32 = vsel %vm728_vm4, %v9771_v21, %v6085_v60  ;;  %v980_v60 = vmax.f32 %v14354_v57, 0.0  ;;  %v14384_v21 = vld [vmem:[#allocation2 + $0x298] sm:$0xf]  ;;  %v14386_v57 = vld [vmem:[#allocation2 + $0x27c] sm:$0xc] }
 0x271   : > { %v5923_v45 = vpop.permute.xlu1 %5922 }
 0x272   : > { %v6305_v16 = vsel %vm728_vm4, %v14144_v11, %v5923_v45  ;;  %v2248_v11 = vsel %vm12347_vm11, %v9352_v40, %v2247_v15  ;;  %v2143_v45 = vld [vmem:[#allocation2 + $0x250] sm:$0x7] }
 0x273   : > { %7234 = vmatmul.mubr.bf16.gmra.mrb[120].mxu0 %v6305_v16  ;;  %v14378_v16 = vld [vmem:[#allocation2 + $0x268] sm:$0xf]  ;;  %v9480_v40 = vcombine.low %v2248_v11, %v2251_v39  ;;  %v2257_v43 = vrot.slane %v2143_v45, 7  ;;  %v2255_v39 = vsel %vm12347_vm11, %v9353_v53, %v2254_v9  ;;  %v14406_v45 = vld [vmem:[#allocation2 + $0x294] sm:$0xc]  ;;  %v9354_v53 = vrot.slane %v2144_v13, 11 }
 0x274   : > { %7243 = vmatprep.mubr.bf16.mxu0 %v6372_v32  ;;  %v14380_v32 = vld [vmem:[#allocation2 + $0x26c] sm:$0x3]  ;;  %v5455_v48 = vrot.slane %v14378_v16, 6  ;;  %v5452_v16 = vsel %vm12082_vm7, %v5450_v6, %v5451_v44  ;;  %v14421_v6 = vld [vmem:[#allocation2 + $0x2b0] sm:$0xf]  ;;  %v5465_v44 = vrot.slane %v14392_v28, 6 }
 0x275   : > { %v5464_v13 = vrot.slane %v5462_v22, 4 }
 0x276   : > { %9568 = vmatmul.mubr.msk.bf16.gmra.mrb[16].mxu1 %vm728_vm4, %v9479_v59  ;;  %v9660_v59 = vrot.slane %v5350_v62, 10  ;;  %v981_v62 = vmax.f32 %v14362_v36, 0.0  ;;  %v9661_v36 = vrot.slane %v14376_v8, 10  ;;  %v2264_v8 = vrot.slane %v2145_v7, 7 }
 0x277   : > { %4035 = vmatprep.mubr.bf16.mxu1 %v16117_v17  ;;  %v16134_v7 = vrot.slane %v14384_v21, 6 }
 0x278   : > { %v5925_v15 = vpop.permute.xlu1 %5924  ;;  %v5449_v11 = vsel %vm12082_vm7, %v9660_v59, %v5448_v19  ;;  %v2258_v19 = vsel %vm12347_vm11, %v14289_v4, %v2257_v43  ;;  %v14415_v59 = vld [vmem:[#allocation2 + $0x29c] sm:$0x3]  ;;  %v9355_v4 = vrot.slane %v14394_v30, 11  ;;  %v11208_v30 = vld [vmem:[%s15842_s4] sm:$0xff]   ;;  %v14463_v23 = vpack.c.bf16 %v981_v62, %v16141_v61  ;;  %v5364_v62 = vld [vmem:[#allocation2 + $0x2b4] sm:$0x3] }
 0x279   : > { %v6308_v51 = vsel %vm728_vm4, %v14173_v49, %v5925_v15  ;;  %v5458_v49 = vrot.slane %v14380_v32, 6  ;;  %v9662_v32 = vrot.slane %v14386_v57, 10  ;;  %v14427_v15 = vld [vmem:[#allocation2 + $0x298] sm:$0x7]  ;;  %v9788_v20 = vcombine.low %v5449_v11, %v5452_v16 }
 0x27a   : > { %v9481_v9 = vcombine.low %v2255_v39, %v2258_v19  ;;  %v5471_v57 = vrot.slane %v16134_v7, 4  ;;  %v5472_v28 = vrot.slane %v14415_v59, 6  ;;  %v16135_v11 = vmax.f32 %v14285_v1, 0.0 }
 0x27b   : > { %7244 = vmatmul.mubr.bf16.gmra.mrb[124].mxu0 %v6308_v51  ;;  %v5457_v51 = vrot.slane %v5455_v48, 4  ;;  %v16136_v39 = vmax.f32 %v14297_v42, 0.0  ;;  %v16137_v19 = vmax.f32 %v14317_v46, 0.0  ;;  %v16138_v7 = vmax.f32 %v14342_v25, 0.0 }
 0x27c   : > { %7286 = vmatprep.mubr.bf16.mxu0 %v16117_v17  ;;  %v16139_v59 = vmax.f32 %v14301_v56, 0.0  ;;  %v9356_v1 = vrot.slane %v14425_v34, 11  ;;  %v2278_v42 = vrot.slane %v14427_v15, 7  ;;  %v16142_v46 = vmax.f32 %v14346_v37, 0.0 }
 0x27d   : > { %v14447_v16 = vpack.c.bf16 %v16136_v39, %v16135_v11  ;;  %v14453_v43 = vpack.c.bf16 %v16138_v7, %v16137_v19  ;;  %v16143_v56 = vrot.slane %v14263_v2, 7  ;;  %v5459_v25 = vsel %vm12082_vm7, %v5457_v51, %v5458_v49  ;;  %v11225_v19 = vld [vmem:[%s15842_s4 + $0x28] sm:$0xff]  }
 0x27e   : > { %9569 = vmatmul.mubr.msk.bf16.gmra.mrb[20].mxu1 %vm728_vm4, %v9480_v40  ;;  %v2271_v40 = vrot.slane %v14396_v58, 7  ;;  %v11212_v58 = vld [vmem:[%s15842_s4 + $0x48] sm:$0xff]   ;;  %v14459_v55 = vpack.c.bf16 %v16140_v38, %v16139_v59  ;;  %v14469_v11 = vpack.c.bf16 %v980_v60, %v16142_v46  ;;  %v5456_v38 = vsel %vm12082_vm7, %v9661_v36, %v5455_v48  ;;  %v11214_v60 = vld [vmem:[%s15842_s4 + $0x50] sm:$0xff]  }
 0x27f   : > { %4045 = vmatprep.mubr.bf16.mxu1 %v16117_v17  ;;  %v2262_v61 = vsel %vm12347_vm11, %v9354_v53, %v16143_v56  ;;  %v9664_v2 = vrot.slane %v14433_v50, 10  ;;  %v16144_v37 = vrot.slane %v14421_v6, 6  ;;  %v2150_v48 = vld [vmem:[#allocation2 + $0x2a8] sm:$0x8]  ;;  %v9789_v36 = vcombine.low %v5456_v38, %v5459_v25  ;;  %v11216_v50 = vld [vmem:[%s15842_s4 + $0x58] sm:$0xff]   ;;  %v11227_v38 = vld [vmem:[%s15842_s4 + $0x70] sm:$0xff]  }
 0x280   : > { %v5479_v51 = vrot.slane %v5364_v62, 6  ;;  %v9357_v53 = vrot.slane %v2150_v48, 11  ;;  %v5466_v34 = vsel %vm12082_vm7, %v5464_v13, %v5465_v44  ;;  %v16145_v15 = vrot.slane %v14273_v26, 7  ;;  %v2151_v44 = vld [vmem:[#allocation2 + $0x2b0] sm:$0x7]  ;;  %v11222_v26 = vld [vmem:[%s15842_s4 + $0x20] sm:$0xff]  }
 0x281   : > { %v5478_v31 = vrot.slane %v16144_v37, 4  ;;  %v5473_v7 = vsel %vm12082_vm7, %v5471_v57, %v5472_v28  ;;  %v16148_v59 = vrot.slane %v14276_v18, 7  ;;  %v2285_v46 = vrot.slane %v2151_v44, 7  ;;  %v5366_v28 = vld [vmem:[#allocation2 + $0x2c8] sm:$0xf]  ;;  %v11229_v18 = vld [vmem:[%s15842_s4 + $0x30] sm:$0xff]  }
 0x282   : > { %v5365_v6 = vld [vmem:[#allocation2 + $0x2c4] sm:$0xc]  ;;  %v5367_v62 = vld [vmem:[#allocation2 + $0x2cc] sm:$0x3]  ;;  %v5483_v48 = vrot.slane %v5366_v28, 6 }
 0x283   : > { %9877 = vmatmul.mubr.msk.bf16.vlgmr.msra.gmra.mrb[64].mxu0 %vm728_vm4, %v9788_v20  ;;  %v2265_v20 = vsel %vm12347_vm11, %v14293_v14, %v2264_v8  ;;  %v5463_v14 = vsel %vm12082_vm7, %v9662_v32, %v5462_v22  ;;  %v11218_v8 = vld [vmem:[%s15842_s4 + $0x18] sm:$0xff]   ;;  %v2272_v22 = vsel %vm12347_vm11, %v14309_v29, %v2271_v40  ;;  %v11220_v32 = vld [vmem:[%s15842_s4 + $0x60] sm:$0xff]   ;;  %v16146_v29 = vrot.slane %v14384_v21, 6 }
 0x284   : > { %7296 = vmatprep.mubr.bf16.mxu0 %v16117_v17  ;;  %9991 = vmatpush3.bf16.msra.mxu0 %v11208_v30  ;;  %v9482_v49 = vcombine.low %v2262_v61, %v2265_v20  ;;  %v2269_v30 = vsel %vm12347_vm11, %v9355_v4, %v16145_v15  ;;  %v11224_v4 = vld [vmem:[%s15842_s4 + $0x68] sm:$0xff]   ;;  %v16147_v40 = vrot.slane %v14406_v45, 10  ;;  %v2276_v21 = vsel %vm12347_vm11, %v9356_v1, %v16148_v59  ;;  %v11335_v1 = vld [vmem:[#allocation2 + $0x2c4] sm:$0xf] }
 0x285   : > { %9992 = vmatprep.subr.bf16.mxu0 %v11212_v58  ;;  %v9790_v58 = vcombine.low %v5463_v14, %v5466_v34  ;;  %v9483_v39 = vcombine.low %v2269_v30, %v2272_v22  ;;  %v2279_v45 = vsel %vm12347_vm11, %v14313_v41, %v2278_v42  ;;  %v11230_v41 = vld [vmem:[%s15842_s4 + $0x78] sm:$0xff]   ;;  %v2289_v42 = vrot.slane %v11335_v1, 7 }
 0x286   : > { %9570 = vmatmul.mubr.msk.bf16.gmra.mrb[24].mxu1 %vm728_vm4, %v9481_v9  ;;  %v11215_v9 = vld [vmem:[%s15842_s4 + $0x10] sm:$0xff]   ;;  %v5470_v13 = vsel %vm12082_vm7, %v16147_v40, %v16146_v29  ;;  %v9484_v57 = vcombine.low %v2276_v21, %v2279_v45  ;;  %v16149_v61 = vmov %v16144_v37  ;;  %v5480_v25 = vsel %vm12082_vm7, %v5478_v31, %v5479_v51  ;;  %v11231_v31 = vld [vmem:[%s15842_s4 + $0x38] sm:$0xff]   ;;  %v2155_v40 = vld [vmem:[#allocation2 + $0x2e0] sm:$0x7] }
 0x287   : > { %4055 = vmatprep.mubr.bf16.mxu1 %v16117_v17  ;;  %v9791_v56 = vcombine.low %v5470_v13, %v5473_v7  ;;  %v16150_v20 = vrot.slane %v14280_v63, 7  ;;  %v5485_v14 = vrot.slane %v5483_v48, 4  ;;  %v5486_v51 = vrot.slane %v5367_v62, 6  ;;  %v11336_v34 = vld [vmem:[#allocation2 + $0x2dc] sm:$0xf] }
 0x288   : > { %9993 = vmatpush3.bf16.msra.mxu0 %v11213_v33  ;;  %v5477_v33 = vsel %vm12082_vm7, %v9664_v2, %v16149_v61  ;;  %v2152_v2 = vld [vmem:[#allocation2 + $0x2c0] sm:$0x8]  ;;  %v2296_v15 = vrot.slane %v11336_v34, 7  ;;  %v2154_v29 = vld [vmem:[#allocation2 + $0x2d8] sm:$0x8] }
 0x289   : > { %9994 = vmatprep.subr.bf16.mxu0 %v11214_v60  ;;  %v2283_v37 = vsel %vm12347_vm11, %v9357_v53, %v16150_v20  ;;  %v2286_v60 = vsel %vm12347_vm11, %v14326_v12, %v2285_v46  ;;  %v9792_v63 = vcombine.low %v5477_v33, %v5480_v25  ;;  %v9358_v53 = vrot.slane %v2152_v2, 11  ;;  %v5369_v12 = vld [vmem:[#allocation2 + $0x2e0] sm:$0xf]  ;;  %v5371_v61 = vld [vmem:[#allocation2 + $0x2f4] sm:$0xc] }
 0x28a   : > { %v5487_v22 = vsel %vm12082_vm7, %v5485_v14, %v5486_v51  ;;  %v5490_v44 = vrot.slane %v5369_v12, 6  ;;  %v2298_v13 = vrot.slane %v2296_v15, 4  ;;  %v9359_v46 = vrot.slane %v2154_v29, 11  ;;  %v5373_v25 = vld [vmem:[#allocation2 + $0x2fc] sm:$0x3] }
 0x28b   : > { %9878 = vmatmul.mubr.msk.bf16.gmra.mrb[68].mxu0 %vm728_vm4, %v9789_v36  ;;  %v2153_v36 = vld [vmem:[#allocation2 + $0x2c8] sm:$0x7]  ;;  %v2156_v20 = vld [vmem:[#allocation2 + $0x2f0] sm:$0x8]  ;;  %v5374_v12 = vld [vmem:[#allocation2 + $0x30c] sm:$0xc] }
 0x28c   : > { %7306 = vmatprep.mubr.bf16.mxu0 %v16117_v17  ;;  %9995 = vmatpush3.bf16.msra.mxu0 %v11215_v9  ;;  %v9485_v9 = vcombine.low %v2283_v37, %v2286_v60  ;;  %v5492_v21 = vrot.slane %v5490_v44, 4  ;;  %v2297_v1 = vsel %vm12347_vm11, %v9359_v46, %v2296_v15  ;;  %v2157_v37 = vld [vmem:[#allocation2 + $0x2f8] sm:$0x7]  ;;  %v5376_v15 = vld [vmem:[#allocation2 + $0x314] sm:$0x3] }
 0x28d   : > { %9996 = vmatprep.subr.bf16.mxu0 %v11216_v50  ;;  %v9665_v50 = vrot.slane %v5365_v6, 10 }
 0x28e   : > { %9571 = vmatmul.mubr.msk.bf16.gmra.mrb[28].mxu1 %vm728_vm4, %v9482_v49  ;;  %v2291_v49 = vrot.slane %v2289_v42, 4 }
 0x28f   : > { %4065 = vmatprep.mubr.bf16.mxu1 %v16117_v17  ;;  %v5484_v30 = vsel %vm12082_vm7, %v9665_v50, %v5483_v48  ;;  %v9667_v48 = vrot.slane %v5371_v61, 10 }
 0x290   : > { %9997 = vmatpush3.bf16.msra.mxu0 %v11218_v8  ;;  %v2292_v8 = vrot.slane %v2153_v36, 7  ;;  %v5500_v36 = vrot.slane %v5373_v25, 6 }
 0x291   : > { %9998 = vmatprep.subr.bf16.mxu0 %v11220_v32  ;;  %v2290_v32 = vsel %vm12347_vm11, %v9358_v53, %v2289_v42 }
 0x293   : > { %9879 = vmatmul.mubr.msk.bf16.gmra.mrb[72].mxu0 %vm728_vm4, %v9790_v58  ;;  %v2293_v58 = vsel %vm12347_vm11, %v2291_v49, %v2292_v8  ;;  %v2306_v49 = vrot.slane %v2157_v37, 7 }
 0x294   : > { %7316 = vmatprep.mubr.bf16.mxu0 %v16117_v17  ;;  %9999 = vmatpush3.bf16.msra.mxu0 %v11222_v26  ;;  %v11237_v26 = vld [vmem:[%s15842_s4 + $0x140] sm:$0xff]   ;;  %v9486_v7 = vcombine.low %v2290_v32, %v2293_v58 }
 0x295   : > { %10000 = vmatprep.subr.bf16.mxu0 %v11224_v4  ;;  %v5370_v4 = vld [vmem:[#allocation2 + $0x2e4] sm:$0x3] }
 0x296   : > { %9572 = vmatmul.mubr.msk.bf16.gmra.mrb[32].mxu1 %vm728_vm4, %v9483_v39  ;;  %v5368_v39 = vld [vmem:[#allocation2 + $0x2dc] sm:$0xc]  ;;  %v5493_v45 = vrot.slane %v5370_v4, 6  ;;  %v5507_v4 = vrot.slane %v5376_v15, 6  ;;  %v5385_v15 = vld [vmem:[#allocation2 + $0x35c] sm:$0x3] }
 0x297   : > { %4075 = vmatprep.mubr.bf16.mxu1 %v16117_v17  ;;  %v9666_v59 = vrot.slane %v5368_v39, 10 }
 0x298   : > { %10001 = vmatpush3.bf16.msra.mxu0 %v11225_v19  ;;  %v9793_v19 = vcombine.low %v5484_v30, %v5487_v22  ;;  %v2158_v30 = vld [vmem:[#allocation2 + $0x308] sm:$0x8]  ;;  %v2159_v22 = vld [vmem:[#allocation2 + $0x310] sm:$0x7] }
 0x299   : > { %10002 = vmatprep.subr.bf16.mxu0 %v11227_v38  ;;  %v2299_v38 = vrot.slane %v2155_v40, 7  ;;  %v9361_v29 = vrot.slane %v2158_v30, 11  ;;  %v2313_v40 = vrot.slane %v2159_v22, 7 }
 0x29b   : > { %9880 = vmatmul.mubr.msk.bf16.gmra.mrb[76].mxu0 %vm728_vm4, %v9791_v56  ;;  %v5372_v56 = vld [vmem:[#allocation2 + $0x2f8] sm:$0xf]  ;;  %v2300_v42 = vsel %vm12347_vm11, %v2298_v13, %v2299_v38  ;;  %v5378_v13 = vld [vmem:[#allocation2 + $0x328] sm:$0xf]  ;;  %v5377_v38 = vld [vmem:[#allocation2 + $0x324] sm:$0xc] }
 0x29c   : > { %7326 = vmatprep.mubr.bf16.mxu0 %v16117_v17  ;;  %10003 = vmatpush3.bf16.msra.mxu0 %v11229_v18  ;;  %v5491_v18 = vsel %vm12082_vm7, %v9666_v59, %v5490_v44  ;;  %v5497_v33 = vrot.slane %v5372_v56, 6  ;;  %v9487_v62 = vcombine.low %v2297_v1, %v2300_v42  ;;  %v9668_v44 = vrot.slane %v5374_v12, 10 }
 0x29d   : > { %10004 = vmatprep.subr.bf16.mxu0 %v11230_v41  ;;  %v5494_v41 = vsel %vm12082_vm7, %v5492_v21, %v5493_v45  ;;  %v5511_v56 = vrot.slane %v5378_v13, 6  ;;  %v9669_v61 = vrot.slane %v5377_v38, 10 }
 0x29e   : > { %9573 = vmatmul.mubr.msk.bf16.gmra.mrb[36].mxu1 %vm728_vm4, %v9484_v57  ;;  %v11337_v57 = vld [vmem:[#allocation2 + $0x2f4] sm:$0xf]  ;;  %v9794_v6 = vcombine.low %v5491_v18, %v5494_v41  ;;  %v5499_v2 = vrot.slane %v5497_v33, 4  ;;  %v5498_v14 = vsel %vm12082_vm7, %v9667_v48, %v5497_v33  ;;  %v2161_v18 = vld [vmem:[#allocation2 + $0x328] sm:$0x7] }
 0x29f   : > { %4085 = vmatprep.mubr.bf16.mxu1 %v16117_v17  ;;  %v2303_v28 = vrot.slane %v11337_v57, 7  ;;  %v5379_v57 = vld [vmem:[#allocation2 + $0x32c] sm:$0x3]  ;;  %v5513_v33 = vrot.slane %v5511_v56, 4  ;;  %v2320_v37 = vrot.slane %v2161_v18, 7  ;;  %v11232_v18 = vld [vmem:[%s15842_s4 + $0xd8] sm:$0xff]  }
 0x2a0   : > { %10005 = vmatpush3.bf16.msra.mxu0 %v11231_v31  ;;  %v9360_v31 = vrot.slane %v2156_v20, 11  ;;  %v5501_v51 = vsel %vm12082_vm7, %v5499_v2, %v5500_v36  ;;  %v5514_v25 = vrot.slane %v5379_v57, 6  ;;  %v5390_v57 = vld [vmem:[#allocation2 + $0x388] sm:$0xf] }
 0x2a1   : > { %10214 = vmatprep.subr.bf16.mxu0 %v11237_v26  ;;  %v2305_v60 = vrot.slane %v2303_v28, 4  ;;  %v9795_v58 = vcombine.low %v5498_v14, %v5501_v51 }
 0x2a2   : > { %v2304_v53 = vsel %vm12347_vm11, %v9360_v31, %v2303_v28  ;;  %v2160_v28 = vld [vmem:[#allocation2 + $0x320] sm:$0x8]  ;;  %v5380_v31 = vld [vmem:[#allocation2 + $0x33c] sm:$0xc] }
 0x2a3   : > { %9881 = vmatmul.mubr.msk.bf16.gmra.mrb[80].mxu0 %vm728_vm4, %v9792_v63  ;;  %v5375_v63 = vld [vmem:[#allocation2 + $0x310] sm:$0xf]  ;;  %v2307_v8 = vsel %vm12347_vm11, %v2305_v60, %v2306_v49  ;;  %v9362_v20 = vrot.slane %v2160_v28, 11  ;;  %v5381_v60 = vld [vmem:[#allocation2 + $0x340] sm:$0xf] }
 0x2a4   : > { %7336 = vmatprep.mubr.bf16.mxu0 %v16117_v17  ;;  %v5504_v34 = vrot.slane %v5375_v63, 6  ;;  %v9488_v39 = vcombine.low %v2304_v53, %v2307_v8  ;;  %v5518_v36 = vrot.slane %v5381_v60, 6  ;;  %v5382_v49 = vld [vmem:[#allocation2 + $0x344] sm:$0x3]  ;;  %v5384_v53 = vld [vmem:[#allocation2 + $0x358] sm:$0xf] }
 0x2a5   : > { %v5521_v51 = vrot.slane %v5382_v49, 6  ;;  %v5525_v12 = vrot.slane %v5384_v53, 6  ;;  %v11228_v28 = vld [vmem:[%s15842_s4 + $0x90] sm:$0xff]   ;;  %v11238_v53 = vld [vmem:[%s15842_s4 + $0xa8] sm:$0xff]  }
 0x2a6   : > { %9574 = vmatmul.mubr.msk.bf16.gmra.mrb[40].mxu1 %vm728_vm4, %v9485_v9  ;;  %v11338_v9 = vld [vmem:[#allocation2 + $0x30c] sm:$0xf]  ;;  %v5506_v26 = vrot.slane %v5504_v34, 4  ;;  %v5505_v59 = vsel %vm12082_vm7, %v9668_v44, %v5504_v34  ;;  %v5520_v14 = vrot.slane %v5518_v36, 4  ;;  %v5383_v34 = vld [vmem:[#allocation2 + $0x354] sm:$0xc] }
 0x2a7   : > { %4095 = vmatprep.mubr.bf16.mxu1 %v16117_v17  ;;  %v2310_v50 = vrot.slane %v11338_v9, 7  ;;  %v9671_v22 = vrot.slane %v5383_v34, 10  ;;  %v5387_v44 = vld [vmem:[#allocation2 + $0x370] sm:$0xf] }
 0x2a8   : > { %v5508_v21 = vsel %vm12082_vm7, %v5506_v26, %v5507_v4  ;;  %v5522_v8 = vsel %vm12082_vm7, %v5520_v14, %v5521_v51  ;;  %v11221_v26 = vld [vmem:[%s15842_s4 + $0xc8] sm:$0xff]   ;;  %v11340_v4 = vld [vmem:[%s11925_s14] sm:$0xff]   ;;  %v5532_v13 = vrot.slane %v5387_v44, 6  ;;  %v11342_v49 = vld [vmem:[%s11925_s14 + $0x10] sm:$0xff]  }
 0x2a9   : > { %v2312_v32 = vrot.slane %v2310_v50, 4  ;;  %v2311_v45 = vsel %vm12347_vm11, %v9361_v29, %v2310_v50  ;;  %v9796_v1 = vcombine.low %v5505_v59, %v5508_v21  ;;  %v9670_v50 = vrot.slane %v5380_v31, 10  ;;  %v5388_v59 = vld [vmem:[#allocation2 + $0x374] sm:$0x3]  ;;  %v11236_v31 = vld [vmem:[%s15842_s4 + $0xe8] sm:$0xff]  }
 0x2aa   : > { %v5526_v29 = vsel %vm12082_vm7, %v9671_v22, %v5525_v12  ;;  %v11226_v21 = vld [vmem:[%s15842_s4 + $0xd0] sm:$0xff]   ;;  %v5534_v38 = vrot.slane %v5532_v13, 4  ;;  %v5392_v14 = vld [vmem:[#allocation2 + $0x39c] sm:$0xc]  ;;  %v5394_v51 = vld [vmem:[#allocation2 + $0x3a4] sm:$0x3] }
 0x2ab   : > { %9882 = vmatmul.mubr.msk.bf16.gmra.mrb[84].mxu0 %vm728_vm4, %v9793_v19  ;;  %v11339_v19 = vld [vmem:[#allocation2 + $0x324] sm:$0xf]  ;;  %v2314_v46 = vsel %vm12347_vm11, %v2312_v32, %v2313_v40  ;;  %v5519_v24 = vsel %vm12082_vm7, %v9670_v50, %v5518_v36  ;;  %v5527_v32 = vrot.slane %v5525_v12, 4  ;;  %v9674_v12 = vrot.slane %v5392_v14, 10  ;;  %v11242_v22 = vld [vmem:[%s15842_s4 + $0xb0] sm:$0xff]  }
 0x2ac   : > { %7346 = vmatprep.mubr.bf16.mxu0 %v16117_v17  ;;  %v9489_v42 = vcombine.low %v2311_v45, %v2314_v46  ;;  %v9798_v30 = vcombine.low %v5519_v24, %v5522_v8  ;;  %v11235_v36 = vld [vmem:[%s15842_s4 + $0xa0] sm:$0xff]   ;;  %v11240_v24 = vld [vmem:[%s15842_s4 + $0xf0] sm:$0xff]  }
 0x2ae   : > { %9575 = vmatmul.mubr.msk.bf16.gmra.mrb[44].mxu1 %vm728_vm4, %v9486_v7  ;;  %v2317_v7 = vrot.slane %v11339_v19, 7  ;;  %v11223_v19 = vld [vmem:[%s15842_s4 + $0x88] sm:$0xff]  }
 0x2af   : > { %4105 = vmatprep.mubr.bf16.mxu1 %v16117_v17 }
 0x2b0   : > { %v2319_v41 = vrot.slane %v2317_v7, 4  ;;  %v2318_v48 = vsel %vm12347_vm11, %v9362_v20, %v2317_v7  ;;  %v5386_v7 = vld [vmem:[#allocation2 + $0x36c] sm:$0xc]  ;;  %v11233_v20 = vld [vmem:[%s15842_s4 + $0x98] sm:$0xff]  }
 0x2b1   : > { %v9672_v46 = vrot.slane %v5386_v7, 10 }
 0x2b2   : > { %v2321_v2 = vsel %vm12347_vm11, %v2319_v41, %v2320_v37  ;;  %v11341_v41 = vld [vmem:[%s11925_s14 + $0x8] sm:$0xff]   ;;  %v11234_v37 = vld [vmem:[%s15842_s4 + $0xe0] sm:$0xff]  }
 0x2b3   : > { %9883 = vmatmul.mubr.msk.bf16.gmra.mrb[88].mxu0 %vm728_vm4, %v9794_v6  ;;  %v5512_v6 = vsel %vm12082_vm7, %v9669_v61, %v5511_v56  ;;  %v9490_v9 = vcombine.low %v2318_v48, %v2321_v2  ;;  %v5535_v56 = vrot.slane %v5388_v59, 6  ;;  %v5539_v61 = vrot.slane %v5390_v57, 6  ;;  %v5393_v2 = vld [vmem:[#allocation2 + $0x3a0] sm:$0xf]  ;;  %v11345_v57 = vld [vmem:[%s11925_s14 + $0x28] sm:$0xff]  }
 0x2b4   : > { %7356 = vmatprep.mubr.bf16.mxu0 %v16117_v17  ;;  %v5546_v50 = vrot.slane %v5393_v2, 6  ;;  %v11349_v2 = vld [vmem:[%s11925_s14 + $0x48] sm:$0xff]  }
 0x2b6   : > { %9576 = vmatmul.mubr.msk.bf16.gmra.mrb[48].mxu1 %vm728_vm4, %v9487_v62  ;;  %v5515_v62 = vsel %vm12082_vm7, %v5513_v33, %v5514_v25  ;;  %v5389_v33 = vld [vmem:[#allocation2 + $0x384] sm:$0xc]  ;;  %v5391_v25 = vld [vmem:[#allocation2 + $0x38c] sm:$0x3]  ;;  %v5548_v34 = vrot.slane %v5546_v50, 4 }
 0x2b7   : > { %4115 = vmatprep.mubr.bf16.mxu1 %v16117_v17  ;;  %v9797_v63 = vcombine.low %v5512_v6, %v5515_v62  ;;  %v9673_v6 = vrot.slane %v5389_v33, 10  ;;  %v5541_v62 = vrot.slane %v5539_v61, 4  ;;  %v5542_v48 = vrot.slane %v5391_v25, 6  ;;  %v11250_v33 = vld [vmem:[%s15842_s4 + $0x118] sm:$0xff]   ;;  %v11252_v25 = vld [vmem:[%s15842_s4 + $0x160] sm:$0xff]  }
 0x2bb   : > { %9884 = vmatmul.mubr.msk.bf16.gmra.mrb[92].mxu0 %vm728_vm4, %v9795_v58  ;;  %v5528_v58 = vrot.slane %v5385_v15, 6  ;;  %v5549_v15 = vrot.slane %v5394_v51, 6  ;;  %v16157_v51 = vld [vmem:[#allocation37_spill] sm:$0xff] }
 0x2bc   : > { %7366 = vmatprep.mubr.bf16.mxu0 %v16117_v17 }
 0x2bd   : > { %v5529_v40 = vsel %vm12082_vm7, %v5527_v32, %v5528_v58  ;;  %v11244_v32 = vld [vmem:[%s15842_s4 + $0xf8] sm:$0xff]   ;;  %v5550_v44 = vsel %vm12082_vm7, %v5548_v34, %v5549_v15 }
 0x2be   : > { %9577 = vmatmul.mubr.msk.bf16.gmra.mrb[52].mxu1 %vm728_vm4, %v9488_v39  ;;  %v11219_v39 = vld [vmem:[%s15842_s4 + $0x80] sm:$0xff]   ;;  %v9799_v45 = vcombine.low %v5526_v29, %v5529_v40  ;;  %v11343_v58 = vld [vmem:[%s11925_s14 + $0x18] sm:$0xff]  }
 0x2bf   : > { %4125 = vmatprep.mubr.bf16.mxu1 %v16117_v17  ;;  %v5397_v29 = vld [vmem:[#allocation2 + $0x3bc] sm:$0x3] }
 0x2c0   : > { %v11246_v40 = vld [vmem:[%s15842_s4 + $0xb8] sm:$0xff]  }
 0x2c3   : > { %9885 = vmatmul.mubr.msk.bf16.gmra.mrb[96].mxu0 %vm728_vm4, %v9796_v1  ;;  %v5533_v1 = vsel %vm12082_vm7, %v9672_v46, %v5532_v13  ;;  %v14734_v13 = vld [vmem:[%s15842_s4 + $0x1c0] sm:$0xff]  }
 0x2c4   : > { %7376 = vmatprep.mubr.bf16.mxu0 %v16117_v17 }
 0x2c6   : > { %9578 = vmatmul.mubr.msk.bf16.gmra.mrb[56].mxu1 %vm728_vm4, %v9489_v42  ;;  %v5536_v42 = vsel %vm12082_vm7, %v5534_v38, %v5535_v56 }
 0x2c7   : > { %4135 = vmatprep.mubr.bf16.mxu1 %v16117_v17  ;;  %v9800_v60 = vcombine.low %v5533_v1, %v5536_v42  ;;  %v11245_v1 = vld [vmem:[%s15842_s4 + $0x150] sm:$0xff]  }
 0x2c8   : > { %v11247_v42 = vld [vmem:[%s15842_s4 + $0x110] sm:$0xff]  }
 0x2cb   : > { %9886 = vmatmul.mubr.msk.bf16.gmra.mrb[100].mxu0 %vm728_vm4, %v9797_v63  ;;  %v5540_v63 = vsel %vm12082_vm7, %v9673_v6, %v5539_v61  ;;  %v11347_v61 = vld [vmem:[%s11925_s14 + $0x38] sm:$0xff]   ;;  %v11259_v6 = vld [vmem:[%s15842_s4 + $0x170] sm:$0xff]  }
 0x2cc   : > { %7386 = vmatprep.mubr.bf16.mxu0 %v16117_v17 }
 0x2ce   : > { %9579 = vmatmul.mubr.msk.bf16.gmra.mrb[60].mxu1 %vm728_vm4, %v9490_v9  ;;  %v5543_v9 = vsel %vm12082_vm7, %v5541_v62, %v5542_v48  ;;  %v11262_v62 = vld [vmem:[%s15842_s4 + $0x178] sm:$0xff]  }
 0x2cf   : > { %7637 = vmatprep.mubr.bf16.mxu1 %v16117_v17  ;;  %v9801_v8 = vcombine.low %v5540_v63, %v5543_v9  ;;  %v16153_v48 = vld [vmem:[#allocation28_spill] sm:$0xff]  ;;  %v16155_v63 = vld [vmem:[#allocation35_spill] sm:$0xff] }
 0x2d0   : > { %v11350_v9 = vld [vmem:[%s11925_s14 + $0x50] sm:$0xff]  }
 0x2d3   : > { %9887 = vmatmul.mubr.msk.bf16.gmra.mrb[104].mxu0 %vm728_vm4, %v9798_v30  ;;  %v5396_v30 = vld [vmem:[#allocation2 + $0x3b8] sm:$0xf] }
 0x2d4   : > { %7396 = vmatprep.mubr.bf16.mxu0 %v16117_v17 }
 0x2d6   : > { %9902 = vmatmul.mubr.msk.bf16.vlgmr.msra.gmra.mrb[64].mxu1 %vm728_vm4, %v11340_v4  ;;  %v5395_v4 = vld [vmem:[#allocation2 + $0x3b4] sm:$0xc] }
 0x2d7   : > { %10103 = vmatpush3.bf16.msra.mxu1 %v11219_v39  ;;  %7647 = vmatprep.mubr.bf16.mxu1 %v16117_v17  ;;  %v5547_v39 = vsel %vm12082_vm7, %v9674_v12, %v5546_v50  ;;  %v9675_v7 = vrot.slane %v5395_v4, 10  ;;  %v16156_v50 = vld [vmem:[#allocation31_spill] sm:$0xff]  ;;  %v11351_v4 = vld [vmem:[%s11925_s14 + $0x58] sm:$0xff]  }
 0x2d8   : > { %10104 = vmatprep.subr.bf16.mxu1 %v11221_v26  ;;  %v5553_v26 = vrot.slane %v5396_v30, 6 }
 0x2da   : > { %v5555_v59 = vrot.slane %v5553_v26, 4  ;;  %v5554_v46 = vsel %vm12082_vm7, %v9675_v7, %v5553_v26 }
 0x2db   : > { %10105 = vmatpush3.bf16.msra.mxu1 %v11223_v19  ;;  %9888 = vmatmul.mubr.msk.bf16.gmra.mrb[108].mxu0 %vm728_vm4, %v9799_v45  ;;  %v9802_v19 = vcombine.low %v5547_v39, %v5550_v44  ;;  %v11344_v45 = vld [vmem:[%s11925_s14 + $0x20] sm:$0xff]   ;;  %v16159_v39 = vld [vmem:[#allocation34_spill] sm:$0xff] }
 0x2dc   : > { %10106 = vmatprep.subr.bf16.mxu1 %v11226_v21  ;;  %7406 = vmatprep.mubr.bf16.mxu0 %v16117_v17  ;;  %v5556_v21 = vrot.slane %v5397_v29, 6  ;;  %v16160_v29 = vld [vmem:[#allocation40_spill] sm:$0xff] }
 0x2de   : > { %9903 = vmatmul.mubr.msk.bf16.gmra.mrb[68].mxu1 %vm728_vm4, %v11341_v41  ;;  %v5557_v38 = vsel %vm12082_vm7, %v5555_v59, %v5556_v21  ;;  %v11346_v41 = vld [vmem:[%s11925_s14 + $0x30] sm:$0xff]  }
 0x2df   : > { %7657 = vmatprep.mubr.bf16.mxu1 %v16117_v17  ;;  %10107 = vmatpush3.bf16.msra.mxu1 %v11228_v28  ;;  %v9803_v56 = vcombine.low %v5554_v46, %v5557_v38  ;;  %v11239_v28 = vld [vmem:[%s15842_s4 + $0x100] sm:$0xff]  }
 0x2e0   : > { %10108 = vmatprep.subr.bf16.mxu1 %v11232_v18  ;;  %v16151_v18 = vld [vmem:[#allocation18_spill] sm:$0xff] }
 0x2e3   : > { %10109 = vmatpush3.bf16.msra.mxu1 %v11233_v20  ;;  %9889 = vmatmul.mubr.msk.bf16.gmra.mrb[112].mxu0 %vm728_vm4, %v9800_v60  ;;  %v11348_v20 = vld [vmem:[%s11925_s14 + $0x40] sm:$0xff]   ;;  %v11257_v60 = vld [vmem:[%s15842_s4 + $0x128] sm:$0xff]  }
 0x2e4   : > { %10110 = vmatprep.subr.bf16.mxu1 %v11234_v37  ;;  %7416 = vmatprep.mubr.bf16.mxu0 %v16117_v17  ;;  %v16152_v37 = vld [vmem:[#allocation30_spill] sm:$0xff] }
 0x2e6   : > { %9904 = vmatmul.mubr.msk.bf16.gmra.mrb[72].mxu1 %vm728_vm4, %v11342_v49  ;;  %v9491_v49 = vld [vmem:[%s15841_s3 + $0x2] sm:$0x3] }
 0x2e7   : > { %7667 = vmatprep.mubr.bf16.mxu1 %v16117_v17  ;;  %10111 = vmatpush3.bf16.msra.mxu1 %v11235_v36  ;;  %v16154_v36 = vld [vmem:[#allocation29_spill] sm:$0xff]  ;;  %v14824_v14 = vrot.slane %v9491_v49, %v16156_v50 }
 0x2e8   : > { %10112 = vmatprep.subr.bf16.mxu1 %v11236_v31  ;;  %v11263_v31 = vld [vmem:[%s15842_s4 + $0x138] sm:$0xff]  }
 0x2eb   : > { %10113 = vmatpush3.bf16.msra.mxu1 %v11238_v53  ;;  %9890 = vmatmul.mubr.msk.bf16.gmra.mrb[116].mxu0 %vm728_vm4, %v9801_v8  ;;  %v16158_v53 = vld [vmem:[#allocation38_spill] sm:$0xff] }
 0x2ec   : > { %10114 = vmatprep.subr.bf16.mxu1 %v11240_v24  ;;  %7426 = vmatprep.mubr.bf16.mxu0 %v16117_v17  ;;  %v14828_v24 = vrot.slane %v9491_v49, %v16158_v53 }
 0x2ee   : > { %9905 = vmatmul.mubr.msk.bf16.gmra.mrb[76].mxu1 %vm728_vm4, %v11343_v58 }
 0x2ef   : > { %7677 = vmatprep.mubr.bf16.mxu1 %v16117_v17  ;;  %10115 = vmatpush3.bf16.msra.mxu1 %v11242_v22 }
 0x2f0   : > { %10116 = vmatprep.subr.bf16.mxu1 %v11244_v32 }
 0x2f3   : > { %10117 = vmatpush3.bf16.msra.mxu1 %v11246_v40  ;;  %9891 = vmatmul.mubr.msk.bf16.gmra.mrb[120].mxu0 %vm728_vm4, %v9802_v19 }
 0x2f4   : > { %10438 = vmatprep.subr.bf16.mxu1 %v14734_v13  ;;  %7436 = vmatprep.mubr.bf16.mxu0 %v16117_v17 }
 0x2f6   : > { %9906 = vmatmul.mubr.msk.bf16.gmra.mrb[80].mxu1 %vm728_vm4, %v11344_v45 }
 0x2f7   : > { %7687 = vmatprep.mubr.bf16.mxu1 %v16117_v17 }
 0x2fb   : > { %9892 = vmatmul.mubr.msk.bf16.gmra.mrb[124].mxu0 %vm728_vm4, %v9803_v56 }
 0x2fc   : > { %8445 = vmatprep.mubr.bf16.mxu0 %v14447_v16  ;;  %v11243_v16 = vld [vmem:[%s15842_s4 + $0x108] sm:$0xff]  }
 0x2fe   : > { %9907 = vmatmul.mubr.msk.bf16.gmra.mrb[84].mxu1 %vm728_vm4, %v11345_v57 }
 0x2ff   : > { %7697 = vmatprep.mubr.bf16.mxu1 %v16117_v17 }
 0x303   : > { %8446 = vmatmul.mubr.bf16.vlgmr.msra.gmra.mrb[128].mxu0 %v16151_v18 }
 0x304   : > { %8453 = vmatprep.mubr.bf16.mxu0 %v14453_v43  ;;  %10215 = vmatpush3.bf16.msra.mxu0 %v11239_v28  ;;  %v11248_v43 = vld [vmem:[%s15842_s4 + $0x158] sm:$0xff]  }
 0x305   : > { %10216 = vmatprep.subr.bf16.mxu0 %v11241_v52  ;;  %v16161_v52 = vld [vmem:[#allocation39_spill] sm:$0xff] }
 0x306   : > { %9908 = vmatmul.mubr.msk.bf16.gmra.mrb[88].mxu1 %vm728_vm4, %v11346_v41 }
 0x307   : > { %7707 = vmatprep.mubr.bf16.mxu1 %v16117_v17 }
 0x308   : > { %10217 = vmatpush3.bf16.msra.mxu0 %v11243_v16  ;;  %v11352_v16 = vld [vmem:[%s11925_s14 + $0x60] sm:$0xff]  }
 0x309   : > { %10218 = vmatprep.subr.bf16.mxu0 %v11245_v1  ;;  %v16162_v1 = vld [vmem:[#allocation10_spill] sm:$0xff] }
 0x30b   : > { %8454 = vmatmul.mubr.bf16.gmra.mrb[132].mxu0 %v14459_v55  ;;  %v11254_v55 = vld [vmem:[%s15842_s4 + $0x120] sm:$0xff]  }
 0x30c   : > { %8461 = vmatprep.mubr.bf16.mxu0 %v14463_v23  ;;  %10219 = vmatpush3.bf16.msra.mxu0 %v11247_v42  ;;  %v11256_v23 = vld [vmem:[%s15842_s4 + $0x168] sm:$0xff]  }
 0x30d   : > { %10220 = vmatprep.subr.bf16.mxu0 %v11248_v43 }
 0x30e   : > { %9909 = vmatmul.mubr.msk.bf16.gmra.mrb[92].mxu1 %vm728_vm4, %v11347_v61 }
 0x30f   : > { %7717 = vmatprep.mubr.bf16.mxu1 %v16117_v17 }
 0x310   : > { %10221 = vmatpush3.bf16.msra.mxu0 %v11250_v33 }
 0x311   : > { %10222 = vmatprep.subr.bf16.mxu0 %v11252_v25 }
 0x313   : > { %8462 = vmatmul.mubr.bf16.gmra.mrb[136].mxu0 %v14469_v11  ;;  %v11261_v11 = vld [vmem:[%s15842_s4 + $0x130] sm:$0xff]  }
 0x314   : > { %8469 = vmatprep.mubr.bf16.mxu0 %v16152_v37  ;;  %10223 = vmatpush3.bf16.msra.mxu0 %v11254_v55 }
 0x315   : > { %10224 = vmatprep.subr.bf16.mxu0 %v11256_v23 }
 0x316   : > { %9910 = vmatmul.mubr.msk.bf16.gmra.mrb[96].mxu1 %vm728_vm4, %v11348_v20 }
 0x317   : > { %7727 = vmatprep.mubr.bf16.mxu1 %v16117_v17 }
 0x318   : > { %10225 = vmatpush3.bf16.msra.mxu0 %v11257_v60 }
 0x319   : > { %10226 = vmatprep.subr.bf16.mxu0 %v11259_v6 }
 0x31b   : > { %8470 = vmatmul.mubr.bf16.gmra.mrb[140].mxu0 %v16153_v48 }
 0x31c   : > { %8477 = vmatprep.mubr.bf16.mxu0 %v16154_v36  ;;  %10227 = vmatpush3.bf16.msra.mxu0 %v11261_v11  ;;  %v11353_v36 = vld [vmem:[%s11925_s14 + $0x68] sm:$0xff]  }
 0x31d   : > { %10228 = vmatprep.subr.bf16.mxu0 %v11262_v62  ;;  %v16163_v62 = vld [vmem:[#allocation42_spill] sm:$0xff] }
 0x31e   : > { %9911 = vmatmul.mubr.msk.bf16.gmra.mrb[100].mxu1 %vm728_vm4, %v11349_v2 }
 0x31f   : > { %7737 = vmatprep.mubr.bf16.mxu1 %v16117_v17 }
 0x320   : > { %10229 = vmatpush3.bf16.msra.mxu0 %v11263_v31 }
 0x321   : > { %10326 = vmatprep.subr.bf16.mxu0 %v14734_v13 }
 0x323   : > { %8478 = vmatmul.mubr.bf16.gmra.mrb[144].mxu0 %v16155_v63 }
 0x324   : > { %8485 = vmatprep.mubr.bf16.mxu0 %v16157_v51 }
 0x326   : > { %9912 = vmatmul.mubr.msk.bf16.gmra.mrb[104].mxu1 %vm728_vm4, %v11350_v9 }
 0x327   : > { %7747 = vmatprep.mubr.bf16.mxu1 %v16117_v17 }
 0x329   : > { %v3987_v8 = vpop.f32.mrb[0].mxu1 }
 0x32a   : > { %v10454_v12 = vadd.f32 %v3987_v8, %v14824_v14  ;;  %v3989_v34 = vpop.f32.mrb[1].mxu1 }
 0x32b   : > { %v10455_v15 = vadd.f32 %v3989_v34, %v14828_v24  ;;  %v3991_v30 = vpop.f32.mrb[2].mxu1  ;;  %8486 = vmatmul.mubr.bf16.gmra.mrb[148].mxu0 %v16159_v39 }
 0x32c   : > { %v10456_v22 = vadd.f32 %v3991_v30, %v14824_v14  ;;  %v3993_v32 = vpop.f32.mrb[3].mxu1  ;;  %v4146_v44 = vmax.f32 %v10454_v12, 0.0  ;;  %8493 = vmatprep.mubr.bf16.mxu0 %v16160_v29 }
 0x32d   : > { %v10457_v58 = vadd.f32 %v3993_v32, %v14828_v24  ;;  %v4147_v40 = vmax.f32 %v10455_v15, 0.0  ;;  %v16164_v32 = vld [vmem:[#allocation45_spill] sm:$0xff] }
 0x32e   : > { %v4148_v26 = vmax.f32 %v10456_v22, 0.0  ;;  %9913 = vmatmul.mubr.msk.bf16.gmra.mrb[108].mxu1 %vm728_vm4, %v11351_v4 }
 0x32f   : > { %v4149_v13 = vmax.f32 %v10457_v58, 0.0  ;;  %7757 = vmatprep.mubr.bf16.mxu1 %v16117_v17 }
 0x330   : > { %v14840_v19 = vpack.c.bf16 %v4148_v26, %v4146_v44  ;;  %v11354_v44 = vld [vmem:[%s11925_s14 + $0x70] sm:$0xff]   ;;  %v16165_v26 = vld [vmem:[#allocation48_spill] sm:$0xff] }
 0x331   : > { %v14842_v7 = vpack.c.bf16 %v4149_v13, %v4147_v40  ;;  %v3997_v59 = vpop.f32.mrb[4].mxu1 }
 0x332   : > { %v10458_v21 = vadd.f32 %v3997_v59, %v14824_v14  ;;  %v3999_v45 = vpop.f32.mrb[5].mxu1 }
 0x333   : > { %v10459_v46 = vadd.f32 %v3999_v45, %v14828_v24  ;;  %v4001_v38 = vpop.f32.mrb[6].mxu1  ;;  %8494 = vmatmul.mubr.bf16.gmra.mrb[152].mxu0 %v16161_v52  ;;  %v16166_v52 = vld [vmem:[#allocation46_spill] sm:$0xff] }
 0x334   : > { %v10460_v56 = vadd.f32 %v4001_v38, %v14824_v14  ;;  %v4003_v57 = vpop.f32.mrb[7].mxu1  ;;  %v4150_v18 = vmax.f32 %v10458_v21, 0.0  ;;  %8501 = vmatprep.mubr.bf16.mxu0 %v16162_v1 }
 0x335   : > { %v10461_v28 = vadd.f32 %v4003_v57, %v14828_v24  ;;  %v4151_v42 = vmax.f32 %v10459_v46, 0.0 }
 0x336   : > { %v4152_v41 = vmax.f32 %v10460_v56, 0.0  ;;  %9914 = vmatmul.mubr.msk.bf16.gmra.mrb[112].mxu1 %vm728_vm4, %v11352_v16 }
 0x337   : > { %v4153_v43 = vmax.f32 %v10461_v28, 0.0  ;;  %7767 = vmatprep.mubr.bf16.mxu1 %v16117_v17 }
 0x338   : > { %v14853_v61 = vpack.c.bf16 %v4152_v41, %v4150_v18  ;;  %v11355_v41 = vld [vmem:[%s11925_s14 + $0x78] sm:$0xff]   ;;  %s11384_s14 = scalar_lea.vmem %s15789_s15, 4096 }
 0x339   : > { %v14855_v33 = vpack.c.bf16 %v4153_v43, %v4151_v42  ;;  %v4007_v25 = vpop.f32.mrb[8].mxu1  ;;  %p11385_p6 = scmp.ne.s32.totalorder %s15789_s15, %s11384_s14  ;;  %p11392_p3 = scmp.lt.s32.totalorder %s11390_s19, %s11384_s14 }
 0x33a   : > { %v10462_v55 = vadd.f32 %v4007_v25, %v14824_v14  ;;  %v4009_v23 = vpop.f32.mrb[9].mxu1 }
 0x33b   : > { %v10463_v20 = vadd.f32 %v4009_v23, %v14828_v24  ;;  %v4011_v37 = vpop.f32.mrb[10].mxu1  ;;  %8502 = vmatmul.mubr.bf16.gmra.mrb[156].mxu0 %v16163_v62  ;;  %p11386_p10 = pnand %p11385_p6, %p16172_p9  ;;  %p11393_p4 = por %p11392_p3, %p11391_p2 }
 0x33c   : > { %v10464_v60 = vadd.f32 %v4011_v37, %v14824_v14  ;;  %v4013_v6 = vpop.f32.mrb[11].mxu1  ;;  %v4154_v48 = vmax.f32 %v10462_v55, 0.0  ;;  %8509 = vmatprep.mubr.bf16.mxu0 %v14024_v35 }
 0x33d   : > { %v10465_v11 = vadd.f32 %v4013_v6, %v14828_v24  ;;  %v4155_v31 = vmax.f32 %v10463_v20, 0.0  ;;  %v9804_v20 = vld [vmem:[%s15841_s3 + $0x4] sm:$0x3]  ;;  %p11387_p12 = pneg %p11386_p10 }
 0x33e   : > { %v4156_v2 = vmax.f32 %v10464_v60, 0.0  ;;  %9915 = vmatmul.mubr.msk.bf16.gmra.mrb[116].mxu1 %vm728_vm4, %v11353_v36 }
 0x33f   : > { %v4157_v49 = vmax.f32 %v10465_v11, 0.0  ;;  %7777 = vmatprep.mubr.bf16.mxu1 %v16117_v17  ;;  %v14910_v11 = vld [vmem:[%s15842_s4 + $0x1c8] sm:$0xff]   ;;  %p11394_p7 = pnand %p11393_p4, %p11387_p12 }
 0x340   : > { %v14866_v63 = vpack.c.bf16 %v4156_v2, %v4154_v48  ;;  %v14915_v2 = vrot.slane %v9804_v20, %v16156_v50 }
 0x341   : > { %v14868_v9 = vpack.c.bf16 %v4157_v49, %v4155_v31  ;;  %v4017_v51 = vpop.f32.mrb[12].mxu1  ;;  %v14920_v49 = vrot.slane %v9804_v20, %v16158_v53 }
 0x342   : > { %v10466_v8 = vadd.f32 %v4017_v51, %v14824_v14  ;;  %v4019_v12 = vpop.f32.mrb[13].mxu1 }
 0x343   : > { %v10467_v34 = vadd.f32 %v4019_v12, %v14828_v24  ;;  %v4021_v15 = vpop.f32.mrb[14].mxu1  ;;  %8510 = vmatmul.mubr.bf16.gmra.mrb[160].mxu0 %v16164_v32 }
 0x344   : > { %v10468_v30 = vadd.f32 %v4021_v15, %v14824_v14  ;;  %v4023_v22 = vpop.f32.mrb[15].mxu1  ;;  %v4158_v58 = vmax.f32 %v10466_v8, 0.0  ;;  %8517 = vmatprep.mubr.bf16.mxu0 %v16165_v26 }
 0x345   : > { %v10469_v35 = vadd.f32 %v4023_v22, %v14828_v24  ;;  %v4159_v4 = vmax.f32 %v10467_v34, 0.0 }
 0x346   : > { %v4160_v39 = vmax.f32 %v10468_v30, 0.0  ;;  %9916 = vmatmul.mubr.msk.bf16.gmra.mrb[120].mxu1 %vm728_vm4, %v11354_v44 }
 0x347   : > { %v4161_v29 = vmax.f32 %v10469_v35, 0.0  ;;  %7787 = vmatprep.mubr.bf16.mxu1 %v16117_v17 }
 0x348   : > { %v14879_v40 = vpack.c.bf16 %v4160_v39, %v4158_v58 }
 0x349   : > { %v14881_v13 = vpack.c.bf16 %v4161_v29, %v4159_v4  ;;  %v4027_v59 = vpop.f32.mrb[16].mxu1 }
 0x34a   : > { %v10470_v21 = vadd.f32 %v4027_v59, %v14824_v14  ;;  %v4029_v45 = vpop.f32.mrb[17].mxu1  ;;  %v14950_v59 = vld [vmem:[%s15842_s4 + $0x190] sm:$0xff]  }
 0x34b   : > { %v10471_v46 = vadd.f32 %v4029_v45, %v14828_v24  ;;  %v4031_v38 = vpop.f32.mrb[18].mxu1  ;;  %8518 = vmatmul.mubr.bf16.gmra.mrb[164].mxu0 %v16166_v52 }
 0x34c   : > { %v10472_v56 = vadd.f32 %v4031_v38, %v14824_v14  ;;  %v4033_v57 = vpop.f32.mrb[19].mxu1  ;;  %v4162_v18 = vmax.f32 %v10470_v21, 0.0  ;;  %8525 = vmatprep.mubr.bf16.mxu0 %v14105_v5  ;;  %v14904_v5 = vld [vmem:[%s15842_s4 + $0x180] sm:$0xff]  }
 0x34d   : > { %v10473_v28 = vadd.f32 %v4033_v57, %v14828_v24  ;;  %v4163_v16 = vmax.f32 %v10471_v46, 0.0  ;;  %v14957_v46 = vld [vmem:[%s15842_s4 + $0x1d8] sm:$0xff]  }
 0x34e   : > { %v4164_v17 = vmax.f32 %v10472_v56, 0.0  ;;  %9917 = vmatmul.mubr.msk.bf16.gmra.mrb[124].mxu1 %vm728_vm4, %v11355_v41 }
 0x34f   : > { %v4165_v1 = vmax.f32 %v10473_v28, 0.0  ;;  %8606 = vmatprep.mubr.bf16.mxu1 %v14842_v7 }
 0x350   : > { %v14892_v42 = vpack.c.bf16 %v4164_v17, %v4162_v18 }
 0x351   : > { %v14894_v43 = vpack.c.bf16 %v4165_v1, %v4163_v16  ;;  %v4037_v25 = vpop.f32.mrb[20].mxu1 }
 0x352   : > { %v10474_v55 = vadd.f32 %v4037_v25, %v14824_v14  ;;  %v4039_v23 = vpop.f32.mrb[21].mxu1 }
 0x353   : > { %v10475_v37 = vadd.f32 %v4039_v23, %v14828_v24  ;;  %v4041_v60 = vpop.f32.mrb[22].mxu1  ;;  %8526 = vmatmul.mubr.bf16.gmra.mrb[168].mxu0 %v14103_v54  ;;  %v14926_v54 = vld [vmem:[%s15842_s4 + $0x188] sm:$0xff]  }
 0x354   : > { %v10476_v7 = vadd.f32 %v4041_v60, %v14824_v14  ;;  %v4043_v6 = vpop.f32.mrb[23].mxu1  ;;  %v4166_v48 = vmax.f32 %v10474_v55, 0.0  ;;  %8533 = vmatprep.mubr.bf16.mxu0 %v14139_v0  ;;  %v14935_v0 = vld [vmem:[%s15842_s4 + $0x1d0] sm:$0xff]  }
 0x355   : > { %v10477_v62 = vadd.f32 %v4043_v6, %v14828_v24  ;;  %v4167_v31 = vmax.f32 %v10475_v37, 0.0 }
 0x356   : > { %v4168_v36 = vmax.f32 %v10476_v7, 0.0  ;;  %8607 = vmatmul.mubr.bf16.vlgmr.msra.gmra.mrb[128].mxu1 %v14840_v19  ;;  %v7288_v19 = vpop.f32.mrb[64].mxu0 }
 0x357   : > { %v4169_v51 = vmax.f32 %v10477_v62, 0.0  ;;  %10446 = vmatpush3.bf16.msra.mxu1 %v14904_v5  ;;  %8614 = vmatprep.mubr.bf16.mxu1 %v14855_v33  ;;  %v10518_v15 = vadd.f32 %v7288_v19, %v14915_v2  ;;  %v7290_v30 = vpop.f32.mrb[65].mxu0 }
 0x358   : > { %v14928_v8 = vpack.c.bf16 %v4168_v36, %v4166_v48  ;;  %10439 = vmatprep.subr.bf16.mxu1 %v14910_v11  ;;  %v10519_v32 = vadd.f32 %v7290_v30, %v14920_v49  ;;  %v7292_v33 = vpop.f32.mrb[66].mxu0 }
 0x359   : > { %v14937_v12 = vpack.c.bf16 %v4169_v51, %v4167_v31  ;;  %v4047_v34 = vpop.f32.mrb[24].mxu1  ;;  %v10520_v44 = vadd.f32 %v7292_v33, %v14915_v2  ;;  %v7294_v26 = vpop.f32.mrb[67].mxu0  ;;  %v7447_v38 = vmax.f32 %v10518_v15, 0.0 }
 0x35a   : > { %v10478_v22 = vadd.f32 %v4047_v34, %v14824_v14  ;;  %v4049_v35 = vpop.f32.mrb[25].mxu1  ;;  %v10521_v21 = vadd.f32 %v7294_v26, %v14920_v49  ;;  %v7448_v52 = vmax.f32 %v10519_v32, 0.0  ;;  %v14993_v34 = vld [vmem:[%s15842_s4 + $0x1a0] sm:$0xff]  }
 0x35b   : > { %v10479_v58 = vadd.f32 %v4049_v35, %v14828_v24  ;;  %v4051_v39 = vpop.f32.mrb[26].mxu1  ;;  %10447 = vmatpush3.bf16.msra.mxu1 %v14926_v54  ;;  %v7449_v56 = vmax.f32 %v10520_v44, 0.0  ;;  %8534 = vmatmul.mubr.bf16.gmra.mrb[172].mxu0 %v14137_v10  ;;  %v14971_v10 = vld [vmem:[%s15842_s4 + $0x198] sm:$0xff]  }
 0x35c   : > { %v10480_v4 = vadd.f32 %v4051_v39, %v14824_v14  ;;  %v4053_v29 = vpop.f32.mrb[27].mxu1  ;;  %10440 = vmatprep.subr.bf16.mxu1 %v14935_v0  ;;  %v4170_v57 = vmax.f32 %v10478_v22, 0.0  ;;  %v7450_v18 = vmax.f32 %v10521_v21, 0.0  ;;  %8541 = vmatprep.mubr.bf16.mxu0 %v14157_v27  ;;  %v15001_v22 = vld [vmem:[%s15842_s4 + $0x1e8] sm:$0xff]  }
 0x35d   : > { %v10481_v45 = vadd.f32 %v4053_v29, %v14828_v24  ;;  %v4171_v17 = vmax.f32 %v10479_v58, 0.0  ;;  %v14963_v16 = vpack.c.bf16 %v7449_v56, %v7447_v38 }
 0x35e   : > { %v4172_v28 = vmax.f32 %v10480_v4, 0.0  ;;  %8615 = vmatmul.mubr.bf16.gmra.mrb[132].mxu1 %v14853_v61  ;;  %v14973_v61 = vpack.c.bf16 %v7450_v18, %v7448_v52  ;;  %v7298_v25 = vpop.f32.mrb[68].mxu0 }
 0x35f   : > { %v4173_v41 = vmax.f32 %v10481_v45, 0.0  ;;  %8622 = vmatprep.mubr.bf16.mxu1 %v14868_v9  ;;  %10448 = vmatpush3.bf16.msra.mxu1 %v14950_v59  ;;  %v14981_v9 = vld [vmem:[%s15842_s4 + $0x1e0] sm:$0xff]   ;;  %v10522_v23 = vadd.f32 %v7298_v25, %v14915_v2  ;;  %v7300_v20 = vpop.f32.mrb[69].mxu0 }
 0x360   : > { %v14965_v1 = vpack.c.bf16 %v4172_v28, %v4170_v57  ;;  %10441 = vmatprep.subr.bf16.mxu1 %v14957_v46  ;;  %v10523_v7 = vadd.f32 %v7300_v20, %v14920_v49  ;;  %v7302_v6 = vpop.f32.mrb[70].mxu0 }
 0x361   : > { %v14975_v55 = vpack.c.bf16 %v4173_v41, %v4171_v17  ;;  %v4057_v27 = vpop.f32.mrb[28].mxu1  ;;  %v10524_v36 = vadd.f32 %v7302_v6, %v14915_v2  ;;  %v7304_v31 = vpop.f32.mrb[71].mxu0  ;;  %v7451_v35 = vmax.f32 %v10522_v23, 0.0 }
 0x362   : > { %v10482_v37 = vadd.f32 %v4057_v27, %v14824_v14  ;;  %v4059_v60 = vpop.f32.mrb[29].mxu1  ;;  %v10525_v15 = vadd.f32 %v7304_v31, %v14920_v49  ;;  %v7452_v39 = vmax.f32 %v10523_v7, 0.0  ;;  %v16167_v31 = vld [vmem:[#allocation47_spill] sm:$0xff] }
 0x363   : > { %v10483_v62 = vadd.f32 %v4059_v60, %v14828_v24  ;;  %v4061_v48 = vpop.f32.mrb[30].mxu1  ;;  %10449 = vmatpush3.bf16.msra.mxu1 %v14971_v10  ;;  %v7453_v32 = vmax.f32 %v10524_v36, 0.0  ;;  %8542 = vmatmul.mubr.bf16.gmra.mrb[176].mxu0 %v14155_v47  ;;  %v15015_v47 = vld [vmem:[%s15842_s4 + $0x1a8] sm:$0xff]   ;;  %v15037_v60 = vld [vmem:[%s15842_s4 + $0x1b0] sm:$0xff]  }
 0x364   : > { %v10484_v51 = vadd.f32 %v4061_v48, %v14824_v14  ;;  %v4063_v19 = vpop.f32.mrb[31].mxu1  ;;  %10442 = vmatprep.subr.bf16.mxu1 %v14981_v9  ;;  %v4174_v33 = vmax.f32 %v10482_v37, 0.0  ;;  %v7454_v44 = vmax.f32 %v10525_v15, 0.0  ;;  %8549 = vmatprep.mubr.bf16.mxu0 %v14180_v3 }
 0x365   : > { %v10485_v30 = vadd.f32 %v4063_v19, %v14828_v24  ;;  %v4175_v26 = vmax.f32 %v10483_v62, 0.0  ;;  %v15007_v29 = vpack.c.bf16 %v7453_v32, %v7451_v35  ;;  %v15045_v62 = vld [vmem:[%s15842_s4 + $0x1f8] sm:$0xff]   ;;  %v16168_v35 = vld [vmem:[#allocation11_spill] sm:$0xff] }
 0x366   : > { %v4176_v58 = vmax.f32 %v10484_v51, 0.0  ;;  %8623 = vmatmul.mubr.bf16.gmra.mrb[136].mxu1 %v14866_v63  ;;  %v15017_v63 = vpack.c.bf16 %v7454_v44, %v7452_v39  ;;  %v7308_v45 = vpop.f32.mrb[72].mxu0  ;;  %v15059_v44 = vld [vmem:[%s15842_s4 + $0x1b8] sm:$0xff]  }
 0x367   : > { %v4177_v4 = vmax.f32 %v10485_v30, 0.0  ;;  %8630 = vmatprep.mubr.bf16.mxu1 %v14881_v13  ;;  %10450 = vmatpush3.bf16.msra.mxu1 %v14993_v34  ;;  %v15025_v13 = vld [vmem:[%s15842_s4 + $0x1f0] sm:$0xff]   ;;  %v10526_v56 = vadd.f32 %v7308_v45, %v14915_v2  ;;  %v7310_v57 = vpop.f32.mrb[73].mxu0 }
 0x368   : > { %v15009_v21 = vpack.c.bf16 %v4176_v58, %v4174_v33  ;;  %10443 = vmatprep.subr.bf16.mxu1 %v15001_v22  ;;  %v10527_v18 = vadd.f32 %v7310_v57, %v14920_v49  ;;  %v7312_v17 = vpop.f32.mrb[74].mxu0 }
 0x369   : > { %v15019_v38 = vpack.c.bf16 %v4177_v4, %v4175_v26  ;;  %v4067_v3 = vpop.f32.mrb[32].mxu1  ;;  %v10528_v27 = vadd.f32 %v7312_v17, %v14915_v2  ;;  %v7314_v23 = vpop.f32.mrb[75].mxu0  ;;  %v7455_v48 = vmax.f32 %v10526_v56, 0.0 }
 0x36a   : > { %v10486_v28 = vadd.f32 %v4067_v3, %v14824_v14  ;;  %v4069_v52 = vpop.f32.mrb[33].mxu1  ;;  %v10529_v7 = vadd.f32 %v7314_v23, %v14920_v49  ;;  %v7456_v15 = vmax.f32 %v10527_v18, 0.0 }
 0x36b   : > { %v10487_v41 = vadd.f32 %v4069_v52, %v14828_v24  ;;  %v4071_v25 = vpop.f32.mrb[34].mxu1  ;;  %10451 = vmatpush3.bf16.msra.mxu1 %v15015_v47  ;;  %v7457_v36 = vmax.f32 %v10528_v27, 0.0  ;;  %8550 = vmatmul.mubr.bf16.gmra.mrb[180].mxu0 %v16167_v31 }
 0x36c   : > { %v10488_v20 = vadd.f32 %v4071_v25, %v14824_v14  ;;  %v4073_v37 = vpop.f32.mrb[35].mxu1  ;;  %10444 = vmatprep.subr.bf16.mxu1 %v15025_v13  ;;  %v4178_v51 = vmax.f32 %v10486_v28, 0.0  ;;  %v7458_v30 = vmax.f32 %v10529_v7, 0.0  ;;  %8557 = vmatprep.mubr.bf16.mxu0 %v16168_v35 }
 0x36d   : > { %v10489_v6 = vadd.f32 %v4073_v37, %v14828_v24  ;;  %v4179_v32 = vmax.f32 %v10487_v41, 0.0  ;;  %v15051_v58 = vpack.c.bf16 %v7457_v36, %v7455_v48  ;;  %v16169_v48 = vld [vmem:[#allocation49_spill] sm:$0xff] }
 0x36e   : > { %v4180_v19 = vmax.f32 %v10488_v20, 0.0  ;;  %8631 = vmatmul.mubr.bf16.gmra.mrb[140].mxu1 %v14879_v40  ;;  %v15061_v40 = vpack.c.bf16 %v7458_v30, %v7456_v15  ;;  %v7318_v26 = vpop.f32.mrb[76].mxu0  ;;  %v16170_v15 = vld [vmem:[#allocation22_spill] sm:$0xff] }
 0x36f   : > { %v4181_v33 = vmax.f32 %v10489_v6, 0.0  ;;  %8638 = vmatprep.mubr.bf16.mxu1 %v14894_v43  ;;  %10452 = vmatpush3.bf16.msra.mxu1 %v15037_v60  ;;  %v10530_v43 = vadd.f32 %v7318_v26, %v14915_v2  ;;  %v7320_v3 = vpop.f32.mrb[77].mxu0 }
 0x370   : > { %v15053_v39 = vpack.c.bf16 %v4180_v19, %v4178_v51  ;;  %10445 = vmatprep.subr.bf16.mxu1 %v15045_v62  ;;  %v10531_v28 = vadd.f32 %v7320_v3, %v14920_v49  ;;  %v7322_v52 = vpop.f32.mrb[78].mxu0 }
 0x371   : > { %v15063_v4 = vpack.c.bf16 %v4181_v33, %v4179_v32  ;;  %v4077_v45 = vpop.f32.mrb[36].mxu1  ;;  %v10532_v41 = vadd.f32 %v7322_v52, %v14915_v2  ;;  %v7324_v25 = vpop.f32.mrb[79].mxu0  ;;  %v7459_v7 = vmax.f32 %v10530_v43, 0.0 }
 0x372   : > { %v10490_v56 = vadd.f32 %v4077_v45, %v14824_v14  ;;  %v4079_v57 = vpop.f32.mrb[37].mxu1  ;;  %v10533_v20 = vadd.f32 %v7324_v25, %v14920_v49  ;;  %v7460_v51 = vmax.f32 %v10531_v28, 0.0 }
 0x373   : > { %v10491_v18 = vadd.f32 %v4079_v57, %v14828_v24  ;;  %v4081_v17 = vpop.f32.mrb[38].mxu1  ;;  %10453 = vmatpush3.bf16.msra.mxu1 %v15059_v44  ;;  %v7461_v6 = vmax.f32 %v10532_v41, 0.0  ;;  %8558 = vmatmul.mubr.bf16.gmra.mrb[184].mxu0 %v16169_v48  ;;  %v16171_v48 = vld [vmem:[#allocation25_spill] sm:$0xff] }
 0x374   : > { %v10492_v27 = vadd.f32 %v4081_v17, %v14824_v14  ;;  %v4083_v23 = vpop.f32.mrb[39].mxu1  ;;  %v4182_v36 = vmax.f32 %v10490_v56, 0.0  ;;  %v7462_v19 = vmax.f32 %v10533_v20, 0.0  ;;  %8565 = vmatprep.mubr.bf16.mxu0 %v16170_v15 }
 0x375   : > { %v10493_v37 = vadd.f32 %v4083_v23, %v14828_v24  ;;  %v4183_v30 = vmax.f32 %v10491_v18, 0.0  ;;  %v15079_v32 = vpack.c.bf16 %v7461_v6, %v7459_v7 }
 0x376   : > { %v4184_v31 = vmax.f32 %v10492_v27, 0.0  ;;  %8639 = vmatmul.mubr.bf16.gmra.mrb[144].mxu1 %v14892_v42  ;;  %v15083_v26 = vpack.c.bf16 %v7462_v19, %v7460_v51  ;;  %v7328_v45 = vpop.f32.mrb[80].mxu0 }
 0x377   : > { %v4185_v35 = vmax.f32 %v10493_v37, 0.0  ;;  %8646 = vmatprep.mubr.bf16.mxu1 %v14937_v12  ;;  %v10534_v42 = vadd.f32 %v7328_v45, %v14915_v2  ;;  %v7330_v56 = vpop.f32.mrb[81].mxu0 }
 0x378   : > { %v15081_v33 = vpack.c.bf16 %v4184_v31, %v4182_v36  ;;  %v10535_v52 = vadd.f32 %v7330_v56, %v14920_v49  ;;  %v7332_v18 = vpop.f32.mrb[82].mxu0 }
 0x379   : > { %v15085_v43 = vpack.c.bf16 %v4185_v35, %v4183_v30  ;;  %v4087_v3 = vpop.f32.mrb[40].mxu1  ;;  %v10536_v41 = vadd.f32 %v7332_v18, %v14915_v2  ;;  %v7334_v25 = vpop.f32.mrb[83].mxu0  ;;  %v7463_v7 = vmax.f32 %v10534_v42, 0.0 }
 0x37a   : > { %v10494_v57 = vadd.f32 %v4087_v3, %v14824_v14  ;;  %v4089_v28 = vpop.f32.mrb[41].mxu1  ;;  %v10537_v20 = vadd.f32 %v7334_v25, %v14920_v49  ;;  %v7464_v51 = vmax.f32 %v10535_v52, 0.0 }
 0x37b   : > { %v10495_v12 = vadd.f32 %v4089_v28, %v14828_v24  ;;  %v4091_v17 = vpop.f32.mrb[42].mxu1  ;;  %v7465_v6 = vmax.f32 %v10536_v41, 0.0  ;;  %8566 = vmatmul.mubr.bf16.gmra.mrb[188].mxu0 %v16171_v48 }
 0x37c   : > { %v10496_v27 = vadd.f32 %v4091_v17, %v14824_v14  ;;  %v4093_v23 = vpop.f32.mrb[43].mxu1  ;;  %v4186_v36 = vmax.f32 %v10494_v57, 0.0  ;;  %v7466_v19 = vmax.f32 %v10537_v20, 0.0  ;;  %8767 = vmatprep.mubr.bf16.mxu0 %v14973_v61 }
 0x37d   : > { %v10497_v37 = vadd.f32 %v4093_v23, %v14828_v24  ;;  %v4187_v15 = vmax.f32 %v10495_v12, 0.0  ;;  %v15099_v35 = vpack.c.bf16 %v7465_v6, %v7463_v7 }
 0x37e   : > { %v4188_v31 = vmax.f32 %v10496_v27, 0.0  ;;  %8647 = vmatmul.mubr.bf16.gmra.mrb[148].mxu1 %v14928_v8  ;;  %v15103_v3 = vpack.c.bf16 %v7466_v19, %v7464_v51  ;;  %v7338_v42 = vpop.f32.mrb[84].mxu0 }
 0x37f   : > { %v4189_v30 = vmax.f32 %v10497_v37, 0.0  ;;  %8654 = vmatprep.mubr.bf16.mxu1 %v14975_v55  ;;  %v10538_v8 = vadd.f32 %v7338_v42, %v14915_v2  ;;  %v7340_v28 = vpop.f32.mrb[85].mxu0 }
 0x380   : > { %v15101_v45 = vpack.c.bf16 %v4188_v31, %v4186_v36  ;;  %v10539_v18 = vadd.f32 %v7340_v28, %v14920_v49  ;;  %v7342_v12 = vpop.f32.mrb[86].mxu0 }
 0x381   : > { %v15105_v56 = vpack.c.bf16 %v4189_v30, %v4187_v15  ;;  %v4097_v57 = vpop.f32.mrb[44].mxu1  ;;  %v10540_v41 = vadd.f32 %v7342_v12, %v14915_v2  ;;  %v7344_v25 = vpop.f32.mrb[87].mxu0  ;;  %v7467_v7 = vmax.f32 %v10538_v8, 0.0 }
 0x382   : > { %v10498_v52 = vadd.f32 %v4097_v57, %v14824_v14  ;;  %v4099_v61 = vpop.f32.mrb[45].mxu1  ;;  %v10541_v20 = vadd.f32 %v7344_v25, %v14920_v49  ;;  %v7468_v31 = vmax.f32 %v10539_v18, 0.0 }
 0x383   : > { %v10499_v55 = vadd.f32 %v4099_v61, %v14828_v24  ;;  %v4101_v17 = vpop.f32.mrb[46].mxu1  ;;  %v7469_v6 = vmax.f32 %v10540_v41, 0.0  ;;  %8768 = vmatmul.mubr.bf16.vlgmr.msra.gmra.mrb[192].mxu0 %v14963_v16 }
 0x384   : > { %v10500_v27 = vadd.f32 %v4101_v17, %v14824_v14  ;;  %v4103_v23 = vpop.f32.mrb[47].mxu1  ;;  %v4190_v48 = vmax.f32 %v10498_v52, 0.0  ;;  %v7470_v51 = vmax.f32 %v10541_v20, 0.0  ;;  %8775 = vmatprep.mubr.bf16.mxu0 %v15017_v63  ;;  %10327 = vmatpush3.bf16.msra.mxu0 %v14904_v5 }
 0x385   : > { %v10501_v37 = vadd.f32 %v4103_v23, %v14828_v24  ;;  %v4191_v19 = vmax.f32 %v10499_v55, 0.0  ;;  %v15119_v30 = vpack.c.bf16 %v7469_v6, %v7467_v7  ;;  %10328 = vmatprep.subr.bf16.mxu0 %v14910_v11 }
 0x386   : > { %v4192_v36 = vmax.f32 %v10500_v27, 0.0  ;;  %8655 = vmatmul.mubr.bf16.gmra.mrb[152].mxu1 %v14965_v1  ;;  %v15124_v57 = vpack.c.bf16 %v7470_v51, %v7468_v31  ;;  %v7348_v16 = vpop.f32.mrb[88].mxu0 }
 0x387   : > { %v4193_v15 = vmax.f32 %v10501_v37, 0.0  ;;  %8662 = vmatprep.mubr.bf16.mxu1 %v15019_v38  ;;  %v10542_v63 = vadd.f32 %v7348_v16, %v14915_v2  ;;  %v7350_v28 = vpop.f32.mrb[89].mxu0 }
 0x388   : > { %v15121_v42 = vpack.c.bf16 %v4192_v36, %v4190_v48  ;;  %v10543_v61 = vadd.f32 %v7350_v28, %v14920_v49  ;;  %v7352_v18 = vpop.f32.mrb[90].mxu0  ;;  %10329 = vmatpush3.bf16.msra.mxu0 %v14926_v54 }
 0x389   : > { %v15126_v8 = vpack.c.bf16 %v4193_v15, %v4191_v19  ;;  %v4107_v1 = vpop.f32.mrb[48].mxu1  ;;  %v10544_v55 = vadd.f32 %v7352_v18, %v14915_v2  ;;  %v7354_v17 = vpop.f32.mrb[91].mxu0  ;;  %10330 = vmatprep.subr.bf16.mxu0 %v14935_v0  ;;  %v7471_v23 = vmax.f32 %v10542_v63, 0.0 }
 0x38a   : > { %v10502_v52 = vadd.f32 %v4107_v1, %v14824_v14  ;;  %v4109_v38 = vpop.f32.mrb[49].mxu1  ;;  %v10545_v11 = vadd.f32 %v7354_v17, %v14920_v49  ;;  %v7472_v6 = vmax.f32 %v10543_v61, 0.0 }
 0x38b   : > { %v10503_v12 = vadd.f32 %v4109_v38, %v14828_v24  ;;  %v4111_v5 = vpop.f32.mrb[50].mxu1  ;;  %v7473_v20 = vmax.f32 %v10544_v55, 0.0  ;;  %8776 = vmatmul.mubr.bf16.gmra.mrb[196].mxu0 %v15007_v29 }
 0x38c   : > { %v10504_v41 = vadd.f32 %v4111_v5, %v14824_v14  ;;  %v4113_v25 = vpop.f32.mrb[51].mxu1  ;;  %v4194_v37 = vmax.f32 %v10502_v52, 0.0  ;;  %v7474_v48 = vmax.f32 %v10545_v11, 0.0  ;;  %8783 = vmatprep.mubr.bf16.mxu0 %v15061_v40  ;;  %10331 = vmatpush3.bf16.msra.mxu0 %v14950_v59 }
 0x38d   : > { %v10505_v27 = vadd.f32 %v4113_v25, %v14828_v24  ;;  %v4195_v36 = vmax.f32 %v10503_v12, 0.0  ;;  %v15143_v31 = vpack.c.bf16 %v7473_v20, %v7471_v23  ;;  %10332 = vmatprep.subr.bf16.mxu0 %v14957_v46 }
 0x38e   : > { %v4196_v7 = vmax.f32 %v10504_v41, 0.0  ;;  %8663 = vmatmul.mubr.bf16.gmra.mrb[156].mxu1 %v15009_v21  ;;  %v15148_v0 = vpack.c.bf16 %v7474_v48, %v7472_v6  ;;  %v7358_v29 = vpop.f32.mrb[92].mxu0 }
 0x38f   : > { %v4197_v54 = vmax.f32 %v10505_v27, 0.0  ;;  %8670 = vmatprep.mubr.bf16.mxu1 %v15063_v4  ;;  %v10546_v40 = vadd.f32 %v7358_v29, %v14915_v2  ;;  %v7360_v15 = vpop.f32.mrb[93].mxu0 }
 0x390   : > { %v15145_v51 = vpack.c.bf16 %v4196_v7, %v4194_v37  ;;  %v10547_v1 = vadd.f32 %v7360_v15, %v14920_v49  ;;  %v7362_v63 = vpop.f32.mrb[94].mxu0  ;;  %10333 = vmatpush3.bf16.msra.mxu0 %v14971_v10 }
 0x391   : > { %v15150_v19 = vpack.c.bf16 %v4197_v54, %v4195_v36  ;;  %v4117_v21 = vpop.f32.mrb[52].mxu1  ;;  %v10548_v52 = vadd.f32 %v7362_v63, %v14915_v2  ;;  %v7364_v38 = vpop.f32.mrb[95].mxu0  ;;  %10334 = vmatprep.subr.bf16.mxu0 %v14981_v9  ;;  %v7475_v5 = vmax.f32 %v10546_v40, 0.0 }
 0x392   : > { %v10506_v16 = vadd.f32 %v4117_v21, %v14824_v14  ;;  %v4119_v4 = vpop.f32.mrb[53].mxu1  ;;  %v10549_v46 = vadd.f32 %v7364_v38, %v14920_v49  ;;  %v7476_v25 = vmax.f32 %v10547_v1, 0.0 }
 0x393   : > { %v10507_v28 = vadd.f32 %v4119_v4, %v14828_v24  ;;  %v4121_v59 = vpop.f32.mrb[54].mxu1  ;;  %v7477_v55 = vmax.f32 %v10548_v52, 0.0  ;;  %8784 = vmatmul.mubr.bf16.gmra.mrb[200].mxu0 %v15051_v58 }
 0x394   : > { %v10508_v61 = vadd.f32 %v4121_v59, %v14824_v14  ;;  %v4123_v18 = vpop.f32.mrb[55].mxu1  ;;  %v4198_v17 = vmax.f32 %v10506_v16, 0.0  ;;  %v7478_v11 = vmax.f32 %v10549_v46, 0.0  ;;  %8791 = vmatprep.mubr.bf16.mxu0 %v15083_v26  ;;  %10335 = vmatpush3.bf16.msra.mxu0 %v14993_v34 }
 0x395   : > { %v10509_v12 = vadd.f32 %v4123_v18, %v14828_v24  ;;  %v4199_v27 = vmax.f32 %v10507_v28, 0.0  ;;  %v15167_v23 = vpack.c.bf16 %v7477_v55, %v7475_v5  ;;  %10336 = vmatprep.subr.bf16.mxu0 %v15001_v22  ;;  %v9893_v55 = vld [vmem:[%s15841_s3 + $0x6] sm:$0x3] }
 0x396   : > { %v4200_v41 = vmax.f32 %v10508_v61, 0.0  ;;  %8671 = vmatmul.mubr.bf16.gmra.mrb[160].mxu1 %v15053_v39  ;;  %v15172_v9 = vpack.c.bf16 %v7478_v11, %v7476_v25  ;;  %v7368_v58 = vpop.f32.mrb[96].mxu0 }
 0x397   : > { %v4201_v10 = vmax.f32 %v10509_v12, 0.0  ;;  %8678 = vmatprep.mubr.bf16.mxu1 %v15085_v43  ;;  %v10550_v26 = vadd.f32 %v7368_v58, %v14915_v2  ;;  %v7370_v7 = vpop.f32.mrb[97].mxu0 }
 0x398   : > { %v15169_v20 = vpack.c.bf16 %v4200_v41, %v4198_v17  ;;  %v10551_v48 = vadd.f32 %v7370_v7, %v14920_v49  ;;  %v7372_v36 = vpop.f32.mrb[98].mxu0  ;;  %10337 = vmatpush3.bf16.msra.mxu0 %v15015_v47  ;;  %v15217_v7 = vrot.slane %v9893_v55, %v16158_v53 }
 0x399   : > { %v15174_v37 = vpack.c.bf16 %v4201_v10, %v4199_v27  ;;  %v4127_v39 = vpop.f32.mrb[56].mxu1  ;;  %v10552_v29 = vadd.f32 %v7372_v36, %v14915_v2  ;;  %v7374_v21 = vpop.f32.mrb[99].mxu0  ;;  %10338 = vmatprep.subr.bf16.mxu0 %v15025_v13  ;;  %v7479_v4 = vmax.f32 %v10550_v26, 0.0  ;;  %v15214_v26 = vrot.slane %v9893_v55, %v16156_v50 }
 0x39a   : > { %v10510_v6 = vadd.f32 %v4127_v39, %v14824_v14  ;;  %v4129_v43 = vpop.f32.mrb[57].mxu1  ;;  %v10553_v22 = vadd.f32 %v7374_v21, %v14920_v49  ;;  %v7480_v59 = vmax.f32 %v10551_v48, 0.0 }
 0x39b   : > { %v10511_v54 = vadd.f32 %v4129_v43, %v14828_v24  ;;  %v4131_v34 = vpop.f32.mrb[58].mxu1  ;;  %v7481_v1 = vmax.f32 %v10552_v29, 0.0  ;;  %8792 = vmatmul.mubr.bf16.gmra.mrb[204].mxu0 %v15079_v32 }
 0x39c   : > { %v10512_v40 = vadd.f32 %v4131_v34, %v14824_v14  ;;  %v4133_v15 = vpop.f32.mrb[59].mxu1  ;;  %v4202_v63 = vmax.f32 %v10510_v6, 0.0  ;;  %v7482_v52 = vmax.f32 %v10553_v22, 0.0  ;;  %8799 = vmatprep.mubr.bf16.mxu0 %v15103_v3  ;;  %10339 = vmatpush3.bf16.msra.mxu0 %v15037_v60 }
 0x39d   : > { %v10513_v16 = vadd.f32 %v4133_v15, %v14828_v24  ;;  %v4203_v38 = vmax.f32 %v10511_v54, 0.0  ;;  %v15191_v61 = vpack.c.bf16 %v7481_v1, %v7479_v4  ;;  %10340 = vmatprep.subr.bf16.mxu0 %v15045_v62 }
 0x39e   : > { %v4204_v28 = vmax.f32 %v10512_v40, 0.0  ;;  %8679 = vmatmul.mubr.bf16.gmra.mrb[164].mxu1 %v15081_v33  ;;  %v15196_v13 = vpack.c.bf16 %v7482_v52, %v7480_v59  ;;  %v7378_v32 = vpop.f32.mrb[100].mxu0 }
 0x39f   : > { %v4205_v47 = vmax.f32 %v10513_v16, 0.0  ;;  %8686 = vmatprep.mubr.bf16.mxu1 %v15105_v56  ;;  %v10554_v3 = vadd.f32 %v7378_v32, %v14915_v2  ;;  %v7380_v12 = vpop.f32.mrb[101].mxu0 }
 0x3a0   : > { %v15193_v18 = vpack.c.bf16 %v4204_v28, %v4202_v63  ;;  %v10555_v60 = vadd.f32 %v7380_v12, %v14920_v49  ;;  %v7382_v17 = vpop.f32.mrb[102].mxu0  ;;  %10341 = vmatpush3.bf16.msra.mxu0 %v15059_v44 }
 0x3a1   : > { %v15198_v46 = vpack.c.bf16 %v4205_v47, %v4203_v38  ;;  %v4137_v33 = vpop.f32.mrb[60].mxu1  ;;  %v10556_v11 = vadd.f32 %v7382_v17, %v14915_v2  ;;  %v7384_v27 = vpop.f32.mrb[103].mxu0  ;;  %v7483_v6 = vmax.f32 %v10554_v3, 0.0 }
 0x3a2   : > { %v10514_v5 = vadd.f32 %v4137_v33, %v14824_v14  ;;  %v4139_v56 = vpop.f32.mrb[61].mxu1  ;;  %v10557_v58 = vadd.f32 %v7384_v27, %v14920_v49 }
 0x3a3   : > { %v10515_v41 = vadd.f32 %v4139_v56, %v14828_v24  ;;  %v4141_v25 = vpop.f32.mrb[62].mxu1  ;;  %v7485_v43 = vmax.f32 %v10556_v11, 0.0  ;;  %8800 = vmatmul.mubr.bf16.gmra.mrb[208].mxu0 %v15099_v35 }
 0x3a4   : > { %v10516_v62 = vadd.f32 %v4141_v25, %v14824_v14  ;;  %v4143_v10 = vpop.f32.mrb[63].mxu1  ;;  %v4206_v48 = vmax.f32 %v10514_v5, 0.0  ;;  %v7484_v14 = vmax.f32 %v10555_v60, 0.0  ;;  %v7486_v44 = vmax.f32 %v10557_v58, 0.0  ;;  %8807 = vmatprep.mubr.bf16.mxu0 %v15124_v57 }
 0x3a5   : > { %v10517_v39 = vadd.f32 %v4143_v10, %v14828_v24  ;;  %v4207_v54 = vmax.f32 %v10515_v41, 0.0  ;;  %v15223_v50 = vpack.c.bf16 %v7485_v43, %v7483_v6 }
 0x3a6   : > { %v4208_v36 = vmax.f32 %v10516_v62, 0.0  ;;  %8687 = vmatmul.mubr.bf16.gmra.mrb[168].mxu1 %v15101_v45  ;;  %v15227_v34 = vpack.c.bf16 %v7486_v44, %v7484_v14  ;;  %v7388_v29 = vpop.f32.mrb[104].mxu0 }
 0x3a7   : > { %v4209_v24 = vmax.f32 %v10517_v39, 0.0  ;;  %8694 = vmatprep.mubr.bf16.mxu1 %v15126_v8  ;;  %v10558_v45 = vadd.f32 %v7388_v29, %v14915_v2  ;;  %v7390_v40 = vpop.f32.mrb[105].mxu0 }
 0x3a8   : > { %v15225_v53 = vpack.c.bf16 %v4208_v36, %v4206_v48  ;;  %v10559_v22 = vadd.f32 %v7390_v40, %v14920_v49  ;;  %v7392_v16 = vpop.f32.mrb[106].mxu0 }
 0x3a9   : > { %v15229_v35 = vpack.c.bf16 %v4209_v24, %v4207_v54  ;;  %v7639_v21 = vpop.f32.mrb[64].mxu1  ;;  %v10560_v1 = vadd.f32 %v7392_v16, %v14915_v2  ;;  %v7394_v63 = vpop.f32.mrb[107].mxu0  ;;  %v7487_v47 = vmax.f32 %v10558_v45, 0.0 }
 0x3aa   : > { %v7640_v15 = vadd.f32 %v7639_v21, %v15214_v26  ;;  %v7641_v57 = vpop.f32.mrb[65].mxu1  ;;  %v10561_v52 = vadd.f32 %v7394_v63, %v14920_v49  ;;  %v7488_v12 = vmax.f32 %v10559_v22, 0.0 }
 0x3ab   : > { %v7642_v8 = vadd.f32 %v7641_v57, %v15217_v7  ;;  %v7643_v4 = vpop.f32.mrb[66].mxu1  ;;  %v7489_v32 = vmax.f32 %v10560_v1, 0.0  ;;  %8808 = vmatmul.mubr.bf16.gmra.mrb[212].mxu0 %v15119_v30 }
 0x3ac   : > { %v7644_v28 = vadd.f32 %v7643_v4, %v15214_v26  ;;  %v7645_v59 = vpop.f32.mrb[67].mxu1  ;;  %v7798_v33 = vmax.f32 %v7640_v15, 0.0  ;;  %v7490_v5 = vmax.f32 %v10561_v52, 0.0  ;;  %8815 = vmatprep.mubr.bf16.mxu0 %v15148_v0 }
 0x3ad   : > { %v7646_v38 = vadd.f32 %v7645_v59, %v15217_v7  ;;  %v7799_v56 = vmax.f32 %v7642_v8, 0.0  ;;  %v15243_v60 = vpack.c.bf16 %v7489_v32, %v7487_v47 }
 0x3ae   : > { %v7800_v3 = vmax.f32 %v7644_v28, 0.0  ;;  %8695 = vmatmul.mubr.bf16.gmra.mrb[172].mxu1 %v15121_v42  ;;  %v15247_v41 = vpack.c.bf16 %v7490_v5, %v7488_v12  ;;  %v7398_v25 = vpop.f32.mrb[108].mxu0 }
 0x3af   : > { %v7801_v55 = vmax.f32 %v7646_v38, 0.0  ;;  %8702 = vmatprep.mubr.bf16.mxu1 %v15150_v19  ;;  %v10562_v42 = vadd.f32 %v7398_v25, %v14915_v2  ;;  %v7400_v27 = vpop.f32.mrb[109].mxu0 }
 0x3b0   : > { %v15245_v17 = vpack.c.bf16 %v7800_v3, %v7798_v33  ;;  %v10563_v10 = vadd.f32 %v7400_v27, %v14920_v49  ;;  %v7402_v58 = vpop.f32.mrb[110].mxu0 }
 0x3b1   : > { %v15249_v30 = vpack.c.bf16 %v7801_v55, %v7799_v56  ;;  %v7649_v11 = vpop.f32.mrb[68].mxu1  ;;  %v10564_v6 = vadd.f32 %v7402_v58, %v14915_v2  ;;  %v7404_v43 = vpop.f32.mrb[111].mxu0  ;;  %v7491_v54 = vmax.f32 %v10562_v42, 0.0 }
 0x3b2   : > { %v7650_v62 = vadd.f32 %v7649_v11, %v15214_v26  ;;  %v7651_v0 = vpop.f32.mrb[69].mxu1  ;;  %v10565_v14 = vadd.f32 %v7404_v43, %v14920_v49  ;;  %v7492_v45 = vmax.f32 %v10563_v10, 0.0 }
 0x3b3   : > { %v7652_v19 = vadd.f32 %v7651_v0, %v15217_v7  ;;  %v7653_v39 = vpop.f32.mrb[70].mxu1  ;;  %v7493_v24 = vmax.f32 %v10564_v6, 0.0  ;;  %8816 = vmatmul.mubr.bf16.gmra.mrb[216].mxu0 %v15143_v31 }
 0x3b4   : > { %v7654_v48 = vadd.f32 %v7653_v39, %v15214_v26  ;;  %v7655_v36 = vpop.f32.mrb[71].mxu1  ;;  %v7802_v29 = vmax.f32 %v7650_v62, 0.0  ;;  %v7494_v40 = vmax.f32 %v10565_v14, 0.0  ;;  %8823 = vmatprep.mubr.bf16.mxu0 %v15172_v9 }
 0x3b5   : > { %v7656_v44 = vadd.f32 %v7655_v36, %v15217_v7  ;;  %v7803_v15 = vmax.f32 %v7652_v19, 0.0  ;;  %v15263_v22 = vpack.c.bf16 %v7493_v24, %v7491_v54 }
 0x3b6   : > { %v7804_v21 = vmax.f32 %v7654_v48, 0.0  ;;  %8703 = vmatmul.mubr.bf16.gmra.mrb[176].mxu1 %v15145_v51  ;;  %v15267_v8 = vpack.c.bf16 %v7494_v40, %v7492_v45  ;;  %v7408_v4 = vpop.f32.mrb[112].mxu0 }
 0x3b7   : > { %v7805_v57 = vmax.f32 %v7656_v44, 0.0  ;;  %8710 = vmatprep.mubr.bf16.mxu1 %v15174_v37  ;;  %v10566_v51 = vadd.f32 %v7408_v4, %v14915_v2  ;;  %v7410_v63 = vpop.f32.mrb[113].mxu0 }
 0x3b8   : > { %v15265_v16 = vpack.c.bf16 %v7804_v21, %v7802_v29  ;;  %v10567_v59 = vadd.f32 %v7410_v63, %v14920_v49  ;;  %v7412_v52 = vpop.f32.mrb[114].mxu0 }
 0x3b9   : > { %v15269_v31 = vpack.c.bf16 %v7805_v57, %v7803_v15  ;;  %v7659_v1 = vpop.f32.mrb[72].mxu1  ;;  %v10568_v47 = vadd.f32 %v7412_v52, %v14915_v2  ;;  %v7414_v32 = vpop.f32.mrb[115].mxu0  ;;  %v7495_v56 = vmax.f32 %v10566_v51, 0.0 }
 0x3ba   : > { %v7660_v28 = vadd.f32 %v7659_v1, %v15214_v26  ;;  %v7661_v9 = vpop.f32.mrb[73].mxu1  ;;  %v10569_v12 = vadd.f32 %v7414_v32, %v14920_v49  ;;  %v7496_v42 = vmax.f32 %v10567_v59, 0.0 }
 0x3bb   : > { %v7662_v37 = vadd.f32 %v7661_v9, %v15217_v7  ;;  %v7663_v38 = vpop.f32.mrb[74].mxu1  ;;  %v7497_v55 = vmax.f32 %v10568_v47, 0.0  ;;  %8824 = vmatmul.mubr.bf16.gmra.mrb[220].mxu0 %v15167_v23 }
 0x3bc   : > { %v7664_v33 = vadd.f32 %v7663_v38, %v15214_v26  ;;  %v7665_v3 = vpop.f32.mrb[75].mxu1  ;;  %v7806_v25 = vmax.f32 %v7660_v28, 0.0  ;;  %v7498_v27 = vmax.f32 %v10569_v12, 0.0  ;;  %8831 = vmatprep.mubr.bf16.mxu0 %v15196_v13 }
 0x3bd   : > { %v7666_v5 = vadd.f32 %v7665_v3, %v15217_v7  ;;  %v7807_v62 = vmax.f32 %v7662_v37, 0.0  ;;  %v15283_v10 = vpack.c.bf16 %v7497_v55, %v7495_v56 }
 0x3be   : > { %v7808_v11 = vmax.f32 %v7664_v33, 0.0  ;;  %8711 = vmatmul.mubr.bf16.gmra.mrb[180].mxu1 %v15169_v20  ;;  %v15287_v19 = vpack.c.bf16 %v7498_v27, %v7496_v42  ;;  %v7418_v39 = vpop.f32.mrb[116].mxu0 }
 0x3bf   : > { %v7809_v0 = vmax.f32 %v7666_v5, 0.0  ;;  %8718 = vmatprep.mubr.bf16.mxu1 %v15198_v46  ;;  %v10570_v20 = vadd.f32 %v7418_v39, %v14915_v2  ;;  %v7420_v43 = vpop.f32.mrb[117].mxu0 }
 0x3c0   : > { %v15285_v58 = vpack.c.bf16 %v7808_v11, %v7806_v25  ;;  %v10571_v36 = vadd.f32 %v7420_v43, %v14920_v49  ;;  %v7422_v14 = vpop.f32.mrb[118].mxu0 }
 0x3c1   : > { %v15289_v23 = vpack.c.bf16 %v7809_v0, %v7807_v62  ;;  %v7669_v6 = vpop.f32.mrb[76].mxu1  ;;  %v10572_v54 = vadd.f32 %v7422_v14, %v14915_v2  ;;  %v7424_v24 = vpop.f32.mrb[119].mxu0  ;;  %v7499_v15 = vmax.f32 %v10570_v20, 0.0 }
 0x3c2   : > { %v7670_v48 = vadd.f32 %v7669_v6, %v15214_v26  ;;  %v7671_v13 = vpop.f32.mrb[77].mxu1  ;;  %v10573_v45 = vadd.f32 %v7424_v24, %v14920_v49  ;;  %v7500_v51 = vmax.f32 %v10571_v36, 0.0 }
 0x3c3   : > { %v7672_v46 = vadd.f32 %v7671_v13, %v15217_v7  ;;  %v7673_v44 = vpop.f32.mrb[78].mxu1  ;;  %v7501_v57 = vmax.f32 %v10572_v54, 0.0  ;;  %8832 = vmatmul.mubr.bf16.gmra.mrb[224].mxu0 %v15191_v61 }
 0x3c4   : > { %v7674_v29 = vadd.f32 %v7673_v44, %v15214_v26  ;;  %v7675_v21 = vpop.f32.mrb[79].mxu1  ;;  %v7810_v4 = vmax.f32 %v7670_v48, 0.0  ;;  %v7502_v63 = vmax.f32 %v10573_v45, 0.0  ;;  %8839 = vmatprep.mubr.bf16.mxu0 %v15227_v34 }
 0x3c5   : > { %v7676_v40 = vadd.f32 %v7675_v21, %v15217_v7  ;;  %v7811_v28 = vmax.f32 %v7672_v46, 0.0  ;;  %v15303_v59 = vpack.c.bf16 %v7501_v57, %v7499_v15 }
 0x3c6   : > { %v7812_v1 = vmax.f32 %v7674_v29, 0.0  ;;  %8719 = vmatmul.mubr.bf16.gmra.mrb[184].mxu1 %v15193_v18  ;;  %v15305_v37 = vpack.c.bf16 %v7502_v63, %v7500_v51  ;;  %v7428_v38 = vpop.f32.mrb[120].mxu0 }
 0x3c7   : > { %v7813_v9 = vmax.f32 %v7676_v40, 0.0  ;;  %8726 = vmatprep.mubr.bf16.mxu1 %v15229_v35  ;;  %v10574_v32 = vadd.f32 %v7428_v38, %v14915_v2  ;;  %v7430_v33 = vpop.f32.mrb[121].mxu0 }
 0x3c8   : > { %v7868_v52 = vpack.c.bf16 %v7812_v1, %v7810_v4  ;;  %v10575_v34 = vadd.f32 %v7430_v33, %v14920_v49  ;;  %v7432_v12 = vpop.f32.mrb[122].mxu0 }
 0x3c9   : > { %v7869_v47 = vpack.c.bf16 %v7813_v9, %v7811_v28  ;;  %v7679_v61 = vpop.f32.mrb[80].mxu1  ;;  %v10576_v56 = vadd.f32 %v7432_v12, %v14915_v2  ;;  %v7434_v55 = vpop.f32.mrb[123].mxu0  ;;  %v7503_v62 = vmax.f32 %v10574_v32, 0.0 }
 0x3ca   : > { %v7680_v18 = vadd.f32 %v7679_v61, %v15214_v26  ;;  %v7681_v3 = vpop.f32.mrb[81].mxu1  ;;  %v10577_v42 = vadd.f32 %v7434_v55, %v14920_v49  ;;  %v7504_v20 = vmax.f32 %v10575_v34, 0.0 }
 0x3cb   : > { %v7682_v5 = vadd.f32 %v7681_v3, %v15217_v7  ;;  %v7683_v35 = vpop.f32.mrb[82].mxu1  ;;  %v7505_v0 = vmax.f32 %v10576_v56, 0.0  ;;  %8840 = vmatmul.mubr.bf16.gmra.mrb[228].mxu0 %v15223_v50 }
 0x3cc   : > { %v7684_v25 = vadd.f32 %v7683_v35, %v15214_v26  ;;  %v7685_v11 = vpop.f32.mrb[83].mxu1  ;;  %v7814_v39 = vmax.f32 %v7680_v18, 0.0  ;;  %v7506_v43 = vmax.f32 %v10577_v42, 0.0  ;;  %8847 = vmatprep.mubr.bf16.mxu0 %v15247_v41 }
 0x3cd   : > { %v7686_v27 = vadd.f32 %v7685_v11, %v15217_v7  ;;  %v7815_v48 = vmax.f32 %v7682_v5, 0.0  ;;  %v15318_v36 = vpack.c.bf16 %v7505_v0, %v7503_v62 }
 0x3ce   : > { %v7816_v6 = vmax.f32 %v7684_v25, 0.0  ;;  %8727 = vmatmul.mubr.bf16.gmra.mrb[188].mxu1 %v15225_v53  ;;  %v15320_v46 = vpack.c.bf16 %v7506_v43, %v7504_v20  ;;  %v7438_v44 = vpop.f32.mrb[124].mxu0 }
 0x3cf   : > { %v7817_v13 = vmax.f32 %v7686_v27, 0.0  ;;  %8952 = vmatprep.mubr.bf16.mxu1 %v7869_v47  ;;  %v10578_v50 = vadd.f32 %v7438_v44, %v14915_v2  ;;  %v7440_v29 = vpop.f32.mrb[125].mxu0 }
 0x3d0   : > { %v7870_v14 = vpack.c.bf16 %v7816_v6, %v7814_v39  ;;  %v10579_v45 = vadd.f32 %v7440_v29, %v14920_v49  ;;  %v7442_v41 = vpop.f32.mrb[126].mxu0 }
 0x3d1   : > { %v7871_v54 = vpack.c.bf16 %v7817_v13, %v7815_v48  ;;  %v7689_v24 = vpop.f32.mrb[84].mxu1  ;;  %v10580_v57 = vadd.f32 %v7442_v41, %v14915_v2  ;;  %v7444_v4 = vpop.f32.mrb[127].mxu0  ;;  %v7507_v9 = vmax.f32 %v10578_v50, 0.0 }
 0x3d2   : > { %v7690_v53 = vadd.f32 %v7689_v24, %v15214_v26  ;;  %v7691_v21 = vpop.f32.mrb[85].mxu1  ;;  %v10581_v63 = vadd.f32 %v7444_v4, %v14920_v49  ;;  %v7508_v32 = vmax.f32 %v10579_v45, 0.0 }
 0x3d3   : > { %v7692_v40 = vadd.f32 %v7691_v21, %v15217_v7  ;;  %v7693_v15 = vpop.f32.mrb[86].mxu1  ;;  %v7509_v38 = vmax.f32 %v10580_v57, 0.0  ;;  %8848 = vmatmul.mubr.bf16.gmra.mrb[232].mxu0 %v15243_v60 }
 0x3d4   : > { %v7694_v1 = vadd.f32 %v7693_v15, %v15214_v26  ;;  %v7695_v51 = vpop.f32.mrb[87].mxu1  ;;  %v7818_v47 = vmax.f32 %v7690_v53, 0.0  ;;  %v7510_v33 = vmax.f32 %v10581_v63, 0.0  ;;  %8855 = vmatprep.mubr.bf16.mxu0 %v15267_v8 }
 0x3d5   : > { %v7696_v28 = vadd.f32 %v7695_v51, %v15217_v7  ;;  %v7819_v2 = vmax.f32 %v7692_v40, 0.0  ;;  %v15332_v3 = vpack.c.bf16 %v7509_v38, %v7507_v9 }
 0x3d6   : > { %v7820_v61 = vmax.f32 %v7694_v1, 0.0  ;;  %8953 = vmatmul.mubr.bf16.vlgmr.msra.gmra.mrb[192].mxu1 %v7868_v52  ;;  %v15334_v49 = vpack.c.bf16 %v7510_v33, %v7508_v32  ;;  %v10006_v12 = vpop.f32.mrb[128].mxu0 }
 0x3d7   : > { %v7821_v18 = vmax.f32 %v7696_v28, 0.0  ;;  %8960 = vmatprep.mubr.bf16.mxu1 %v7871_v54  ;;  %v10007_v56 = vpop.f32.mrb[129].mxu0 }
 0x3d8   : > { %v7872_v34 = vpack.c.bf16 %v7820_v61, %v7818_v47  ;;  %v15337_v52 = vadd.f32 %v10007_v56, %v10006_v12  ;;  %v10009_v25 = vpop.f32.mrb[130].mxu0 }
 0x3d9   : > { %v7873_v5 = vpack.c.bf16 %v7821_v18, %v7819_v2  ;;  %v7699_v35 = vpop.f32.mrb[88].mxu1  ;;  %v10010_v42 = vpop.f32.mrb[131].mxu0 }
 0x3da   : > { %v7700_v60 = vadd.f32 %v7699_v35, %v15214_v26  ;;  %v7701_v55 = vpop.f32.mrb[89].mxu1  ;;  %v15341_v0 = vadd.f32 %v10010_v42, %v10009_v25 }
 0x3db   : > { %v7702_v8 = vadd.f32 %v7701_v55, %v15217_v7  ;;  %v7703_v11 = vpop.f32.mrb[90].mxu1  ;;  %8856 = vmatmul.mubr.bf16.gmra.mrb[236].mxu0 %v15263_v22 }
 0x3dc   : > { %v7704_v27 = vadd.f32 %v7703_v11, %v15214_v26  ;;  %v7705_v62 = vpop.f32.mrb[91].mxu1  ;;  %v7822_v6 = vmax.f32 %v7700_v60, 0.0  ;;  %8863 = vmatprep.mubr.bf16.mxu0 %v15287_v19 }
 0x3dd   : > { %v7706_v39 = vadd.f32 %v7705_v62, %v15217_v7  ;;  %v7823_v43 = vmax.f32 %v7702_v8, 0.0 }
 0x3de   : > { %v7824_v20 = vmax.f32 %v7704_v27, 0.0  ;;  %8961 = vmatmul.mubr.bf16.gmra.mrb[196].mxu1 %v7870_v14  ;;  %v10012_v44 = vpop.f32.mrb[132].mxu0 }
 0x3df   : > { %v7825_v48 = vmax.f32 %v7706_v39, 0.0  ;;  %8968 = vmatprep.mubr.bf16.mxu1 %v7873_v5  ;;  %v10013_v50 = vpop.f32.mrb[133].mxu0 }
 0x3e0   : > { %v7874_v13 = vpack.c.bf16 %v7824_v20, %v7822_v6  ;;  %v15347_v21 = vadd.f32 %v10013_v50, %v10012_v44  ;;  %v10015_v45 = vpop.f32.mrb[134].mxu0 }
 0x3e1   : > { %v7875_v54 = vpack.c.bf16 %v7825_v48, %v7823_v43  ;;  %v7709_v24 = vpop.f32.mrb[92].mxu1  ;;  %v10016_v14 = vpop.f32.mrb[135].mxu0 }
 0x3e2   : > { %v7710_v29 = vadd.f32 %v7709_v24, %v15214_v26  ;;  %v7711_v53 = vpop.f32.mrb[93].mxu1  ;;  %v15351_v15 = vadd.f32 %v10016_v14, %v10015_v45 }
 0x3e3   : > { %v7712_v22 = vadd.f32 %v7711_v53, %v15217_v7  ;;  %v7713_v41 = vpop.f32.mrb[94].mxu1  ;;  %8864 = vmatmul.mubr.bf16.gmra.mrb[240].mxu0 %v15283_v10 }
 0x3e4   : > { %v7714_v19 = vadd.f32 %v7713_v41, %v15214_v26  ;;  %v7715_v40 = vpop.f32.mrb[95].mxu1  ;;  %v7826_v4 = vmax.f32 %v7710_v29, 0.0  ;;  %8871 = vmatprep.mubr.bf16.mxu0 %v15305_v37 }
 0x3e5   : > { %v7716_v57 = vadd.f32 %v7715_v40, %v15217_v7  ;;  %v7827_v51 = vmax.f32 %v7712_v22, 0.0 }
 0x3e6   : > { %v7828_v1 = vmax.f32 %v7714_v19, 0.0  ;;  %8969 = vmatmul.mubr.bf16.gmra.mrb[200].mxu1 %v7872_v34  ;;  %v10018_v9 = vpop.f32.mrb[136].mxu0 }
 0x3e7   : > { %v7829_v63 = vmax.f32 %v7716_v57, 0.0  ;;  %8976 = vmatprep.mubr.bf16.mxu1 %v7875_v54  ;;  %v10019_v61 = vpop.f32.mrb[137].mxu0 }
 0x3e8   : > { %v7876_v28 = vpack.c.bf16 %v7828_v1, %v7826_v4  ;;  %v15357_v2 = vadd.f32 %v10019_v61, %v10018_v9  ;;  %v10021_v18 = vpop.f32.mrb[138].mxu0 }
 0x3e9   : > { %v7877_v38 = vpack.c.bf16 %v7829_v63, %v7827_v51  ;;  %v7719_v47 = vpop.f32.mrb[96].mxu1  ;;  %v10022_v34 = vpop.f32.mrb[139].mxu0 }
 0x3ea   : > { %v7720_v32 = vadd.f32 %v7719_v47, %v15214_v26  ;;  %v7721_v33 = vpop.f32.mrb[97].mxu1  ;;  %v15361_v35 = vadd.f32 %v10022_v34, %v10021_v18 }
 0x3eb   : > { %v7722_v10 = vadd.f32 %v7721_v33, %v15217_v7  ;;  %v7723_v12 = vpop.f32.mrb[98].mxu1  ;;  %8872 = vmatmul.mubr.bf16.gmra.mrb[244].mxu0 %v15303_v59 }
 0x3ec   : > { %v7724_v37 = vadd.f32 %v7723_v12, %v15214_v26  ;;  %v7725_v5 = vpop.f32.mrb[99].mxu1  ;;  %v7830_v60 = vmax.f32 %v7720_v32, 0.0  ;;  %8879 = vmatprep.mubr.bf16.mxu0 %v15320_v46 }
 0x3ed   : > { %v7726_v56 = vadd.f32 %v7725_v5, %v15217_v7  ;;  %v7831_v25 = vmax.f32 %v7722_v10, 0.0 }
 0x3ee   : > { %v7832_v55 = vmax.f32 %v7724_v37, 0.0  ;;  %8977 = vmatmul.mubr.bf16.gmra.mrb[204].mxu1 %v7874_v13  ;;  %v10024_v42 = vpop.f32.mrb[140].mxu0 }
 0x3ef   : > { %v7833_v8 = vmax.f32 %v7726_v56, 0.0  ;;  %8984 = vmatprep.mubr.bf16.mxu1 %v7877_v38  ;;  %v10025_v39 = vpop.f32.mrb[141].mxu0 }
 0x3f0   : > { %v7878_v11 = vpack.c.bf16 %v7832_v55, %v7830_v60  ;;  %v15367_v43 = vadd.f32 %v10025_v39, %v10024_v42  ;;  %v10027_v48 = vpop.f32.mrb[142].mxu0 }
 0x3f1   : > { %v7879_v27 = vpack.c.bf16 %v7833_v8, %v7831_v25  ;;  %v7729_v62 = vpop.f32.mrb[100].mxu1  ;;  %v10028_v13 = vpop.f32.mrb[143].mxu0 }
 0x3f2   : > { %v7730_v6 = vadd.f32 %v7729_v62, %v15214_v26  ;;  %v7731_v20 = vpop.f32.mrb[101].mxu1  ;;  %v15371_v24 = vadd.f32 %v10028_v13, %v10027_v48 }
 0x3f3   : > { %v7732_v59 = vadd.f32 %v7731_v20, %v15217_v7  ;;  %v7733_v44 = vpop.f32.mrb[102].mxu1  ;;  %8880 = vmatmul.mubr.bf16.gmra.mrb[248].mxu0 %v15318_v36 }
 0x3f4   : > { %v7734_v46 = vadd.f32 %v7733_v44, %v15214_v26  ;;  %v7735_v54 = vpop.f32.mrb[103].mxu1  ;;  %v7834_v29 = vmax.f32 %v7730_v6, 0.0  ;;  %8887 = vmatprep.mubr.bf16.mxu0 %v15334_v49 }
 0x3f5   : > { %v7736_v50 = vadd.f32 %v7735_v54, %v15217_v7  ;;  %v7835_v45 = vmax.f32 %v7732_v59, 0.0 }
 0x3f6   : > { %v7836_v53 = vmax.f32 %v7734_v46, 0.0  ;;  %8985 = vmatmul.mubr.bf16.gmra.mrb[208].mxu1 %v7876_v28  ;;  %v10030_v14 = vpop.f32.mrb[144].mxu0 }
 0x3f7   : > { %v7837_v22 = vmax.f32 %v7736_v50, 0.0  ;;  %8992 = vmatprep.mubr.bf16.mxu1 %v7879_v27  ;;  %v10031_v57 = vpop.f32.mrb[145].mxu0 }
 0x3f8   : > { %v7880_v41 = vpack.c.bf16 %v7836_v53, %v7834_v29  ;;  %v15377_v51 = vadd.f32 %v10031_v57, %v10030_v14  ;;  %v10033_v63 = vpop.f32.mrb[146].mxu0 }
 0x3f9   : > { %v7881_v19 = vpack.c.bf16 %v7837_v22, %v7835_v45  ;;  %v7739_v40 = vpop.f32.mrb[104].mxu1  ;;  %v10034_v28 = vpop.f32.mrb[147].mxu0 }
 0x3fa   : > { %v7740_v4 = vadd.f32 %v7739_v40, %v15214_v26  ;;  %v7741_v1 = vpop.f32.mrb[105].mxu1  ;;  %v15381_v47 = vadd.f32 %v10034_v28, %v10033_v63 }
 0x3fb   : > { %v7742_v36 = vadd.f32 %v7741_v1, %v15217_v7  ;;  %v7743_v9 = vpop.f32.mrb[106].mxu1  ;;  %8888 = vmatmul.mubr.bf16.gmra.mrb[252].mxu0 %v15332_v3 }
 0x3fc   : > { %v7744_v49 = vadd.f32 %v7743_v9, %v15214_v26  ;;  %v7745_v38 = vpop.f32.mrb[107].mxu1  ;;  %v7838_v32 = vmax.f32 %v7740_v4, 0.0  ;;  %8928 = vmatprep.mubr.bf16.mxu0 %v15249_v30 }
 0x3fd   : > { %v7746_v61 = vadd.f32 %v7745_v38, %v15217_v7  ;;  %v7839_v18 = vmax.f32 %v7742_v36, 0.0 }
 0x3fe   : > { %v7840_v33 = vmax.f32 %v7744_v49, 0.0  ;;  %8993 = vmatmul.mubr.bf16.gmra.mrb[212].mxu1 %v7878_v11  ;;  %v10036_v34 = vpop.f32.mrb[148].mxu0 }
 0x3ff   : > { %v7841_v10 = vmax.f32 %v7746_v61, 0.0  ;;  %9000 = vmatprep.mubr.bf16.mxu1 %v7881_v19  ;;  %v10037_v56 = vpop.f32.mrb[149].mxu0 }
 0x400   : > { %v7882_v12 = vpack.c.bf16 %v7840_v33, %v7838_v32  ;;  %v15387_v25 = vadd.f32 %v10037_v56, %v10036_v34  ;;  %v10039_v8 = vpop.f32.mrb[150].mxu0 }
 0x401   : > { %v7883_v37 = vpack.c.bf16 %v7841_v10, %v7839_v18  ;;  %v7749_v5 = vpop.f32.mrb[108].mxu1  ;;  %v10040_v11 = vpop.f32.mrb[151].mxu0 }
 0x402   : > { %v7750_v60 = vadd.f32 %v7749_v5, %v15214_v26  ;;  %v7751_v55 = vpop.f32.mrb[109].mxu1  ;;  %v15391_v62 = vadd.f32 %v10040_v11, %v10039_v8 }
 0x403   : > { %v7752_v3 = vadd.f32 %v7751_v55, %v15217_v7  ;;  %v7753_v42 = vpop.f32.mrb[110].mxu1  ;;  %8929 = vmatmul.mubr.bf16.vlgmr.msra.gmra.mrb[0].mxu0 %v15245_v17 }
 0x404   : > { %v7754_v30 = vadd.f32 %v7753_v42, %v15214_v26  ;;  %v7755_v27 = vpop.f32.mrb[111].mxu1  ;;  %v7842_v6 = vmax.f32 %v7750_v60, 0.0  ;;  %8936 = vmatprep.mubr.bf16.mxu0 %v15269_v31 }
 0x405   : > { %v7756_v39 = vadd.f32 %v7755_v27, %v15217_v7  ;;  %v7843_v48 = vmax.f32 %v7752_v3, 0.0 }
 0x406   : > { %v7844_v20 = vmax.f32 %v7754_v30, 0.0  ;;  %9001 = vmatmul.mubr.bf16.gmra.mrb[216].mxu1 %v7880_v41  ;;  %v10042_v13 = vpop.f32.mrb[152].mxu0 }
 0x407   : > { %v7845_v59 = vmax.f32 %v7756_v39, 0.0  ;;  %9008 = vmatprep.mubr.bf16.mxu1 %v7883_v37  ;;  %v10043_v50 = vpop.f32.mrb[153].mxu0 }
 0x408   : > { %v7884_v44 = vpack.c.bf16 %v7844_v20, %v7842_v6  ;;  %v15397_v45 = vadd.f32 %v10043_v50, %v10042_v13  ;;  %v10045_v22 = vpop.f32.mrb[154].mxu0 }
 0x409   : > { %v7885_v46 = vpack.c.bf16 %v7845_v59, %v7843_v48  ;;  %v7759_v54 = vpop.f32.mrb[112].mxu1  ;;  %v10046_v41 = vpop.f32.mrb[155].mxu0 }
 0x40a   : > { %v7760_v29 = vadd.f32 %v7759_v54, %v15214_v26  ;;  %v7761_v53 = vpop.f32.mrb[113].mxu1  ;;  %v15401_v40 = vadd.f32 %v10046_v41, %v10045_v22 }
 0x40b   : > { %v7762_v17 = vadd.f32 %v7761_v53, %v15217_v7  ;;  %v7763_v14 = vpop.f32.mrb[114].mxu1  ;;  %8937 = vmatmul.mubr.bf16.gmra.mrb[4].mxu0 %v15265_v16 }
 0x40c   : > { %v7764_v31 = vadd.f32 %v7763_v14, %v15214_v26  ;;  %v7765_v19 = vpop.f32.mrb[115].mxu1  ;;  %v7846_v4 = vmax.f32 %v7760_v29, 0.0  ;;  %8944 = vmatprep.mubr.bf16.mxu0 %v15289_v23 }
 0x40d   : > { %v7766_v57 = vadd.f32 %v7765_v19, %v15217_v7  ;;  %v7847_v63 = vmax.f32 %v7762_v17, 0.0 }
 0x40e   : > { %v7848_v1 = vmax.f32 %v7764_v31, 0.0  ;;  %9009 = vmatmul.mubr.bf16.gmra.mrb[220].mxu1 %v7882_v12  ;;  %v10048_v28 = vpop.f32.mrb[156].mxu0 }
 0x40f   : > { %v7849_v36 = vmax.f32 %v7766_v57, 0.0  ;;  %9016 = vmatprep.mubr.bf16.mxu1 %v7885_v46  ;;  %v10049_v61 = vpop.f32.mrb[157].mxu0 }
 0x410   : > { %v7886_v9 = vpack.c.bf16 %v7848_v1, %v7846_v4  ;;  %v15407_v18 = vadd.f32 %v10049_v61, %v10048_v28  ;;  %v10051_v10 = vpop.f32.mrb[158].mxu0 }
 0x411   : > { %v7887_v49 = vpack.c.bf16 %v7849_v36, %v7847_v63  ;;  %v7769_v38 = vpop.f32.mrb[116].mxu1  ;;  %v10052_v12 = vpop.f32.mrb[159].mxu0 }
 0x412   : > { %v7770_v32 = vadd.f32 %v7769_v38, %v15214_v26  ;;  %v7771_v33 = vpop.f32.mrb[117].mxu1  ;;  %v15411_v5 = vadd.f32 %v10052_v12, %v10051_v10 }
 0x413   : > { %v7772_v16 = vadd.f32 %v7771_v33, %v15217_v7  ;;  %v7773_v34 = vpop.f32.mrb[118].mxu1  ;;  %8945 = vmatmul.mubr.bf16.gmra.mrb[8].mxu0 %v15285_v58 }
 0x414   : > { %v7774_v23 = vadd.f32 %v7773_v34, %v15214_v26  ;;  %v7775_v37 = vpop.f32.mrb[119].mxu1  ;;  %v7850_v60 = vmax.f32 %v7770_v32, 0.0 }
 0x415   : > { %v7776_v56 = vadd.f32 %v7775_v37, %v15217_v7  ;;  %v7851_v8 = vmax.f32 %v7772_v16, 0.0  ;;  %v15435_v37 = vld [vmem:[%s278_s10] ss:$0 sm:$0xff] }
 0x416   : > { %v7852_v55 = vmax.f32 %v7774_v23, 0.0  ;;  %9017 = vmatmul.mubr.bf16.gmra.mrb[224].mxu1 %v7884_v44  ;;  %v10054_v11 = vpop.f32.mrb[160].mxu0 }
 0x417   : > { %v7853_v3 = vmax.f32 %v7776_v56, 0.0  ;;  %9024 = vmatprep.mubr.bf16.mxu1 %v7887_v49  ;;  %v10055_v39 = vpop.f32.mrb[161].mxu0 }
 0x418   : > { %v7888_v42 = vpack.c.bf16 %v7852_v55, %v7850_v60  ;;  %v15416_v48 = vadd.f32 %v10055_v39, %v10054_v11  ;;  %v10057_v59 = vpop.f32.mrb[162].mxu0  ;;  %v8448_v11 = vadd.f32 %v15337_v52, %v15435_v37 }
 0x419   : > { %v7889_v30 = vpack.c.bf16 %v7853_v3, %v7851_v8  ;;  %v7779_v27 = vpop.f32.mrb[120].mxu1  ;;  %v10058_v46 = vpop.f32.mrb[163].mxu0 }
 0x41a   : > { %v7780_v6 = vadd.f32 %v7779_v27, %v15214_v26  ;;  %v7781_v20 = vpop.f32.mrb[121].mxu1  ;;  %v15420_v50 = vadd.f32 %v10058_v46, %v10057_v59 }
 0x41b   : > { %v7782_v13 = vadd.f32 %v7781_v20, %v15217_v7  ;;  %v7783_v58 = vpop.f32.mrb[122].mxu1  ;;  %v8451_v20 = vadd.f32 %v15341_v0, %v15435_v37 }
 0x41c   : > { %v7784_v44 = vadd.f32 %v7783_v58, %v15214_v26  ;;  %v7785_v54 = vpop.f32.mrb[123].mxu1  ;;  %v7854_v53 = vmax.f32 %v7780_v6, 0.0 }
 0x41d   : > { %v7786_v29 = vadd.f32 %v7785_v54, %v15217_v7  ;;  %v7855_v17 = vmax.f32 %v7782_v13, 0.0 }
 0x41e   : > { %v7856_v22 = vmax.f32 %v7784_v44, 0.0  ;;  %9025 = vmatmul.mubr.bf16.gmra.mrb[228].mxu1 %v7886_v9  ;;  %v10060_v31 = vpop.f32.mrb[164].mxu0 }
 0x41f   : > { %v7857_v14 = vmax.f32 %v7786_v29, 0.0  ;;  %9032 = vmatprep.mubr.bf16.mxu1 %v7889_v30  ;;  %v10061_v4 = vpop.f32.mrb[165].mxu0 }
 0x420   : > { %v7890_v41 = vpack.c.bf16 %v7856_v22, %v7854_v53  ;;  %v15424_v36 = vadd.f32 %v10061_v4, %v10060_v31  ;;  %v10063_v28 = vpop.f32.mrb[166].mxu0  ;;  %v8456_v53 = vadd.f32 %v15347_v21, %v15435_v37 }
 0x421   : > { %v7891_v19 = vpack.c.bf16 %v7857_v14, %v7855_v17  ;;  %v7789_v57 = vpop.f32.mrb[124].mxu1  ;;  %v10064_v61 = vpop.f32.mrb[167].mxu0 }
 0x422   : > { %v7790_v1 = vadd.f32 %v7789_v57, %v15214_v26  ;;  %v7791_v63 = vpop.f32.mrb[125].mxu1  ;;  %v15432_v33 = vadd.f32 %v10064_v61, %v10063_v28  ;;  %v8464_v61 = vadd.f32 %v15357_v2, %v15435_v37 }
 0x423   : > { %v7792_v49 = vadd.f32 %v7791_v63, %v15217_v7  ;;  %v7793_v38 = vpop.f32.mrb[126].mxu1 }
 0x424   : > { %v7794_v9 = vadd.f32 %v7793_v38, %v15214_v26  ;;  %v7795_v32 = vpop.f32.mrb[127].mxu1  ;;  %v7858_v16 = vmax.f32 %v7790_v1, 0.0 }
 0x425   : > { %v7796_v10 = vadd.f32 %v7795_v32, %v15217_v7  ;;  %v7859_v12 = vmax.f32 %v7792_v49, 0.0 }
 0x426   : > { %v7860_v34 = vmax.f32 %v7794_v9, 0.0  ;;  %9033 = vmatmul.mubr.bf16.gmra.mrb[232].mxu1 %v7888_v42  ;;  %v10066_v60 = vpop.f32.mrb[168].mxu0 }
 0x427   : > { %v7861_v23 = vmax.f32 %v7796_v10, 0.0  ;;  %9040 = vmatprep.mubr.bf16.mxu1 %v7891_v19  ;;  %v10067_v8 = vpop.f32.mrb[169].mxu0 }
 0x428   : > { %v7892_v56 = vpack.c.bf16 %v7860_v34, %v7858_v16  ;;  %v15439_v30 = vadd.f32 %v10067_v8, %v10066_v60  ;;  %v10069_v7 = vpop.f32.mrb[170].mxu0 }
 0x429   : > { %v7893_v26 = vpack.c.bf16 %v7861_v23, %v7859_v12  ;;  %v10118_v55 = vpop.f32.mrb[128].mxu1  ;;  %v10070_v42 = vpop.f32.mrb[171].mxu0  ;;  %v8467_v12 = vadd.f32 %v15361_v35, %v15435_v37 }
 0x42a   : > { %v10119_v3 = vpop.f32.mrb[129].mxu1  ;;  %v15443_v59 = vadd.f32 %v10070_v42, %v10069_v7 }
 0x42b   : > { %v10120_v27 = vadd.f32 %v10119_v3, %v10118_v55  ;;  %v10121_v39 = vpop.f32.mrb[130].mxu1 }
 0x42c   : > { %v10122_v6 = vpop.f32.mrb[131].mxu1 }
 0x42d   : > { %v15445_v13 = vadd.f32 %v10120_v27, %v8448_v11  ;;  %v10123_v58 = vadd.f32 %v10122_v6, %v10121_v39  ;;  %v8472_v11 = vadd.f32 %v15367_v43, %v15435_v37 }
 0x42e   : > { %9041 = vmatmul.mubr.bf16.gmra.mrb[236].mxu1 %v7890_v41  ;;  %v10072_v52 = vpop.f32.mrb[172].mxu0  ;;  %v8459_v41 = vadd.f32 %v15351_v15, %v15435_v37 }
 0x42f   : > { %v15447_v46 = vadd.f32 %v10123_v58, %v8451_v20  ;;  %9048 = vmatprep.mubr.bf16.mxu1 %v7893_v26  ;;  %v10073_v54 = vpop.f32.mrb[173].mxu0  ;;  %v8475_v20 = vadd.f32 %v15371_v24, %v15435_v37 }
 0x430   : > { %v15451_v22 = vadd.f32 %v10073_v54, %v10072_v52  ;;  %v10075_v17 = vpop.f32.mrb[174].mxu0 }
 0x431   : > { %v10124_v44 = vpop.f32.mrb[132].mxu1  ;;  %v10076_v31 = vpop.f32.mrb[175].mxu0 }
 0x432   : > { %v10125_v29 = vpop.f32.mrb[133].mxu1  ;;  %v15455_v57 = vadd.f32 %v10076_v31, %v10075_v17 }
 0x433   : > { %v10126_v0 = vadd.f32 %v10125_v29, %v10124_v44  ;;  %v10127_v14 = vpop.f32.mrb[134].mxu1 }
 0x434   : > { %v10128_v19 = vpop.f32.mrb[135].mxu1 }
 0x435   : > { %v15457_v4 = vadd.f32 %v10126_v0, %v8456_v53  ;;  %v10129_v1 = vadd.f32 %v10128_v19, %v10127_v14  ;;  %v8480_v0 = vadd.f32 %v15377_v51, %v15435_v37 }
 0x436   : > { %9049 = vmatmul.mubr.bf16.gmra.mrb[240].mxu1 %v7892_v56  ;;  %v10078_v28 = vpop.f32.mrb[176].mxu0 }
 0x437   : > { %v15459_v63 = vadd.f32 %v10129_v1, %v8459_v41  ;;  %v10079_v49 = vpop.f32.mrb[177].mxu0 }
 0x438   : > { %v15463_v9 = vadd.f32 %v10079_v49, %v10078_v28  ;;  %v10081_v32 = vpop.f32.mrb[178].mxu0  ;;  %v8483_v28 = vadd.f32 %v15381_v47, %v15435_v37 }
 0x439   : > { %v10130_v21 = vpop.f32.mrb[136].mxu1  ;;  %v10082_v16 = vpop.f32.mrb[179].mxu0 }
 0x43a   : > { %v10131_v38 = vpop.f32.mrb[137].mxu1  ;;  %v15467_v23 = vadd.f32 %v10082_v16, %v10081_v32  ;;  %v8488_v16 = vadd.f32 %v15387_v25, %v15435_v37 }
 0x43b   : > { %v10132_v10 = vadd.f32 %v10131_v38, %v10130_v21  ;;  %v10133_v15 = vpop.f32.mrb[138].mxu1 }
 0x43c   : > { %v10134_v34 = vpop.f32.mrb[139].mxu1 }
 0x43d   : > { %v15469_v56 = vadd.f32 %v10132_v10, %v8464_v61  ;;  %v10135_v60 = vadd.f32 %v10134_v34, %v10133_v15 }
 0x43e   : > { %v10084_v55 = vpop.f32.mrb[180].mxu0 }
 0x43f   : > { %v15471_v26 = vadd.f32 %v10135_v60, %v8467_v12  ;;  %v10085_v2 = vpop.f32.mrb[181].mxu0 }
 0x440   : > { %v15475_v7 = vadd.f32 %v10085_v2, %v10084_v55  ;;  %v10087_v27 = vpop.f32.mrb[182].mxu0  ;;  %v8491_v2 = vadd.f32 %v15391_v62, %v15435_v37  ;;  %v8499_v62 = vadd.f32 %v15401_v40, %v15435_v37  ;;  %v8504_v40 = vadd.f32 %v15407_v18, %v15435_v37 }
 0x441   : > { %v10136_v8 = vpop.f32.mrb[140].mxu1  ;;  %v10088_v35 = vpop.f32.mrb[183].mxu0 }
 0x442   : > { %v10137_v3 = vpop.f32.mrb[141].mxu1  ;;  %v15479_v58 = vadd.f32 %v10088_v35, %v10087_v27 }
 0x443   : > { %v10138_v39 = vadd.f32 %v10137_v3, %v10136_v8  ;;  %v10139_v42 = vpop.f32.mrb[142].mxu1 }
 0x444   : > { %v10140_v6 = vpop.f32.mrb[143].mxu1 }
 0x445   : > { %v15481_v52 = vadd.f32 %v10138_v39, %v8472_v11  ;;  %v10141_v44 = vadd.f32 %v10140_v6, %v10139_v42 }
 0x446   : > { %v10090_v29 = vpop.f32.mrb[184].mxu0 }
 0x447   : > { %v15483_v54 = vadd.f32 %v10141_v44, %v8475_v20  ;;  %v10091_v43 = vpop.f32.mrb[185].mxu0  ;;  %v8496_v20 = vadd.f32 %v15397_v45, %v15435_v37 }
 0x448   : > { %v15487_v14 = vadd.f32 %v10091_v43, %v10090_v29  ;;  %v10093_v31 = vpop.f32.mrb[186].mxu0 }
 0x449   : > { %v10142_v53 = vpop.f32.mrb[144].mxu1  ;;  %v10094_v24 = vpop.f32.mrb[187].mxu0 }
 0x44a   : > { %v10143_v17 = vpop.f32.mrb[145].mxu1  ;;  %v15491_v21 = vadd.f32 %v10094_v24, %v10093_v31 }
 0x44b   : > { %v10144_v19 = vadd.f32 %v10143_v17, %v10142_v53  ;;  %v10145_v41 = vpop.f32.mrb[146].mxu1 }
 0x44c   : > { %v10146_v1 = vpop.f32.mrb[147].mxu1 }
 0x44d   : > { %v15493_v49 = vadd.f32 %v10144_v19, %v8480_v0  ;;  %v10147_v38 = vadd.f32 %v10146_v1, %v10145_v41 }
 0x44e   : > { %v10096_v32 = vpop.f32.mrb[188].mxu0 }
 0x44f   : > { %v15495_v61 = vadd.f32 %v10147_v38, %v8483_v28  ;;  %v10097_v51 = vpop.f32.mrb[189].mxu0 }
 0x450   : > { %v15499_v34 = vadd.f32 %v10097_v51, %v10096_v32  ;;  %v10099_v12 = vpop.f32.mrb[190].mxu0 }
 0x451   : > { %v10148_v10 = vpop.f32.mrb[148].mxu1  ;;  %v10100_v47 = vpop.f32.mrb[191].mxu0 }
 0x452   : > { %v10149_v15 = vpop.f32.mrb[149].mxu1  ;;  %v15503_v3 = vadd.f32 %v10100_v47, %v10099_v12  ;;  %v8507_v12 = vadd.f32 %v15411_v5, %v15435_v37  ;;  %v8512_v5 = vadd.f32 %v15416_v48, %v15435_v37 }
 0x453   : > { %v10150_v60 = vadd.f32 %v10149_v15, %v10148_v10  ;;  %v10151_v55 = vpop.f32.mrb[150].mxu1 }
 0x454   : > { %v10152_v8 = vpop.f32.mrb[151].mxu1 }
 0x455   : > { %v15505_v11 = vadd.f32 %v10150_v60, %v8488_v16  ;;  %v10153_v27 = vadd.f32 %v10152_v8, %v10151_v55 }
 0x456   : > { %v10230_v42 = vpop.f32.mrb[192].mxu0 }
 0x457   : > { %v15507_v39 = vadd.f32 %v10153_v27, %v8491_v2  ;;  %v10231_v25 = vpop.f32.mrb[193].mxu0 }
 0x458   : > { %v10232_v44 = vadd.f32 %v10231_v25, %v10230_v42  ;;  %v10233_v29 = vpop.f32.mrb[194].mxu0 }
 0x459   : > { %v10154_v35 = vpop.f32.mrb[152].mxu1  ;;  %v10234_v17 = vpop.f32.mrb[195].mxu0 }
 0x45a   : > { %v10155_v6 = vpop.f32.mrb[153].mxu1  ;;  %v15514_v31 = vadd.f32 %v10232_v44, %v15445_v13  ;;  %v10235_v19 = vadd.f32 %v10234_v17, %v10233_v29 }
 0x45b   : > { %v10156_v53 = vadd.f32 %v10155_v6, %v10154_v35  ;;  %v10157_v43 = vpop.f32.mrb[154].mxu1 }
 0x45c   : > { %v10158_v0 = vpop.f32.mrb[155].mxu1  ;;  %v15519_v1 = vadd.f32 %v10235_v19, %v15447_v46 }
 0x45d   : > { %v15516_v41 = vadd.f32 %v10156_v53, %v8496_v20  ;;  %v10159_v24 = vadd.f32 %v10158_v0, %v10157_v43  ;;  %v8515_v53 = vadd.f32 %v15420_v50, %v15435_v37  ;;  %v8520_v50 = vadd.f32 %v15424_v36, %v15435_v37 }
 0x45e   : > { %v10236_v28 = vpop.f32.mrb[196].mxu0 }
 0x45f   : > { %v15521_v45 = vadd.f32 %v10159_v24, %v8499_v62  ;;  %v10237_v32 = vpop.f32.mrb[197].mxu0 }
 0x460   : > { %v10238_v51 = vadd.f32 %v10237_v32, %v10236_v28  ;;  %v10239_v15 = vpop.f32.mrb[198].mxu0 }
 0x461   : > { %v10160_v38 = vpop.f32.mrb[156].mxu1  ;;  %v10240_v60 = vpop.f32.mrb[199].mxu0 }
 0x462   : > { %v10161_v10 = vpop.f32.mrb[157].mxu1  ;;  %v15528_v46 = vadd.f32 %v10238_v51, %v15457_v4  ;;  %v10241_v47 = vadd.f32 %v10240_v60, %v10239_v15 }
 0x463   : > { %v10162_v13 = vadd.f32 %v10161_v10, %v10160_v38  ;;  %v10163_v16 = vpop.f32.mrb[158].mxu1 }
 0x464   : > { %v10164_v55 = vpop.f32.mrb[159].mxu1  ;;  %v15533_v27 = vadd.f32 %v10241_v47, %v15459_v63 }
 0x465   : > { %v15530_v8 = vadd.f32 %v10162_v13, %v8504_v40  ;;  %v10165_v2 = vadd.f32 %v10164_v55, %v10163_v16  ;;  %v8523_v13 = vadd.f32 %v15432_v33, %v15435_v37  ;;  %v8528_v33 = vadd.f32 %v15439_v30, %v15435_v37 }
 0x466   : > { %v10242_v42 = vpop.f32.mrb[200].mxu0 }
 0x467   : > { %v15535_v18 = vadd.f32 %v10165_v2, %v8507_v12  ;;  %v10243_v25 = vpop.f32.mrb[201].mxu0 }
 0x468   : > { %v10244_v20 = vadd.f32 %v10243_v25, %v10242_v42  ;;  %v10245_v44 = vpop.f32.mrb[202].mxu0 }
 0x469   : > { %v10166_v35 = vpop.f32.mrb[160].mxu1  ;;  %v10246_v43 = vpop.f32.mrb[203].mxu0 }
 0x46a   : > { %v10167_v6 = vpop.f32.mrb[161].mxu1  ;;  %v15542_v63 = vadd.f32 %v10244_v20, %v15469_v56  ;;  %v10247_v17 = vadd.f32 %v10246_v43, %v10245_v44 }
 0x46b   : > { %v10168_v4 = vadd.f32 %v10167_v6, %v10166_v35  ;;  %v10169_v29 = vpop.f32.mrb[162].mxu1 }
 0x46c   : > { %v10170_v62 = vpop.f32.mrb[163].mxu1  ;;  %v15547_v24 = vadd.f32 %v10247_v17, %v15471_v26 }
 0x46d   : > { %v15544_v0 = vadd.f32 %v10168_v4, %v8512_v5  ;;  %v10171_v19 = vadd.f32 %v10170_v62, %v10169_v29  ;;  %v8531_v4 = vadd.f32 %v15443_v59, %v15435_v37  ;;  %v8536_v59 = vadd.f32 %v15451_v22, %v15435_v37 }
 0x46e   : > { %v10248_v28 = vpop.f32.mrb[204].mxu0 }
 0x46f   : > { %v15549_v48 = vadd.f32 %v10171_v19, %v8515_v53  ;;  %v10249_v32 = vpop.f32.mrb[205].mxu0 }
 0x470   : > { %v10250_v40 = vadd.f32 %v10249_v32, %v10248_v28  ;;  %v10251_v51 = vpop.f32.mrb[206].mxu0 }
 0x471   : > { %v10172_v38 = vpop.f32.mrb[164].mxu1  ;;  %v10252_v16 = vpop.f32.mrb[207].mxu0 }
 0x472   : > { %v10173_v10 = vpop.f32.mrb[165].mxu1  ;;  %v15556_v26 = vadd.f32 %v10250_v40, %v15481_v52  ;;  %v10253_v60 = vadd.f32 %v10252_v16, %v10251_v51 }
 0x473   : > { %v10174_v56 = vadd.f32 %v10173_v10, %v10172_v38  ;;  %v10175_v15 = vpop.f32.mrb[166].mxu1 }
 0x474   : > { %v10176_v12 = vpop.f32.mrb[167].mxu1  ;;  %v15561_v2 = vadd.f32 %v10253_v60, %v15483_v54 }
 0x475   : > { %v15558_v55 = vadd.f32 %v10174_v56, %v8520_v50  ;;  %v10177_v47 = vadd.f32 %v10176_v12, %v10175_v15  ;;  %v8539_v56 = vadd.f32 %v15455_v57, %v15435_v37  ;;  %v8544_v57 = vadd.f32 %v15463_v9, %v15435_v37 }
 0x476   : > { %v10254_v42 = vpop.f32.mrb[208].mxu0 }
 0x477   : > { %v15563_v36 = vadd.f32 %v10177_v47, %v8523_v13  ;;  %v10255_v25 = vpop.f32.mrb[209].mxu0 }
 0x478   : > { %v10256_v5 = vadd.f32 %v10255_v25, %v10254_v42  ;;  %v10257_v20 = vpop.f32.mrb[210].mxu0 }
 0x479   : > { %v10178_v35 = vpop.f32.mrb[168].mxu1  ;;  %v10258_v29 = vpop.f32.mrb[211].mxu0 }
 0x47a   : > { %v10179_v6 = vpop.f32.mrb[169].mxu1  ;;  %v15570_v54 = vadd.f32 %v10256_v5, %v15493_v49  ;;  %v10259_v43 = vadd.f32 %v10258_v29, %v10257_v20 }
 0x47b   : > { %v10180_v52 = vadd.f32 %v10179_v6, %v10178_v35  ;;  %v10181_v44 = vpop.f32.mrb[170].mxu1 }
 0x47c   : > { %v10182_v53 = vpop.f32.mrb[171].mxu1  ;;  %v15575_v19 = vadd.f32 %v10259_v43, %v15495_v61 }
 0x47d   : > { %v15572_v62 = vadd.f32 %v10180_v52, %v8528_v33  ;;  %v10183_v17 = vadd.f32 %v10182_v53, %v10181_v44  ;;  %v8547_v52 = vadd.f32 %v15467_v23, %v15435_v37  ;;  %v8552_v23 = vadd.f32 %v15475_v7, %v15435_v37 }
 0x47e   : > { %v10260_v28 = vpop.f32.mrb[212].mxu0 }
 0x47f   : > { %v15577_v30 = vadd.f32 %v10183_v17, %v8531_v4  ;;  %v10261_v32 = vpop.f32.mrb[213].mxu0 }
 0x480   : > { %v10262_v50 = vadd.f32 %v10261_v32, %v10260_v28  ;;  %v10263_v40 = vpop.f32.mrb[214].mxu0 }
 0x481   : > { %v10184_v38 = vpop.f32.mrb[172].mxu1  ;;  %v10264_v15 = vpop.f32.mrb[215].mxu0 }
 0x482   : > { %v10185_v10 = vpop.f32.mrb[173].mxu1  ;;  %v15584_v61 = vadd.f32 %v10262_v50, %v15505_v11  ;;  %v10265_v16 = vadd.f32 %v10264_v15, %v10263_v40 }
 0x483   : > { %v10186_v49 = vadd.f32 %v10185_v10, %v10184_v38  ;;  %v10187_v51 = vpop.f32.mrb[174].mxu1 }
 0x484   : > { %v10188_v13 = vpop.f32.mrb[175].mxu1  ;;  %v15589_v47 = vadd.f32 %v10265_v16, %v15507_v39 }
 0x485   : > { %v15586_v12 = vadd.f32 %v10186_v49, %v8536_v59  ;;  %v10189_v60 = vadd.f32 %v10188_v13, %v10187_v51  ;;  %v8555_v49 = vadd.f32 %v15479_v58, %v15435_v37  ;;  %v8560_v58 = vadd.f32 %v15487_v14, %v15435_v37 }
 0x486   : > { %v10266_v42 = vpop.f32.mrb[216].mxu0 }
 0x487   : > { %v15591_v22 = vadd.f32 %v10189_v60, %v8539_v56  ;;  %v10267_v25 = vpop.f32.mrb[217].mxu0 }
 0x488   : > { %v10268_v33 = vadd.f32 %v10267_v25, %v10266_v42  ;;  %v10269_v5 = vpop.f32.mrb[218].mxu0 }
 0x489   : > { %v10190_v35 = vpop.f32.mrb[176].mxu1  ;;  %v10270_v44 = vpop.f32.mrb[219].mxu0 }
 0x48a   : > { %v10191_v6 = vpop.f32.mrb[177].mxu1  ;;  %v15598_v39 = vadd.f32 %v10268_v33, %v15516_v41  ;;  %v10271_v29 = vadd.f32 %v10270_v44, %v10269_v5 }
 0x48b   : > { %v10192_v11 = vadd.f32 %v10191_v6, %v10190_v35  ;;  %v10193_v20 = vpop.f32.mrb[178].mxu1 }
 0x48c   : > { %v10194_v4 = vpop.f32.mrb[179].mxu1  ;;  %v15603_v17 = vadd.f32 %v10271_v29, %v15521_v45 }
 0x48d   : > { %v15600_v53 = vadd.f32 %v10192_v11, %v8544_v57  ;;  %v10195_v43 = vadd.f32 %v10194_v4, %v10193_v20  ;;  %v8563_v11 = vadd.f32 %v15491_v21, %v15435_v37  ;;  %v8568_v21 = vadd.f32 %v15499_v34, %v15435_v37 }
 0x48e   : > { %v10272_v28 = vpop.f32.mrb[220].mxu0 }
 0x48f   : > { %v15605_v9 = vadd.f32 %v10195_v43, %v8547_v52  ;;  %v10273_v32 = vpop.f32.mrb[221].mxu0 }
 0x490   : > { %v10274_v59 = vadd.f32 %v10273_v32, %v10272_v28  ;;  %v10275_v50 = vpop.f32.mrb[222].mxu0 }
 0x491   : > { %v10196_v38 = vpop.f32.mrb[180].mxu1  ;;  %v10276_v51 = vpop.f32.mrb[223].mxu0 }
 0x492   : > { %v10197_v10 = vpop.f32.mrb[181].mxu1  ;;  %v15612_v45 = vadd.f32 %v10274_v59, %v15530_v8  ;;  %v10277_v15 = vadd.f32 %v10276_v51, %v10275_v50 }
 0x493   : > { %v10198_v41 = vadd.f32 %v10197_v10, %v10196_v38  ;;  %v10199_v40 = vpop.f32.mrb[182].mxu1 }
 0x494   : > { %v10200_v56 = vpop.f32.mrb[183].mxu1  ;;  %v15617_v60 = vadd.f32 %v10277_v15, %v15535_v18 }
 0x495   : > { %v15614_v13 = vadd.f32 %v10198_v41, %v8552_v23  ;;  %v10201_v16 = vadd.f32 %v10200_v56, %v10199_v40  ;;  %v8571_v41 = vadd.f32 %v15503_v3, %v15435_v37 }
 0x496   : > { %v10278_v42 = vpop.f32.mrb[224].mxu0 }
 0x497   : > { %v15619_v7 = vadd.f32 %v10201_v16, %v8555_v49  ;;  %v10279_v25 = vpop.f32.mrb[225].mxu0 }
 0x498   : > { %v10280_v57 = vadd.f32 %v10279_v25, %v10278_v42  ;;  %v10281_v33 = vpop.f32.mrb[226].mxu0 }
 0x499   : > { %v10202_v35 = vpop.f32.mrb[184].mxu1  ;;  %v10282_v20 = vpop.f32.mrb[227].mxu0 }
 0x49a   : > { %v10203_v6 = vpop.f32.mrb[185].mxu1  ;;  %v15626_v18 = vadd.f32 %v10280_v57, %v15544_v0  ;;  %v10283_v44 = vadd.f32 %v10282_v20, %v10281_v33 }
 0x49b   : > { %v10204_v8 = vadd.f32 %v10203_v6, %v10202_v35  ;;  %v10205_v5 = vpop.f32.mrb[186].mxu1 }
 0x49c   : > { %v10206_v52 = vpop.f32.mrb[187].mxu1  ;;  %v15631_v43 = vadd.f32 %v10283_v44, %v15549_v48 }
 0x49d   : > { %v15628_v4 = vadd.f32 %v10204_v8, %v8560_v58  ;;  %v10207_v29 = vadd.f32 %v10206_v52, %v10205_v5 }
 0x49e   : > { %v10284_v28 = vpop.f32.mrb[228].mxu0 }
 0x49f   : > { %v15633_v14 = vadd.f32 %v10207_v29, %v8563_v11  ;;  %v10285_v32 = vpop.f32.mrb[229].mxu0 }
 0x4a0   : > { %v10286_v23 = vadd.f32 %v10285_v32, %v10284_v28  ;;  %v10287_v0 = vpop.f32.mrb[230].mxu0 }
 0x4a1   : > { %v10208_v38 = vpop.f32.mrb[188].mxu1  ;;  %v10288_v48 = vpop.f32.mrb[231].mxu0 }
 0x4a2   : > { %v10209_v10 = vpop.f32.mrb[189].mxu1  ;;  %v15640_v49 = vadd.f32 %v10286_v23, %v15558_v55  ;;  %v10289_v51 = vadd.f32 %v10288_v48, %v10287_v0 }
 0x4a3   : > { %v10210_v59 = vadd.f32 %v10209_v10, %v10208_v38  ;;  %v10211_v50 = vpop.f32.mrb[190].mxu1 }
 0x4a4   : > { %v10212_v40 = vpop.f32.mrb[191].mxu1  ;;  %v15645_v16 = vadd.f32 %v10289_v51, %v15563_v36 }
 0x4a5   : > { %v15642_v56 = vadd.f32 %v10210_v59, %v8568_v21  ;;  %v10213_v15 = vadd.f32 %v10212_v40, %v10211_v50 }
 0x4a6   : > { %v10290_v42 = vpop.f32.mrb[232].mxu0 }
 0x4a7   : > { %v15647_v34 = vadd.f32 %v10213_v15, %v8571_v41  ;;  %v10291_v25 = vpop.f32.mrb[233].mxu0 }
 0x4a8   : > { %v10292_v3 = vadd.f32 %v10291_v25, %v10290_v42  ;;  %v10293_v6 = vpop.f32.mrb[234].mxu0 }
 0x4a9   : > { %v10360_v35 = vpop.f32.mrb[192].mxu1  ;;  %v10294_v57 = vpop.f32.mrb[235].mxu0 }
 0x4aa   : > { %v10361_v37 = vpop.f32.mrb[193].mxu1  ;;  %v15653_v8 = vadd.f32 %v10292_v3, %v15572_v62  ;;  %v10295_v36 = vadd.f32 %v10294_v57, %v10293_v6 }
 0x4ab   : > { %v10362_v55 = vadd.f32 %v10361_v37, %v10360_v35  ;;  %v10363_v58 = vpop.f32.mrb[194].mxu1 }
 0x4ac   : > { %v10364_v33 = vpop.f32.mrb[195].mxu1  ;;  %v15657_v20 = vadd.f32 %v10295_v36, %v15577_v30 }
 0x4ad   : > { %v8955_v5 = vadd.f32 %v10362_v55, %v15556_v26  ;;  %v10365_v11 = vadd.f32 %v10364_v33, %v10363_v58 }
 0x4ae   : > { %v10296_v29 = vpop.f32.mrb[236].mxu0 }
 0x4af   : > { %v9063_v52 = vmax.f32 %v8955_v5, 0.0  ;;  %v8958_v44 = vadd.f32 %v10365_v11, %v15561_v2  ;;  %v10297_v38 = vpop.f32.mrb[237].mxu0 }
 0x4b0   : > { %v10298_v26 = vadd.f32 %v10297_v38, %v10296_v29  ;;  %v10299_v10 = vpop.f32.mrb[238].mxu0 }
 0x4b1   : > { %9095 = vst.msk [vmem:[%s15660_s12 + $0x30] sm:$0xff] %vm728_vm4, %v9063_v52  ;;  %v9064_v28 = vmax.f32 %v8958_v44, 0.0  ;;  %v10366_v62 = vpop.f32.mrb[196].mxu1  ;;  %v10300_v23 = vpop.f32.mrb[239].mxu0 }
 0x4b2   : > { %v10367_v32 = vpop.f32.mrb[197].mxu1  ;;  %v15667_v0 = vadd.f32 %v10298_v26, %v15586_v12  ;;  %v10301_v59 = vadd.f32 %v10300_v23, %v10299_v10 }
 0x4b3   : > { %9096 = vst.msk [vmem:[%s15660_s12 + $0x38] sm:$0xff] %vm728_vm4, %v9064_v28  ;;  %v10368_v30 = vadd.f32 %v10367_v32, %v10366_v62  ;;  %v10369_v21 = vpop.f32.mrb[198].mxu1 }
 0x4b4   : > { %v10370_v2 = vpop.f32.mrb[199].mxu1  ;;  %v15671_v48 = vadd.f32 %v10301_v59, %v15591_v22 }
 0x4b5   : > { %v8963_v50 = vadd.f32 %v10368_v30, %v15570_v54  ;;  %v10371_v41 = vadd.f32 %v10370_v2, %v10369_v21 }
 0x4b6   : > { %v10302_v15 = vpop.f32.mrb[240].mxu0 }
 0x4b7   : > { %v9065_v40 = vmax.f32 %v8963_v50, 0.0  ;;  %v8966_v51 = vadd.f32 %v10371_v41, %v15575_v19  ;;  %v10303_v25 = vpop.f32.mrb[241].mxu0 }
 0x4b8   : > { %v10304_v12 = vadd.f32 %v10303_v25, %v10302_v15  ;;  %v10305_v3 = vpop.f32.mrb[242].mxu0 }
 0x4b9   : > { %9097 = vst.msk [vmem:[%s15660_s12 + $0x40] sm:$0xff] %vm728_vm4, %v9065_v40  ;;  %v9066_v42 = vmax.f32 %v8966_v51, 0.0  ;;  %v10372_v35 = vpop.f32.mrb[200].mxu1  ;;  %v10306_v55 = vpop.f32.mrb[243].mxu0 }
 0x4ba   : > { %v10373_v37 = vpop.f32.mrb[201].mxu1  ;;  %v15679_v58 = vadd.f32 %v10304_v12, %v15600_v53  ;;  %v10307_v19 = vadd.f32 %v10306_v55, %v10305_v3 }
 0x4bb   : > { %9098 = vst.msk [vmem:[%s15660_s12 + $0x48] sm:$0xff] %vm728_vm4, %v9066_v42  ;;  %v10374_v54 = vadd.f32 %v10373_v37, %v10372_v35  ;;  %v10375_v6 = vpop.f32.mrb[202].mxu1 }
 0x4bc   : > { %v10376_v22 = vpop.f32.mrb[203].mxu1  ;;  %v15683_v36 = vadd.f32 %v10307_v19, %v15605_v9 }
 0x4bd   : > { %v8971_v57 = vadd.f32 %v10374_v54, %v15584_v61  ;;  %v10377_v33 = vadd.f32 %v10376_v22, %v10375_v6 }
 0x4be   : > { %v10308_v52 = vpop.f32.mrb[244].mxu0 }
 0x4bf   : > { %v9067_v5 = vmax.f32 %v8971_v57, 0.0  ;;  %v8974_v11 = vadd.f32 %v10377_v33, %v15589_v47  ;;  %v10309_v28 = vpop.f32.mrb[245].mxu0 }
 0x4c0   : > { %v10310_v53 = vadd.f32 %v10309_v28, %v10308_v52  ;;  %v10311_v38 = vpop.f32.mrb[246].mxu0 }
 0x4c1   : > { %9099 = vst.msk [vmem:[%s15660_s12 + $0x50] sm:$0xff] %vm728_vm4, %v9067_v5  ;;  %v9068_v44 = vmax.f32 %v8974_v11, 0.0  ;;  %v10378_v29 = vpop.f32.mrb[204].mxu1  ;;  %v10312_v26 = vpop.f32.mrb[247].mxu0 }
 0x4c2   : > { %v10379_v62 = vpop.f32.mrb[205].mxu1  ;;  %v15691_v10 = vadd.f32 %v10310_v53, %v15614_v13  ;;  %v10313_v47 = vadd.f32 %v10312_v26, %v10311_v38 }
 0x4c3   : > { %9100 = vst.msk [vmem:[%s15660_s12 + $0x58] sm:$0xff] %vm728_vm4, %v9068_v44  ;;  %v10380_v61 = vadd.f32 %v10379_v62, %v10378_v29  ;;  %v10381_v32 = vpop.f32.mrb[206].mxu1 }
 0x4c4   : > { %v10382_v9 = vpop.f32.mrb[207].mxu1  ;;  %v15695_v23 = vadd.f32 %v10313_v47, %v15619_v7 }
 0x4c5   : > { %v8979_v30 = vadd.f32 %v10380_v61, %v15598_v39  ;;  %v10383_v21 = vadd.f32 %v10382_v9, %v10381_v32 }
 0x4c6   : > { %v10314_v50 = vpop.f32.mrb[248].mxu0 }
 0x4c7   : > { %v9069_v2 = vmax.f32 %v8979_v30, 0.0  ;;  %v8982_v59 = vadd.f32 %v10383_v21, %v15603_v17  ;;  %v10315_v51 = vpop.f32.mrb[249].mxu0 }
 0x4c8   : > { %v10316_v13 = vadd.f32 %v10315_v51, %v10314_v50  ;;  %v10317_v42 = vpop.f32.mrb[250].mxu0 }
 0x4c9   : > { %9101 = vst.msk [vmem:[%s15660_s12 + $0x60] sm:$0xff] %vm728_vm4, %v9069_v2  ;;  %v9070_v41 = vmax.f32 %v8982_v59, 0.0  ;;  %v10384_v40 = vpop.f32.mrb[208].mxu1  ;;  %v10318_v25 = vpop.f32.mrb[251].mxu0 }
 0x4ca   : > { %v10385_v15 = vpop.f32.mrb[209].mxu1  ;;  %v15703_v37 = vadd.f32 %v10316_v13, %v15628_v4  ;;  %v10319_v17 = vadd.f32 %v10318_v25, %v10317_v42 }
 0x4cb   : > { %9102 = vst.msk [vmem:[%s15660_s12 + $0x68] sm:$0xff] %vm728_vm4, %v9070_v41  ;;  %v10386_v39 = vadd.f32 %v10385_v15, %v10384_v40  ;;  %v10387_v35 = vpop.f32.mrb[210].mxu1 }
 0x4cc   : > { %v10388_v7 = vpop.f32.mrb[211].mxu1  ;;  %v15707_v54 = vadd.f32 %v10319_v17, %v15633_v14 }
 0x4cd   : > { %v8987_v12 = vadd.f32 %v10386_v39, %v15612_v45  ;;  %v10389_v3 = vadd.f32 %v10388_v7, %v10387_v35 }
 0x4ce   : > { %v10320_v22 = vpop.f32.mrb[252].mxu0 }
 0x4cf   : > { %v9071_v6 = vmax.f32 %v8987_v12, 0.0  ;;  %v8990_v55 = vadd.f32 %v10389_v3, %v15617_v60  ;;  %v10321_v33 = vpop.f32.mrb[253].mxu0 }
 0x4d0   : > { %v10322_v4 = vadd.f32 %v10321_v33, %v10320_v22  ;;  %v10323_v11 = vpop.f32.mrb[254].mxu0 }
 0x4d1   : > { %9103 = vst.msk [vmem:[%s15660_s12 + $0x70] sm:$0xff] %vm728_vm4, %v9071_v6  ;;  %v9072_v19 = vmax.f32 %v8990_v55, 0.0  ;;  %v10390_v57 = vpop.f32.mrb[212].mxu1  ;;  %v10324_v44 = vpop.f32.mrb[255].mxu0 }
 0x4d2   : > { %v10391_v5 = vpop.f32.mrb[213].mxu1  ;;  %v15715_v29 = vadd.f32 %v10322_v4, %v15642_v56  ;;  %v10325_v60 = vadd.f32 %v10324_v44, %v10323_v11 }
 0x4d3   : > { %9104 = vst.msk [vmem:[%s15660_s12 + $0x78] sm:$0xff] %vm728_vm4, %v9072_v19  ;;  %v10392_v45 = vadd.f32 %v10391_v5, %v10390_v57  ;;  %v10393_v52 = vpop.f32.mrb[214].mxu1 }
 0x4d4   : > { %v10394_v14 = vpop.f32.mrb[215].mxu1  ;;  %v15719_v53 = vadd.f32 %v10325_v60, %v15647_v34 }
 0x4d5   : > { %v8995_v28 = vadd.f32 %v10392_v45, %v15626_v18  ;;  %v10395_v62 = vadd.f32 %v10394_v14, %v10393_v52 }
 0x4d6   : > { %v10342_v32 = vpop.f32.mrb[0].mxu0 }
 0x4d7   : > { %v9073_v38 = vmax.f32 %v8995_v28, 0.0  ;;  %v8998_v61 = vadd.f32 %v10395_v62, %v15631_v43  ;;  %v10343_v47 = vpop.f32.mrb[1].mxu0 }
 0x4d8   : > { %v10344_v56 = vadd.f32 %v10343_v47, %v10342_v32  ;;  %v10345_v21 = vpop.f32.mrb[2].mxu0 }
 0x4d9   : > { %9105 = vst.msk [vmem:[%s15660_s12 + $0x80] sm:$0xff] %vm728_vm4, %v9073_v38  ;;  %v9074_v26 = vmax.f32 %v8998_v61, 0.0  ;;  %v10396_v9 = vpop.f32.mrb[216].mxu1  ;;  %v10346_v34 = vpop.f32.mrb[3].mxu0 }
 0x4da   : > { %v10397_v30 = vpop.f32.mrb[217].mxu1  ;;  %v8931_v50 = vadd.f32 %v10344_v56, %v15514_v31  ;;  %v10347_v43 = vadd.f32 %v10346_v34, %v10345_v21 }
 0x4db   : > { %9106 = vst.msk [vmem:[%s15660_s12 + $0x88] sm:$0xff] %vm728_vm4, %v9074_v26  ;;  %v10398_v18 = vadd.f32 %v10397_v30, %v10396_v9  ;;  %v10399_v2 = vpop.f32.mrb[218].mxu1 }
 0x4dc   : > { %v10400_v59 = vpop.f32.mrb[219].mxu1  ;;  %v9057_v51 = vmax.f32 %v8931_v50, 0.0  ;;  %v8934_v15 = vadd.f32 %v10347_v43, %v15519_v1 }
 0x4dd   : > { %v9003_v41 = vadd.f32 %v10398_v18, %v15640_v49  ;;  %v10401_v40 = vadd.f32 %v10400_v59, %v10399_v2 }
 0x4de   : > { %9089 = vst.msk [vmem:[%s15660_s12] sm:$0xff] %vm728_vm4, %v9057_v51  ;;  %v9058_v39 = vmax.f32 %v8934_v15, 0.0  ;;  %v10348_v35 = vpop.f32.mrb[4].mxu0 }
 0x4df   : > { %v9075_v13 = vmax.f32 %v9003_v41, 0.0  ;;  %v9006_v42 = vadd.f32 %v10401_v40, %v15645_v16  ;;  %v10349_v7 = vpop.f32.mrb[5].mxu0 }
 0x4e0   : > { %9090 = vst.msk [vmem:[%s15660_s12 + $0x8] sm:$0xff] %vm728_vm4, %v9058_v39  ;;  %v10350_v49 = vadd.f32 %v10349_v7, %v10348_v35  ;;  %v10351_v12 = vpop.f32.mrb[6].mxu0 }
 0x4e1   : > { %9107 = vst.msk [vmem:[%s15660_s12 + $0x90] sm:$0xff] %vm728_vm4, %v9075_v13  ;;  %v9076_v25 = vmax.f32 %v9006_v42, 0.0  ;;  %v10402_v31 = vpop.f32.mrb[220].mxu1  ;;  %v10352_v3 = vpop.f32.mrb[7].mxu0 }
 0x4e2   : > { %v10403_v17 = vpop.f32.mrb[221].mxu1  ;;  %v8939_v55 = vadd.f32 %v10350_v49, %v15528_v46  ;;  %v10353_v22 = vadd.f32 %v10352_v3, %v10351_v12 }
 0x4e3   : > { %9108 = vst.msk [vmem:[%s15660_s12 + $0x98] sm:$0xff] %vm728_vm4, %v9076_v25  ;;  %v10404_v1 = vadd.f32 %v10403_v17, %v10402_v31  ;;  %v10405_v16 = vpop.f32.mrb[222].mxu1 }
 0x4e4   : > { %v10406_v6 = vpop.f32.mrb[223].mxu1  ;;  %v9059_v33 = vmax.f32 %v8939_v55, 0.0  ;;  %v8942_v5 = vadd.f32 %v10353_v22, %v15533_v27 }
 0x4e5   : > { %v9011_v19 = vadd.f32 %v10404_v1, %v15653_v8  ;;  %v10407_v57 = vadd.f32 %v10406_v6, %v10405_v16 }
 0x4e6   : > { %9091 = vst.msk [vmem:[%s15660_s12 + $0x10] sm:$0xff] %vm728_vm4, %v9059_v33  ;;  %v9060_v45 = vmax.f32 %v8942_v5, 0.0  ;;  %v10354_v52 = vpop.f32.mrb[8].mxu0 }
 0x4e7   : > { %v9077_v4 = vmax.f32 %v9011_v19, 0.0  ;;  %v9014_v11 = vadd.f32 %v10407_v57, %v15657_v20  ;;  %v10355_v14 = vpop.f32.mrb[9].mxu0 }
 0x4e8   : > { %9092 = vst.msk [vmem:[%s15660_s12 + $0x18] sm:$0xff] %vm728_vm4, %v9060_v45  ;;  %v10356_v8 = vadd.f32 %v10355_v14, %v10354_v52  ;;  %v10357_v28 = vpop.f32.mrb[10].mxu0 }
 0x4e9   : > { %9109 = vst.msk [vmem:[%s15660_s12 + $0xa0] sm:$0xff] %vm728_vm4, %v9077_v4  ;;  %v9078_v44 = vmax.f32 %v9014_v11, 0.0  ;;  %v10408_v46 = vpop.f32.mrb[224].mxu1  ;;  %v10358_v62 = vpop.f32.mrb[11].mxu0 }
 0x4ea   : > { %v10409_v60 = vpop.f32.mrb[225].mxu1  ;;  %v8947_v61 = vadd.f32 %v10356_v8, %v15542_v63  ;;  %v10359_v32 = vadd.f32 %v10358_v62, %v10357_v28 }
 0x4eb   : > { %9110 = vst.msk [vmem:[%s15660_s12 + $0xa8] sm:$0xff] %vm728_vm4, %v9078_v44  ;;  %v10410_v27 = vadd.f32 %v10409_v60, %v10408_v46  ;;  %v10411_v20 = vpop.f32.mrb[226].mxu1 }
 0x4ec   : > { %v10412_v38 = vpop.f32.mrb[227].mxu1  ;;  %v9061_v47 = vmax.f32 %v8947_v61, 0.0  ;;  %v8950_v30 = vadd.f32 %v10359_v32, %v15547_v24 }
 0x4ed   : > { %v9019_v26 = vadd.f32 %v10410_v27, %v15667_v0  ;;  %v10413_v9 = vadd.f32 %v10412_v38, %v10411_v20 }
 0x4ee   : > { %9093 = vst.msk [vmem:[%s15660_s12 + $0x20] sm:$0xff] %vm728_vm4, %v9061_v47  ;;  %v9062_v18 = vmax.f32 %v8950_v30, 0.0 }
 0x4ef   : > { %v9079_v56 = vmax.f32 %v9019_v26, 0.0  ;;  %v9022_v21 = vadd.f32 %v10413_v9, %v15671_v48 }
 0x4f0   : > { %9094 = vst.msk [vmem:[%s15660_s12 + $0x28] sm:$0xff] %vm728_vm4, %v9062_v18 }
 0x4f1   : > { %9111 = vst.msk [vmem:[%s15660_s12 + $0xb0] sm:$0xff] %vm728_vm4, %v9079_v56  ;;  %v9080_v2 = vmax.f32 %v9022_v21, 0.0  ;;  %v10414_v34 = vpop.f32.mrb[228].mxu1 }
 0x4f2   : > { %v10415_v63 = vpop.f32.mrb[229].mxu1 }
 0x4f3   : > { %9112 = vst.msk [vmem:[%s15660_s12 + $0xb8] sm:$0xff] %vm728_vm4, %v9080_v2  ;;  %v10416_v0 = vadd.f32 %v10415_v63, %v10414_v34  ;;  %v10417_v59 = vpop.f32.mrb[230].mxu1 }
 0x4f4   : > { %v10418_v24 = vpop.f32.mrb[231].mxu1 }
 0x4f5   : > { %v9027_v50 = vadd.f32 %v10416_v0, %v15679_v58  ;;  %v10419_v48 = vadd.f32 %v10418_v24, %v10417_v59 }
 0x4f7   : > { %v9081_v43 = vmax.f32 %v9027_v50, 0.0  ;;  %v9030_v41 = vadd.f32 %v10419_v48, %v15683_v36 }
 0x4f9   : > { %9113 = vst.msk [vmem:[%s15660_s12 + $0xc0] sm:$0xff] %vm728_vm4, %v9081_v43  ;;  %v9082_v40 = vmax.f32 %v9030_v41, 0.0  ;;  %v10420_v51 = vpop.f32.mrb[232].mxu1 }
 0x4fa   : > { %v10421_v15 = vpop.f32.mrb[233].mxu1 }
 0x4fb   : > { %9114 = vst.msk [vmem:[%s15660_s12 + $0xc8] sm:$0xff] %vm728_vm4, %v9082_v40  ;;  %v10422_v13 = vadd.f32 %v10421_v15, %v10420_v51  ;;  %v10423_v42 = vpop.f32.mrb[234].mxu1 }
 0x4fc   : > { %v10424_v39 = vpop.f32.mrb[235].mxu1 }
 0x4fd   : > { %v9035_v35 = vadd.f32 %v10422_v13, %v15691_v10  ;;  %v10425_v58 = vadd.f32 %v10424_v39, %v10423_v42 }
 0x4ff   : > { %v9083_v25 = vmax.f32 %v9035_v35, 0.0  ;;  %v9038_v31 = vadd.f32 %v10425_v58, %v15695_v23 }
 0x501   : > { %9115 = vst.msk [vmem:[%s15660_s12 + $0xd0] sm:$0xff] %vm728_vm4, %v9083_v25  ;;  %v9084_v36 = vmax.f32 %v9038_v31, 0.0  ;;  %v10426_v7 = vpop.f32.mrb[236].mxu1 }
 0x502   : > { %v10427_v17 = vpop.f32.mrb[237].mxu1 }
 0x503   : > { %9116 = vst.msk [vmem:[%s15660_s12 + $0xd8] sm:$0xff] %vm728_vm4, %v9084_v36  ;;  %v10428_v49 = vadd.f32 %v10427_v17, %v10426_v7  ;;  %v10429_v12 = vpop.f32.mrb[238].mxu1 }
 0x504   : > { %v10430_v1 = vpop.f32.mrb[239].mxu1 }
 0x505   : > { %v9043_v10 = vadd.f32 %v10428_v49, %v15703_v37  ;;  %v10431_v16 = vadd.f32 %v10430_v1, %v10429_v12 }
 0x507   : > { %v9085_v3 = vmax.f32 %v9043_v10, 0.0  ;;  %v9046_v6 = vadd.f32 %v10431_v16, %v15707_v54 }
 0x509   : > { %9117 = vst.msk [vmem:[%s15660_s12 + $0xe0] sm:$0xff] %vm728_vm4, %v9085_v3  ;;  %v9086_v23 = vmax.f32 %v9046_v6, 0.0  ;;  %v10432_v55 = vpop.f32.mrb[240].mxu1 }
 0x50a   : > { %v10433_v22 = vpop.f32.mrb[241].mxu1 }
 0x50b   : > { %9118 = vst.msk [vmem:[%s15660_s12 + $0xe8] sm:$0xff] %vm728_vm4, %v9086_v23  ;;  %v10434_v19 = vadd.f32 %v10433_v22, %v10432_v55  ;;  %v10435_v57 = vpop.f32.mrb[242].mxu1 }
 0x50c   : > { %v10436_v33 = vpop.f32.mrb[243].mxu1 }
 0x50d   : > { %v9051_v37 = vadd.f32 %v10434_v19, %v15715_v29  ;;  %v10437_v5 = vadd.f32 %v10436_v33, %v10435_v57 }
 0x50f   : > { %v9087_v54 = vmax.f32 %v9051_v37, 0.0  ;;  %v9054_v4 = vadd.f32 %v10437_v5, %v15719_v53 }
 0x511   : > { %9119 = vst.msk [vmem:[%s15660_s12 + $0xf0] sm:$0xff] %vm728_vm4, %v9087_v54  ;;  %v9088_v11 = vmax.f32 %v9054_v4, 0.0 }
 0x513   : > { %9120 = vst.msk [vmem:[%s15660_s12 + $0xf8] sm:$0xff] %vm728_vm4, %v9088_v11 }
 0x514   : > { %11397 = shalt.err (!%p11394_p7)
}
 0x515   : > { %s11398_s28 = scalar_lea.hbm %s15787_s18, 4096  ;;  %s11402_s9 = scalar_lea.hbm %s15844_s6, 8192 }
 0x516   : > { %p11399_p8 = scmp.ne.s32.totalorder %s15787_s18, %s11398_s28  ;;  %p11403_p1 = scmp.lt.u32.totalorder %s15787_s18, %s15844_s6 }
 0x517   : > { %p11404_p0 = scmp.lt.u32.totalorder %s11402_s9, %s11398_s28  ;;  %p11406_p6 = scmp.lt.u32.totalorder %s11398_s28, %s15787_s18 }
 0x518   : > { %p11400_p11 = pnand %p11399_p8, %p16172_p9 }
 0x519   : > { %p11405_p5 = por %p11404_p0, %p11403_p1 }
 0x51a   : > { %p11401_p13 = pneg %p11400_p11 }
 0x51b   : > { %p11407_p10 = por %p11406_p6, %p11405_p5 }
 0x51d   : > { %p11408_p12 = pnand %p11407_p10, %p11401_p13 }
 0x51f   : > { %11411 = shalt.err (!%p11408_p12)
}
 0x520   : > { %s11458_s13 = smov 128   ;;  %s11459_s16 = smov 8  }
 0x521   : > { %10842 = dma.vmem_to_hbm [thread:$0]  (%p16172_p9), %s15789_s15, 4096, %s15787_s18, %s15797_s25, %s11458_s13, %s11458_s13, %s11459_s16  }
 0x522 PF: > { %p10854_p2 = scmp.ge.s32.totalorder %s11450_s24, 2  ;;  %s9150_s17 = sand.u32 1, %s11438_s21  }
 0x523   : > { %p16173_p3 = scmp.ne.s32.totalorder %s15903_s8, 0  ;;  %s9151_s14 = scalar_lea.sflag [#allocation5], %s9150_s17 }
 0x525   : > { %p10849_p4 = pnand %p10854_p2, %p16173_p3 }
 0x527   : > { %11433 = dma.done.wait (!%p10849_p4), %s9151_s14, 4096  }
 0x528   : > { %11435 = vsyncadd (!%p10849_p4), %s9151_s14, 4294963200  ;;  %p17_p7 = scmp.ge.s32.totalorder %s11520_s27, 4   ;;  %s16174_s21 = smov %s11442_s22 }
 0x529   : > { %s16175_s22 = smov %s11446_s23  ;;  %s16176_s23 = smov %s11531_s30 }
 0x52a   : > { %s16177_s24 = smov %s11520_s27  ;;  %19 = sbr.rel (!%p17_p7) target bundleno = 4 (0x4), region = 97 }
 0x531   :  { %9156 = vsyncpa [#allocation4], 1 }
 0x532   :  { %9158 = vsyncpa [#allocation4 + $0x1], 1 }
 0x533   :  { %9159 = vsyncpa [#allocation5], 1 }
 0x534   :  { %9161 = vsyncpa [#allocation5 + $0x1], 1 }

</bundles_post_ra>
